<compile_context>
chip_gen: v7x
topology: tpu7x:2x2x1
jax: 0.10.0
libtpu: 0.0.40
codegen_flags: <defaults>
</compile_context>

<pallas_src>
import functools

import jax
import jax.numpy as jnp
import numpy as np
from jax.experimental import pallas as pl
from jax.experimental.pallas import tpu as pltpu

EPS = 1e-5   # torch.nn.InstanceNorm2d default eps (affine=False, no running stats)

# ConvTranspose2d(k=4, s=2, p=1) phase decomposition: output row 2m+py receives
# kernel row ky applied to input row m+dy (same structure for columns / px).
_PHASE_TAPS = {0: ((1, 0), (3, -1)),    # py/px = 0 -> (ky, dy) in {(1, 0), (3, -1)}
               1: ((0, 1), (2, 0))}     # py/px = 1 -> (ky, dy) in {(0,+1), (2, 0)}


def _rup(v, m):
    return ((v + m - 1) // m) * m


def _rup8(v):
    return _rup(v, 8)


def _pad2d(a, rows, cols):
    return jnp.pad(a, ((0, rows - a.shape[0]), (0, cols - a.shape[1])))


# ----------------------------------------------------------------------------
# Wrapper-side glue: matmul-ready (bf16) weights and tiny constant operators
# ----------------------------------------------------------------------------
def _conv_w_flat(w_oihw, part_cins):
    """Conv2d weight (Cout, Cin, 3, 3) -> bf16 im2col weight (rup8(Cout), 9*cpad).

    Column layout is tap-major ((dy,dx) in row-major order over the 3x3 stencil),
    then concat-part-major, each part's channels zero-padded to a multiple of 8 so
    the in-kernel sublane-stacked patch matrix stays tile-aligned."""
    cout = w_oihw.shape[0]
    cp_out = _rup8(cout)
    part_cpads = [_rup8(c) for c in part_cins]
    cols = []
    for dy in (-1, 0, 1):
        for dx in (-1, 0, 1):
            base = 0
            for clog, cpq in zip(part_cins, part_cpads):
                blk = w_oihw[:, base:base + clog, dy + 1, dx + 1]       # (Cout, clog)
                cols.append(_pad2d(blk, cp_out, cpq))
                base += clog
    return jnp.concatenate(cols, axis=1).astype(jnp.bfloat16)


def _convT_w_stacked(w_iohw, part_cins):
    """ConvTranspose2d(k=4, s=2, p=1) weight (Cin, Cout, 4, 4) -> bf16
    (4*rup8(Cout), 9*cpad): the 4 output phases (p = 2*py + px) stacked along rows,
    each expressed in the SAME shared 9-tap im2col column layout as a 3x3 conv
    (taps a phase does not use are zero columns), so one patch build + one matmul
    serves all four phases."""
    cout = w_iohw.shape[1]
    cp_out = _rup8(cout)
    part_cpads = [_rup8(c) for c in part_cins]
    ky_of = [{dy: ky for (ky, dy) in _PHASE_TAPS[ph]} for ph in (0, 1)]
    rows = []
    for py in (0, 1):
        for px in (0, 1):
            cols = []
            for dy in (-1, 0, 1):
                for dx in (-1, 0, 1):
                    base = 0
                    for clog, cpq in zip(part_cins, part_cpads):
                        if dy in ky_of[py] and dx in ky_of[px]:
                            blk = jnp.transpose(
                                w_iohw[base:base + clog, :,
                                       ky_of[py][dy], ky_of[px][dx]], (1, 0))
                            cols.append(_pad2d(blk, cp_out, cpq))
                        else:
                            cols.append(jnp.zeros((cp_out, cpq), w_iohw.dtype))
                        base += clog
            rows.append(jnp.concatenate(cols, axis=1))
    return jnp.concatenate(rows, axis=0).astype(jnp.bfloat16)


def _pool_matrix(win):
    """(2*W, W/2) bf16 operator: AvgPool2d(2) of one row-PAIR of the image."""
    w1 = win // 2
    p = np.zeros((2 * win, w1), np.float32)
    for j in range(w1):
        for dj in (0, 1):
            p[2 * j + dj, j] = 0.25
            p[win + 2 * j + dj, j] = 0.25
    return jnp.asarray(p, jnp.bfloat16)


def _interleave_matrices(w2):
    """(2, W2, 2*W2) bf16 even/odd column-scatter operators for the 2x upsample."""
    w1 = 2 * w2
    e = np.zeros((w2, w1), np.float32)
    o = np.zeros((w2, w1), np.float32)
    for j in range(w2):
        e[j, 2 * j] = 1.0
        o[j, 2 * j + 1] = 1.0
    return jnp.asarray(np.stack([e, o]), jnp.bfloat16)


def _vmem_limit_bytes():
    """Per-generation scoped VMEM limit (the kernel itself only needs ~100 KiB)."""
    try:
        cap = pltpu.get_tpu_info().vmem_capacity_bytes
        return int(min(cap * 3 // 4, 96 * 1024 * 1024))
    except Exception:
        return 48 * 1024 * 1024          # safe on v5e / v6e / v7x


# ----------------------------------------------------------------------------
# In-kernel building blocks (flattened lane-dense layout: activation = (Cpad, H*W))
# ----------------------------------------------------------------------------
def _border_zero(pad_ref, pad, hw):
    """Zero only the two zero-lane borders; the interior is always overwritten."""
    rows = pad_ref.shape[0]
    pad_ref[:, 0:pad] = jnp.zeros((rows, pad), jnp.float32)
    pad_ref[:, pad + hw:2 * pad + hw] = jnp.zeros((rows, pad), jnp.float32)


def _col_masks(hin, win):
    """Validity masks over flattened positions for the dx = -1 / +1 taps."""
    col = jax.lax.broadcasted_iota(jnp.int32, (1, hin * win), 1) % win
    return {-1: (col > 0).astype(jnp.float32),
            +1: (col < win - 1).astype(jnp.float32)}


def _im2col_mm(pad_ref, pad, cpad, w_flat, hin, win, masks):
    """One MXU matmul over the 9 shifted copies of the staged activation.

    Row overflow of a flat shift lands in the zero border; column wrap-around is
    killed with the precomputed lane masks.  The patch matrix and weights are bf16,
    accumulation is f32."""
    hw = hin * win
    xz = pad_ref[0:cpad, :]
    pieces = []
    for dy in (-1, 0, 1):
        for dx in (-1, 0, 1):
            s = dy * win + dx
            t = xz[:, pad + s:pad + s + hw]
            if dx != 0:
                t = t * masks[dx]
            pieces.append(t)
    patches = jnp.concatenate(pieces, axis=0).astype(jnp.bfloat16)   # (9*cpad, hw)
    return jnp.dot(w_flat, patches, preferred_element_type=jnp.float32)


def _conv9(pad_ref, pad, parts, w_flat, hin, win, masks):
    """Stage the channel-stacked parts and run the 9-tap im2col matmul."""
    hw = hin * win
    off = 0
    for v in parts:
        pad_ref[off:off + v.shape[0], pad:pad + hw] = v
        off += v.shape[0]
    assert w_flat.shape[1] == 9 * off, (w_flat.shape, off)
    return _im2col_mm(pad_ref, pad, off, w_flat, hin, win, masks)


def _inorm_relu(y):
    """InstanceNorm2d (affine=False, biased var, eps=1e-5) + ReLU in float32."""
    mean = jnp.mean(y, axis=1, keepdims=True)
    c = y - mean
    var = jnp.mean(c * c, axis=1, keepdims=True)
    return jnp.maximum(c * jax.lax.rsqrt(var + EPS), 0.0)


def _avgpool_to(dst_ref, x, hin, win, pw):
    """AvgPool2d(2): stack the H/2 row-pair lane slices on sublanes, one tiny
    (2W, W/2) bf16 matmul, then un-stack into the flat (Cpad, H/2*W/2) scratch."""
    cp = x.shape[0]
    h1, w1 = hin // 2, win // 2
    pieces = [x[:, (2 * i) * win:(2 * i + 2) * win] for i in range(h1)]
    stacked = jnp.concatenate(pieces, axis=0).astype(jnp.bfloat16)    # (cp*h1, 2W)
    pooled = jnp.dot(stacked, pw, preferred_element_type=jnp.float32)  # (cp*h1, W/2)
    for i in range(h1):
        dst_ref[0:cp, i * w1:(i + 1) * w1] = pooled[i * cp:(i + 1) * cp, :]


def _interleave_into(dst_ref, pad, phases, h2, w2, e_mat, o_mat):
    """Scatter the 4 ConvTranspose phases (each (Cpad, h2*w2), p = 2*py + px) into
    their interleaved 2x-upsampled positions of dst_ref rows [0:Cpad] (the upblock2
    staging interior) -- replaces the dense U1 scatter matmuls."""
    cp = phases[0].shape[0]
    h1, w1 = 2 * h2, 2 * w2
    ev, od = [], []
    for r in range(h1):
        py, m = r % 2, r // 2
        ev.append(phases[2 * py][:, m * w2:(m + 1) * w2])
        od.append(phases[2 * py + 1][:, m * w2:(m + 1) * w2])
    se = jnp.concatenate(ev, axis=0).astype(jnp.bfloat16)             # (cp*h1, w2)
    so = jnp.concatenate(od, axis=0).astype(jnp.bfloat16)
    rows = (jnp.dot(se, e_mat, preferred_element_type=jnp.float32)
            + jnp.dot(so, o_mat, preferred_element_type=jnp.float32))  # (cp*h1, w1)
    for r in range(h1):
        dst_ref[0:cp, pad + r * w1:pad + (r + 1) * w1] = rows[r * cp:(r + 1) * cp, :]


# ----------------------------------------------------------------------------
# The fused kernel: one batch element per grid step
# ----------------------------------------------------------------------------
def _unet_kernel(x_ref, c1w_ref, c2w_ref, c3w_ref, c4w_ref,
                 rw1_ref, rw2_ref, gamma_ref,
                 u1w_ref, u1b_ref, u2w_ref, u2b_ref,
                 pw1_ref, pw2_ref, eo_ref,
                 o_ref,
                 pad0, pad1, pad2, b1s, b2s,
                 *, H, W, num_res, n_qr, pads):
    H1, W1, H2, W2 = H // 2, W // 2, H // 4, W // 4
    HW0, HW1, HW2 = H * W, H1 * W1, H2 * W2
    P0, P1p, P2p = pads
    cp_red = u1b_ref.shape[0]

    # Zero only the zero-lane borders (interiors are fully overwritten by staging).
    _border_zero(pad0, P0, HW0)
    _border_zero(pad1, P1p, HW1)
    _border_zero(pad2, P2p, HW2)

    m0 = _col_masks(H, W)
    m1 = _col_masks(H1, W1)
    m2 = _col_masks(H2, W2)

    x = x_ref[0]                                                      # (cp_in, H*W)

    # block1: (Conv3x3 -> InstanceNorm -> ReLU) x 2, then AvgPool2d(2).
    # (Conv biases omitted: InstanceNorm subtracts them exactly.)
    h = _inorm_relu(_conv9(pad0, P0, [x], c1w_ref[...], H, W, m0))
    h = _inorm_relu(_conv9(pad0, P0, [h], c2w_ref[...], H, W, m0))
    _avgpool_to(b1s, h, H, W, pw1_ref[...])
    b1 = b1s[...]                                                     # (cp_red, HW1)

    # block2
    h = _inorm_relu(_conv9(pad1, P1p, [b1], c3w_ref[...], H1, W1, m1))
    h = _inorm_relu(_conv9(pad1, P1p, [h], c4w_ref[...], H1, W1, m1))
    _avgpool_to(b2s, h, H1, W1, pw2_ref[...])
    b2 = b2s[...]                                                     # (cp_c2, HW2)

    # residual stack (f32 accumulation; the 1x1 projection runs on the VPU as
    # n_qr broadcast FMAs instead of a K=n_qr MXU matmul), then relu(gamma * x).
    h = b2
    for i in range(num_res):
        r = _conv9(pad2, P2p, [jnp.maximum(h, 0.0)], rw1_ref[i], H2, W2, m2)
        r = jnp.maximum(r, 0.0)                                       # (cp_qr, HW2)
        w2c = rw2_ref[i]                                              # (cp_c2, n_qr)
        for k in range(n_qr):
            h = h + w2c[:, k:k + 1] * r[k:k + 1, :]
    h = jnp.maximum(gamma_ref[...] * h, 0.0)

    # upblock1 on cat([h, b2]): ONE matmul over the shared 9-tap patch gives all 4
    # phases; bias + ReLU per phase; the 2x interleave goes straight into the
    # upblock2 staging scratch (no dense upsample operator).
    y = _conv9(pad2, P2p, [h, b2], u1w_ref[...], H2, W2, m2)          # (4*cp_red, HW2)
    u1b = u1b_ref[...]
    phases = [jnp.maximum(y[p * cp_red:(p + 1) * cp_red, :] + u1b, 0.0)
              for p in range(4)]
    _interleave_into(pad1, P1p, phases, H2, W2, eo_ref[0], eo_ref[1])
    pad1[cp_red:2 * cp_red, P1p:P1p + HW1] = b1                       # cat([up1, b1])

    # upblock2: one matmul over the 9-tap patch of pad1 rows [0:2*cp_red]; phases
    # stay row-stacked -> a single unmasked lane-dense store (interleave in wrapper).
    assert u2w_ref.shape[1] == 9 * 2 * cp_red
    y2 = _im2col_mm(pad1, P1p, 2 * cp_red, u2w_ref[...], H1, W1, m1)  # (4*cp_out, HW1)
    o_ref[0] = y2 + u2b_ref[...]


# ----------------------------------------------------------------------------
# Wrapper
# ----------------------------------------------------------------------------
def simple_unet_forward(x_nchw, params):
    """SimpleUnet forward.  x_nchw: (N, Cin, H, W) float32 (PyTorch layout)."""
    N, Cin, H, W = x_nchw.shape
    assert H % 4 == 0 and W % 4 == 0
    red = Cin // 2
    c2 = red * 2
    qr = c2 // 4
    Cout = params["up2_w"].shape[1]
    num_res = len(params["res"])
    H1, W1, H2, W2 = H // 2, W // 2, H // 4, W // 4
    HW0, HW1, HW2 = H * W, H1 * W1, H2 * W2

    cp_in, cp_red, cp_c2 = _rup8(Cin), _rup8(red), _rup8(c2)
    cp_out = _rup8(Cout)

    # zero-lane border per resolution: multiple of 128 and always >= W + 1 so the
    # dy=+-1 tap shifts can never escape the border.
    P0 = max(128, _rup(W + 1, 128))
    P1p = max(128, _rup(W1 + 1, 128))
    P2p = max(128, _rup(W2 + 1, 128))
    assert W + 1 <= P0 and W1 + 1 <= P1p and W2 + 1 <= P2p

    # matmul-ready bf16 weights / tiny constant operators (built by XLA per call)
    c1w = _conv_w_flat(params["c1_w"], [Cin])
    c2w = _conv_w_flat(params["c2_w"], [red])
    c3w = _conv_w_flat(params["c3_w"], [red])
    c4w = _conv_w_flat(params["c4_w"], [red])
    rw1 = jnp.stack([_conv_w_flat(w1, [c2]) for (w1, _) in params["res"]])
    rw2 = jnp.stack([jnp.pad(w2[:, :, 0, 0], ((0, cp_c2 - c2), (0, 0)))
                     for (_, w2) in params["res"]])                   # f32 (VPU FMA)
    gamma = jnp.pad(params["gamma"].reshape(c2, 1), ((0, cp_c2 - c2), (0, 0)))
    u1w = _convT_w_stacked(params["up1_w"], [c2, c2])       # (4*cp_red, 9*2*cp_c2)
    u2w = _convT_w_stacked(params["up2_w"], [red, red])     # (4*cp_out, 9*2*cp_red)
    u1b = jnp.pad(params["up1_b"].reshape(red, 1), ((0, cp_red - red), (0, 0)))
    u2b = jnp.tile(jnp.pad(params["up2_b"].reshape(Cout, 1),
                           ((0, cp_out - Cout), (0, 0))), (4, 1))     # (4*cp_out, 1)
    pw1 = _pool_matrix(W)
    pw2 = _pool_matrix(W1)
    eo = _interleave_matrices(W2)

    x_p = jnp.pad(x_nchw.reshape(N, Cin, HW0), ((0, 0), (0, cp_in - Cin), (0, 0)))

    rows0 = max(cp_in, cp_red)
    rows1 = 2 * cp_red
    rows2 = 2 * cp_c2

    def _const(a):
        return pl.BlockSpec(a.shape, lambda n, nd=a.ndim: (0,) * nd)

    kern = functools.partial(_unet_kernel, H=H, W=W, num_res=num_res, n_qr=qr,
                             pads=(P0, P1p, P2p))
    out = pl.pallas_call(
        kern,
        out_shape=jax.ShapeDtypeStruct((N, 4 * cp_out, HW1), jnp.float32),
        grid=(N,),
        in_specs=[
            pl.BlockSpec((1, cp_in, HW0), lambda n: (n, 0, 0)),
            _const(c1w), _const(c2w), _const(c3w), _const(c4w),
            _const(rw1), _const(rw2), _const(gamma),
            _const(u1w), _const(u1b), _const(u2w), _const(u2b),
            _const(pw1), _const(pw2), _const(eo),
        ],
        out_specs=pl.BlockSpec((1, 4 * cp_out, HW1), lambda n: (n, 0, 0)),
        scratch_shapes=[
            pltpu.VMEM((rows0, HW0 + 2 * P0), jnp.float32),
            pltpu.VMEM((rows1, HW1 + 2 * P1p), jnp.float32),
            pltpu.VMEM((rows2, HW2 + 2 * P2p), jnp.float32),
            pltpu.VMEM((cp_red, HW1), jnp.float32),   # b1 (skip connection)
            pltpu.VMEM((cp_c2, HW2), jnp.float32),    # b2 (skip connection)
        ],
        compiler_params=pltpu.CompilerParams(
            dimension_semantics=("parallel",),        # v7x: one image per TensorCore
            vmem_limit_bytes=_vmem_limit_bytes(),
        ),
    )(x_p, c1w, c2w, c3w, c4w, rw1, rw2, gamma, u1w, u1b, u2w, u2b, pw1, pw2, eo)

    # glue: interleave upblock2's 4 phase-separated outputs -> (N, Cout, H, W)
    out = out.reshape(N, 2, 2, cp_out, H1, W1)[:, :, :, :Cout]
    out = jnp.transpose(out, (0, 3, 4, 1, 5, 2)).reshape(N, Cout, H, W)
    return out


# ----------------------------------------------------------------------------
# Synthetic parameters (PyTorch layouts) and a pure-JAX reference for validation
# ----------------------------------------------------------------------------
def init_params(key, in_channels, out_channels, num_residual_layers):
    """Synthetic parameters in PyTorch layouts.  block1/block2 conv biases are
    omitted: each conv is followed by InstanceNorm2d(affine=False), which subtracts
    the per-channel mean, so those biases have exactly no effect on the output."""
    red = in_channels // 2
    c2 = red * 2
    keys = iter(jax.random.split(key, 8 + 2 * num_residual_layers))

    def w(shape, scale=0.1):
        return scale * jax.random.normal(next(keys), shape, dtype=jnp.float32)

    return {
        "c1_w": w((red, in_channels, 3, 3)),
        "c2_w": w((red, red, 3, 3)),
        "c3_w": w((red, red, 3, 3)),
        "c4_w": w((c2, red, 3, 3)),
        "res": [(w((c2 // 4, c2, 3, 3)), w((c2, c2 // 4, 1, 1)))
                for _ in range(num_residual_layers)],
        # PyTorch initializes gamma to 1e-6; 0.1 here so the residual branch
        # contributes measurably in the numerical check below.
        "gamma": 0.1 * jnp.ones((1, c2, 1, 1), jnp.float32),
        "up1_w": w((red * 4, red, 4, 4)),        # ConvTranspose2d (Cin, Cout, kh, kw)
        "up1_b": w((red,), 0.01),
        "up2_w": w((red * 2, out_channels, 4, 4)),
        "up2_b": w((out_channels,), 0.01),
    }


def reference_forward(x, params):
    """Pure-JAX (XLA) reference of the same SimpleUnet forward, NCHW."""
    prec = jax.lax.Precision.HIGHEST

    def conv(y, w, pad):
        return jax.lax.conv_general_dilated(
            y, w, (1, 1), ((pad, pad), (pad, pad)),
            dimension_numbers=("NCHW", "OIHW", "NCHW"), precision=prec)

    def in_relu(y):
        m = y.mean((2, 3), keepdims=True)
        v = ((y - m) ** 2).mean((2, 3), keepdims=True)
        return jnp.maximum((y - m) * jax.lax.rsqrt(v + EPS), 0.0)

    def pool(y):
        n, c, h, w = y.shape
        return y.reshape(n, c, h // 2, 2, w // 2, 2).mean((3, 5))

    def convT(y, w, b):          # ConvTranspose2d(k=4, s=2, p=1)
        wf = jnp.transpose(jnp.flip(w, (2, 3)), (1, 0, 2, 3))
        o = jax.lax.conv_general_dilated(
            y, wf, (1, 1), ((2, 2), (2, 2)), lhs_dilation=(2, 2),
            dimension_numbers=("NCHW", "OIHW", "NCHW"), precision=prec)
        return o + b.reshape(1, -1, 1, 1)

    h = in_relu(conv(x, params["c1_w"], 1))
    h = in_relu(conv(h, params["c2_w"], 1))
    b1 = pool(h)
    h = in_relu(conv(b1, params["c3_w"], 1))
    h = in_relu(conv(h, params["c4_w"], 1))
    b2 = pool(h)
    h = b2
    for w1, w2 in params["res"]:
        r = conv(jnp.maximum(h, 0.0), w1, 1)
        r = conv(jnp.maximum(r, 0.0), w2, 0)
        h = h + r
    h = jnp.maximum(params["gamma"] * h, 0.0)
    h = jnp.maximum(convT(jnp.concatenate([h, b2], 1),
                          params["up1_w"], params["up1_b"]), 0.0)
    return convT(jnp.concatenate([h, b1], 1), params["up2_w"], params["up2_b"])


if __name__ == "__main__":
    key = jax.random.PRNGKey(0)
    kx, kp = jax.random.split(key)

    N, Cin, H, W = 2, 8, 32, 32             # PyTorch-style NCHW input
    Cout, num_res = 3, 2

    x = jax.random.normal(kx, (N, Cin, H, W), dtype=jnp.float32)
    params = init_params(kp, Cin, Cout, num_res)

    fwd = jax.jit(simple_unet_forward)
    y = jax.block_until_ready(fwd(x, params))
    assert y.shape == (N, Cout, H, W), y.shape
    assert bool(jnp.all(jnp.isfinite(y)))

    # numerical check against the pure-JAX/XLA reference (kernel uses bf16 MXU
    # operands with f32 accumulation, so a few-percent tolerance is expected)
    y_ref = jax.jit(reference_forward)(x, params)
    err = float(jnp.max(jnp.abs(y - y_ref)))
    tol = 5e-2 * (1.0 + float(jnp.max(jnp.abs(y_ref))))
    assert err < tol, f"max abs err {err} exceeds tol {tol}"

    print("KERNEL_OK")
</pallas_src>

<mosaic_0001>
module attributes {stable_mosaic.version = 11 : i64} {
  func.func @_unet_kernel(%arg0: i32, %arg1: memref<1x8x1024xf32, #tpu.memory_space<vmem>>, %arg2: memref<8x72xbf16, #tpu.memory_space<vmem>>, %arg3: memref<8x72xbf16, #tpu.memory_space<vmem>>, %arg4: memref<8x72xbf16, #tpu.memory_space<vmem>>, %arg5: memref<8x72xbf16, #tpu.memory_space<vmem>>, %arg6: memref<2x8x72xbf16, #tpu.memory_space<vmem>>, %arg7: memref<2x8x2xf32, #tpu.memory_space<vmem>>, %arg8: memref<8x1xf32, #tpu.memory_space<vmem>>, %arg9: memref<32x144xbf16, #tpu.memory_space<vmem>>, %arg10: memref<8x1xf32, #tpu.memory_space<vmem>>, %arg11: memref<32x144xbf16, #tpu.memory_space<vmem>>, %arg12: memref<32x1xf32, #tpu.memory_space<vmem>>, %arg13: memref<64x16xbf16, #tpu.memory_space<vmem>>, %arg14: memref<32x8xbf16, #tpu.memory_space<vmem>>, %arg15: memref<2x8x16xbf16, #tpu.memory_space<vmem>>, %arg16: memref<1x32x256xf32, #tpu.memory_space<vmem>>, %arg17: memref<8x1280xf32, #tpu.memory_space<vmem>>, %arg18: memref<16x512xf32, #tpu.memory_space<vmem>>, %arg19: memref<16x320xf32, #tpu.memory_space<vmem>>, %arg20: memref<8x256xf32, #tpu.memory_space<vmem>>, %arg21: memref<8x64xf32, #tpu.memory_space<vmem>>) attributes {dimension_semantics = [#tpu.dimension_semantics<parallel>], iteration_bounds = array<i64: 2>, scalar_prefetch = 0 : i64, scratch_operands = 5 : i64, tpu.core_type = #tpu.core_type<tc>, window_params = [{transform_indices = @transform_0, window_bounds = array<i64: 1, 8, 1024>}, {pipeline_mode = #tpu.pipeline_mode<synchronous>, transform_indices = @transform_1, window_bounds = array<i64: 8, 72>}, {pipeline_mode = #tpu.pipeline_mode<synchronous>, transform_indices = @transform_2, window_bounds = array<i64: 8, 72>}, {pipeline_mode = #tpu.pipeline_mode<synchronous>, transform_indices = @transform_3, window_bounds = array<i64: 8, 72>}, {pipeline_mode = #tpu.pipeline_mode<synchronous>, transform_indices = @transform_4, window_bounds = array<i64: 8, 72>}, {pipeline_mode = #tpu.pipeline_mode<synchronous>, transform_indices = @transform_5, window_bounds = array<i64: 2, 8, 72>}, {pipeline_mode = #tpu.pipeline_mode<synchronous>, transform_indices = @transform_6, window_bounds = array<i64: 2, 8, 2>}, {pipeline_mode = #tpu.pipeline_mode<synchronous>, transform_indices = @transform_7, window_bounds = array<i64: 8, 1>}, {pipeline_mode = #tpu.pipeline_mode<synchronous>, transform_indices = @transform_8, window_bounds = array<i64: 32, 144>}, {pipeline_mode = #tpu.pipeline_mode<synchronous>, transform_indices = @transform_9, window_bounds = array<i64: 8, 1>}, {pipeline_mode = #tpu.pipeline_mode<synchronous>, transform_indices = @transform_10, window_bounds = array<i64: 32, 144>}, {pipeline_mode = #tpu.pipeline_mode<synchronous>, transform_indices = @transform_11, window_bounds = array<i64: 32, 1>}, {pipeline_mode = #tpu.pipeline_mode<synchronous>, transform_indices = @transform_12, window_bounds = array<i64: 64, 16>}, {pipeline_mode = #tpu.pipeline_mode<synchronous>, transform_indices = @transform_13, window_bounds = array<i64: 32, 8>}, {pipeline_mode = #tpu.pipeline_mode<synchronous>, transform_indices = @transform_14, window_bounds = array<i64: 2, 8, 16>}, {transform_indices = @transform_15, window_bounds = array<i64: 1, 32, 256>}]} {
    %cst = arith.constant 0.000000e+00 : f32
    %0 = vector.broadcast %cst : f32 to vector<8x128xf32>
    %c0 = arith.constant 0 : index
    %c0_0 = arith.constant 0 : index
    %1 = vector.load %arg17[%c0, %c0_0] : memref<8x1280xf32, #tpu.memory_space<vmem>>, vector<8x128xf32>
    tpu.vector_store %arg17[%c0, %c0_0], %0 {strides = array<i32>} : memref<8x1280xf32, #tpu.memory_space<vmem>>, vector<8x128xf32>,
    %cst_1 = arith.constant 0.000000e+00 : f32
    %2 = vector.broadcast %cst_1 : f32 to vector<8x128xf32>
    %c0_2 = arith.constant 0 : index
    %c1152 = arith.constant 1152 : index
    %3 = vector.load %arg17[%c0_2, %c1152] : memref<8x1280xf32, #tpu.memory_space<vmem>>, vector<8x128xf32>
    tpu.vector_store %arg17[%c0_2, %c1152], %2 {strides = array<i32>} : memref<8x1280xf32, #tpu.memory_space<vmem>>, vector<8x128xf32>,
    %cst_3 = arith.constant 0.000000e+00 : f32
    %4 = vector.broadcast %cst_3 : f32 to vector<16x128xf32>
    %c0_4 = arith.constant 0 : index
    %c0_5 = arith.constant 0 : index
    %5 = vector.load %arg18[%c0_4, %c0_5] : memref<16x512xf32, #tpu.memory_space<vmem>>, vector<16x128xf32>
    tpu.vector_store %arg18[%c0_4, %c0_5], %4 {strides = array<i32>} : memref<16x512xf32, #tpu.memory_space<vmem>>, vector<16x128xf32>,
    %cst_6 = arith.constant 0.000000e+00 : f32
    %6 = vector.broadcast %cst_6 : f32 to vector<16x128xf32>
    %c0_7 = arith.constant 0 : index
    %c384 = arith.constant 384 : index
    %7 = vector.load %arg18[%c0_7, %c384] : memref<16x512xf32, #tpu.memory_space<vmem>>, vector<16x128xf32>
    tpu.vector_store %arg18[%c0_7, %c384], %6 {strides = array<i32>} : memref<16x512xf32, #tpu.memory_space<vmem>>, vector<16x128xf32>,
    %cst_8 = arith.constant 0.000000e+00 : f32
    %8 = vector.broadcast %cst_8 : f32 to vector<16x128xf32>
    %c0_9 = arith.constant 0 : index
    %c0_10 = arith.constant 0 : index
    %9 = vector.load %arg19[%c0_9, %c0_10] : memref<16x320xf32, #tpu.memory_space<vmem>>, vector<16x128xf32>
    tpu.vector_store %arg19[%c0_9, %c0_10], %8 {strides = array<i32>} : memref<16x320xf32, #tpu.memory_space<vmem>>, vector<16x128xf32>,
    %cst_11 = arith.constant 0.000000e+00 : f32
    %10 = vector.broadcast %cst_11 : f32 to vector<16x128xf32>
    %c0_12 = arith.constant 0 : index
    %c192 = arith.constant 192 : index
    %11 = vector.load %arg19[%c0_12, %c192] : memref<16x320xf32, #tpu.memory_space<vmem>>, vector<16x128xf32>
    tpu.vector_store %arg19[%c0_12, %c192], %10 {strides = array<i32>} : memref<16x320xf32, #tpu.memory_space<vmem>>, vector<16x128xf32>,
    %12 = tpu.iota {dimensions = array<i32: 1>} : vector<1x1024xi32>
    %c32_i32 = arith.constant 32 : i32
    %c0_i32 = arith.constant 0 : i32
    %13 = arith.cmpi eq, %c32_i32, %c0_i32 : i32
    %c1_i32 = arith.constant 1 : i32
    %14 = arith.select %13, %c1_i32, %c32_i32 : i32
    %15 = vector.broadcast %14 : i32 to vector<1x1024xi32>
    %16 = arith.remsi %12, %15 : vector<1x1024xi32>
    %c0_i32_13 = arith.constant 0 : i32
    %17 = vector.broadcast %c0_i32_13 : i32 to vector<1x1024xi32>
    %18 = arith.cmpi ne, %16, %17 : vector<1x1024xi32>
    %c0_i32_14 = arith.constant 0 : i32
    %19 = vector.broadcast %c0_i32_14 : i32 to vector<1x1024xi32>
    %20 = arith.cmpi slt, %16, %19 : vector<1x1024xi32>
    %c0_i32_15 = arith.constant 0 : i32
    %21 = arith.cmpi slt, %14, %c0_i32_15 : i32
    %22 = vector.broadcast %21 : i1 to vector<1x1024xi1>
    %23 = vector.broadcast %22 : vector<1x1024xi1> to vector<1x1024xi1>
    %24 = arith.xori %20, %23 : vector<1x1024xi1>
    %25 = arith.andi %24, %18 : vector<1x1024xi1>
    %26 = vector.broadcast %14 : i32 to vector<1x1024xi32>
    %27 = arith.addi %16, %26 : vector<1x1024xi32>
    %28 = arith.select %25, %27, %16 : vector<1x1024xi1>, vector<1x1024xi32>
    %c0_i32_16 = arith.constant 0 : i32
    %29 = vector.broadcast %c0_i32_16 : i32 to vector<1x1024xi32>
    %30 = arith.cmpi sgt, %28, %29 : vector<1x1024xi32>
    %31 = arith.extui %30 : vector<1x1024xi1> to vector<1x1024xi32>
    %32 = arith.sitofp %31 : vector<1x1024xi32> to vector<1x1024xf32>
    %c31_i32 = arith.constant 31 : i32
    %33 = vector.broadcast %c31_i32 : i32 to vector<1x1024xi32>
    %34 = arith.cmpi slt, %28, %33 : vector<1x1024xi32>
    %35 = arith.extui %34 : vector<1x1024xi1> to vector<1x1024xi32>
    %36 = arith.sitofp %35 : vector<1x1024xi32> to vector<1x1024xf32>
    %37 = tpu.iota {dimensions = array<i32: 1>} : vector<1x256xi32>
    %c16_i32 = arith.constant 16 : i32
    %c0_i32_17 = arith.constant 0 : i32
    %38 = arith.cmpi eq, %c16_i32, %c0_i32_17 : i32
    %c1_i32_18 = arith.constant 1 : i32
    %39 = arith.select %38, %c1_i32_18, %c16_i32 : i32
    %40 = vector.broadcast %39 : i32 to vector<1x256xi32>
    %41 = arith.remsi %37, %40 : vector<1x256xi32>
    %c0_i32_19 = arith.constant 0 : i32
    %42 = vector.broadcast %c0_i32_19 : i32 to vector<1x256xi32>
    %43 = arith.cmpi ne, %41, %42 : vector<1x256xi32>
    %c0_i32_20 = arith.constant 0 : i32
    %44 = vector.broadcast %c0_i32_20 : i32 to vector<1x256xi32>
    %45 = arith.cmpi slt, %41, %44 : vector<1x256xi32>
    %c0_i32_21 = arith.constant 0 : i32
    %46 = arith.cmpi slt, %39, %c0_i32_21 : i32
    %47 = vector.broadcast %46 : i1 to vector<1x256xi1>
    %48 = vector.broadcast %47 : vector<1x256xi1> to vector<1x256xi1>
    %49 = arith.xori %45, %48 : vector<1x256xi1>
    %50 = arith.andi %49, %43 : vector<1x256xi1>
    %51 = vector.broadcast %39 : i32 to vector<1x256xi32>
    %52 = arith.addi %41, %51 : vector<1x256xi32>
    %53 = arith.select %50, %52, %41 : vector<1x256xi1>, vector<1x256xi32>
    %c0_i32_22 = arith.constant 0 : i32
    %54 = vector.broadcast %c0_i32_22 : i32 to vector<1x256xi32>
    %55 = arith.cmpi sgt, %53, %54 : vector<1x256xi32>
    %56 = arith.extui %55 : vector<1x256xi1> to vector<1x256xi32>
    %57 = arith.sitofp %56 : vector<1x256xi32> to vector<1x256xf32>
    %c15_i32 = arith.constant 15 : i32
    %58 = vector.broadcast %c15_i32 : i32 to vector<1x256xi32>
    %59 = arith.cmpi slt, %53, %58 : vector<1x256xi32>
    %60 = arith.extui %59 : vector<1x256xi1> to vector<1x256xi32>
    %61 = arith.sitofp %60 : vector<1x256xi32> to vector<1x256xf32>
    %62 = tpu.iota {dimensions = array<i32: 1>} : vector<1x64xi32>
    %c8_i32 = arith.constant 8 : i32
    %c0_i32_23 = arith.constant 0 : i32
    %63 = arith.cmpi eq, %c8_i32, %c0_i32_23 : i32
    %c1_i32_24 = arith.constant 1 : i32
    %64 = arith.select %63, %c1_i32_24, %c8_i32 : i32
    %65 = vector.broadcast %64 : i32 to vector<1x64xi32>
    %66 = arith.remsi %62, %65 : vector<1x64xi32>
    %c0_i32_25 = arith.constant 0 : i32
    %67 = vector.broadcast %c0_i32_25 : i32 to vector<1x64xi32>
    %68 = arith.cmpi ne, %66, %67 : vector<1x64xi32>
    %c0_i32_26 = arith.constant 0 : i32
    %69 = vector.broadcast %c0_i32_26 : i32 to vector<1x64xi32>
    %70 = arith.cmpi slt, %66, %69 : vector<1x64xi32>
    %c0_i32_27 = arith.constant 0 : i32
    %71 = arith.cmpi slt, %64, %c0_i32_27 : i32
    %72 = vector.broadcast %71 : i1 to vector<1x64xi1>
    %73 = vector.broadcast %72 : vector<1x64xi1> to vector<1x64xi1>
    %74 = arith.xori %70, %73 : vector<1x64xi1>
    %75 = arith.andi %74, %68 : vector<1x64xi1>
    %76 = vector.broadcast %64 : i32 to vector<1x64xi32>
    %77 = arith.addi %66, %76 : vector<1x64xi32>
    %78 = arith.select %75, %77, %66 : vector<1x64xi1>, vector<1x64xi32>
    %c0_i32_28 = arith.constant 0 : i32
    %79 = vector.broadcast %c0_i32_28 : i32 to vector<1x64xi32>
    %80 = arith.cmpi sgt, %78, %79 : vector<1x64xi32>
    %81 = arith.extui %80 : vector<1x64xi1> to vector<1x64xi32>
    %82 = arith.sitofp %81 : vector<1x64xi32> to vector<1x64xf32>
    %c7_i32 = arith.constant 7 : i32
    %83 = vector.broadcast %c7_i32 : i32 to vector<1x64xi32>
    %84 = arith.cmpi slt, %78, %83 : vector<1x64xi32>
    %85 = arith.extui %84 : vector<1x64xi1> to vector<1x64xi32>
    %86 = arith.sitofp %85 : vector<1x64xi32> to vector<1x64xf32>
    %c0_29 = arith.constant 0 : index
    %c0_30 = arith.constant 0 : index
    %c0_31 = arith.constant 0 : index
    %87 = vector.load %arg1[%c0_29, %c0_30, %c0_31] : memref<1x8x1024xf32, #tpu.memory_space<vmem>>, vector<1x8x1024xf32>
    %88 = vector.shape_cast %87 : vector<1x8x1024xf32> to vector<8x1024xf32>
    %c0_32 = arith.constant 0 : index
    %c0_33 = arith.constant 0 : index
    %89 = vector.load %arg2[%c0_32, %c0_33] : memref<8x72xbf16, #tpu.memory_space<vmem>>, vector<8x72xbf16>
    %c0_34 = arith.constant 0 : index
    %c128 = arith.constant 128 : index
    %90 = vector.load %arg17[%c0_34, %c128] : memref<8x1280xf32, #tpu.memory_space<vmem>>, vector<8x1024xf32>
    tpu.vector_store %arg17[%c0_34, %c128], %88 {strides = array<i32>} : memref<8x1280xf32, #tpu.memory_space<vmem>>, vector<8x1024xf32>,
    %c0_35 = arith.constant 0 : index
    %c0_36 = arith.constant 0 : index
    %91 = vector.load %arg17[%c0_35, %c0_36] : memref<8x1280xf32, #tpu.memory_space<vmem>>, vector<8x1280xf32>
    %92 = vector.extract_strided_slice %91 {offsets = [0, 95], sizes = [8, 1024], strides = [1, 1]} : vector<8x1280xf32> to vector<8x1024xf32>
    %93 = vector.broadcast %32 : vector<1x1024xf32> to vector<8x1024xf32>
    %94 = arith.mulf %92, %93 : vector<8x1024xf32>
    %95 = vector.extract_strided_slice %91 {offsets = [0, 96], sizes = [8, 1024], strides = [1, 1]} : vector<8x1280xf32> to vector<8x1024xf32>
    %96 = vector.extract_strided_slice %91 {offsets = [0, 97], sizes = [8, 1024], strides = [1, 1]} : vector<8x1280xf32> to vector<8x1024xf32>
    %97 = vector.broadcast %36 : vector<1x1024xf32> to vector<8x1024xf32>
    %98 = arith.mulf %96, %97 : vector<8x1024xf32>
    %99 = vector.extract_strided_slice %91 {offsets = [0, 127], sizes = [8, 1024], strides = [1, 1]} : vector<8x1280xf32> to vector<8x1024xf32>
    %100 = vector.broadcast %32 : vector<1x1024xf32> to vector<8x1024xf32>
    %101 = arith.mulf %99, %100 : vector<8x1024xf32>
    %102 = vector.extract_strided_slice %91 {offsets = [0, 128], sizes = [8, 1024], strides = [1, 1]} : vector<8x1280xf32> to vector<8x1024xf32>
    %103 = vector.extract_strided_slice %91 {offsets = [0, 129], sizes = [8, 1024], strides = [1, 1]} : vector<8x1280xf32> to vector<8x1024xf32>
    %104 = vector.broadcast %36 : vector<1x1024xf32> to vector<8x1024xf32>
    %105 = arith.mulf %103, %104 : vector<8x1024xf32>
    %106 = vector.extract_strided_slice %91 {offsets = [0, 159], sizes = [8, 1024], strides = [1, 1]} : vector<8x1280xf32> to vector<8x1024xf32>
    %107 = vector.broadcast %32 : vector<1x1024xf32> to vector<8x1024xf32>
    %108 = arith.mulf %106, %107 : vector<8x1024xf32>
    %109 = vector.extract_strided_slice %91 {offsets = [0, 160], sizes = [8, 1024], strides = [1, 1]} : vector<8x1280xf32> to vector<8x1024xf32>
    %110 = vector.extract_strided_slice %91 {offsets = [0, 161], sizes = [8, 1024], strides = [1, 1]} : vector<8x1280xf32> to vector<8x1024xf32>
    %111 = vector.broadcast %36 : vector<1x1024xf32> to vector<8x1024xf32>
    %112 = arith.mulf %110, %111 : vector<8x1024xf32>
    %113 = tpu.concatenate %94, %95, %98, %101, %102, %105, %108, %109, %112 in 0 : vector<8x1024xf32>, vector<8x1024xf32>, vector<8x1024xf32>, vector<8x1024xf32>, vector<8x1024xf32>, vector<8x1024xf32>, vector<8x1024xf32>, vector<8x1024xf32>, vector<8x1024xf32> -> vector<72x1024xf32>
    %114 = arith.truncf %113 : vector<72x1024xf32> to vector<72x1024xbf16>
    %cst_37 = arith.constant dense<0.000000e+00> : vector<8x1024xf32>
    %115 = tpu.matmul %89, %114, %cst_37 {dimension_numbers = #tpu.dot_dimension_numbers<[1], [0], [0], [1], [0, 0, 1, 1], [], []>} : vector<8x72xbf16>, vector<72x1024xbf16>, vector<8x1024xf32> -> vector<8x1024xf32>
    %cst_38 = arith.constant dense<0.000000e+00> : vector<8xf32>
    %116 = vector.multi_reduction <add>, %115, %cst_38 [1] : vector<8x1024xf32> to vector<8xf32>
    %117 = vector.shape_cast %116 : vector<8xf32> to vector<8x1xf32>
    %cst_39 = arith.constant 1.024000e+03 : f32
    %118 = vector.broadcast %cst_39 : f32 to vector<8x1xf32>
    %119 = arith.divf %117, %118 : vector<8x1xf32>
    %120 = vector.broadcast %119 : vector<8x1xf32> to vector<8x1024xf32>
    %121 = arith.subf %115, %120 : vector<8x1024xf32>
    %122 = arith.mulf %121, %121 : vector<8x1024xf32>
    %cst_40 = arith.constant dense<0.000000e+00> : vector<8xf32>
    %123 = vector.multi_reduction <add>, %122, %cst_40 [1] : vector<8x1024xf32> to vector<8xf32>
    %124 = vector.shape_cast %123 : vector<8xf32> to vector<8x1xf32>
    %cst_41 = arith.constant 1.024000e+03 : f32
    %125 = vector.broadcast %cst_41 : f32 to vector<8x1xf32>
    %126 = arith.divf %124, %125 : vector<8x1xf32>
    %cst_42 = arith.constant 9.99999974E-6 : f32
    %127 = vector.broadcast %cst_42 : f32 to vector<8x1xf32>
    %128 = arith.addf %126, %127 : vector<8x1xf32>
    %129 = math.rsqrt %128 : vector<8x1xf32>
    %130 = vector.broadcast %129 : vector<8x1xf32> to vector<8x1024xf32>
    %131 = arith.mulf %121, %130 : vector<8x1024xf32>
    %cst_43 = arith.constant 0.000000e+00 : f32
    %132 = vector.broadcast %cst_43 : f32 to vector<8x1024xf32>
    %133 = arith.maximumf %131, %132 : vector<8x1024xf32>
    %c0_44 = arith.constant 0 : index
    %c0_45 = arith.constant 0 : index
    %134 = vector.load %arg3[%c0_44, %c0_45] : memref<8x72xbf16, #tpu.memory_space<vmem>>, vector<8x72xbf16>
    %c0_46 = arith.constant 0 : index
    %c128_47 = arith.constant 128 : index
    %135 = vector.load %arg17[%c0_46, %c128_47] : memref<8x1280xf32, #tpu.memory_space<vmem>>, vector<8x1024xf32>
    tpu.vector_store %arg17[%c0_46, %c128_47], %133 {strides = array<i32>} : memref<8x1280xf32, #tpu.memory_space<vmem>>, vector<8x1024xf32>,
    %c0_48 = arith.constant 0 : index
    %c0_49 = arith.constant 0 : index
    %136 = vector.load %arg17[%c0_48, %c0_49] : memref<8x1280xf32, #tpu.memory_space<vmem>>, vector<8x1280xf32>
    %137 = vector.extract_strided_slice %136 {offsets = [0, 95], sizes = [8, 1024], strides = [1, 1]} : vector<8x1280xf32> to vector<8x1024xf32>
    %138 = vector.broadcast %32 : vector<1x1024xf32> to vector<8x1024xf32>
    %139 = arith.mulf %137, %138 : vector<8x1024xf32>
    %140 = vector.extract_strided_slice %136 {offsets = [0, 96], sizes = [8, 1024], strides = [1, 1]} : vector<8x1280xf32> to vector<8x1024xf32>
    %141 = vector.extract_strided_slice %136 {offsets = [0, 97], sizes = [8, 1024], strides = [1, 1]} : vector<8x1280xf32> to vector<8x1024xf32>
    %142 = vector.broadcast %36 : vector<1x1024xf32> to vector<8x1024xf32>
    %143 = arith.mulf %141, %142 : vector<8x1024xf32>
    %144 = vector.extract_strided_slice %136 {offsets = [0, 127], sizes = [8, 1024], strides = [1, 1]} : vector<8x1280xf32> to vector<8x1024xf32>
    %145 = vector.broadcast %32 : vector<1x1024xf32> to vector<8x1024xf32>
    %146 = arith.mulf %144, %145 : vector<8x1024xf32>
    %147 = vector.extract_strided_slice %136 {offsets = [0, 128], sizes = [8, 1024], strides = [1, 1]} : vector<8x1280xf32> to vector<8x1024xf32>
    %148 = vector.extract_strided_slice %136 {offsets = [0, 129], sizes = [8, 1024], strides = [1, 1]} : vector<8x1280xf32> to vector<8x1024xf32>
    %149 = vector.broadcast %36 : vector<1x1024xf32> to vector<8x1024xf32>
    %150 = arith.mulf %148, %149 : vector<8x1024xf32>
    %151 = vector.extract_strided_slice %136 {offsets = [0, 159], sizes = [8, 1024], strides = [1, 1]} : vector<8x1280xf32> to vector<8x1024xf32>
    %152 = vector.broadcast %32 : vector<1x1024xf32> to vector<8x1024xf32>
    %153 = arith.mulf %151, %152 : vector<8x1024xf32>
    %154 = vector.extract_strided_slice %136 {offsets = [0, 160], sizes = [8, 1024], strides = [1, 1]} : vector<8x1280xf32> to vector<8x1024xf32>
    %155 = vector.extract_strided_slice %136 {offsets = [0, 161], sizes = [8, 1024], strides = [1, 1]} : vector<8x1280xf32> to vector<8x1024xf32>
    %156 = vector.broadcast %36 : vector<1x1024xf32> to vector<8x1024xf32>
    %157 = arith.mulf %155, %156 : vector<8x1024xf32>
    %158 = tpu.concatenate %139, %140, %143, %146, %147, %150, %153, %154, %157 in 0 : vector<8x1024xf32>, vector<8x1024xf32>, vector<8x1024xf32>, vector<8x1024xf32>, vector<8x1024xf32>, vector<8x1024xf32>, vector<8x1024xf32>, vector<8x1024xf32>, vector<8x1024xf32> -> vector<72x1024xf32>
    %159 = arith.truncf %158 : vector<72x1024xf32> to vector<72x1024xbf16>
    %cst_50 = arith.constant dense<0.000000e+00> : vector<8x1024xf32>
    %160 = tpu.matmul %134, %159, %cst_50 {dimension_numbers = #tpu.dot_dimension_numbers<[1], [0], [0], [1], [0, 0, 1, 1], [], []>} : vector<8x72xbf16>, vector<72x1024xbf16>, vector<8x1024xf32> -> vector<8x1024xf32>
    %cst_51 = arith.constant dense<0.000000e+00> : vector<8xf32>
    %161 = vector.multi_reduction <add>, %160, %cst_51 [1] : vector<8x1024xf32> to vector<8xf32>
    %162 = vector.shape_cast %161 : vector<8xf32> to vector<8x1xf32>
    %cst_52 = arith.constant 1.024000e+03 : f32
    %163 = vector.broadcast %cst_52 : f32 to vector<8x1xf32>
    %164 = arith.divf %162, %163 : vector<8x1xf32>
    %165 = vector.broadcast %164 : vector<8x1xf32> to vector<8x1024xf32>
    %166 = arith.subf %160, %165 : vector<8x1024xf32>
    %167 = arith.mulf %166, %166 : vector<8x1024xf32>
    %cst_53 = arith.constant dense<0.000000e+00> : vector<8xf32>
    %168 = vector.multi_reduction <add>, %167, %cst_53 [1] : vector<8x1024xf32> to vector<8xf32>
    %169 = vector.shape_cast %168 : vector<8xf32> to vector<8x1xf32>
    %cst_54 = arith.constant 1.024000e+03 : f32
    %170 = vector.broadcast %cst_54 : f32 to vector<8x1xf32>
    %171 = arith.divf %169, %170 : vector<8x1xf32>
    %cst_55 = arith.constant 9.99999974E-6 : f32
    %172 = vector.broadcast %cst_55 : f32 to vector<8x1xf32>
    %173 = arith.addf %171, %172 : vector<8x1xf32>
    %174 = math.rsqrt %173 : vector<8x1xf32>
    %175 = vector.broadcast %174 : vector<8x1xf32> to vector<8x1024xf32>
    %176 = arith.mulf %166, %175 : vector<8x1024xf32>
    %cst_56 = arith.constant 0.000000e+00 : f32
    %177 = vector.broadcast %cst_56 : f32 to vector<8x1024xf32>
    %178 = arith.maximumf %176, %177 : vector<8x1024xf32>
    %c0_57 = arith.constant 0 : index
    %c0_58 = arith.constant 0 : index
    %179 = vector.load %arg13[%c0_57, %c0_58] : memref<64x16xbf16, #tpu.memory_space<vmem>>, vector<64x16xbf16>
    %180 = vector.extract_strided_slice %178 {offsets = [0, 0], sizes = [8, 64], strides = [1, 1]} : vector<8x1024xf32> to vector<8x64xf32>
    %181 = vector.extract_strided_slice %178 {offsets = [0, 64], sizes = [8, 64], strides = [1, 1]} : vector<8x1024xf32> to vector<8x64xf32>
    %182 = vector.extract_strided_slice %178 {offsets = [0, 128], sizes = [8, 64], strides = [1, 1]} : vector<8x1024xf32> to vector<8x64xf32>
    %183 = vector.extract_strided_slice %178 {offsets = [0, 192], sizes = [8, 64], strides = [1, 1]} : vector<8x1024xf32> to vector<8x64xf32>
    %184 = vector.extract_strided_slice %178 {offsets = [0, 256], sizes = [8, 64], strides = [1, 1]} : vector<8x1024xf32> to vector<8x64xf32>
    %185 = vector.extract_strided_slice %178 {offsets = [0, 320], sizes = [8, 64], strides = [1, 1]} : vector<8x1024xf32> to vector<8x64xf32>
    %186 = vector.extract_strided_slice %178 {offsets = [0, 384], sizes = [8, 64], strides = [1, 1]} : vector<8x1024xf32> to vector<8x64xf32>
    %187 = vector.extract_strided_slice %178 {offsets = [0, 448], sizes = [8, 64], strides = [1, 1]} : vector<8x1024xf32> to vector<8x64xf32>
    %188 = vector.extract_strided_slice %178 {offsets = [0, 512], sizes = [8, 64], strides = [1, 1]} : vector<8x1024xf32> to vector<8x64xf32>
    %189 = vector.extract_strided_slice %178 {offsets = [0, 576], sizes = [8, 64], strides = [1, 1]} : vector<8x1024xf32> to vector<8x64xf32>
    %190 = vector.extract_strided_slice %178 {offsets = [0, 640], sizes = [8, 64], strides = [1, 1]} : vector<8x1024xf32> to vector<8x64xf32>
    %191 = vector.extract_strided_slice %178 {offsets = [0, 704], sizes = [8, 64], strides = [1, 1]} : vector<8x1024xf32> to vector<8x64xf32>
    %192 = vector.extract_strided_slice %178 {offsets = [0, 768], sizes = [8, 64], strides = [1, 1]} : vector<8x1024xf32> to vector<8x64xf32>
    %193 = vector.extract_strided_slice %178 {offsets = [0, 832], sizes = [8, 64], strides = [1, 1]} : vector<8x1024xf32> to vector<8x64xf32>
    %194 = vector.extract_strided_slice %178 {offsets = [0, 896], sizes = [8, 64], strides = [1, 1]} : vector<8x1024xf32> to vector<8x64xf32>
    %195 = vector.extract_strided_slice %178 {offsets = [0, 960], sizes = [8, 64], strides = [1, 1]} : vector<8x1024xf32> to vector<8x64xf32>
    %196 = tpu.concatenate %180, %181, %182, %183, %184, %185, %186, %187, %188, %189, %190, %191, %192, %193, %194, %195 in 0 : vector<8x64xf32>, vector<8x64xf32>, vector<8x64xf32>, vector<8x64xf32>, vector<8x64xf32>, vector<8x64xf32>, vector<8x64xf32>, vector<8x64xf32>, vector<8x64xf32>, vector<8x64xf32>, vector<8x64xf32>, vector<8x64xf32>, vector<8x64xf32>, vector<8x64xf32>, vector<8x64xf32>, vector<8x64xf32> -> vector<128x64xf32>
    %197 = arith.truncf %196 : vector<128x64xf32> to vector<128x64xbf16>
    %cst_59 = arith.constant dense<0.000000e+00> : vector<128x16xf32>
    %198 = tpu.matmul %197, %179, %cst_59 {dimension_numbers = #tpu.dot_dimension_numbers<[1], [0], [0], [1], [0, 0, 1, 1], [], []>} : vector<128x64xbf16>, vector<64x16xbf16>, vector<128x16xf32> -> vector<128x16xf32>
    %199 = vector.extract_strided_slice %198 {offsets = [0, 0], sizes = [8, 16], strides = [1, 1]} : vector<128x16xf32> to vector<8x16xf32>
    %c0_60 = arith.constant 0 : index
    %c0_61 = arith.constant 0 : index
    %200 = vector.load %arg20[%c0_60, %c0_61] : memref<8x256xf32, #tpu.memory_space<vmem>>, vector<8x16xf32>
    tpu.vector_store %arg20[%c0_60, %c0_61], %199 {strides = array<i32>} : memref<8x256xf32, #tpu.memory_space<vmem>>, vector<8x16xf32>,
    %201 = vector.extract_strided_slice %198 {offsets = [8, 0], sizes = [8, 16], strides = [1, 1]} : vector<128x16xf32> to vector<8x16xf32>
    %c0_62 = arith.constant 0 : index
    %c16 = arith.constant 16 : index
    %202 = vector.load %arg20[%c0_62, %c16] : memref<8x256xf32, #tpu.memory_space<vmem>>, vector<8x16xf32>
    tpu.vector_store %arg20[%c0_62, %c16], %201 {strides = array<i32>} : memref<8x256xf32, #tpu.memory_space<vmem>>, vector<8x16xf32>,
    %203 = vector.extract_strided_slice %198 {offsets = [16, 0], sizes = [8, 16], strides = [1, 1]} : vector<128x16xf32> to vector<8x16xf32>
    %c0_63 = arith.constant 0 : index
    %c32 = arith.constant 32 : index
    %204 = vector.load %arg20[%c0_63, %c32] : memref<8x256xf32, #tpu.memory_space<vmem>>, vector<8x16xf32>
    tpu.vector_store %arg20[%c0_63, %c32], %203 {strides = array<i32>} : memref<8x256xf32, #tpu.memory_space<vmem>>, vector<8x16xf32>,
    %205 = vector.extract_strided_slice %198 {offsets = [24, 0], sizes = [8, 16], strides = [1, 1]} : vector<128x16xf32> to vector<8x16xf32>
    %c0_64 = arith.constant 0 : index
    %c48 = arith.constant 48 : index
    %206 = vector.load %arg20[%c0_64, %c48] : memref<8x256xf32, #tpu.memory_space<vmem>>, vector<8x16xf32>
    tpu.vector_store %arg20[%c0_64, %c48], %205 {strides = array<i32>} : memref<8x256xf32, #tpu.memory_space<vmem>>, vector<8x16xf32>,
    %207 = vector.extract_strided_slice %198 {offsets = [32, 0], sizes = [8, 16], strides = [1, 1]} : vector<128x16xf32> to vector<8x16xf32>
    %c0_65 = arith.constant 0 : index
    %c64 = arith.constant 64 : index
    %208 = vector.load %arg20[%c0_65, %c64] : memref<8x256xf32, #tpu.memory_space<vmem>>, vector<8x16xf32>
    tpu.vector_store %arg20[%c0_65, %c64], %207 {strides = array<i32>} : memref<8x256xf32, #tpu.memory_space<vmem>>, vector<8x16xf32>,
    %209 = vector.extract_strided_slice %198 {offsets = [40, 0], sizes = [8, 16], strides = [1, 1]} : vector<128x16xf32> to vector<8x16xf32>
    %c0_66 = arith.constant 0 : index
    %c80 = arith.constant 80 : index
    %210 = vector.load %arg20[%c0_66, %c80] : memref<8x256xf32, #tpu.memory_space<vmem>>, vector<8x16xf32>
    tpu.vector_store %arg20[%c0_66, %c80], %209 {strides = array<i32>} : memref<8x256xf32, #tpu.memory_space<vmem>>, vector<8x16xf32>,
    %211 = vector.extract_strided_slice %198 {offsets = [48, 0], sizes = [8, 16], strides = [1, 1]} : vector<128x16xf32> to vector<8x16xf32>
    %c0_67 = arith.constant 0 : index
    %c96 = arith.constant 96 : index
    %212 = vector.load %arg20[%c0_67, %c96] : memref<8x256xf32, #tpu.memory_space<vmem>>, vector<8x16xf32>
    tpu.vector_store %arg20[%c0_67, %c96], %211 {strides = array<i32>} : memref<8x256xf32, #tpu.memory_space<vmem>>, vector<8x16xf32>,
    %213 = vector.extract_strided_slice %198 {offsets = [56, 0], sizes = [8, 16], strides = [1, 1]} : vector<128x16xf32> to vector<8x16xf32>
    %c0_68 = arith.constant 0 : index
    %c112 = arith.constant 112 : index
    %214 = vector.load %arg20[%c0_68, %c112] : memref<8x256xf32, #tpu.memory_space<vmem>>, vector<8x16xf32>
    tpu.vector_store %arg20[%c0_68, %c112], %213 {strides = array<i32>} : memref<8x256xf32, #tpu.memory_space<vmem>>, vector<8x16xf32>,
    %215 = vector.extract_strided_slice %198 {offsets = [64, 0], sizes = [8, 16], strides = [1, 1]} : vector<128x16xf32> to vector<8x16xf32>
    %c0_69 = arith.constant 0 : index
    %c128_70 = arith.constant 128 : index
    %216 = vector.load %arg20[%c0_69, %c128_70] : memref<8x256xf32, #tpu.memory_space<vmem>>, vector<8x16xf32>
    tpu.vector_store %arg20[%c0_69, %c128_70], %215 {strides = array<i32>} : memref<8x256xf32, #tpu.memory_space<vmem>>, vector<8x16xf32>,
    %217 = vector.extract_strided_slice %198 {offsets = [72, 0], sizes = [8, 16], strides = [1, 1]} : vector<128x16xf32> to vector<8x16xf32>
    %c0_71 = arith.constant 0 : index
    %c144 = arith.constant 144 : index
    %218 = vector.load %arg20[%c0_71, %c144] : memref<8x256xf32, #tpu.memory_space<vmem>>, vector<8x16xf32>
    tpu.vector_store %arg20[%c0_71, %c144], %217 {strides = array<i32>} : memref<8x256xf32, #tpu.memory_space<vmem>>, vector<8x16xf32>,
    %219 = vector.extract_strided_slice %198 {offsets = [80, 0], sizes = [8, 16], strides = [1, 1]} : vector<128x16xf32> to vector<8x16xf32>
    %c0_72 = arith.constant 0 : index
    %c160 = arith.constant 160 : index
    %220 = vector.load %arg20[%c0_72, %c160] : memref<8x256xf32, #tpu.memory_space<vmem>>, vector<8x16xf32>
    tpu.vector_store %arg20[%c0_72, %c160], %219 {strides = array<i32>} : memref<8x256xf32, #tpu.memory_space<vmem>>, vector<8x16xf32>,
    %221 = vector.extract_strided_slice %198 {offsets = [88, 0], sizes = [8, 16], strides = [1, 1]} : vector<128x16xf32> to vector<8x16xf32>
    %c0_73 = arith.constant 0 : index
    %c176 = arith.constant 176 : index
    %222 = vector.load %arg20[%c0_73, %c176] : memref<8x256xf32, #tpu.memory_space<vmem>>, vector<8x16xf32>
    tpu.vector_store %arg20[%c0_73, %c176], %221 {strides = array<i32>} : memref<8x256xf32, #tpu.memory_space<vmem>>, vector<8x16xf32>,
    %223 = vector.extract_strided_slice %198 {offsets = [96, 0], sizes = [8, 16], strides = [1, 1]} : vector<128x16xf32> to vector<8x16xf32>
    %c0_74 = arith.constant 0 : index
    %c192_75 = arith.constant 192 : index
    %224 = vector.load %arg20[%c0_74, %c192_75] : memref<8x256xf32, #tpu.memory_space<vmem>>, vector<8x16xf32>
    tpu.vector_store %arg20[%c0_74, %c192_75], %223 {strides = array<i32>} : memref<8x256xf32, #tpu.memory_space<vmem>>, vector<8x16xf32>,
    %225 = vector.extract_strided_slice %198 {offsets = [104, 0], sizes = [8, 16], strides = [1, 1]} : vector<128x16xf32> to vector<8x16xf32>
    %c0_76 = arith.constant 0 : index
    %c208 = arith.constant 208 : index
    %226 = vector.load %arg20[%c0_76, %c208] : memref<8x256xf32, #tpu.memory_space<vmem>>, vector<8x16xf32>
    tpu.vector_store %arg20[%c0_76, %c208], %225 {strides = array<i32>} : memref<8x256xf32, #tpu.memory_space<vmem>>, vector<8x16xf32>,
    %227 = vector.extract_strided_slice %198 {offsets = [112, 0], sizes = [8, 16], strides = [1, 1]} : vector<128x16xf32> to vector<8x16xf32>
    %c0_77 = arith.constant 0 : index
    %c224 = arith.constant 224 : index
    %228 = vector.load %arg20[%c0_77, %c224] : memref<8x256xf32, #tpu.memory_space<vmem>>, vector<8x16xf32>
    tpu.vector_store %arg20[%c0_77, %c224], %227 {strides = array<i32>} : memref<8x256xf32, #tpu.memory_space<vmem>>, vector<8x16xf32>,
    %229 = vector.extract_strided_slice %198 {offsets = [120, 0], sizes = [8, 16], strides = [1, 1]} : vector<128x16xf32> to vector<8x16xf32>
    %c0_78 = arith.constant 0 : index
    %c240 = arith.constant 240 : index
    %230 = vector.load %arg20[%c0_78, %c240] : memref<8x256xf32, #tpu.memory_space<vmem>>, vector<8x16xf32>
    tpu.vector_store %arg20[%c0_78, %c240], %229 {strides = array<i32>} : memref<8x256xf32, #tpu.memory_space<vmem>>, vector<8x16xf32>,
    %c0_79 = arith.constant 0 : index
    %c0_80 = arith.constant 0 : index
    %231 = vector.load %arg20[%c0_79, %c0_80] : memref<8x256xf32, #tpu.memory_space<vmem>>, vector<8x256xf32>
    %c0_81 = arith.constant 0 : index
    %c0_82 = arith.constant 0 : index
    %232 = vector.load %arg4[%c0_81, %c0_82] : memref<8x72xbf16, #tpu.memory_space<vmem>>, vector<8x72xbf16>
    %c0_83 = arith.constant 0 : index
    %c128_84 = arith.constant 128 : index
    %233 = vector.load %arg18[%c0_83, %c128_84] : memref<16x512xf32, #tpu.memory_space<vmem>>, vector<8x256xf32>
    tpu.vector_store %arg18[%c0_83, %c128_84], %231 {strides = array<i32>} : memref<16x512xf32, #tpu.memory_space<vmem>>, vector<8x256xf32>,
    %c0_85 = arith.constant 0 : index
    %c0_86 = arith.constant 0 : index
    %234 = vector.load %arg18[%c0_85, %c0_86] : memref<16x512xf32, #tpu.memory_space<vmem>>, vector<8x512xf32>
    %235 = vector.extract_strided_slice %234 {offsets = [0, 111], sizes = [8, 256], strides = [1, 1]} : vector<8x512xf32> to vector<8x256xf32>
    %236 = vector.broadcast %57 : vector<1x256xf32> to vector<8x256xf32>
    %237 = arith.mulf %235, %236 : vector<8x256xf32>
    %238 = vector.extract_strided_slice %234 {offsets = [0, 112], sizes = [8, 256], strides = [1, 1]} : vector<8x512xf32> to vector<8x256xf32>
    %239 = vector.extract_strided_slice %234 {offsets = [0, 113], sizes = [8, 256], strides = [1, 1]} : vector<8x512xf32> to vector<8x256xf32>
    %240 = vector.broadcast %61 : vector<1x256xf32> to vector<8x256xf32>
    %241 = arith.mulf %239, %240 : vector<8x256xf32>
    %242 = vector.extract_strided_slice %234 {offsets = [0, 127], sizes = [8, 256], strides = [1, 1]} : vector<8x512xf32> to vector<8x256xf32>
    %243 = vector.broadcast %57 : vector<1x256xf32> to vector<8x256xf32>
    %244 = arith.mulf %242, %243 : vector<8x256xf32>
    %245 = vector.extract_strided_slice %234 {offsets = [0, 128], sizes = [8, 256], strides = [1, 1]} : vector<8x512xf32> to vector<8x256xf32>
    %246 = vector.extract_strided_slice %234 {offsets = [0, 129], sizes = [8, 256], strides = [1, 1]} : vector<8x512xf32> to vector<8x256xf32>
    %247 = vector.broadcast %61 : vector<1x256xf32> to vector<8x256xf32>
    %248 = arith.mulf %246, %247 : vector<8x256xf32>
    %249 = vector.extract_strided_slice %234 {offsets = [0, 143], sizes = [8, 256], strides = [1, 1]} : vector<8x512xf32> to vector<8x256xf32>
    %250 = vector.broadcast %57 : vector<1x256xf32> to vector<8x256xf32>
    %251 = arith.mulf %249, %250 : vector<8x256xf32>
    %252 = vector.extract_strided_slice %234 {offsets = [0, 144], sizes = [8, 256], strides = [1, 1]} : vector<8x512xf32> to vector<8x256xf32>
    %253 = vector.extract_strided_slice %234 {offsets = [0, 145], sizes = [8, 256], strides = [1, 1]} : vector<8x512xf32> to vector<8x256xf32>
    %254 = vector.broadcast %61 : vector<1x256xf32> to vector<8x256xf32>
    %255 = arith.mulf %253, %254 : vector<8x256xf32>
    %256 = tpu.concatenate %237, %238, %241, %244, %245, %248, %251, %252, %255 in 0 : vector<8x256xf32>, vector<8x256xf32>, vector<8x256xf32>, vector<8x256xf32>, vector<8x256xf32>, vector<8x256xf32>, vector<8x256xf32>, vector<8x256xf32>, vector<8x256xf32> -> vector<72x256xf32>
    %257 = arith.truncf %256 : vector<72x256xf32> to vector<72x256xbf16>
    %cst_87 = arith.constant dense<0.000000e+00> : vector<8x256xf32>
    %258 = tpu.matmul %232, %257, %cst_87 {dimension_numbers = #tpu.dot_dimension_numbers<[1], [0], [0], [1], [0, 0, 1, 1], [], []>} : vector<8x72xbf16>, vector<72x256xbf16>, vector<8x256xf32> -> vector<8x256xf32>
    %cst_88 = arith.constant dense<0.000000e+00> : vector<8xf32>
    %259 = vector.multi_reduction <add>, %258, %cst_88 [1] : vector<8x256xf32> to vector<8xf32>
    %260 = vector.shape_cast %259 : vector<8xf32> to vector<8x1xf32>
    %cst_89 = arith.constant 2.560000e+02 : f32
    %261 = vector.broadcast %cst_89 : f32 to vector<8x1xf32>
    %262 = arith.divf %260, %261 : vector<8x1xf32>
    %263 = vector.broadcast %262 : vector<8x1xf32> to vector<8x256xf32>
    %264 = arith.subf %258, %263 : vector<8x256xf32>
    %265 = arith.mulf %264, %264 : vector<8x256xf32>
    %cst_90 = arith.constant dense<0.000000e+00> : vector<8xf32>
    %266 = vector.multi_reduction <add>, %265, %cst_90 [1] : vector<8x256xf32> to vector<8xf32>
    %267 = vector.shape_cast %266 : vector<8xf32> to vector<8x1xf32>
    %cst_91 = arith.constant 2.560000e+02 : f32
    %268 = vector.broadcast %cst_91 : f32 to vector<8x1xf32>
    %269 = arith.divf %267, %268 : vector<8x1xf32>
    %cst_92 = arith.constant 9.99999974E-6 : f32
    %270 = vector.broadcast %cst_92 : f32 to vector<8x1xf32>
    %271 = arith.addf %269, %270 : vector<8x1xf32>
    %272 = math.rsqrt %271 : vector<8x1xf32>
    %273 = vector.broadcast %272 : vector<8x1xf32> to vector<8x256xf32>
    %274 = arith.mulf %264, %273 : vector<8x256xf32>
    %cst_93 = arith.constant 0.000000e+00 : f32
    %275 = vector.broadcast %cst_93 : f32 to vector<8x256xf32>
    %276 = arith.maximumf %274, %275 : vector<8x256xf32>
    %c0_94 = arith.constant 0 : index
    %c0_95 = arith.constant 0 : index
    %277 = vector.load %arg5[%c0_94, %c0_95] : memref<8x72xbf16, #tpu.memory_space<vmem>>, vector<8x72xbf16>
    %c0_96 = arith.constant 0 : index
    %c128_97 = arith.constant 128 : index
    %278 = vector.load %arg18[%c0_96, %c128_97] : memref<16x512xf32, #tpu.memory_space<vmem>>, vector<8x256xf32>
    tpu.vector_store %arg18[%c0_96, %c128_97], %276 {strides = array<i32>} : memref<16x512xf32, #tpu.memory_space<vmem>>, vector<8x256xf32>,
    %c0_98 = arith.constant 0 : index
    %c0_99 = arith.constant 0 : index
    %279 = vector.load %arg18[%c0_98, %c0_99] : memref<16x512xf32, #tpu.memory_space<vmem>>, vector<8x512xf32>
    %280 = vector.extract_strided_slice %279 {offsets = [0, 111], sizes = [8, 256], strides = [1, 1]} : vector<8x512xf32> to vector<8x256xf32>
    %281 = vector.broadcast %57 : vector<1x256xf32> to vector<8x256xf32>
    %282 = arith.mulf %280, %281 : vector<8x256xf32>
    %283 = vector.extract_strided_slice %279 {offsets = [0, 112], sizes = [8, 256], strides = [1, 1]} : vector<8x512xf32> to vector<8x256xf32>
    %284 = vector.extract_strided_slice %279 {offsets = [0, 113], sizes = [8, 256], strides = [1, 1]} : vector<8x512xf32> to vector<8x256xf32>
    %285 = vector.broadcast %61 : vector<1x256xf32> to vector<8x256xf32>
    %286 = arith.mulf %284, %285 : vector<8x256xf32>
    %287 = vector.extract_strided_slice %279 {offsets = [0, 127], sizes = [8, 256], strides = [1, 1]} : vector<8x512xf32> to vector<8x256xf32>
    %288 = vector.broadcast %57 : vector<1x256xf32> to vector<8x256xf32>
    %289 = arith.mulf %287, %288 : vector<8x256xf32>
    %290 = vector.extract_strided_slice %279 {offsets = [0, 128], sizes = [8, 256], strides = [1, 1]} : vector<8x512xf32> to vector<8x256xf32>
    %291 = vector.extract_strided_slice %279 {offsets = [0, 129], sizes = [8, 256], strides = [1, 1]} : vector<8x512xf32> to vector<8x256xf32>
    %292 = vector.broadcast %61 : vector<1x256xf32> to vector<8x256xf32>
    %293 = arith.mulf %291, %292 : vector<8x256xf32>
    %294 = vector.extract_strided_slice %279 {offsets = [0, 143], sizes = [8, 256], strides = [1, 1]} : vector<8x512xf32> to vector<8x256xf32>
    %295 = vector.broadcast %57 : vector<1x256xf32> to vector<8x256xf32>
    %296 = arith.mulf %294, %295 : vector<8x256xf32>
    %297 = vector.extract_strided_slice %279 {offsets = [0, 144], sizes = [8, 256], strides = [1, 1]} : vector<8x512xf32> to vector<8x256xf32>
    %298 = vector.extract_strided_slice %279 {offsets = [0, 145], sizes = [8, 256], strides = [1, 1]} : vector<8x512xf32> to vector<8x256xf32>
    %299 = vector.broadcast %61 : vector<1x256xf32> to vector<8x256xf32>
    %300 = arith.mulf %298, %299 : vector<8x256xf32>
    %301 = tpu.concatenate %282, %283, %286, %289, %290, %293, %296, %297, %300 in 0 : vector<8x256xf32>, vector<8x256xf32>, vector<8x256xf32>, vector<8x256xf32>, vector<8x256xf32>, vector<8x256xf32>, vector<8x256xf32>, vector<8x256xf32>, vector<8x256xf32> -> vector<72x256xf32>
    %302 = arith.truncf %301 : vector<72x256xf32> to vector<72x256xbf16>
    %cst_100 = arith.constant dense<0.000000e+00> : vector<8x256xf32>
    %303 = tpu.matmul %277, %302, %cst_100 {dimension_numbers = #tpu.dot_dimension_numbers<[1], [0], [0], [1], [0, 0, 1, 1], [], []>} : vector<8x72xbf16>, vector<72x256xbf16>, vector<8x256xf32> -> vector<8x256xf32>
    %cst_101 = arith.constant dense<0.000000e+00> : vector<8xf32>
    %304 = vector.multi_reduction <add>, %303, %cst_101 [1] : vector<8x256xf32> to vector<8xf32>
    %305 = vector.shape_cast %304 : vector<8xf32> to vector<8x1xf32>
    %cst_102 = arith.constant 2.560000e+02 : f32
    %306 = vector.broadcast %cst_102 : f32 to vector<8x1xf32>
    %307 = arith.divf %305, %306 : vector<8x1xf32>
    %308 = vector.broadcast %307 : vector<8x1xf32> to vector<8x256xf32>
    %309 = arith.subf %303, %308 : vector<8x256xf32>
    %310 = arith.mulf %309, %309 : vector<8x256xf32>
    %cst_103 = arith.constant dense<0.000000e+00> : vector<8xf32>
    %311 = vector.multi_reduction <add>, %310, %cst_103 [1] : vector<8x256xf32> to vector<8xf32>
    %312 = vector.shape_cast %311 : vector<8xf32> to vector<8x1xf32>
    %cst_104 = arith.constant 2.560000e+02 : f32
    %313 = vector.broadcast %cst_104 : f32 to vector<8x1xf32>
    %314 = arith.divf %312, %313 : vector<8x1xf32>
    %cst_105 = arith.constant 9.99999974E-6 : f32
    %315 = vector.broadcast %cst_105 : f32 to vector<8x1xf32>
    %316 = arith.addf %314, %315 : vector<8x1xf32>
    %317 = math.rsqrt %316 : vector<8x1xf32>
    %318 = vector.broadcast %317 : vector<8x1xf32> to vector<8x256xf32>
    %319 = arith.mulf %309, %318 : vector<8x256xf32>
    %cst_106 = arith.constant 0.000000e+00 : f32
    %320 = vector.broadcast %cst_106 : f32 to vector<8x256xf32>
    %321 = arith.maximumf %319, %320 : vector<8x256xf32>
    %c0_107 = arith.constant 0 : index
    %c0_108 = arith.constant 0 : index
    %322 = vector.load %arg14[%c0_107, %c0_108] : memref<32x8xbf16, #tpu.memory_space<vmem>>, vector<32x8xbf16>
    %323 = vector.extract_strided_slice %321 {offsets = [0, 0], sizes = [8, 32], strides = [1, 1]} : vector<8x256xf32> to vector<8x32xf32>
    %324 = vector.extract_strided_slice %321 {offsets = [0, 32], sizes = [8, 32], strides = [1, 1]} : vector<8x256xf32> to vector<8x32xf32>
    %325 = vector.extract_strided_slice %321 {offsets = [0, 64], sizes = [8, 32], strides = [1, 1]} : vector<8x256xf32> to vector<8x32xf32>
    %326 = vector.extract_strided_slice %321 {offsets = [0, 96], sizes = [8, 32], strides = [1, 1]} : vector<8x256xf32> to vector<8x32xf32>
    %327 = vector.extract_strided_slice %321 {offsets = [0, 128], sizes = [8, 32], strides = [1, 1]} : vector<8x256xf32> to vector<8x32xf32>
    %328 = vector.extract_strided_slice %321 {offsets = [0, 160], sizes = [8, 32], strides = [1, 1]} : vector<8x256xf32> to vector<8x32xf32>
    %329 = vector.extract_strided_slice %321 {offsets = [0, 192], sizes = [8, 32], strides = [1, 1]} : vector<8x256xf32> to vector<8x32xf32>
    %330 = vector.extract_strided_slice %321 {offsets = [0, 224], sizes = [8, 32], strides = [1, 1]} : vector<8x256xf32> to vector<8x32xf32>
    %331 = tpu.concatenate %323, %324, %325, %326, %327, %328, %329, %330 in 0 : vector<8x32xf32>, vector<8x32xf32>, vector<8x32xf32>, vector<8x32xf32>, vector<8x32xf32>, vector<8x32xf32>, vector<8x32xf32>, vector<8x32xf32> -> vector<64x32xf32>
    %332 = arith.truncf %331 : vector<64x32xf32> to vector<64x32xbf16>
    %cst_109 = arith.constant dense<0.000000e+00> : vector<64x8xf32>
    %333 = tpu.matmul %332, %322, %cst_109 {dimension_numbers = #tpu.dot_dimension_numbers<[1], [0], [0], [1], [0, 0, 1, 1], [], []>} : vector<64x32xbf16>, vector<32x8xbf16>, vector<64x8xf32> -> vector<64x8xf32>
    %334 = vector.extract_strided_slice %333 {offsets = [0, 0], sizes = [8, 8], strides = [1, 1]} : vector<64x8xf32> to vector<8x8xf32>
    %c0_110 = arith.constant 0 : index
    %c0_111 = arith.constant 0 : index
    %335 = vector.load %arg21[%c0_110, %c0_111] : memref<8x64xf32, #tpu.memory_space<vmem>>, vector<8x8xf32>
    tpu.vector_store %arg21[%c0_110, %c0_111], %334 {strides = array<i32>} : memref<8x64xf32, #tpu.memory_space<vmem>>, vector<8x8xf32>,
    %336 = vector.extract_strided_slice %333 {offsets = [8, 0], sizes = [8, 8], strides = [1, 1]} : vector<64x8xf32> to vector<8x8xf32>
    %c0_112 = arith.constant 0 : index
    %c8 = arith.constant 8 : index
    %337 = vector.load %arg21[%c0_112, %c8] : memref<8x64xf32, #tpu.memory_space<vmem>>, vector<8x8xf32>
    tpu.vector_store %arg21[%c0_112, %c8], %336 {strides = array<i32>} : memref<8x64xf32, #tpu.memory_space<vmem>>, vector<8x8xf32>,
    %338 = vector.extract_strided_slice %333 {offsets = [16, 0], sizes = [8, 8], strides = [1, 1]} : vector<64x8xf32> to vector<8x8xf32>
    %c0_113 = arith.constant 0 : index
    %c16_114 = arith.constant 16 : index
    %339 = vector.load %arg21[%c0_113, %c16_114] : memref<8x64xf32, #tpu.memory_space<vmem>>, vector<8x8xf32>
    tpu.vector_store %arg21[%c0_113, %c16_114], %338 {strides = array<i32>} : memref<8x64xf32, #tpu.memory_space<vmem>>, vector<8x8xf32>,
    %340 = vector.extract_strided_slice %333 {offsets = [24, 0], sizes = [8, 8], strides = [1, 1]} : vector<64x8xf32> to vector<8x8xf32>
    %c0_115 = arith.constant 0 : index
    %c24 = arith.constant 24 : index
    %341 = vector.load %arg21[%c0_115, %c24] : memref<8x64xf32, #tpu.memory_space<vmem>>, vector<8x8xf32>
    tpu.vector_store %arg21[%c0_115, %c24], %340 {strides = array<i32>} : memref<8x64xf32, #tpu.memory_space<vmem>>, vector<8x8xf32>,
    %342 = vector.extract_strided_slice %333 {offsets = [32, 0], sizes = [8, 8], strides = [1, 1]} : vector<64x8xf32> to vector<8x8xf32>
    %c0_116 = arith.constant 0 : index
    %c32_117 = arith.constant 32 : index
    %343 = vector.load %arg21[%c0_116, %c32_117] : memref<8x64xf32, #tpu.memory_space<vmem>>, vector<8x8xf32>
    tpu.vector_store %arg21[%c0_116, %c32_117], %342 {strides = array<i32>} : memref<8x64xf32, #tpu.memory_space<vmem>>, vector<8x8xf32>,
    %344 = vector.extract_strided_slice %333 {offsets = [40, 0], sizes = [8, 8], strides = [1, 1]} : vector<64x8xf32> to vector<8x8xf32>
    %c0_118 = arith.constant 0 : index
    %c40 = arith.constant 40 : index
    %345 = vector.load %arg21[%c0_118, %c40] : memref<8x64xf32, #tpu.memory_space<vmem>>, vector<8x8xf32>
    tpu.vector_store %arg21[%c0_118, %c40], %344 {strides = array<i32>} : memref<8x64xf32, #tpu.memory_space<vmem>>, vector<8x8xf32>,
    %346 = vector.extract_strided_slice %333 {offsets = [48, 0], sizes = [8, 8], strides = [1, 1]} : vector<64x8xf32> to vector<8x8xf32>
    %c0_119 = arith.constant 0 : index
    %c48_120 = arith.constant 48 : index
    %347 = vector.load %arg21[%c0_119, %c48_120] : memref<8x64xf32, #tpu.memory_space<vmem>>, vector<8x8xf32>
    tpu.vector_store %arg21[%c0_119, %c48_120], %346 {strides = array<i32>} : memref<8x64xf32, #tpu.memory_space<vmem>>, vector<8x8xf32>,
    %348 = vector.extract_strided_slice %333 {offsets = [56, 0], sizes = [8, 8], strides = [1, 1]} : vector<64x8xf32> to vector<8x8xf32>
    %c0_121 = arith.constant 0 : index
    %c56 = arith.constant 56 : index
    %349 = vector.load %arg21[%c0_121, %c56] : memref<8x64xf32, #tpu.memory_space<vmem>>, vector<8x8xf32>
    tpu.vector_store %arg21[%c0_121, %c56], %348 {strides = array<i32>} : memref<8x64xf32, #tpu.memory_space<vmem>>, vector<8x8xf32>,
    %c0_122 = arith.constant 0 : index
    %c0_123 = arith.constant 0 : index
    %350 = vector.load %arg21[%c0_122, %c0_123] : memref<8x64xf32, #tpu.memory_space<vmem>>, vector<8x64xf32>
    %cst_124 = arith.constant 0.000000e+00 : f32
    %351 = vector.broadcast %cst_124 : f32 to vector<8x64xf32>
    %352 = arith.maximumf %350, %351 : vector<8x64xf32>
    %c0_125 = arith.constant 0 : index
    %c0_126 = arith.constant 0 : index
    %c0_127 = arith.constant 0 : index
    %353 = vector.load %arg6[%c0_125, %c0_126, %c0_127] : memref<2x8x72xbf16, #tpu.memory_space<vmem>>, vector<1x8x72xbf16>
    %354 = vector.shape_cast %353 : vector<1x8x72xbf16> to vector<8x72xbf16>
    %c0_128 = arith.constant 0 : index
    %c128_129 = arith.constant 128 : index
    %355 = vector.load %arg19[%c0_128, %c128_129] : memref<16x320xf32, #tpu.memory_space<vmem>>, vector<8x64xf32>
    tpu.vector_store %arg19[%c0_128, %c128_129], %352 {strides = array<i32>} : memref<16x320xf32, #tpu.memory_space<vmem>>, vector<8x64xf32>,
    %c0_130 = arith.constant 0 : index
    %c0_131 = arith.constant 0 : index
    %356 = vector.load %arg19[%c0_130, %c0_131] : memref<16x320xf32, #tpu.memory_space<vmem>>, vector<8x320xf32>
    %357 = vector.extract_strided_slice %356 {offsets = [0, 119], sizes = [8, 64], strides = [1, 1]} : vector<8x320xf32> to vector<8x64xf32>
    %358 = vector.broadcast %82 : vector<1x64xf32> to vector<8x64xf32>
    %359 = arith.mulf %357, %358 : vector<8x64xf32>
    %360 = vector.extract_strided_slice %356 {offsets = [0, 120], sizes = [8, 64], strides = [1, 1]} : vector<8x320xf32> to vector<8x64xf32>
    %361 = vector.extract_strided_slice %356 {offsets = [0, 121], sizes = [8, 64], strides = [1, 1]} : vector<8x320xf32> to vector<8x64xf32>
    %362 = vector.broadcast %86 : vector<1x64xf32> to vector<8x64xf32>
    %363 = arith.mulf %361, %362 : vector<8x64xf32>
    %364 = vector.extract_strided_slice %356 {offsets = [0, 127], sizes = [8, 64], strides = [1, 1]} : vector<8x320xf32> to vector<8x64xf32>
    %365 = vector.broadcast %82 : vector<1x64xf32> to vector<8x64xf32>
    %366 = arith.mulf %364, %365 : vector<8x64xf32>
    %367 = vector.extract_strided_slice %356 {offsets = [0, 128], sizes = [8, 64], strides = [1, 1]} : vector<8x320xf32> to vector<8x64xf32>
    %368 = vector.extract_strided_slice %356 {offsets = [0, 129], sizes = [8, 64], strides = [1, 1]} : vector<8x320xf32> to vector<8x64xf32>
    %369 = vector.broadcast %86 : vector<1x64xf32> to vector<8x64xf32>
    %370 = arith.mulf %368, %369 : vector<8x64xf32>
    %371 = vector.extract_strided_slice %356 {offsets = [0, 135], sizes = [8, 64], strides = [1, 1]} : vector<8x320xf32> to vector<8x64xf32>
    %372 = vector.broadcast %82 : vector<1x64xf32> to vector<8x64xf32>
    %373 = arith.mulf %371, %372 : vector<8x64xf32>
    %374 = vector.extract_strided_slice %356 {offsets = [0, 136], sizes = [8, 64], strides = [1, 1]} : vector<8x320xf32> to vector<8x64xf32>
    %375 = vector.extract_strided_slice %356 {offsets = [0, 137], sizes = [8, 64], strides = [1, 1]} : vector<8x320xf32> to vector<8x64xf32>
    %376 = vector.broadcast %86 : vector<1x64xf32> to vector<8x64xf32>
    %377 = arith.mulf %375, %376 : vector<8x64xf32>
    %378 = tpu.concatenate %359, %360, %363, %366, %367, %370, %373, %374, %377 in 0 : vector<8x64xf32>, vector<8x64xf32>, vector<8x64xf32>, vector<8x64xf32>, vector<8x64xf32>, vector<8x64xf32>, vector<8x64xf32>, vector<8x64xf32>, vector<8x64xf32> -> vector<72x64xf32>
    %379 = arith.truncf %378 : vector<72x64xf32> to vector<72x64xbf16>
    %cst_132 = arith.constant dense<0.000000e+00> : vector<8x64xf32>
    %380 = tpu.matmul %354, %379, %cst_132 {dimension_numbers = #tpu.dot_dimension_numbers<[1], [0], [0], [1], [0, 0, 1, 1], [], []>} : vector<8x72xbf16>, vector<72x64xbf16>, vector<8x64xf32> -> vector<8x64xf32>
    %cst_133 = arith.constant 0.000000e+00 : f32
    %381 = vector.broadcast %cst_133 : f32 to vector<8x64xf32>
    %382 = arith.maximumf %380, %381 : vector<8x64xf32>
    %c0_134 = arith.constant 0 : index
    %c0_135 = arith.constant 0 : index
    %c0_136 = arith.constant 0 : index
    %383 = vector.load %arg7[%c0_134, %c0_135, %c0_136] : memref<2x8x2xf32, #tpu.memory_space<vmem>>, vector<1x8x2xf32>
    %384 = vector.shape_cast %383 : vector<1x8x2xf32> to vector<8x2xf32>
    %385 = vector.extract_strided_slice %384 {offsets = [0, 0], sizes = [8, 1], strides = [1, 1]} : vector<8x2xf32> to vector<8x1xf32>
    %386 = vector.extract_strided_slice %382 {offsets = [0, 0], sizes = [1, 64], strides = [1, 1]} : vector<8x64xf32> to vector<1x64xf32>
    %387 = vector.broadcast %385 : vector<8x1xf32> to vector<8x64xf32>
    %388 = vector.broadcast %386 : vector<1x64xf32> to vector<8x64xf32>
    %389 = arith.mulf %387, %388 : vector<8x64xf32>
    %390 = arith.addf %350, %389 : vector<8x64xf32>
    %391 = vector.extract_strided_slice %384 {offsets = [0, 1], sizes = [8, 1], strides = [1, 1]} : vector<8x2xf32> to vector<8x1xf32>
    %392 = vector.extract_strided_slice %382 {offsets = [1, 0], sizes = [1, 64], strides = [1, 1]} : vector<8x64xf32> to vector<1x64xf32>
    %393 = vector.broadcast %391 : vector<8x1xf32> to vector<8x64xf32>
    %394 = vector.broadcast %392 : vector<1x64xf32> to vector<8x64xf32>
    %395 = arith.mulf %393, %394 : vector<8x64xf32>
    %396 = arith.addf %390, %395 : vector<8x64xf32>
    %cst_137 = arith.constant 0.000000e+00 : f32
    %397 = vector.broadcast %cst_137 : f32 to vector<8x64xf32>
    %398 = arith.maximumf %396, %397 : vector<8x64xf32>
    %c1 = arith.constant 1 : index
    %c0_138 = arith.constant 0 : index
    %c0_139 = arith.constant 0 : index
    %399 = vector.load %arg6[%c1, %c0_138, %c0_139] : memref<2x8x72xbf16, #tpu.memory_space<vmem>>, vector<1x8x72xbf16>
    %400 = vector.shape_cast %399 : vector<1x8x72xbf16> to vector<8x72xbf16>
    %c0_140 = arith.constant 0 : index
    %c128_141 = arith.constant 128 : index
    %401 = vector.load %arg19[%c0_140, %c128_141] : memref<16x320xf32, #tpu.memory_space<vmem>>, vector<8x64xf32>
    tpu.vector_store %arg19[%c0_140, %c128_141], %398 {strides = array<i32>} : memref<16x320xf32, #tpu.memory_space<vmem>>, vector<8x64xf32>,
    %c0_142 = arith.constant 0 : index
    %c0_143 = arith.constant 0 : index
    %402 = vector.load %arg19[%c0_142, %c0_143] : memref<16x320xf32, #tpu.memory_space<vmem>>, vector<8x320xf32>
    %403 = vector.extract_strided_slice %402 {offsets = [0, 119], sizes = [8, 64], strides = [1, 1]} : vector<8x320xf32> to vector<8x64xf32>
    %404 = vector.broadcast %82 : vector<1x64xf32> to vector<8x64xf32>
    %405 = arith.mulf %403, %404 : vector<8x64xf32>
    %406 = vector.extract_strided_slice %402 {offsets = [0, 120], sizes = [8, 64], strides = [1, 1]} : vector<8x320xf32> to vector<8x64xf32>
    %407 = vector.extract_strided_slice %402 {offsets = [0, 121], sizes = [8, 64], strides = [1, 1]} : vector<8x320xf32> to vector<8x64xf32>
    %408 = vector.broadcast %86 : vector<1x64xf32> to vector<8x64xf32>
    %409 = arith.mulf %407, %408 : vector<8x64xf32>
    %410 = vector.extract_strided_slice %402 {offsets = [0, 127], sizes = [8, 64], strides = [1, 1]} : vector<8x320xf32> to vector<8x64xf32>
    %411 = vector.broadcast %82 : vector<1x64xf32> to vector<8x64xf32>
    %412 = arith.mulf %410, %411 : vector<8x64xf32>
    %413 = vector.extract_strided_slice %402 {offsets = [0, 128], sizes = [8, 64], strides = [1, 1]} : vector<8x320xf32> to vector<8x64xf32>
    %414 = vector.extract_strided_slice %402 {offsets = [0, 129], sizes = [8, 64], strides = [1, 1]} : vector<8x320xf32> to vector<8x64xf32>
    %415 = vector.broadcast %86 : vector<1x64xf32> to vector<8x64xf32>
    %416 = arith.mulf %414, %415 : vector<8x64xf32>
    %417 = vector.extract_strided_slice %402 {offsets = [0, 135], sizes = [8, 64], strides = [1, 1]} : vector<8x320xf32> to vector<8x64xf32>
    %418 = vector.broadcast %82 : vector<1x64xf32> to vector<8x64xf32>
    %419 = arith.mulf %417, %418 : vector<8x64xf32>
    %420 = vector.extract_strided_slice %402 {offsets = [0, 136], sizes = [8, 64], strides = [1, 1]} : vector<8x320xf32> to vector<8x64xf32>
    %421 = vector.extract_strided_slice %402 {offsets = [0, 137], sizes = [8, 64], strides = [1, 1]} : vector<8x320xf32> to vector<8x64xf32>
    %422 = vector.broadcast %86 : vector<1x64xf32> to vector<8x64xf32>
    %423 = arith.mulf %421, %422 : vector<8x64xf32>
    %424 = tpu.concatenate %405, %406, %409, %412, %413, %416, %419, %420, %423 in 0 : vector<8x64xf32>, vector<8x64xf32>, vector<8x64xf32>, vector<8x64xf32>, vector<8x64xf32>, vector<8x64xf32>, vector<8x64xf32>, vector<8x64xf32>, vector<8x64xf32> -> vector<72x64xf32>
    %425 = arith.truncf %424 : vector<72x64xf32> to vector<72x64xbf16>
    %cst_144 = arith.constant dense<0.000000e+00> : vector<8x64xf32>
    %426 = tpu.matmul %400, %425, %cst_144 {dimension_numbers = #tpu.dot_dimension_numbers<[1], [0], [0], [1], [0, 0, 1, 1], [], []>} : vector<8x72xbf16>, vector<72x64xbf16>, vector<8x64xf32> -> vector<8x64xf32>
    %cst_145 = arith.constant 0.000000e+00 : f32
    %427 = vector.broadcast %cst_145 : f32 to vector<8x64xf32>
    %428 = arith.maximumf %426, %427 : vector<8x64xf32>
    %c1_146 = arith.constant 1 : index
    %c0_147 = arith.constant 0 : index
    %c0_148 = arith.constant 0 : index
    %429 = vector.load %arg7[%c1_146, %c0_147, %c0_148] : memref<2x8x2xf32, #tpu.memory_space<vmem>>, vector<1x8x2xf32>
    %430 = vector.shape_cast %429 : vector<1x8x2xf32> to vector<8x2xf32>
    %431 = vector.extract_strided_slice %430 {offsets = [0, 0], sizes = [8, 1], strides = [1, 1]} : vector<8x2xf32> to vector<8x1xf32>
    %432 = vector.extract_strided_slice %428 {offsets = [0, 0], sizes = [1, 64], strides = [1, 1]} : vector<8x64xf32> to vector<1x64xf32>
    %433 = vector.broadcast %431 : vector<8x1xf32> to vector<8x64xf32>
    %434 = vector.broadcast %432 : vector<1x64xf32> to vector<8x64xf32>
    %435 = arith.mulf %433, %434 : vector<8x64xf32>
    %436 = arith.addf %396, %435 : vector<8x64xf32>
    %437 = vector.extract_strided_slice %430 {offsets = [0, 1], sizes = [8, 1], strides = [1, 1]} : vector<8x2xf32> to vector<8x1xf32>
    %438 = vector.extract_strided_slice %428 {offsets = [1, 0], sizes = [1, 64], strides = [1, 1]} : vector<8x64xf32> to vector<1x64xf32>
    %439 = vector.broadcast %437 : vector<8x1xf32> to vector<8x64xf32>
    %440 = vector.broadcast %438 : vector<1x64xf32> to vector<8x64xf32>
    %441 = arith.mulf %439, %440 : vector<8x64xf32>
    %442 = arith.addf %436, %441 : vector<8x64xf32>
    %c0_149 = arith.constant 0 : index
    %c0_150 = arith.constant 0 : index
    %443 = vector.load %arg8[%c0_149, %c0_150] : memref<8x1xf32, #tpu.memory_space<vmem>>, vector<8x1xf32>
    %444 = vector.broadcast %443 : vector<8x1xf32> to vector<8x64xf32>
    %445 = arith.mulf %444, %442 : vector<8x64xf32>
    %cst_151 = arith.constant 0.000000e+00 : f32
    %446 = vector.broadcast %cst_151 : f32 to vector<8x64xf32>
    %447 = arith.maximumf %445, %446 : vector<8x64xf32>
    %c0_152 = arith.constant 0 : index
    %c0_153 = arith.constant 0 : index
    %448 = vector.load %arg9[%c0_152, %c0_153] : memref<32x144xbf16, #tpu.memory_space<vmem>>, vector<32x144xbf16>
    %c0_154 = arith.constant 0 : index
    %c128_155 = arith.constant 128 : index
    %449 = vector.load %arg19[%c0_154, %c128_155] : memref<16x320xf32, #tpu.memory_space<vmem>>, vector<8x64xf32>
    tpu.vector_store %arg19[%c0_154, %c128_155], %447 {strides = array<i32>} : memref<16x320xf32, #tpu.memory_space<vmem>>, vector<8x64xf32>,
    %c8_156 = arith.constant 8 : index
    %c128_157 = arith.constant 128 : index
    %450 = vector.load %arg19[%c8_156, %c128_157] : memref<16x320xf32, #tpu.memory_space<vmem>>, vector<8x64xf32>
    tpu.vector_store %arg19[%c8_156, %c128_157], %350 {strides = array<i32>} : memref<16x320xf32, #tpu.memory_space<vmem>>, vector<8x64xf32>,
    %c0_158 = arith.constant 0 : index
    %c0_159 = arith.constant 0 : index
    %451 = vector.load %arg19[%c0_158, %c0_159] : memref<16x320xf32, #tpu.memory_space<vmem>>, vector<16x320xf32>
    %452 = vector.extract_strided_slice %451 {offsets = [0, 119], sizes = [16, 64], strides = [1, 1]} : vector<16x320xf32> to vector<16x64xf32>
    %453 = vector.broadcast %82 : vector<1x64xf32> to vector<16x64xf32>
    %454 = arith.mulf %452, %453 : vector<16x64xf32>
    %455 = vector.extract_strided_slice %451 {offsets = [0, 120], sizes = [16, 64], strides = [1, 1]} : vector<16x320xf32> to vector<16x64xf32>
    %456 = vector.extract_strided_slice %451 {offsets = [0, 121], sizes = [16, 64], strides = [1, 1]} : vector<16x320xf32> to vector<16x64xf32>
    %457 = vector.broadcast %86 : vector<1x64xf32> to vector<16x64xf32>
    %458 = arith.mulf %456, %457 : vector<16x64xf32>
    %459 = vector.extract_strided_slice %451 {offsets = [0, 127], sizes = [16, 64], strides = [1, 1]} : vector<16x320xf32> to vector<16x64xf32>
    %460 = vector.broadcast %82 : vector<1x64xf32> to vector<16x64xf32>
    %461 = arith.mulf %459, %460 : vector<16x64xf32>
    %462 = vector.extract_strided_slice %451 {offsets = [0, 128], sizes = [16, 64], strides = [1, 1]} : vector<16x320xf32> to vector<16x64xf32>
    %463 = vector.extract_strided_slice %451 {offsets = [0, 129], sizes = [16, 64], strides = [1, 1]} : vector<16x320xf32> to vector<16x64xf32>
    %464 = vector.broadcast %86 : vector<1x64xf32> to vector<16x64xf32>
    %465 = arith.mulf %463, %464 : vector<16x64xf32>
    %466 = vector.extract_strided_slice %451 {offsets = [0, 135], sizes = [16, 64], strides = [1, 1]} : vector<16x320xf32> to vector<16x64xf32>
    %467 = vector.broadcast %82 : vector<1x64xf32> to vector<16x64xf32>
    %468 = arith.mulf %466, %467 : vector<16x64xf32>
    %469 = vector.extract_strided_slice %451 {offsets = [0, 136], sizes = [16, 64], strides = [1, 1]} : vector<16x320xf32> to vector<16x64xf32>
    %470 = vector.extract_strided_slice %451 {offsets = [0, 137], sizes = [16, 64], strides = [1, 1]} : vector<16x320xf32> to vector<16x64xf32>
    %471 = vector.broadcast %86 : vector<1x64xf32> to vector<16x64xf32>
    %472 = arith.mulf %470, %471 : vector<16x64xf32>
    %473 = tpu.concatenate %454, %455, %458, %461, %462, %465, %468, %469, %472 in 0 : vector<16x64xf32>, vector<16x64xf32>, vector<16x64xf32>, vector<16x64xf32>, vector<16x64xf32>, vector<16x64xf32>, vector<16x64xf32>, vector<16x64xf32>, vector<16x64xf32> -> vector<144x64xf32>
    %474 = arith.truncf %473 : vector<144x64xf32> to vector<144x64xbf16>
    %cst_160 = arith.constant dense<0.000000e+00> : vector<32x64xf32>
    %475 = tpu.matmul %448, %474, %cst_160 {dimension_numbers = #tpu.dot_dimension_numbers<[1], [0], [0], [1], [0, 0, 1, 1], [], []>} : vector<32x144xbf16>, vector<144x64xbf16>, vector<32x64xf32> -> vector<32x64xf32>
    %c0_161 = arith.constant 0 : index
    %c0_162 = arith.constant 0 : index
    %476 = vector.load %arg10[%c0_161, %c0_162] : memref<8x1xf32, #tpu.memory_space<vmem>>, vector<8x1xf32>
    %477 = vector.extract_strided_slice %475 {offsets = [0, 0], sizes = [8, 64], strides = [1, 1]} : vector<32x64xf32> to vector<8x64xf32>
    %478 = vector.broadcast %476 : vector<8x1xf32> to vector<8x64xf32>
    %479 = arith.addf %477, %478 : vector<8x64xf32>
    %cst_163 = arith.constant 0.000000e+00 : f32
    %480 = vector.broadcast %cst_163 : f32 to vector<8x64xf32>
    %481 = arith.maximumf %479, %480 : vector<8x64xf32>
    %482 = vector.extract_strided_slice %475 {offsets = [8, 0], sizes = [8, 64], strides = [1, 1]} : vector<32x64xf32> to vector<8x64xf32>
    %483 = vector.broadcast %476 : vector<8x1xf32> to vector<8x64xf32>
    %484 = arith.addf %482, %483 : vector<8x64xf32>
    %cst_164 = arith.constant 0.000000e+00 : f32
    %485 = vector.broadcast %cst_164 : f32 to vector<8x64xf32>
    %486 = arith.maximumf %484, %485 : vector<8x64xf32>
    %487 = vector.extract_strided_slice %475 {offsets = [16, 0], sizes = [8, 64], strides = [1, 1]} : vector<32x64xf32> to vector<8x64xf32>
    %488 = vector.broadcast %476 : vector<8x1xf32> to vector<8x64xf32>
    %489 = arith.addf %487, %488 : vector<8x64xf32>
    %cst_165 = arith.constant 0.000000e+00 : f32
    %490 = vector.broadcast %cst_165 : f32 to vector<8x64xf32>
    %491 = arith.maximumf %489, %490 : vector<8x64xf32>
    %492 = vector.extract_strided_slice %475 {offsets = [24, 0], sizes = [8, 64], strides = [1, 1]} : vector<32x64xf32> to vector<8x64xf32>
    %493 = vector.broadcast %476 : vector<8x1xf32> to vector<8x64xf32>
    %494 = arith.addf %492, %493 : vector<8x64xf32>
    %cst_166 = arith.constant 0.000000e+00 : f32
    %495 = vector.broadcast %cst_166 : f32 to vector<8x64xf32>
    %496 = arith.maximumf %494, %495 : vector<8x64xf32>
    %c0_167 = arith.constant 0 : index
    %c0_168 = arith.constant 0 : index
    %c0_169 = arith.constant 0 : index
    %497 = vector.load %arg15[%c0_167, %c0_168, %c0_169] : memref<2x8x16xbf16, #tpu.memory_space<vmem>>, vector<1x8x16xbf16>
    %498 = vector.shape_cast %497 : vector<1x8x16xbf16> to vector<8x16xbf16>
    %c1_170 = arith.constant 1 : index
    %c0_171 = arith.constant 0 : index
    %c0_172 = arith.constant 0 : index
    %499 = vector.load %arg15[%c1_170, %c0_171, %c0_172] : memref<2x8x16xbf16, #tpu.memory_space<vmem>>, vector<1x8x16xbf16>
    %500 = vector.shape_cast %499 : vector<1x8x16xbf16> to vector<8x16xbf16>
    %501 = vector.extract_strided_slice %481 {offsets = [0, 0], sizes = [8, 8], strides = [1, 1]} : vector<8x64xf32> to vector<8x8xf32>
    %502 = vector.extract_strided_slice %486 {offsets = [0, 0], sizes = [8, 8], strides = [1, 1]} : vector<8x64xf32> to vector<8x8xf32>
    %503 = vector.extract_strided_slice %491 {offsets = [0, 0], sizes = [8, 8], strides = [1, 1]} : vector<8x64xf32> to vector<8x8xf32>
    %504 = vector.extract_strided_slice %496 {offsets = [0, 0], sizes = [8, 8], strides = [1, 1]} : vector<8x64xf32> to vector<8x8xf32>
    %505 = vector.extract_strided_slice %481 {offsets = [0, 8], sizes = [8, 8], strides = [1, 1]} : vector<8x64xf32> to vector<8x8xf32>
    %506 = vector.extract_strided_slice %486 {offsets = [0, 8], sizes = [8, 8], strides = [1, 1]} : vector<8x64xf32> to vector<8x8xf32>
    %507 = vector.extract_strided_slice %491 {offsets = [0, 8], sizes = [8, 8], strides = [1, 1]} : vector<8x64xf32> to vector<8x8xf32>
    %508 = vector.extract_strided_slice %496 {offsets = [0, 8], sizes = [8, 8], strides = [1, 1]} : vector<8x64xf32> to vector<8x8xf32>
    %509 = vector.extract_strided_slice %481 {offsets = [0, 16], sizes = [8, 8], strides = [1, 1]} : vector<8x64xf32> to vector<8x8xf32>
    %510 = vector.extract_strided_slice %486 {offsets = [0, 16], sizes = [8, 8], strides = [1, 1]} : vector<8x64xf32> to vector<8x8xf32>
    %511 = vector.extract_strided_slice %491 {offsets = [0, 16], sizes = [8, 8], strides = [1, 1]} : vector<8x64xf32> to vector<8x8xf32>
    %512 = vector.extract_strided_slice %496 {offsets = [0, 16], sizes = [8, 8], strides = [1, 1]} : vector<8x64xf32> to vector<8x8xf32>
    %513 = vector.extract_strided_slice %481 {offsets = [0, 24], sizes = [8, 8], strides = [1, 1]} : vector<8x64xf32> to vector<8x8xf32>
    %514 = vector.extract_strided_slice %486 {offsets = [0, 24], sizes = [8, 8], strides = [1, 1]} : vector<8x64xf32> to vector<8x8xf32>
    %515 = vector.extract_strided_slice %491 {offsets = [0, 24], sizes = [8, 8], strides = [1, 1]} : vector<8x64xf32> to vector<8x8xf32>
    %516 = vector.extract_strided_slice %496 {offsets = [0, 24], sizes = [8, 8], strides = [1, 1]} : vector<8x64xf32> to vector<8x8xf32>
    %517 = vector.extract_strided_slice %481 {offsets = [0, 32], sizes = [8, 8], strides = [1, 1]} : vector<8x64xf32> to vector<8x8xf32>
    %518 = vector.extract_strided_slice %486 {offsets = [0, 32], sizes = [8, 8], strides = [1, 1]} : vector<8x64xf32> to vector<8x8xf32>
    %519 = vector.extract_strided_slice %491 {offsets = [0, 32], sizes = [8, 8], strides = [1, 1]} : vector<8x64xf32> to vector<8x8xf32>
    %520 = vector.extract_strided_slice %496 {offsets = [0, 32], sizes = [8, 8], strides = [1, 1]} : vector<8x64xf32> to vector<8x8xf32>
    %521 = vector.extract_strided_slice %481 {offsets = [0, 40], sizes = [8, 8], strides = [1, 1]} : vector<8x64xf32> to vector<8x8xf32>
    %522 = vector.extract_strided_slice %486 {offsets = [0, 40], sizes = [8, 8], strides = [1, 1]} : vector<8x64xf32> to vector<8x8xf32>
    %523 = vector.extract_strided_slice %491 {offsets = [0, 40], sizes = [8, 8], strides = [1, 1]} : vector<8x64xf32> to vector<8x8xf32>
    %524 = vector.extract_strided_slice %496 {offsets = [0, 40], sizes = [8, 8], strides = [1, 1]} : vector<8x64xf32> to vector<8x8xf32>
    %525 = vector.extract_strided_slice %481 {offsets = [0, 48], sizes = [8, 8], strides = [1, 1]} : vector<8x64xf32> to vector<8x8xf32>
    %526 = vector.extract_strided_slice %486 {offsets = [0, 48], sizes = [8, 8], strides = [1, 1]} : vector<8x64xf32> to vector<8x8xf32>
    %527 = vector.extract_strided_slice %491 {offsets = [0, 48], sizes = [8, 8], strides = [1, 1]} : vector<8x64xf32> to vector<8x8xf32>
    %528 = vector.extract_strided_slice %496 {offsets = [0, 48], sizes = [8, 8], strides = [1, 1]} : vector<8x64xf32> to vector<8x8xf32>
    %529 = vector.extract_strided_slice %481 {offsets = [0, 56], sizes = [8, 8], strides = [1, 1]} : vector<8x64xf32> to vector<8x8xf32>
    %530 = vector.extract_strided_slice %486 {offsets = [0, 56], sizes = [8, 8], strides = [1, 1]} : vector<8x64xf32> to vector<8x8xf32>
    %531 = vector.extract_strided_slice %491 {offsets = [0, 56], sizes = [8, 8], strides = [1, 1]} : vector<8x64xf32> to vector<8x8xf32>
    %532 = vector.extract_strided_slice %496 {offsets = [0, 56], sizes = [8, 8], strides = [1, 1]} : vector<8x64xf32> to vector<8x8xf32>
    %533 = tpu.concatenate %501, %503, %505, %507, %509, %511, %513, %515, %517, %519, %521, %523, %525, %527, %529, %531 in 0 : vector<8x8xf32>, vector<8x8xf32>, vector<8x8xf32>, vector<8x8xf32>, vector<8x8xf32>, vector<8x8xf32>, vector<8x8xf32>, vector<8x8xf32>, vector<8x8xf32>, vector<8x8xf32>, vector<8x8xf32>, vector<8x8xf32>, vector<8x8xf32>, vector<8x8xf32>, vector<8x8xf32>, vector<8x8xf32> -> vector<128x8xf32>
    %534 = arith.truncf %533 : vector<128x8xf32> to vector<128x8xbf16>
    %535 = tpu.concatenate %502, %504, %506, %508, %510, %512, %514, %516, %518, %520, %522, %524, %526, %528, %530, %532 in 0 : vector<8x8xf32>, vector<8x8xf32>, vector<8x8xf32>, vector<8x8xf32>, vector<8x8xf32>, vector<8x8xf32>, vector<8x8xf32>, vector<8x8xf32>, vector<8x8xf32>, vector<8x8xf32>, vector<8x8xf32>, vector<8x8xf32>, vector<8x8xf32>, vector<8x8xf32>, vector<8x8xf32>, vector<8x8xf32> -> vector<128x8xf32>
    %536 = arith.truncf %535 : vector<128x8xf32> to vector<128x8xbf16>
    %cst_173 = arith.constant dense<0.000000e+00> : vector<128x16xf32>
    %537 = tpu.matmul %534, %498, %cst_173 {dimension_numbers = #tpu.dot_dimension_numbers<[1], [0], [0], [1], [0, 0, 1, 1], [], []>} : vector<128x8xbf16>, vector<8x16xbf16>, vector<128x16xf32> -> vector<128x16xf32>
    %cst_174 = arith.constant dense<0.000000e+00> : vector<128x16xf32>
    %538 = tpu.matmul %536, %500, %cst_174 {dimension_numbers = #tpu.dot_dimension_numbers<[1], [0], [0], [1], [0, 0, 1, 1], [], []>} : vector<128x8xbf16>, vector<8x16xbf16>, vector<128x16xf32> -> vector<128x16xf32>
    %539 = arith.addf %537, %538 : vector<128x16xf32>
    %540 = vector.extract_strided_slice %539 {offsets = [0, 0], sizes = [8, 16], strides = [1, 1]} : vector<128x16xf32> to vector<8x16xf32>
    %c0_175 = arith.constant 0 : index
    %c128_176 = arith.constant 128 : index
    %541 = vector.load %arg18[%c0_175, %c128_176] : memref<16x512xf32, #tpu.memory_space<vmem>>, vector<8x16xf32>
    tpu.vector_store %arg18[%c0_175, %c128_176], %540 {strides = array<i32>} : memref<16x512xf32, #tpu.memory_space<vmem>>, vector<8x16xf32>,
    %542 = vector.extract_strided_slice %539 {offsets = [8, 0], sizes = [8, 16], strides = [1, 1]} : vector<128x16xf32> to vector<8x16xf32>
    %c0_177 = arith.constant 0 : index
    %c144_178 = arith.constant 144 : index
    %543 = vector.load %arg18[%c0_177, %c144_178] : memref<16x512xf32, #tpu.memory_space<vmem>>, vector<8x16xf32>
    tpu.vector_store %arg18[%c0_177, %c144_178], %542 {strides = array<i32>} : memref<16x512xf32, #tpu.memory_space<vmem>>, vector<8x16xf32>,
    %544 = vector.extract_strided_slice %539 {offsets = [16, 0], sizes = [8, 16], strides = [1, 1]} : vector<128x16xf32> to vector<8x16xf32>
    %c0_179 = arith.constant 0 : index
    %c160_180 = arith.constant 160 : index
    %545 = vector.load %arg18[%c0_179, %c160_180] : memref<16x512xf32, #tpu.memory_space<vmem>>, vector<8x16xf32>
    tpu.vector_store %arg18[%c0_179, %c160_180], %544 {strides = array<i32>} : memref<16x512xf32, #tpu.memory_space<vmem>>, vector<8x16xf32>,
    %546 = vector.extract_strided_slice %539 {offsets = [24, 0], sizes = [8, 16], strides = [1, 1]} : vector<128x16xf32> to vector<8x16xf32>
    %c0_181 = arith.constant 0 : index
    %c176_182 = arith.constant 176 : index
    %547 = vector.load %arg18[%c0_181, %c176_182] : memref<16x512xf32, #tpu.memory_space<vmem>>, vector<8x16xf32>
    tpu.vector_store %arg18[%c0_181, %c176_182], %546 {strides = array<i32>} : memref<16x512xf32, #tpu.memory_space<vmem>>, vector<8x16xf32>,
    %548 = vector.extract_strided_slice %539 {offsets = [32, 0], sizes = [8, 16], strides = [1, 1]} : vector<128x16xf32> to vector<8x16xf32>
    %c0_183 = arith.constant 0 : index
    %c192_184 = arith.constant 192 : index
    %549 = vector.load %arg18[%c0_183, %c192_184] : memref<16x512xf32, #tpu.memory_space<vmem>>, vector<8x16xf32>
    tpu.vector_store %arg18[%c0_183, %c192_184], %548 {strides = array<i32>} : memref<16x512xf32, #tpu.memory_space<vmem>>, vector<8x16xf32>,
    %550 = vector.extract_strided_slice %539 {offsets = [40, 0], sizes = [8, 16], strides = [1, 1]} : vector<128x16xf32> to vector<8x16xf32>
    %c0_185 = arith.constant 0 : index
    %c208_186 = arith.constant 208 : index
    %551 = vector.load %arg18[%c0_185, %c208_186] : memref<16x512xf32, #tpu.memory_space<vmem>>, vector<8x16xf32>
    tpu.vector_store %arg18[%c0_185, %c208_186], %550 {strides = array<i32>} : memref<16x512xf32, #tpu.memory_space<vmem>>, vector<8x16xf32>,
    %552 = vector.extract_strided_slice %539 {offsets = [48, 0], sizes = [8, 16], strides = [1, 1]} : vector<128x16xf32> to vector<8x16xf32>
    %c0_187 = arith.constant 0 : index
    %c224_188 = arith.constant 224 : index
    %553 = vector.load %arg18[%c0_187, %c224_188] : memref<16x512xf32, #tpu.memory_space<vmem>>, vector<8x16xf32>
    tpu.vector_store %arg18[%c0_187, %c224_188], %552 {strides = array<i32>} : memref<16x512xf32, #tpu.memory_space<vmem>>, vector<8x16xf32>,
    %554 = vector.extract_strided_slice %539 {offsets = [56, 0], sizes = [8, 16], strides = [1, 1]} : vector<128x16xf32> to vector<8x16xf32>
    %c0_189 = arith.constant 0 : index
    %c240_190 = arith.constant 240 : index
    %555 = vector.load %arg18[%c0_189, %c240_190] : memref<16x512xf32, #tpu.memory_space<vmem>>, vector<8x16xf32>
    tpu.vector_store %arg18[%c0_189, %c240_190], %554 {strides = array<i32>} : memref<16x512xf32, #tpu.memory_space<vmem>>, vector<8x16xf32>,
    %556 = vector.extract_strided_slice %539 {offsets = [64, 0], sizes = [8, 16], strides = [1, 1]} : vector<128x16xf32> to vector<8x16xf32>
    %c0_191 = arith.constant 0 : index
    %c256 = arith.constant 256 : index
    %557 = vector.load %arg18[%c0_191, %c256] : memref<16x512xf32, #tpu.memory_space<vmem>>, vector<8x16xf32>
    tpu.vector_store %arg18[%c0_191, %c256], %556 {strides = array<i32>} : memref<16x512xf32, #tpu.memory_space<vmem>>, vector<8x16xf32>,
    %558 = vector.extract_strided_slice %539 {offsets = [72, 0], sizes = [8, 16], strides = [1, 1]} : vector<128x16xf32> to vector<8x16xf32>
    %c0_192 = arith.constant 0 : index
    %c272 = arith.constant 272 : index
    %559 = vector.load %arg18[%c0_192, %c272] : memref<16x512xf32, #tpu.memory_space<vmem>>, vector<8x16xf32>
    tpu.vector_store %arg18[%c0_192, %c272], %558 {strides = array<i32>} : memref<16x512xf32, #tpu.memory_space<vmem>>, vector<8x16xf32>,
    %560 = vector.extract_strided_slice %539 {offsets = [80, 0], sizes = [8, 16], strides = [1, 1]} : vector<128x16xf32> to vector<8x16xf32>
    %c0_193 = arith.constant 0 : index
    %c288 = arith.constant 288 : index
    %561 = vector.load %arg18[%c0_193, %c288] : memref<16x512xf32, #tpu.memory_space<vmem>>, vector<8x16xf32>
    tpu.vector_store %arg18[%c0_193, %c288], %560 {strides = array<i32>} : memref<16x512xf32, #tpu.memory_space<vmem>>, vector<8x16xf32>,
    %562 = vector.extract_strided_slice %539 {offsets = [88, 0], sizes = [8, 16], strides = [1, 1]} : vector<128x16xf32> to vector<8x16xf32>
    %c0_194 = arith.constant 0 : index
    %c304 = arith.constant 304 : index
    %563 = vector.load %arg18[%c0_194, %c304] : memref<16x512xf32, #tpu.memory_space<vmem>>, vector<8x16xf32>
    tpu.vector_store %arg18[%c0_194, %c304], %562 {strides = array<i32>} : memref<16x512xf32, #tpu.memory_space<vmem>>, vector<8x16xf32>,
    %564 = vector.extract_strided_slice %539 {offsets = [96, 0], sizes = [8, 16], strides = [1, 1]} : vector<128x16xf32> to vector<8x16xf32>
    %c0_195 = arith.constant 0 : index
    %c320 = arith.constant 320 : index
    %565 = vector.load %arg18[%c0_195, %c320] : memref<16x512xf32, #tpu.memory_space<vmem>>, vector<8x16xf32>
    tpu.vector_store %arg18[%c0_195, %c320], %564 {strides = array<i32>} : memref<16x512xf32, #tpu.memory_space<vmem>>, vector<8x16xf32>,
    %566 = vector.extract_strided_slice %539 {offsets = [104, 0], sizes = [8, 16], strides = [1, 1]} : vector<128x16xf32> to vector<8x16xf32>
    %c0_196 = arith.constant 0 : index
    %c336 = arith.constant 336 : index
    %567 = vector.load %arg18[%c0_196, %c336] : memref<16x512xf32, #tpu.memory_space<vmem>>, vector<8x16xf32>
    tpu.vector_store %arg18[%c0_196, %c336], %566 {strides = array<i32>} : memref<16x512xf32, #tpu.memory_space<vmem>>, vector<8x16xf32>,
    %568 = vector.extract_strided_slice %539 {offsets = [112, 0], sizes = [8, 16], strides = [1, 1]} : vector<128x16xf32> to vector<8x16xf32>
    %c0_197 = arith.constant 0 : index
    %c352 = arith.constant 352 : index
    %569 = vector.load %arg18[%c0_197, %c352] : memref<16x512xf32, #tpu.memory_space<vmem>>, vector<8x16xf32>
    tpu.vector_store %arg18[%c0_197, %c352], %568 {strides = array<i32>} : memref<16x512xf32, #tpu.memory_space<vmem>>, vector<8x16xf32>,
    %570 = vector.extract_strided_slice %539 {offsets = [120, 0], sizes = [8, 16], strides = [1, 1]} : vector<128x16xf32> to vector<8x16xf32>
    %c0_198 = arith.constant 0 : index
    %c368 = arith.constant 368 : index
    %571 = vector.load %arg18[%c0_198, %c368] : memref<16x512xf32, #tpu.memory_space<vmem>>, vector<8x16xf32>
    tpu.vector_store %arg18[%c0_198, %c368], %570 {strides = array<i32>} : memref<16x512xf32, #tpu.memory_space<vmem>>, vector<8x16xf32>,
    %c8_199 = arith.constant 8 : index
    %c128_200 = arith.constant 128 : index
    %572 = vector.load %arg18[%c8_199, %c128_200] : memref<16x512xf32, #tpu.memory_space<vmem>>, vector<8x256xf32>
    tpu.vector_store %arg18[%c8_199, %c128_200], %231 {strides = array<i32>} : memref<16x512xf32, #tpu.memory_space<vmem>>, vector<8x256xf32>,
    %c0_201 = arith.constant 0 : index
    %c0_202 = arith.constant 0 : index
    %573 = vector.load %arg11[%c0_201, %c0_202] : memref<32x144xbf16, #tpu.memory_space<vmem>>, vector<32x144xbf16>
    %c0_203 = arith.constant 0 : index
    %c0_204 = arith.constant 0 : index
    %574 = vector.load %arg18[%c0_203, %c0_204] : memref<16x512xf32, #tpu.memory_space<vmem>>, vector<16x512xf32>
    %575 = vector.extract_strided_slice %574 {offsets = [0, 111], sizes = [16, 256], strides = [1, 1]} : vector<16x512xf32> to vector<16x256xf32>
    %576 = vector.broadcast %57 : vector<1x256xf32> to vector<16x256xf32>
    %577 = arith.mulf %575, %576 : vector<16x256xf32>
    %578 = vector.extract_strided_slice %574 {offsets = [0, 112], sizes = [16, 256], strides = [1, 1]} : vector<16x512xf32> to vector<16x256xf32>
    %579 = vector.extract_strided_slice %574 {offsets = [0, 113], sizes = [16, 256], strides = [1, 1]} : vector<16x512xf32> to vector<16x256xf32>
    %580 = vector.broadcast %61 : vector<1x256xf32> to vector<16x256xf32>
    %581 = arith.mulf %579, %580 : vector<16x256xf32>
    %582 = vector.extract_strided_slice %574 {offsets = [0, 127], sizes = [16, 256], strides = [1, 1]} : vector<16x512xf32> to vector<16x256xf32>
    %583 = vector.broadcast %57 : vector<1x256xf32> to vector<16x256xf32>
    %584 = arith.mulf %582, %583 : vector<16x256xf32>
    %585 = vector.extract_strided_slice %574 {offsets = [0, 128], sizes = [16, 256], strides = [1, 1]} : vector<16x512xf32> to vector<16x256xf32>
    %586 = vector.extract_strided_slice %574 {offsets = [0, 129], sizes = [16, 256], strides = [1, 1]} : vector<16x512xf32> to vector<16x256xf32>
    %587 = vector.broadcast %61 : vector<1x256xf32> to vector<16x256xf32>
    %588 = arith.mulf %586, %587 : vector<16x256xf32>
    %589 = vector.extract_strided_slice %574 {offsets = [0, 143], sizes = [16, 256], strides = [1, 1]} : vector<16x512xf32> to vector<16x256xf32>
    %590 = vector.broadcast %57 : vector<1x256xf32> to vector<16x256xf32>
    %591 = arith.mulf %589, %590 : vector<16x256xf32>
    %592 = vector.extract_strided_slice %574 {offsets = [0, 144], sizes = [16, 256], strides = [1, 1]} : vector<16x512xf32> to vector<16x256xf32>
    %593 = vector.extract_strided_slice %574 {offsets = [0, 145], sizes = [16, 256], strides = [1, 1]} : vector<16x512xf32> to vector<16x256xf32>
    %594 = vector.broadcast %61 : vector<1x256xf32> to vector<16x256xf32>
    %595 = arith.mulf %593, %594 : vector<16x256xf32>
    %596 = tpu.concatenate %577, %578, %581, %584, %585, %588, %591, %592, %595 in 0 : vector<16x256xf32>, vector<16x256xf32>, vector<16x256xf32>, vector<16x256xf32>, vector<16x256xf32>, vector<16x256xf32>, vector<16x256xf32>, vector<16x256xf32>, vector<16x256xf32> -> vector<144x256xf32>
    %597 = arith.truncf %596 : vector<144x256xf32> to vector<144x256xbf16>
    %cst_205 = arith.constant dense<0.000000e+00> : vector<32x256xf32>
    %598 = tpu.matmul %573, %597, %cst_205 {dimension_numbers = #tpu.dot_dimension_numbers<[1], [0], [0], [1], [0, 0, 1, 1], [], []>} : vector<32x144xbf16>, vector<144x256xbf16>, vector<32x256xf32> -> vector<32x256xf32>
    %c0_206 = arith.constant 0 : index
    %c0_207 = arith.constant 0 : index
    %599 = vector.load %arg12[%c0_206, %c0_207] : memref<32x1xf32, #tpu.memory_space<vmem>>, vector<32x1xf32>
    %600 = vector.broadcast %599 : vector<32x1xf32> to vector<32x256xf32>
    %601 = arith.addf %598, %600 : vector<32x256xf32>
    %c0_208 = arith.constant 0 : index
    %c0_209 = arith.constant 0 : index
    %c0_210 = arith.constant 0 : index
    %602 = vector.load %arg16[%c0_208, %c0_209, %c0_210] : memref<1x32x256xf32, #tpu.memory_space<vmem>>, vector<1x32x256xf32>
    %603 = vector.shape_cast %602 : vector<1x32x256xf32> to vector<32x256xf32>
    %604 = vector.shape_cast %601 : vector<32x256xf32> to vector<1x32x256xf32>
    tpu.vector_store %arg16[%c0_208, %c0_209, %c0_210], %604 {strides = array<i32>} : memref<1x32x256xf32, #tpu.memory_space<vmem>>, vector<1x32x256xf32>,
    return
  }
  func.func @transform_0(%arg0: i32) -> (i32, i32, i32) {
    %c0_i32 = arith.constant 0 : i32
    %c0_i32_0 = arith.constant 0 : i32
    %c0_i32_1 = arith.constant 0 : i32
    return %arg0, %c0_i32, %c0_i32_0 : i32, i32, i32
  }
  func.func @transform_1(%arg0: i32) -> (i32, i32) {
    %c0_i32 = arith.constant 0 : i32
    %c0_i32_0 = arith.constant 0 : i32
    %c0_i32_1 = arith.constant 0 : i32
    return %c0_i32, %c0_i32_0 : i32, i32
  }
  func.func @transform_2(%arg0: i32) -> (i32, i32) {
    %c0_i32 = arith.constant 0 : i32
    %c0_i32_0 = arith.constant 0 : i32
    %c0_i32_1 = arith.constant 0 : i32
    return %c0_i32, %c0_i32_0 : i32, i32
  }
  func.func @transform_3(%arg0: i32) -> (i32, i32) {
    %c0_i32 = arith.constant 0 : i32
    %c0_i32_0 = arith.constant 0 : i32
    %c0_i32_1 = arith.constant 0 : i32
    return %c0_i32, %c0_i32_0 : i32, i32
  }
  func.func @transform_4(%arg0: i32) -> (i32, i32) {
    %c0_i32 = arith.constant 0 : i32
    %c0_i32_0 = arith.constant 0 : i32
    %c0_i32_1 = arith.constant 0 : i32
    return %c0_i32, %c0_i32_0 : i32, i32
  }
  func.func @transform_5(%arg0: i32) -> (i32, i32, i32) {
    %c0_i32 = arith.constant 0 : i32
    %c0_i32_0 = arith.constant 0 : i32
    %c0_i32_1 = arith.constant 0 : i32
    %c0_i32_2 = arith.constant 0 : i32
    return %c0_i32, %c0_i32_0, %c0_i32_1 : i32, i32, i32
  }
  func.func @transform_6(%arg0: i32) -> (i32, i32, i32) {
    %c0_i32 = arith.constant 0 : i32
    %c0_i32_0 = arith.constant 0 : i32
    %c0_i32_1 = arith.constant 0 : i32
    %c0_i32_2 = arith.constant 0 : i32
    return %c0_i32, %c0_i32_0, %c0_i32_1 : i32, i32, i32
  }
  func.func @transform_7(%arg0: i32) -> (i32, i32) {
    %c0_i32 = arith.constant 0 : i32
    %c0_i32_0 = arith.constant 0 : i32
    %c0_i32_1 = arith.constant 0 : i32
    return %c0_i32, %c0_i32_0 : i32, i32
  }
  func.func @transform_8(%arg0: i32) -> (i32, i32) {
    %c0_i32 = arith.constant 0 : i32
    %c0_i32_0 = arith.constant 0 : i32
    %c0_i32_1 = arith.constant 0 : i32
    return %c0_i32, %c0_i32_0 : i32, i32
  }
  func.func @transform_9(%arg0: i32) -> (i32, i32) {
    %c0_i32 = arith.constant 0 : i32
    %c0_i32_0 = arith.constant 0 : i32
    %c0_i32_1 = arith.constant 0 : i32
    return %c0_i32, %c0_i32_0 : i32, i32
  }
  func.func @transform_10(%arg0: i32) -> (i32, i32) {
    %c0_i32 = arith.constant 0 : i32
    %c0_i32_0 = arith.constant 0 : i32
    %c0_i32_1 = arith.constant 0 : i32
    return %c0_i32, %c0_i32_0 : i32, i32
  }
  func.func @transform_11(%arg0: i32) -> (i32, i32) {
    %c0_i32 = arith.constant 0 : i32
    %c0_i32_0 = arith.constant 0 : i32
    %c0_i32_1 = arith.constant 0 : i32
    return %c0_i32, %c0_i32_0 : i32, i32
  }
  func.func @transform_12(%arg0: i32) -> (i32, i32) {
    %c0_i32 = arith.constant 0 : i32
    %c0_i32_0 = arith.constant 0 : i32
    %c0_i32_1 = arith.constant 0 : i32
    return %c0_i32, %c0_i32_0 : i32, i32
  }
  func.func @transform_13(%arg0: i32) -> (i32, i32) {
    %c0_i32 = arith.constant 0 : i32
    %c0_i32_0 = arith.constant 0 : i32
    %c0_i32_1 = arith.constant 0 : i32
    return %c0_i32, %c0_i32_0 : i32, i32
  }
  func.func @transform_14(%arg0: i32) -> (i32, i32, i32) {
    %c0_i32 = arith.constant 0 : i32
    %c0_i32_0 = arith.constant 0 : i32
    %c0_i32_1 = arith.constant 0 : i32
    %c0_i32_2 = arith.constant 0 : i32
    return %c0_i32, %c0_i32_0, %c0_i32_1 : i32, i32, i32
  }
  func.func @transform_15(%arg0: i32) -> (i32, i32, i32) {
    %c0_i32 = arith.constant 0 : i32
    %c0_i32_0 = arith.constant 0 : i32
    %c0_i32_1 = arith.constant 0 : i32
    return %arg0, %c0_i32, %c0_i32_0 : i32, i32, i32
  }
}

</mosaic_0001>

<bundles_post_ra>
// kernel: simple_unet_forward.1
= control target key start
LH: loop header
LB: loop body
LE: loop exit
PB: predicated region body
PF: predicated region fallthrough
CT: control target
= control target key end

     0   :  { %s6740_s18 = smov 0   ;;  %s9190_s0 = inlined_call_operand.vmem [shape: f32[2,8,1024], index: 0, kind: input, shape index: {}]   ;;  %s9191_s1 = inlined_call_operand.vmem [shape: bf16[8,72], index: 1, kind: input, shape index: {}]   ;;  %s9192_s2 = inlined_call_operand.vmem [shape: bf16[8,72], index: 2, kind: input, shape index: {}]   ;;  %s9193_s3 = inlined_call_operand.vmem [shape: bf16[8,72], index: 3, kind: input, shape index: {}]   ;;  %s9194_s4 = inlined_call_operand.vmem [shape: bf16[8,72], index: 4, kind: input, shape index: {}]   ;;  %s9195_s5 = inlined_call_operand.vmem [shape: bf16[2,8,72], index: 5, kind: input, shape index: {}]   ;;  %s9196_s6 = inlined_call_operand.vmem [shape: f32[2,8,2], index: 6, kind: input, shape index: {}]   ;;  %s9197_s7 = inlined_call_operand.vmem [shape: f32[8,1], index: 7, kind: input, shape index: {}]   ;;  %s9198_s8 = inlined_call_operand.vmem [shape: bf16[32,144], index: 8, kind: input, shape index: {}]   ;;  %s9199_s9 = inlined_call_operand.vmem [shape: f32[8,1], index: 9, kind: input, shape index: {}]   ;;  %s9200_s10 = inlined_call_operand.vmem [shape: bf16[32,144], index: 10, kind: input, shape index: {}]   ;;  %s9201_s11 = inlined_call_operand.vmem [shape: f32[32,1], index: 11, kind: input, shape index: {}]   ;;  %s9202_s12 = inlined_call_operand.vmem [shape: bf16[64,16], index: 12, kind: input, shape index: {}]   ;;  %s9203_s13 = inlined_call_operand.vmem [shape: bf16[32,8], index: 13, kind: input, shape index: {}]   ;;  %s9204_s14 = inlined_call_operand.vmem [shape: bf16[2,8,16], index: 14, kind: input, shape index: {}]   ;;  %s9205_s15 = inlined_call_operand.vmem [shape: f32[2,32,256], index: 15, kind: output, shape index: {}]  }
   0x1 LB: > { %s5419_s19 = sadd.s32 4294967295, %s6619_s18   ;;  %p5423_p0 = scmp.ge.s32.totalorder %s6619_s18, 1  ;;  %s6619_s18 = sphi %s6740_s18, %s25_s18  }
   0x2   : > { %p437_p1 = scmp.lt.s32.totalorder %s6619_s18, 3 }
   0x4   : > { %p438_p2 = pnand %p5423_p0, %p437_p1 }
   0x6   : > { %441 = sbr.rel (%p438_p2) target bundleno = 7062 (0x1b96), region = 80 }
   0xd   : > { %v9206_v0 = vlaneseq  ;;  %v6621_v1 = vmov 0.0   ;;  %s6622_s20 = smov 97   ;;  %s9301_s21 = smov 127  }
   0xe   : > { %498 = vst [vmem:[#allocation3] sm:$0xff] %v6621_v1  ;;  %s9272_s22 = smov 1   ;;  %s6625_s23 = smov 31  }
   0xf   : > { %v6750_v2 = vand.u32 127, %v9206_v0  ;;  %p485_p3 = scmp.lt.s32.totalorder %s5419_s19, 1  ;;  %s6626_s24 = smov 33  }
  0x10   : > { %s9280_s29 = smov 95   ;;  %s6628_s30 = smov 63  }
  0x11   : > { %9303 = vst [vmem:[#allocation7_spill] sm:$0xff] %v6750_v2  ;;  %v6753_v3 = vadd.s32 128, %v6750_v2  ;;  %v523_v4 = vand.u32 31, %v6750_v2  ;;  %v513_v5 = vadd.s32 256, %v6750_v2  ;;  %v514_v6 = vadd.s32 384, %v6750_v2  ;;  %s9502_s19 = smov (!%p485_p3, %s5419_s19), 1 }
  0x12   : > { %v515_v7 = vadd.s32 512, %v6750_v2  ;;  %v516_v8 = vadd.s32 640, %v6750_v2  ;;  %v517_v32 = vadd.s32 768, %v6750_v2  ;;  %v518_v33 = vadd.s32 896, %v6750_v2  ;;  %s9261_s25 = sshll.u32 %s9502_s19, 6  ;;  %s9299_s16 = smov 126  }
  0x13   : > { %9304 = vst [vmem:[#allocation8_spill] sm:$0xff] %v6753_v3  ;;  %v530_v9 = vand.u32 31, %v6753_v3  ;;  %vm639_vm0 = vcmp.lt.s32.totalorder %v523_v4, 31  ;;  %vm615_vm1 = vcmp.gt.s32.totalorder %v523_v4, 0  ;;  %v537_v12 = vand.u32 31, %v513_v5  ;;  %s6813_s28 = scalar_lea.vmem %s9190_s0, %s9261_s25  ;;  %s9287_s17 = smov 96  }
  0x14   : > { %v5436_v10 = vsel %vm639_vm0, 1.0, %v6621_v1  ;;  %v5428_v11 = vsel %vm615_vm1, 1.0, %v6621_v1  ;;  %v544_v13 = vand.u32 31, %v514_v6  ;;  %v551_v14 = vand.u32 31, %v515_v7  ;;  %v6817_v42 = vld [vmem:[%s6813_s28 + $0x10] sm:$0xff]  ;;  %v6820_v43 = vld [vmem:[%s6813_s28] sm:$0xff] }
  0x15   : > { %vm640_vm2 = vcmp.lt.s32.totalorder %v530_v9, 31  ;;  %vm616_vm3 = vcmp.gt.s32.totalorder %v530_v9, 0  ;;  %v558_v15 = vand.u32 31, %v516_v8  ;;  %vm641_vm4 = vcmp.lt.s32.totalorder %v537_v12, 31  ;;  %v6823_v44 = vld [vmem:[%s6813_s28 + $0x8] sm:$0xff]  ;;  %v6833_v47 = vld [vmem:[%s6813_s28 + $0x18] sm:$0xff] }
  0x16   : > { %v5437_v16 = vsel %vm640_vm2, 1.0, %v6621_v1  ;;  %v5429_v17 = vsel %vm616_vm3, 1.0, %v6621_v1  ;;  %vm642_vm5 = vcmp.lt.s32.totalorder %v544_v13, 31  ;;  %v5438_v20 = vsel %vm641_vm4, 1.0, %v6621_v1  ;;  %v6836_v48 = vld [vmem:[%s6813_s28 + $0x20] sm:$0xff]  ;;  %v6852_v53 = vld [vmem:[%s6813_s28 + $0x28] sm:$0xff] }
  0x17   : > { %v5738_v18 = vpack.i.bf16 %v5437_v16, %v5436_v10  ;;  %v6765_v19 = vpack.i.bf16 %v5429_v17, %v5428_v11  ;;  %v5439_v21 = vsel %vm642_vm5, 1.0, %v6621_v1  ;;  %vm617_vm6 = vcmp.gt.s32.totalorder %v537_v12, 0  ;;  %v6860_v56 = vld [vmem:[%s6813_s28 + $0x30] sm:$0xff]  ;;  %v6867_v58 = vld [vmem:[%s6813_s28 + $0x38] sm:$0xff]  ;;  %s6633_s26 = smov 62   ;;  %s9285_s25 = smov 32  }
  0x18   : > { %v5743_v22 = vpack.i.bf16 %v5439_v21, %v5438_v20  ;;  %vm618_vm7 = vcmp.gt.s32.totalorder %v544_v13, 0  ;;  %vm643_vm8 = vcmp.lt.s32.totalorder %v551_v14, 31  ;;  %v5430_v23 = vsel %vm617_vm6, 1.0, %v6621_v1  ;;  %s9262_s28 = smov 48   ;;  %s6640_s27 = smov 113  }
  0x19   : > { %5739 = vrot.lane.b32.xlu0 %v5738_v18, %s6622_s20  ;;  %5749 = vrot.lane.b32.xlu1 %v6765_v19, %s9301_s21  ;;  %v5431_v24 = vsel %vm618_vm7, 1.0, %v6621_v1  ;;  %vm644_vm9 = vcmp.lt.s32.totalorder %v558_v15, 31  ;;  %v5440_v25 = vsel %vm643_vm8, 1.0, %v6621_v1  ;;  %vm619_vm10 = vcmp.gt.s32.totalorder %v551_v14, 0 }
  0x1a   : > { %v5753_v26 = vpack.i.bf16 %v5431_v24, %v5430_v23  ;;  %v5441_v27 = vsel %vm644_vm9, 1.0, %v6621_v1  ;;  %vm620_vm11 = vcmp.gt.s32.totalorder %v558_v15, 0  ;;  %v5432_v28 = vsel %vm619_vm10, 1.0, %v6621_v1 }
  0x1b   : > { %v6778_v29 = vsel %vm620_vm11, 1.0, %v6621_v1  ;;  %v5758_v30 = vpack.i.bf16 %v5441_v27, %v5440_v25  ;;  %v565_v34 = vand.u32 31, %v517_v32  ;;  %v572_v35 = vand.u32 31, %v518_v33 }
  0x1c   : > { %v5763_v31 = vpack.i.bf16 %v6778_v29, %v5432_v28  ;;  %v5853_v45 = vpack.i.bf16 %v6621_v1, %v6817_v42  ;;  %v5848_v46 = vpack.i.bf16 %v6823_v44, %v6820_v43  ;;  %v5863_v49 = vpack.i.bf16 %v6836_v48, %v6833_v47 }
  0x1d   : > { %5744 = vrot.lane.b32.xlu0 %v5743_v22, %s6622_s20  ;;  %5754 = vrot.lane.b32.xlu1 %v5753_v26, %s9301_s21  ;;  %vm645_vm12 = vcmp.lt.s32.totalorder %v565_v34, 31  ;;  %vm646_vm13 = vcmp.lt.s32.totalorder %v572_v35, 31  ;;  %vm621_vm14 = vcmp.gt.s32.totalorder %v565_v34, 0  ;;  %vm622_vm15 = vcmp.gt.s32.totalorder %v572_v35, 0 }
  0x1e   : > { %v5442_v36 = vsel %vm645_vm12, 1.0, %v6621_v1  ;;  %v5443_v37 = vsel %vm646_vm13, 1.0, %v6621_v1  ;;  %v5434_v39 = vsel %vm621_vm14, 1.0, %v6621_v1  ;;  %v5435_v40 = vsel %vm622_vm15, 1.0, %v6621_v1 }
  0x1f   : > { %v5813_v38 = vpack.i.bf16 %v5443_v37, %v5442_v36  ;;  %v5818_v41 = vpack.i.bf16 %v5435_v40, %v5434_v39  ;;  %v5858_v50 = vpack.i.bf16 %v6820_v43, %v5432_v28  ;;  %v5868_v51 = vpack.i.bf16 %v6817_v42, %v6823_v44 }
  0x20   : > { %v5883_v52 = vpack.i.bf16 %v6833_v47, %v6817_v42  ;;  %v5888_v54 = vpack.i.bf16 %v6852_v53, %v6836_v48  ;;  %v5893_v55 = vpack.i.bf16 %v5434_v39, %v6778_v29  ;;  %v5898_v57 = vpack.i.bf16 %v6860_v56, %v6852_v53 }
  0x21   : > { %5759 = vrot.lane.b32.xlu0 %v5758_v30, %s6622_s20  ;;  %5764 = vrot.lane.b32.xlu1 %v5763_v31, %s9301_s21  ;;  %v5903_v59 = vpack.i.bf16 %v6852_v53, %v5435_v40  ;;  %v5908_v60 = vpack.i.bf16 %v6867_v58, %v6860_v56  ;;  %vm818_vm0 = vcmask 793600   ;;  %vm860_vm1 = vcmask 1039360  }
  0x22   : > { %vm902_vm2 = vcmask 7168   ;;  %vm944_vm3 = vcmask 252928   ;;  %vm986_vm4 = vcmask 269312   ;;  %vm506_vm5 = vcmask 523264  }
  0x23   : > { %vm9289_vm6 = vcmask 777216   ;;  %vm9278_vm7 = vcmask 785408   ;;  %vm1083_vm8 = vcmask 1031168   ;;  %vm9277_vm9 = vcmask 769024  }
  0x24   : > { %vm1286_vm10 = vcmask 515072   ;;  %vm1331_vm11 = vcmask 506880   ;;  %vm1606_vm12 = vcmask 1043456   ;;  %vm1602_vm13 = vcmask 588800  }
  0x25   : > { %5769 = vrot.lane.b32.xlu0 %v5738_v18, %s9272_s22  ;;  %5774 = vrot.lane.b32.xlu1 %v5743_v22, %s9272_s22  ;;  %vm9266_vm14 = vcmask 130048  }
  0x29   : > { %5779 = vrot.lane.b32.xlu0 %v5758_v30, %s9272_s22  ;;  %5784 = vrot.lane.b32.xlu1 %v6765_v19, %s6625_s23 }
  0x2d   : > { %5789 = vrot.lane.b32.xlu0 %v5753_v26, %s6625_s23  ;;  %5794 = vrot.lane.b32.xlu1 %v5763_v31, %s6625_s23 }
  0x31   : > { %5799 = vrot.lane.b32.xlu0 %v5738_v18, %s6626_s24  ;;  %5804 = vrot.lane.b32.xlu1 %v5743_v22, %s6626_s24 }
  0x35   : > { %5809 = vrot.lane.b32.xlu0 %v5758_v30, %s6626_s24  ;;  %5814 = vrot.lane.b32.xlu1 %v5813_v38, %s6622_s20  ;;  %s9275_s20 = smov 94  }
  0x39   : > { %5819 = vrot.lane.b32.xlu0 %v5818_v41, %s9301_s21  ;;  %5824 = vrot.lane.b32.xlu1 %v5813_v38, %s9272_s22 }
  0x3d   : > { %5829 = vrot.lane.b32.xlu0 %v5818_v41, %s6625_s23  ;;  %5834 = vrot.lane.b32.xlu1 %v5813_v38, %s6626_s24  ;;  %s9283_s23 = smov 64  }
  0x41   : > { %5839 = vrot.lane.b32.xlu0 %v6765_v19, %s9280_s29  ;;  %5844 = vrot.lane.b32.xlu1 %v5753_v26, %s9280_s29 }
  0x45   : > { %5854 = vrot.lane.b32.xlu1 %v5853_v45, %s9301_s21  ;;  %5849 = vrot.lane.b32.xlu0 %v5848_v46, %s9301_s21 }
  0x49   : > { %5864 = vrot.lane.b32.xlu1 %v5863_v49, %s9301_s21  ;;  %5859 = vrot.lane.b32.xlu0 %v5858_v50, %s9280_s29 }
  0x4d   : > { %5869 = vrot.lane.b32.xlu0 %v5868_v51, %s9280_s29  ;;  %5874 = vrot.lane.b32.xlu1 %v5863_v49, %s9280_s29 }
  0x51   : > { %5884 = vrot.lane.b32.xlu0 %v5883_v52, %s6628_s30  ;;  %5879 = vrot.lane.b32.xlu1 %v5848_v46, %s6628_s30 }
  0x55   : > { %5889 = vrot.lane.b32.xlu0 %v5888_v54, %s6628_s30  ;;  %5894 = vrot.lane.b32.xlu1 %v5893_v55, %s9280_s29 }
  0x59   : > { %5899 = vrot.lane.b32.xlu0 %v5898_v57, %s9301_s21  ;;  %1037 = vrot.lane.b32.xlu1 %v6867_v58, %s9301_s21 }
  0x5d   : > { %5904 = vrot.lane.b32.xlu0 %v5903_v59, %s9280_s29 }
  0x61   : > { %5909 = vrot.lane.b32.xlu0 %v5908_v60, %s9280_s29 }
  0x65   : > { %5914 = vrot.lane.b32.xlu0 %v5908_v60, %s6628_s30 }
  0x69   : > { %1284 = vrot.lane.b32.xlu0 %v6621_v1, %s6628_s30 }
  0x8b   : > { %v6880_v61 = vpop.permute.xlu0 %5739  ;;  %v6882_v62 = vpop.permute.xlu1 %5749 }
  0x8c   : > { %v5742_v23 = vunpack.i.h.bf16 %v6880_v61  ;;  %v5741_v24 = vunpack.i.l.bf16 %v6880_v61  ;;  %v5752_v31 = vunpack.i.h.bf16 %v6882_v62  ;;  %v5751_v32 = vunpack.i.l.bf16 %v6882_v62 }
  0x8e   : > { %v6954_v36 = vsel %vm818_vm0, %v5741_v24, %v5742_v23  ;;  %v6983_v52 = vsel %vm860_vm1, %v5751_v32, %v5752_v31 }
  0x8f   : > { %v6884_v63 = vpop.permute.xlu0 %5744  ;;  %v6886_v4 = vpop.permute.xlu1 %5754  ;;  %v836_v51 = vmul.f32 %v6954_v36, %v6820_v43 }
  0x90   : > { %v5746_v18 = vunpack.i.l.bf16 %v6884_v63  ;;  %v5756_v25 = vunpack.i.l.bf16 %v6886_v4  ;;  %v5747_v35 = vunpack.i.h.bf16 %v6884_v63  ;;  %v5757_v50 = vunpack.i.h.bf16 %v6886_v4 }
  0x92   : > { %v6941_v30 = vsel %vm818_vm0, %v5742_v23, %v5746_v18  ;;  %v6967_v40 = vsel %vm860_vm1, %v5752_v31, %v5756_v25  ;;  %v6989_v57 = vsel %vm818_vm0, %v5746_v18, %v5747_v35  ;;  %v878_v23 = vmul.f32 %v6983_v52, %v6820_v43 }
  0x93   : > { %v6888_v5 = vpop.permute.xlu0 %5759  ;;  %v6890_v6 = vpop.permute.xlu1 %5764  ;;  %v837_v39 = vmul.f32 %v6941_v30, %v6823_v44  ;;  %v879_v55 = vmul.f32 %v6967_v40, %v6823_v44 }
  0x94   : > { %v9210_v41 = vunpack.i.h.bf16 %v6888_v5  ;;  %v5761_v45 = vunpack.i.l.bf16 %v6888_v5  ;;  %v5766_v0 = vunpack.i.l.bf16 %v6890_v6 }
  0x95   : > { %v5918_v62 = vpack.i.bf16 %v837_v39, %v836_v51  ;;  %v7014_v51 = vsel %vm860_vm1, %v5756_v25, %v5757_v50 }
  0x96   : > { %v7006_v18 = vsel %vm818_vm0, %v5761_v45, %v9210_v41  ;;  %v7053_v41 = vsel %vm860_vm1, %v5757_v50, %v5766_v0 }
  0x97   : > { %v6892_v7 = vpop.permute.xlu0 %5769  ;;  %v6894_v8 = vpop.permute.xlu1 %5774  ;;  %9307 = vst [vmem:[#allocation11_spill] sm:$0xff] %v7006_v18  ;;  %v840_v25 = vmul.f32 %v7006_v18, %v6836_v48  ;;  %9312 = vst [vmem:[#allocation16_spill] sm:$0xff] %v7053_v41 }
  0x98   : > { %v9213_v59 = vunpack.i.h.bf16 %v6892_v7  ;;  %v5776_v60 = vunpack.i.l.bf16 %v6894_v8  ;;  %v5777_v63 = vunpack.i.h.bf16 %v6894_v8  ;;  %v838_v8 = vmul.f32 %v6989_v57, %v6817_v42 }
  0x9b   : > { %v6896_v9 = vpop.permute.xlu0 %5779  ;;  %v6898_v10 = vpop.permute.xlu1 %5784 }
  0x9f   : > { %v6900_v1 = vpop.permute.xlu0 %5789  ;;  %v6902_v11 = vpop.permute.xlu1 %5794 }
  0xa0   : > { %v5791_v61 = vunpack.i.l.bf16 %v6900_v1  ;;  %v5792_v2 = vunpack.i.h.bf16 %v6900_v1  ;;  %v881_v1 = vmul.f32 %v7053_v41, %v6833_v47 }
  0xa3   : > { %v6904_v12 = vpop.permute.xlu0 %5799  ;;  %v6906_v13 = vpop.permute.xlu1 %5804 }
  0xa7   : > { %v6908_v14 = vpop.permute.xlu0 %5809  ;;  %v6910_v15 = vpop.permute.xlu1 %5814 }
  0xa8   : > { %v6913_v16 = vunpack.i.h.bf16 %v6910_v15 }
  0xaa   : > { %9305 = vst [vmem:[#allocation9_spill] sm:$0xff] %v6913_v16  ;;  %v843_v17 = vmul.f32 %v6913_v16, %v6867_v58 }
  0xab   : > { %v6918_v19 = vpop.permute.xlu0 %5819  ;;  %v6920_v20 = vpop.permute.xlu1 %5824 }
  0xac   : > { %v6923_v21 = vunpack.i.h.bf16 %v6918_v19  ;;  %v9209_v22 = vunpack.i.h.bf16 %v6920_v20  ;;  %1081 = vrot.lane.b32.xlu0 %v843_v17, %s9299_s16 }
  0xae   : > { %9306 = vst [vmem:[#allocation10_spill] sm:$0xff] %v6923_v21  ;;  %v885_v26 = vmul.f32 %v6923_v21, %v6867_v58  ;;  %v6934_v27 = vmul.f32 0.0, %v9209_v22  ;;  %v7032_v22 = vsel %vm902_vm2, %v9213_v59, %v5776_v60  ;;  %v880_v59 = vmul.f32 %v7014_v51, %v6817_v42 }
  0xaf   : > { %v6936_v28 = vpop.permute.xlu0 %5829  ;;  %v6938_v29 = vpop.permute.xlu1 %5834  ;;  %9309 = vst [vmem:[#allocation13_spill] sm:$0xff] %v7032_v22 }
  0xb0   : > { %v9208_v33 = vunpack.i.h.bf16 %v6936_v28  ;;  %v9207_v34 = vunpack.i.h.bf16 %v6938_v29  ;;  %1126 = vrot.lane.b32.xlu1 %v885_v26, %s9287_s17  ;;  %1203 = vrot.lane.b32.xlu0 %v6934_v27, %s9275_s20  ;;  %v7001_v26 = vsel %vm818_vm0, %v5747_v35, %v5761_v45  ;;  %v7047_v35 = vmul.f32 0.0, %v5751_v32 }
  0xb1   : > { %v921_v32 = vmul.f32 %v7032_v22, %v6817_v42 }
  0xb2   : > { %v6958_v37 = vmul.f32 0.0, %v9208_v33  ;;  %v6962_v38 = vmul.f32 0.0, %v9207_v34  ;;  %v5928_v34 = vpack.i.bf16 %v879_v55, %v878_v23  ;;  %9311 = vst [vmem:[#allocation15_spill] sm:$0xff] %v7047_v35 }
  0xb3   : > { %v6971_v46 = vpop.permute.xlu0 %5839  ;;  %v6973_v49 = vpop.permute.xlu1 %5844 }
  0xb4   : > { %1248 = vrot.lane.b32.xlu1 %v6958_v37, %s9283_s23  ;;  %1329 = vrot.lane.b32.xlu0 %v6962_v38, %s6633_s26  ;;  %v9211_v54 = vunpack.i.l.bf16 %v6971_v46 }
  0xb6   : > { %v7020_v45 = vmul.f32 0.0, %v9211_v54  ;;  %v5781_v54 = vunpack.i.l.bf16 %v6896_v9 }
  0xb7   : > { %v6994_v4 = vpop.permute.xlu1 %5854  ;;  %v6996_v17 = vpop.permute.xlu0 %5849 }
  0xb8   : > { %v5857_v31 = vunpack.i.h.bf16 %v6994_v4  ;;  %v9212_v39 = vunpack.i.l.bf16 %v6996_v17  ;;  %5919 = vrot.lane.b32.xlu0 %v5918_v62, %s9299_s16  ;;  %9308 = vst [vmem:[#allocation12_spill] sm:$0xff] %v7020_v45  ;;  %v839_v62 = vmul.f32 %v7001_v26, %v6833_v47  ;;  %v7070_v3 = vsel %vm902_vm2, %v5777_v63, %v5781_v54 }
  0xb9   : > { %9315 = vst [vmem:[#allocation18_spill] sm:$0xff] %v7070_v3 }
  0xba   : > { %v1039_v33 = vsel %vm860_vm1, %v5857_v31, %v9212_v39  ;;  %v7040_v31 = vsel %vm902_vm2, %v5776_v60, %v5777_v63  ;;  %v7044_v39 = vmul.f32 0.0, %v5741_v24 }
  0xbb   : > { %v7036_v55 = vpop.permute.xlu0 %5859  ;;  %v1349_v23 = vpack.c.bf16 %v1039_v33, %v7020_v45  ;;  %9310 = vst [vmem:[#allocation14_spill] sm:$0xff] %v7040_v31  ;;  %v9313_v33 = vunpack.i.h.bf16 %v6890_v6  ;;  %v7061_v24 = vpop.permute.xlu1 %5864 }
  0xbc   : > { %5929 = vrot.lane.b32.xlu0 %v5928_v34, %s9287_s17  ;;  %v5938_v34 = vpack.i.bf16 %v840_v25, %v839_v62  ;;  %v5923_v50 = vpack.i.bf16 %v7044_v39, %v838_v8  ;;  %v7080_v62 = vunpack.i.l.bf16 %v6892_v7  ;;  %v5787_v25 = vunpack.i.h.bf16 %v6898_v10 }
  0xbd   : > { %1439 = vrot.lane.b32.xlu1 %v1349_v23, %s6626_s24  ;;  %v7058_v60 = vsel %vm860_vm1, %v5766_v0, %v9313_v33  ;;  %v922_v23 = vmul.f32 %v7040_v31, %v6833_v47  ;;  %v9316_v0 = vunpack.i.h.bf16 %v6896_v9  ;;  %v7089_v8 = vunpack.i.l.bf16 %v6898_v10 }
  0xbe   : > { %9314 = vst [vmem:[#allocation17_spill] sm:$0xff] %v7058_v60  ;;  %9318 = vst [vmem:[#allocation20_spill] sm:$0xff] %v7080_v62  ;;  %v882_v63 = vmul.f32 %v7058_v60, %v6836_v48  ;;  %v923_v31 = vmul.f32 %v7070_v3, %v6836_v48  ;;  %v7098_v22 = vsel %vm944_vm3, %v5787_v25, %v5791_v61  ;;  %v5802_v10 = vunpack.i.h.bf16 %v6904_v12 }
  0xbf   : > { %v7075_v33 = vsel %vm902_vm2, %v5781_v54, %v9316_v0  ;;  %v7077_v45 = vpop.permute.xlu0 %5869  ;;  %9319 = vst [vmem:[#allocation21_spill] sm:$0xff] %v7089_v8  ;;  %v5933_v54 = vpack.i.bf16 %v7047_v35, %v880_v59  ;;  %v5953_v0 = vpack.i.bf16 %v922_v23, %v921_v32  ;;  %9320 = vst [vmem:[#allocation22_spill] sm:$0xff] %v7098_v22  ;;  %v7100_v41 = vpop.permute.xlu1 %5874  ;;  %v9322_v23 = vunpack.i.h.bf16 %v6892_v7 }
  0xc0   : > { %9317 = vst [vmem:[#allocation19_spill] sm:$0xff] %v7075_v33  ;;  %5939 = vrot.lane.b32.xlu0 %v5938_v34, %s9299_s16  ;;  %v924_v34 = vmul.f32 %v7075_v33, %v6852_v53  ;;  %v7106_v59 = vsel %vm944_vm3, %v5791_v61, %v5792_v2  ;;  %v5943_v32 = vpack.i.bf16 %v882_v63, %v881_v1  ;;  %v5796_v35 = vunpack.i.l.bf16 %v6902_v11 }
  0xc1   : > { %5924 = vrot.lane.b32.xlu1 %v5923_v50, %s9299_s16  ;;  %v5806_v50 = vunpack.i.l.bf16 %v6906_v13  ;;  %9321 = vst [vmem:[#allocation23_spill] sm:$0xff] %v7106_v59  ;;  %v7113_v33 = vsel %vm902_vm2, %v7080_v62, %v9322_v23  ;;  %v919_v61 = vmul.f32 %v7080_v62, %v6820_v43  ;;  %v963_v63 = vmul.f32 %v7098_v22, %v6817_v42 }
  0xc2   : > { %v5958_v1 = vpack.i.bf16 %v924_v34, %v923_v31  ;;  %v964_v23 = vmul.f32 %v7106_v59, %v6833_v47  ;;  %v5816_v60 = vunpack.i.l.bf16 %v6910_v15  ;;  %v961_v31 = vmul.f32 %v7089_v8, %v6820_v43 }
  0xc3   : > { %v7115_v3 = vpop.permute.xlu0 %5884  ;;  %v7134_v62 = vsel %vm986_vm4, %v5802_v10, %v5806_v50  ;;  %v7146_v15 = vpop.permute.xlu1 %5879  ;;  %v7150_v7 = vsel %vm944_vm3, %v5792_v2, %v5796_v35  ;;  %v9329_v2 = vunpack.i.h.bf16 %v6888_v5 }
  0xc4   : > { %5954 = vrot.lane.b32.xlu0 %v5953_v0, %s9275_s20  ;;  %v7123_v0 = vsel %vm944_vm3, %v7089_v8, %v5787_v25  ;;  %9324 = vst [vmem:[#allocation25_spill] sm:$0xff] %v7134_v62  ;;  %v9325_v25 = vunpack.i.h.bf16 %v6906_v13  ;;  %v5968_v59 = vpack.i.bf16 %v964_v23, %v963_v63  ;;  %v7164_v8 = vunpack.i.l.bf16 %v6904_v12 }
  0xc5   : > { %5934 = vrot.lane.b32.xlu1 %v5933_v54, %s9287_s17  ;;  %9323 = vst [vmem:[#allocation24_spill] sm:$0xff] %v7123_v0  ;;  %v920_v54 = vmul.f32 %v7113_v33, %v6823_v44  ;;  %v962_v34 = vmul.f32 %v7123_v0, %v6823_v44  ;;  %v7169_v63 = vsel %vm818_vm0, %v9329_v2, %v5816_v60 }
  0xc6   : > { %v7139_v18 = vsel %vm986_vm4, %v5806_v50, %v9325_v25  ;;  %v1005_v50 = vmul.f32 %v7134_v62, %v6817_v42  ;;  %v9327_v25 = vunpack.i.h.bf16 %v6902_v11  ;;  %9328 = vst [vmem:[#allocation27_spill] sm:$0xff] %v7164_v8  ;;  %9330 = vst [vmem:[#allocation28_spill] sm:$0xff] %v7169_v63  ;;  %v7173_v23 = vsel %vm818_vm0, %v5816_v60, %v6913_v16 }
  0xc7   : > { %9326 = vst [vmem:[#allocation26_spill] sm:$0xff] %v7139_v18  ;;  %v7161_v0 = vpop.permute.xlu0 %5889  ;;  %9331 = vst [vmem:[#allocation29_spill] sm:$0xff] %v7173_v23  ;;  %v965_v5 = vmul.f32 %v7150_v7, %v6836_v48  ;;  %v9346_v62 = vunpack.i.l.bf16 %v7061_v24 }
  0xc8   : > { %5959 = vrot.lane.b32.xlu0 %v5958_v1, %s9275_s20  ;;  %v1006_v1 = vmul.f32 %v7139_v18, %v6833_v47  ;;  %v7159_v22 = vsel %vm944_vm3, %v5796_v35, %v9327_v25  ;;  %v5963_v18 = vpack.i.bf16 %v962_v34, %v961_v31  ;;  %v5846_v25 = vunpack.i.l.bf16 %v6973_v49  ;;  %v7188_v31 = vpop.permute.xlu1 %5894 }
  0xc9   : > { %5944 = vrot.lane.b32.xlu1 %v5943_v32, %s9287_s17  ;;  %v5948_v32 = vpack.i.bf16 %v920_v54, %v919_v61  ;;  %v966_v12 = vmul.f32 %v7159_v22, %v6852_v53  ;;  %v5811_v61 = vunpack.i.l.bf16 %v6908_v14  ;;  %v842_v54 = vmul.f32 %v7173_v23, %v6860_v56 }
  0xca   : > { %v5983_v60 = vpack.i.bf16 %v1006_v1, %v1005_v50  ;;  %v7195_v35 = vsel %vm986_vm4, %v7164_v8, %v5802_v10  ;;  %v9333_v23 = vunpack.i.h.bf16 %v6971_v46  ;;  %v1003_v10 = vmul.f32 %v7164_v8, %v6820_v43 }
  0xcb   : > { %9332 = vst [vmem:[#allocation30_spill] sm:$0xff] %v7195_v35  ;;  %v7198_v50 = vpop.permute.xlu0 %5899  ;;  %v5973_v16 = vpack.i.bf16 %v966_v12, %v965_v5  ;;  %v5867_v5 = vunpack.i.h.bf16 %v7061_v24 }
  0xcc   : > { %5969 = vrot.lane.b32.xlu0 %v5968_v59, %s9283_s23  ;;  %v841_v59 = vmul.f32 %v7169_v63, %v6852_v53  ;;  %v7205_v34 = vsel %vm9289_vm6, %v9333_v23, %v5846_v25  ;;  %v9335_v63 = vunpack.i.h.bf16 %v6906_v13  ;;  %v9337_v23 = vunpack.i.h.bf16 %v6996_v17 }
  0xcd   : > { %5949 = vrot.lane.b32.xlu1 %v5948_v32, %s9275_s20  ;;  %v5856_v32 = vunpack.i.l.bf16 %v6994_v4  ;;  %9334 = vst [vmem:[#allocation31_spill] sm:$0xff] %v7205_v34  ;;  %v5821_v4 = vunpack.i.l.bf16 %v6918_v19  ;;  %v787_v13 = vmul.f32 %v7205_v34, %v6823_v44  ;;  %v9343_v19 = vunpack.i.l.bf16 %v7036_v55 }
  0xce   : > { %v5993_v2 = vpack.i.bf16 %v842_v54, %v841_v59  ;;  %v7215_v1 = vsel %vm986_vm4, %v9335_v63, %v5811_v61  ;;  %v9338_v59 = vunpack.i.h.bf16 %v6908_v14 }
  0xcf   : > { %9336 = vst [vmem:[#allocation32_spill] sm:$0xff] %v7215_v1  ;;  %v1041_v12 = vsel %vm860_vm1, %v9337_v23, %v5856_v32  ;;  %v7231_v63 = vpop.permute.xlu0 %5904 }
  0xd0   : > { %5984 = vrot.lane.b32.xlu0 %v5983_v60, %s6633_s26  ;;  %v1004_v60 = vmul.f32 %v7195_v35, %v6823_v44  ;;  %v7225_v54 = vsel %vm986_vm4, %v5811_v61, %v9338_v59  ;;  %v9342_v61 = vunpack.i.l.bf16 %v7188_v31  ;;  %v7248_v44 = vunpack.i.l.bf16 %v7231_v63 }
  0xd1   : > { %5964 = vrot.lane.b32.xlu1 %v5963_v18, %s9283_s23  ;;  %9339 = vst [vmem:[#allocation33_spill] sm:$0xff] %v7225_v54  ;;  %v9340_v18 = vunpack.i.h.bf16 %v6973_v49  ;;  %v1351_v59 = vpack.c.bf16 %v1041_v12, %v787_v13  ;;  %v7270_v13 = vsel %vm860_vm1, %v5821_v4, %v6923_v21 }
  0xd2   : > { %9345 = vst [vmem:[#allocation36_spill] sm:$0xff] %v7248_v44  ;;  %v5978_v34 = vpack.i.bf16 %v1004_v60, %v1003_v10  ;;  %v9347_v60 = vunpack.i.h.bf16 %v6890_v6  ;;  %9349 = vst [vmem:[#allocation38_spill] sm:$0xff] %v7270_v13 }
  0xd3   : > { %v7237_v23 = vsel %vm9289_vm6, %v5846_v25, %v9340_v18  ;;  %v1008_v25 = vmul.f32 %v7225_v54, %v6852_v53  ;;  %v5826_v18 = vunpack.i.l.bf16 %v6920_v20 }
  0xd4   : > { %5994 = vrot.lane.b32.xlu0 %v5993_v2, %s9299_s16  ;;  %9341 = vst [vmem:[#allocation34_spill] sm:$0xff] %v7237_v23  ;;  %v7245_v2 = vsel %vm9289_vm6, %v9343_v19, %v9342_v61  ;;  %v1042_v61 = vsel %vm860_vm1, %v5856_v32, %v9346_v62  ;;  %v5897_v19 = vunpack.i.h.bf16 %v7188_v31  ;;  %v788_v10 = vmul.f32 %v7237_v23, %v6817_v42 }
  0xd5   : > { %5974 = vrot.lane.b32.xlu1 %v5973_v16, %s9283_s23  ;;  %9344 = vst [vmem:[#allocation35_spill] sm:$0xff] %v7245_v2  ;;  %v1007_v16 = vmul.f32 %v7215_v1, %v6836_v48  ;;  %v7266_v12 = vsel %vm860_vm1, %v9347_v60, %v5821_v4  ;;  %v790_v54 = vmul.f32 %v7245_v2, %v6836_v48  ;;  %v9350_v62 = vunpack.i.l.bf16 %v7198_v50 }
  0xd6   : > { %9348 = vst [vmem:[#allocation37_spill] sm:$0xff] %v7266_v12  ;;  %v7280_v42 = vsel %vm9289_vm6, %v5897_v19, %v7248_v44  ;;  %v1352_v6 = vpack.c.bf16 %v1042_v61, %v788_v10  ;;  %v883_v60 = vmul.f32 %v7266_v12, %v6852_v53  ;;  %v884_v4 = vmul.f32 %v7270_v13, %v6860_v56  ;;  %v1038_v10 = vpop.permute.xlu1 %1037 }
  0xd7   : > { %v1044_v32 = vsel %vm860_vm1, %v5867_v5, %v9350_v62  ;;  %9351 = vst [vmem:[#allocation39_spill] sm:$0xff] %v7280_v42  ;;  %v9352_v48 = vunpack.i.h.bf16 %v6896_v9  ;;  %v5902_v2 = vunpack.i.h.bf16 %v7198_v50  ;;  %v5831_v62 = vunpack.i.l.bf16 %v6936_v28 }
  0xd8   : > { %1443 = vrot.lane.b32.xlu0 %v1351_v59, %s6626_s24  ;;  %v5988_v59 = vpack.i.bf16 %v1008_v25, %v1007_v16  ;;  %v9354_v61 = vunpack.i.h.bf16 %v6920_v20  ;;  %v1354_v25 = vpack.c.bf16 %v1044_v32, %v790_v54  ;;  %v792_v23 = vmul.f32 %v7280_v42, %v6860_v56 }
  0xd9   : > { %5979 = vrot.lane.b32.xlu1 %v5978_v34, %s6633_s26  ;;  %v7289_v34 = vsel %vm902_vm2, %v9352_v48, %v5826_v18  ;;  %v1046_v9 = vsel %vm860_vm1, %v5902_v2, %v1038_v10  ;;  %v5998_v48 = vpack.i.bf16 %v884_v4, %v883_v60  ;;  %v5836_v20 = vunpack.i.l.bf16 %v6938_v29 }
  0xda   : > { %9353 = vst [vmem:[#allocation40_spill] sm:$0xff] %v7289_v34  ;;  %v7297_v16 = vsel %vm902_vm2, %v5826_v18, %v9354_v61  ;;  %v925_v21 = vmul.f32 %v7289_v34, %v6860_v56  ;;  %v9356_v18 = vunpack.i.h.bf16 %v6902_v11  ;;  %v9358_v32 = vunpack.i.h.bf16 %v6936_v28 }
  0xdb   : > { %9355 = vst [vmem:[#allocation41_spill] sm:$0xff] %v7297_v16  ;;  %v1356_v60 = vpack.c.bf16 %v1046_v9, %v792_v23  ;;  %v9362_v28 = vunpack.i.h.bf16 %v6938_v29  ;;  %v9365_v29 = vunpack.i.l.bf16 %v6971_v46 }
  0xdc   : > { %1445 = vrot.lane.b32.xlu0 %v1352_v6, %s6626_s24  ;;  %v926_v6 = vmul.f32 %v7297_v16, %v6867_v58  ;;  %v7311_v54 = vsel %vm944_vm3, %v9356_v18, %v5831_v62  ;;  %v9360_v18 = vunpack.i.h.bf16 %v6908_v14  ;;  %v9364_v14 = vunpack.i.h.bf16 %v6971_v46 }
  0xdd   : > { %5989 = vrot.lane.b32.xlu1 %v5988_v59, %s6633_s26  ;;  %9357 = vst [vmem:[#allocation42_spill] sm:$0xff] %v7311_v54  ;;  %v7316_v59 = vsel %vm944_vm3, %v5831_v62, %v9358_v32  ;;  %v967_v61 = vmul.f32 %v7311_v54, %v6860_v56  ;;  %v7332_v62 = vsel %vm986_vm4, %v5836_v20, %v9362_v28  ;;  %v9374_v28 = vunpack.i.l.bf16 %v7061_v24 }
  0xde   : > { %9359 = vst [vmem:[#allocation43_spill] sm:$0xff] %v7316_v59  ;;  %v6003_v4 = vpack.i.bf16 %v926_v6, %v925_v21  ;;  %v968_v11 = vmul.f32 %v7316_v59, %v6867_v58  ;;  %v7327_v42 = vsel %vm986_vm4, %v9360_v18, %v5836_v20  ;;  %9363 = vst [vmem:[#allocation45_spill] sm:$0xff] %v7332_v62  ;;  %v9367_v6 = vunpack.i.h.bf16 %v6996_v17 }
  0xdf   : > { %9361 = vst [vmem:[#allocation44_spill] sm:$0xff] %v7327_v42  ;;  %v1009_v23 = vmul.f32 %v7327_v42, %v6860_v56  ;;  %v7346_v9 = vsel %vm9289_vm6, %v9365_v29, %v9364_v14  ;;  %v9368_v20 = vunpack.i.l.bf16 %v6996_v17  ;;  %v9369_v56 = vunpack.i.l.bf16 %v7036_v55 }
  0xe0   : > { %1449 = vrot.lane.b32.xlu0 %v1354_v25, %s6626_s24  ;;  %v6008_v21 = vpack.i.bf16 %v968_v11, %v967_v61  ;;  %v1010_v25 = vmul.f32 %v7332_v62, %v6867_v58  ;;  %9366 = vst [vmem:[#allocation46_spill] sm:$0xff] %v7346_v9  ;;  %v786_v46 = vmul.f32 %v7346_v9, %v6820_v43  ;;  %v9372_v61 = vunpack.i.l.bf16 %v7188_v31 }
  0xe1   : > { %5999 = vrot.lane.b32.xlu1 %v5998_v48, %s9287_s17  ;;  %v1040_v32 = vsel %vm860_vm1, %v9368_v20, %v9367_v6  ;;  %v9375_v43 = vunpack.i.l.bf16 %v7198_v50 }
  0xe2   : > { %v6013_v48 = vpack.i.bf16 %v1010_v25, %v1009_v23  ;;  %v7366_v11 = vsel %vm9289_vm6, %v9372_v61, %v5897_v19  ;;  %v1350_v17 = vpack.c.bf16 %v1040_v32, %v786_v46  ;;  %v9242_v61 = vunpack.i.h.bf16 %v7036_v55 }
  0xe3   : > { %9373 = vst [vmem:[#allocation48_spill] sm:$0xff] %v7366_v11  ;;  %v1045_v31 = vsel %vm860_vm1, %v9375_v43, %v5902_v2 }
  0xe4   : > { %1453 = vrot.lane.b32.xlu0 %v1356_v60, %s6626_s24  ;;  %v9370_v60 = vunpack.i.h.bf16 %v6973_v49  ;;  %v1043_v49 = vsel %vm860_vm1, %v9374_v28, %v5867_v5  ;;  %v7384_v5 = vpop.permute.xlu0 %5909 }
  0xe5   : > { %6004 = vrot.lane.b32.xlu1 %v6003_v4, %s9275_s20 }
  0xe6   : > { %v7358_v4 = vsel %vm9289_vm6, %v9370_v60, %v9369_v56 }
  0xe7   : > { %9371 = vst [vmem:[#allocation47_spill] sm:$0xff] %v7358_v4  ;;  %v789_v18 = vmul.f32 %v7358_v4, %v6833_v47  ;;  %v793_v47 = vmul.f32 %v7248_v44, %v6867_v58 }
  0xe8   : > { %v7386_v25 = vpop.permute.xlu0 %5914 }
  0xe9   : > { %6009 = vrot.lane.b32.xlu1 %v6008_v21, %s9283_s23  ;;  %v791_v21 = vmul.f32 %v7366_v11, %v6852_v53  ;;  %v1353_v23 = vpack.c.bf16 %v1043_v49, %v789_v18  ;;  %v1357_v24 = vpack.c.bf16 %v1038_v10, %v793_v47 }
  0xeb   : > { %v1355_v19 = vpack.c.bf16 %v1045_v31, %v791_v21  ;;  %v9247_v31 = vunpack.i.l.bf16 %v7146_v15 }
  0xec   : > { %v7388_v53 = vpop.permute.xlu0 %1284 }
  0xed   : > { %6014 = vrot.lane.b32.xlu1 %v6013_v48, %s6633_s26 }
  0xf1   : > { %1441 = vrot.lane.b32.xlu1 %v1350_v17, %s6626_s24 }
  0xf5   : > { %1447 = vrot.lane.b32.xlu1 %v1353_v23, %s6626_s24 }
  0xf9   : > { %1451 = vrot.lane.b32.xlu1 %v1355_v19, %s6626_s24 }
  0xfd   : > { %1455 = vrot.lane.b32.xlu1 %v1357_v24, %s6626_s24 }
 0x11e   : > { %v7390_v50 = vpop.permute.xlu0 %1081 }
 0x122   : > { %v7392_v2 = vpop.permute.xlu0 %1203  ;;  %v7394_v14 = vpop.permute.xlu1 %1126 }
 0x123   : > { %v1366_v16 = vpack.c.bf16 %v7394_v14, %v7390_v50 }
 0x126   : > { %v7396_v29 = vpop.permute.xlu0 %1329  ;;  %v7398_v58 = vpop.permute.xlu1 %1248 }
 0x12a   : > { %v7402_v10 = vpop.permute.xlu0 %5919 }
 0x12b   : > { %v5922_v19 = vunpack.i.h.bf16 %v7402_v10  ;;  %v5921_v47 = vunpack.i.l.bf16 %v7402_v10 }
 0x12d   : > { %v1085_v10 = vsel %vm1083_vm8, %v5921_v47, %v5922_v19 }
 0x12e   : > { %v5930_v20 = vpop.permute.xlu0 %5929 }
 0x12f   : > { %v7400_v48 = vpop.permute.xlu1 %1439  ;;  %v5932_v49 = vunpack.i.h.bf16 %v5930_v20  ;;  %v5931_v21 = vunpack.i.l.bf16 %v5930_v20 }
 0x132   : > { %v7410_v60 = vpop.permute.xlu0 %5939 }
 0x133   : > { %v7404_v6 = vpop.permute.xlu1 %5924  ;;  %v5941_v42 = vunpack.i.l.bf16 %v7410_v60 }
 0x136   : > { %v7416_v18 = vpop.permute.xlu0 %5954 }
 0x137   : > { %v7406_v32 = vpop.permute.xlu1 %5934 }
 0x138   : > { %v5937_v20 = vunpack.i.h.bf16 %v7406_v32  ;;  %v5936_v54 = vunpack.i.l.bf16 %v7406_v32 }
 0x13a   : > { %v7437_v11 = vpop.permute.xlu0 %5959  ;;  %v1129_v44 = vsel %vm9278_vm7, %v5937_v20, %v5931_v21  ;;  %v1131_v1 = vsel %vm9278_vm7, %v5932_v49, %v5936_v54 }
 0x13b   : > { %v7408_v56 = vpop.permute.xlu1 %5944 }
 0x13f   : > { %v7412_v46 = vpop.permute.xlu1 %5949 }
 0x140   : > { %v9243_v17 = vunpack.i.l.bf16 %v7412_v46 }
 0x142   : > { %v1367_v28 = vpack.c.bf16 %v9243_v17, %v9242_v61  ;;  %v1130_v17 = vsel %vm9278_vm7, %v5931_v21, %v5932_v49  ;;  %v5952_v21 = vunpack.i.h.bf16 %v7412_v46 }
 0x143   : > { %v7422_v43 = vpop.permute.xlu1 %5964  ;;  %v1359_v4 = vpack.c.bf16 %v1130_v17, %v1085_v10  ;;  %v7454_v17 = vpop.permute.xlu0 %5969 }
 0x144   : > { %v9248_v23 = vunpack.i.l.bf16 %v7422_v43  ;;  %1475 = vrot.lane.b32.xlu1 %v1367_v28, %s6626_s24  ;;  %v5927_v28 = vunpack.i.h.bf16 %v7404_v6  ;;  %v5967_v12 = vunpack.i.h.bf16 %v7422_v43 }
 0x146   : > { %v1376_v24 = vpack.c.bf16 %v9247_v31, %v9248_v23  ;;  %v5946_v31 = vunpack.i.l.bf16 %v7408_v56  ;;  %v1084_v59 = vsel %vm1083_vm8, %v5927_v28, %v5921_v47  ;;  %v5926_v47 = vunpack.i.l.bf16 %v7404_v6 }
 0x147   : > { %v7434_v61 = vpop.permute.xlu1 %5974  ;;  %v1358_v10 = vpack.c.bf16 %v1129_v44, %v1084_v59  ;;  %v5956_v44 = vunpack.i.l.bf16 %v7416_v18  ;;  %v9377_v59 = vunpack.i.h.bf16 %v7410_v60  ;;  %v5872_v28 = vunpack.i.h.bf16 %v7077_v45  ;;  %v7481_v13 = vpop.permute.xlu0 %5984 }
 0x148   : > { %1493 = vrot.lane.b32.xlu0 %v1376_v24, %s6626_s24  ;;  %v1132_v8 = vsel %vm9278_vm7, %v5936_v54, %v5946_v31 }
 0x149   : > { %v1088_v32 = vsel %vm1083_vm8, %v5941_v42, %v9377_v59  ;;  %v1207_v6 = vsel %vm9277_vm9, %v5952_v21, %v5956_v44  ;;  %v5876_v59 = vunpack.i.l.bf16 %v7100_v41 }
 0x14b   : > { %v7444_v23 = vpop.permute.xlu1 %5979 }
 0x14c   : > { %v7448_v62 = vunpack.i.l.bf16 %v7444_v23  ;;  %1459 = vrot.lane.b32.xlu0 %v1359_v4, %s6626_s24  ;;  %v9376_v4 = vunpack.i.h.bf16 %v7408_v56 }
 0x14e   : > { %v1385_v9 = vpack.c.bf16 %v7448_v62, %v7448_v62  ;;  %v1133_v24 = vsel %vm9278_vm7, %v5946_v31, %v9376_v4  ;;  %v5871_v4 = vunpack.i.l.bf16 %v7077_v45  ;;  %v1086_v45 = vsel %vm1083_vm8, %v5922_v19, %v5926_v47 }
 0x14f   : > { %v7460_v20 = vpop.permute.xlu1 %5989  ;;  %v1362_v34 = vpack.c.bf16 %v1133_v24, %v1088_v32  ;;  %v1087_v19 = vsel %vm1083_vm8, %v5926_v47, %v5941_v42  ;;  %v9378_v31 = vunpack.i.l.bf16 %v7422_v43  ;;  %v5877_v42 = vunpack.i.h.bf16 %v7100_v41 }
 0x150   : > { %1457 = vrot.lane.b32.xlu0 %v1358_v10, %s6626_s24  ;;  %1511 = vrot.lane.b32.xlu1 %v1385_v9, %s6626_s24  ;;  %v5957_v10 = vunpack.i.h.bf16 %v7416_v18  ;;  %v1163_v24 = vsel %vm9289_vm6, %v5871_v4, %v5872_v28  ;;  %v1360_v18 = vpack.c.bf16 %v1131_v1, %v1086_v45  ;;  %v7498_v1 = vpop.permute.xlu0 %5994  ;;  %v5961_v45 = vunpack.i.l.bf16 %v7437_v11 }
 0x151   : > { %v1369_v32 = vpack.c.bf16 %v1207_v6, %v1163_v24  ;;  %v1361_v24 = vpack.c.bf16 %v1132_v8, %v1087_v19  ;;  %v9380_v8 = vunpack.i.h.bf16 %v7036_v55  ;;  %v5891_v43 = vunpack.i.l.bf16 %v7161_v0 }
 0x152   : > { %v1208_v49 = vsel %vm9277_vm9, %v5956_v44, %v5957_v10  ;;  %v5976_v44 = vunpack.i.l.bf16 %v7434_v61 }
 0x153   : > { %v7477_v9 = vpop.permute.xlu1 %5999  ;;  %v1162_v47 = vsel %vm9289_vm6, %v9380_v8, %v5871_v4  ;;  %v1209_v4 = vsel %vm9277_vm9, %v5957_v10, %v5961_v45  ;;  %v5987_v10 = vunpack.i.h.bf16 %v7481_v13 }
 0x154   : > { %1465 = vrot.lane.b32.xlu0 %v1362_v34, %s6626_s24  ;;  %1473 = vrot.lane.b32.xlu1 %v1366_v16, %s6626_s24  ;;  %v5882_v34 = vunpack.i.h.bf16 %v7146_v15  ;;  %v1164_v16 = vsel %vm9289_vm6, %v5872_v28, %v5876_v59 }
 0x155   : > { %v1370_v6 = vpack.c.bf16 %v1208_v49, %v1164_v16  ;;  %v5887_v49 = vunpack.i.h.bf16 %v7115_v3  ;;  %v5972_v16 = vunpack.i.h.bf16 %v7454_v17 }
 0x157   : > { %v7489_v35 = vpop.permute.xlu1 %6004  ;;  %v1253_v55 = vsel %vm506_vm5, %v5972_v16, %v5976_v44 }
 0x158   : > { %1479 = vrot.lane.b32.xlu0 %v1369_v32, %s6626_s24  ;;  %1461 = vrot.lane.b32.xlu1 %v1360_v18, %s6626_s24  ;;  %v1250_v32 = vsel %vm506_vm5, %v9378_v31, %v5967_v12  ;;  %v9379_v18 = vunpack.i.l.bf16 %v7412_v46  ;;  %v9381_v46 = vunpack.i.l.bf16 %v7146_v15  ;;  %v5886_v15 = vunpack.i.l.bf16 %v7115_v3 }
 0x15a   : > { %v1206_v28 = vsel %vm9277_vm9, %v9379_v18, %v5952_v21  ;;  %v1287_v21 = vsel %vm1286_vm10, %v9381_v46, %v5882_v34  ;;  %v5986_v46 = vunpack.i.l.bf16 %v7481_v13 }
 0x15b   : > { %v7502_v54 = vpop.permute.xlu1 %6009  ;;  %v1377_v19 = vpack.c.bf16 %v1287_v21, %v1250_v32  ;;  %v1368_v31 = vpack.c.bf16 %v1206_v28, %v1162_v47  ;;  %v5971_v32 = vunpack.i.l.bf16 %v7454_v17  ;;  %v1165_v28 = vsel %vm9289_vm6, %v5876_v59, %v5877_v42 }
 0x15c   : > { %1481 = vrot.lane.b32.xlu0 %v1370_v6, %s6626_s24  ;;  %1463 = vrot.lane.b32.xlu1 %v1361_v24, %s6626_s24  ;;  %v5982_v6 = vunpack.i.h.bf16 %v7444_v23  ;;  %v1444_v24 = vpop.permute.xlu0 %1443  ;;  %v1290_v23 = vsel %vm1286_vm10, %v5887_v49, %v5891_v43  ;;  %v1371_v47 = vpack.c.bf16 %v1209_v4, %v1165_v28 }
 0x15d   : > { %v1380_v8 = vpack.c.bf16 %v1290_v23, %v1253_v55  ;;  %v1251_v17 = vsel %vm506_vm5, %v5967_v12, %v5971_v32  ;;  %v1334_v12 = vsel %vm1331_vm11, %v5986_v46, %v5987_v10  ;;  %v1252_v28 = vsel %vm506_vm5, %v5971_v32, %v5972_v16 }
 0x15e   : > { %v1332_v3 = vsel %vm1331_vm11, %v7448_v62, %v5982_v6  ;;  %v6001_v62 = vunpack.i.l.bf16 %v7477_v9  ;;  %v1388_v16 = vpack.c.bf16 %v1334_v12, %v1334_v12  ;;  %v6007_v12 = vunpack.i.h.bf16 %v7489_v35 }
 0x15f   : > { %v7523_v18 = vpop.permute.xlu1 %6014  ;;  %v1386_v13 = vpack.c.bf16 %v1332_v3, %v1332_v3  ;;  %v5991_v3 = vunpack.i.l.bf16 %v7460_v20 }
 0x160   : > { %1495 = vrot.lane.b32.xlu0 %v1377_v19, %s6626_s24  ;;  %1477 = vrot.lane.b32.xlu1 %v1368_v31, %s6626_s24  ;;  %v1288_v31 = vsel %vm1286_vm10, %v5882_v34, %v5886_v15  ;;  %v1446_v55 = vpop.permute.xlu0 %1445  ;;  %v5996_v34 = vunpack.i.l.bf16 %v7498_v1 }
 0x161   : > { %v1378_v4 = vpack.c.bf16 %v1288_v31, %v1251_v17  ;;  %v6002_v17 = vunpack.i.h.bf16 %v7477_v9  ;;  %v1333_v31 = vsel %vm1331_vm11, %v5982_v6, %v5986_v46  ;;  %v5962_v9 = vunpack.i.h.bf16 %v7437_v11 }
 0x162   : > { %v1335_v6 = vsel %vm1331_vm11, %v5987_v10, %v5991_v3 }
 0x163   : > { %v1442_v21 = vpop.permute.xlu1 %1441  ;;  %v1135_v10 = vsel %vm9278_vm7, %v6001_v62, %v6002_v17 }
 0x164   : > { %1501 = vrot.lane.b32.xlu0 %v1380_v8, %s6626_s24  ;;  %1483 = vrot.lane.b32.xlu1 %v1371_v47, %s6626_s24  ;;  %v1531_v19 = vsel %vm986_vm4, %v1442_v21, %v1444_v24  ;;  %v1530_v59 = vsel %vm986_vm4, %v7400_v48, %v1442_v21  ;;  %v6634_v8 = vmov 0   ;;  %v1532_v47 = vsel %vm986_vm4, %v1444_v24, %v1446_v55 }
 0x165   : > { %1631 = vmatprep.subr.bf16.mxu0 %v1531_v19  ;;  %1663 = vmatprep.mubr.bf16.mxu0 %v6634_v8  ;;  %v1289_v21 = vsel %vm1286_vm10, %v5886_v15, %v5887_v49  ;;  %v9382_v19 = vunpack.i.h.bf16 %v7408_v56  ;;  %v5997_v49 = vunpack.i.h.bf16 %v7498_v1  ;;  %v9383_v24 = vunpack.i.h.bf16 %v7410_v60 }
 0x166   : > { %1632 = vmatpush1.bf16.msra.mxu0 %v1530_v59  ;;  %1704 = vmatprep.mubr.bf16.mxu1 %v6634_v8  ;;  %v1379_v32 = vpack.c.bf16 %v1289_v21, %v1252_v28  ;;  %v1136_v56 = vsel %vm9278_vm7, %v6002_v17, %v7394_v14  ;;  %v5907_v1 = vunpack.i.h.bf16 %v7231_v63  ;;  %v6006_v28 = vunpack.i.l.bf16 %v7489_v35 }
 0x167   : > { %v7553_v23 = vpop.permute.xlu1 %1447  ;;  %6323 = vset.pattern.permute.xlu0 %v6634_v8  ;;  %v1134_v59 = vsel %vm9278_vm7, %v9382_v19, %v6001_v62  ;;  %v1089_v15 = vsel %vm1083_vm8, %v9383_v24, %v5996_v34  ;;  %v1091_v60 = vsel %vm1083_vm8, %v5997_v49, %v7390_v50  ;;  %v1210_v14 = vsel %vm9277_vm9, %v5961_v45, %v5962_v9 }
 0x168   : > { %1513 = vrot.lane.b32.xlu0 %v1386_v13, %s6626_s24  ;;  %1497 = vrot.lane.b32.xlu1 %v1378_v4, %s6626_s24  ;;  %v1533_v48 = vsel %vm986_vm4, %v1446_v55, %v7553_v23  ;;  %v1363_v55 = vpack.c.bf16 %v1134_v59, %v1089_v15  ;;  %v1387_v13 = vpack.c.bf16 %v1333_v31, %v1333_v31  ;;  %v5912_v63 = vunpack.i.h.bf16 %v7384_v5 }
 0x169   : > { %1672 = vmatprep.subr.bf16.mxu1 %v1533_v48  ;;  %v1365_v46 = vpack.c.bf16 %v1136_v56, %v1091_v60  ;;  %v1389_v4 = vpack.c.bf16 %v1335_v6, %v1335_v6  ;;  %v5911_v50 = vunpack.i.l.bf16 %v7384_v5  ;;  %v1166_v48 = vsel %vm9289_vm6, %v5877_v42, %v5907_v1 }
 0x16a   : > { %1673 = vmatpush1.bf16.msra.mxu1 %v1532_v47  ;;  %v1090_v35 = vsel %vm1083_vm8, %v5996_v34, %v5997_v49  ;;  %v1372_v47 = vpack.c.bf16 %v1210_v14, %v1166_v48  ;;  %v5977_v45 = vunpack.i.h.bf16 %v7434_v61  ;;  %v1212_v62 = vsel %vm9277_vm9, %v6006_v28, %v6007_v12 }
 0x16b   : > { %v1364_v11 = vpack.c.bf16 %v1135_v10, %v1090_v35  ;;  %v1211_v21 = vsel %vm9277_vm9, %v5962_v9, %v6006_v28  ;;  %v5892_v5 = vunpack.i.h.bf16 %v7161_v0  ;;  %v1168_v41 = vsel %vm9289_vm6, %v5911_v50, %v5912_v63  ;;  %v7657_v28 = vpop.permute.xlu1 %1451 }
 0x16c   : > { %1517 = vrot.lane.b32.xlu0 %v1388_v16, %s6626_s24  ;;  %1499 = vrot.lane.b32.xlu1 %v1379_v32, %s6626_s24  ;;  %v1167_v42 = vsel %vm9289_vm6, %v5907_v1, %v5911_v50  ;;  %v1374_v16 = vpack.c.bf16 %v1212_v62, %v1168_v41  ;;  %v1254_v32 = vsel %vm506_vm5, %v5976_v44, %v5977_v45  ;;  %v6012_v19 = vunpack.i.h.bf16 %v7502_v54 }
 0x16d   : > { %v1373_v34 = vpack.c.bf16 %v1211_v21, %v1167_v42  ;;  %v1213_v17 = vsel %vm9277_vm9, %v6007_v12, %v7392_v2  ;;  %v6011_v59 = vunpack.i.l.bf16 %v7502_v54  ;;  %v1291_v31 = vsel %vm1286_vm10, %v5891_v43, %v5892_v5  ;;  %v7655_v12 = vpop.permute.xlu0 %1449 }
 0x16e   : > { %v5917_v49 = vunpack.i.h.bf16 %v7386_v25  ;;  %v5916_v61 = vunpack.i.l.bf16 %v7386_v25  ;;  %v1381_v44 = vpack.c.bf16 %v1291_v31, %v1254_v32  ;;  %v1375_v24 = vpack.c.bf16 %v1213_v17, %v5912_v63 }
 0x16f   : > { %v5992_v2 = vunpack.i.h.bf16 %v7460_v20  ;;  %v1255_v15 = vsel %vm506_vm5, %v5977_v45, %v6011_v59  ;;  %v1256_v54 = vsel %vm506_vm5, %v6011_v59, %v6012_v19  ;;  %v1257_v25 = vsel %vm506_vm5, %v6012_v19, %v7398_v58  ;;  %v7661_v10 = vpop.permute.xlu1 %1455 }
 0x170   : > { %1467 = vrot.lane.b32.xlu0 %v1363_v55, %s6626_s24  ;;  %1515 = vrot.lane.b32.xlu1 %v1387_v13, %s6626_s24  ;;  %v1292_v0 = vsel %vm1286_vm10, %v5892_v5, %v5916_v61  ;;  %v1293_v43 = vsel %vm1286_vm10, %v5916_v61, %v5917_v49  ;;  %v6017_v9 = vunpack.i.h.bf16 %v7523_v18  ;;  %v6016_v56 = vunpack.i.l.bf16 %v7523_v18 }
 0x171   : > { %v1383_v55 = vpack.c.bf16 %v1293_v43, %v1256_v54  ;;  %v1382_v13 = vpack.c.bf16 %v1292_v0, %v1255_v15  ;;  %v1336_v6 = vsel %vm1331_vm11, %v5991_v3, %v5992_v2  ;;  %v1294_v1 = vsel %vm1286_vm10, %v5917_v49, %v7388_v53  ;;  %v7659_v14 = vpop.permute.xlu0 %1453 }
 0x172   : > { %v1390_v60 = vpack.c.bf16 %v1336_v6, %v1336_v6  ;;  %v1337_v58 = vsel %vm1331_vm11, %v5992_v2, %v6016_v56  ;;  %v1339_v3 = vsel %vm1331_vm11, %v6017_v9, %v7396_v29 }
 0x173   : > { %v1391_v18 = vpack.c.bf16 %v1337_v58, %v1337_v58  ;;  %v1393_v53 = vpack.c.bf16 %v1339_v3, %v1339_v3  ;;  %v1534_v3 = vsel %vm986_vm4, %v7553_v23, %v7655_v12 }
 0x174   : > { %1471 = vrot.lane.b32.xlu0 %v1365_v46, %s6626_s24  ;;  %1519 = vrot.lane.b32.xlu1 %v1389_v4, %s6626_s24  ;;  %v1384_v46 = vpack.c.bf16 %v1294_v1, %v1257_v25  ;;  %v1338_v4 = vsel %vm1331_vm11, %v6016_v56, %v6017_v9  ;;  %v1535_v1 = vsel %vm986_vm4, %v7655_v12, %v7657_v28 }
 0x175   : > { %v1392_v20 = vpack.c.bf16 %v1338_v4, %v1338_v4  ;;  %v1536_v12 = vsel %vm986_vm4, %v7657_v28, %v7659_v14 }
 0x178   : > { %1485 = vrot.lane.b32.xlu0 %v1372_v47, %s6626_s24  ;;  %1469 = vrot.lane.b32.xlu1 %v1364_v11, %s6626_s24 }
 0x17c   : > { %1489 = vrot.lane.b32.xlu0 %v1374_v16, %s6626_s24  ;;  %1487 = vrot.lane.b32.xlu1 %v1373_v34, %s6626_s24 }
 0x180   : > { %1503 = vrot.lane.b32.xlu0 %v1381_v44, %s6626_s24  ;;  %1491 = vrot.lane.b32.xlu1 %v1375_v24, %s6626_s24 }
 0x184   : > { %1507 = vrot.lane.b32.xlu0 %v1383_v55, %s6626_s24  ;;  %1505 = vrot.lane.b32.xlu1 %v1382_v13, %s6626_s24 }
 0x188   : > { %1521 = vrot.lane.b32.xlu0 %v1390_v60, %s6626_s24  ;;  %1509 = vrot.lane.b32.xlu1 %v1384_v46, %s6626_s24  ;;  %v7693_v60 = vld [vmem:[%s9191_s1] sm:$0xf] }
 0x18c   : > { %1525 = vrot.lane.b32.xlu0 %v1392_v20, %s6626_s24  ;;  %1523 = vrot.lane.b32.xlu1 %v1391_v18, %s6626_s24 }
 0x190   : > { %1527 = vrot.lane.b32.xlu1 %v1393_v53, %s6626_s24  ;;  %v1537_v53 = vsel %vm986_vm4, %v7659_v14, %v7661_v10 }
 0x194   : > { %2156 = vrot.lane.b32.xlu1 %v6958_v37, %s9283_s23 }
 0x1b6   : > { %v1476_v29 = vpop.permute.xlu1 %1475 }
 0x1ba   : > { %v1494_v63 = vpop.permute.xlu0 %1493 }
 0x1be   : > { %v1460_v50 = vpop.permute.xlu0 %1459 }
 0x1c2   : > { %v1458_v48 = vpop.permute.xlu0 %1457  ;;  %v1512_v35 = vpop.permute.xlu1 %1511 }
 0x1c3   : > { %v1538_v21 = vsel %vm986_vm4, %v1458_v48, %v1460_v50 }
 0x1c6   : > { %v7663_v47 = vpop.permute.xlu0 %1465  ;;  %v7665_v11 = vpop.permute.xlu1 %1473 }
 0x1ca   : > { %v1480_v45 = vpop.permute.xlu0 %1479  ;;  %v1462_v62 = vpop.permute.xlu1 %1461 }
 0x1cb   : > { %v1539_v37 = vsel %vm986_vm4, %v1460_v50, %v1462_v62 }
 0x1cc   : > { %1633 = vmatprep.subr.bf16.mxu0 %v1539_v37 }
 0x1cd   : > { %1634 = vmatpush1.bf16.msra.mxu0 %v1538_v21 }
 0x1ce   : > { %v1482_v5 = vpop.permute.xlu0 %1481  ;;  %v1464_v41 = vpop.permute.xlu1 %1463 }
 0x1cf   : > { %v1541_v42 = vsel %vm986_vm4, %v1464_v41, %v7663_v47  ;;  %v1540_v16 = vsel %vm986_vm4, %v1462_v62, %v1464_v41  ;;  %v1548_v61 = vsel %vm986_vm4, %v1480_v45, %v1482_v5 }
 0x1d0   : > { %1674 = vmatprep.subr.bf16.mxu1 %v1541_v42 }
 0x1d1   : > { %1675 = vmatpush1.bf16.msra.mxu1 %v1540_v16 }
 0x1d2   : > { %v1496_v34 = vpop.permute.xlu0 %1495  ;;  %v1478_v32 = vpop.permute.xlu1 %1477 }
 0x1d3   : > { %v1547_v17 = vsel %vm986_vm4, %v1478_v32, %v1480_v45  ;;  %v1546_v19 = vsel %vm986_vm4, %v1476_v29, %v1478_v32  ;;  %v1554_v15 = vsel %vm986_vm4, %v1494_v63, %v1496_v34 }
 0x1d4   : > { %1635 = vmatprep.subr.bf16.mxu0 %v1547_v17 }
 0x1d5   : > { %1636 = vmatpush1.bf16.msra.mxu0 %v1546_v19 }
 0x1d6   : > { %v7674_v59 = vpop.permute.xlu0 %1501  ;;  %v1484_v31 = vpop.permute.xlu1 %1483 }
 0x1d7   : > { %v1549_v49 = vsel %vm986_vm4, %v1482_v5, %v1484_v31 }
 0x1d8   : > { %1676 = vmatprep.subr.bf16.mxu1 %v1549_v49 }
 0x1d9   : > { %1677 = vmatpush1.bf16.msra.mxu1 %v1548_v61 }
 0x1da   : > { %v1514_v44 = vpop.permute.xlu0 %1513  ;;  %v1498_v24 = vpop.permute.xlu1 %1497 }
 0x1db   : > { %v1555_v2 = vsel %vm986_vm4, %v1496_v34, %v1498_v24  ;;  %v1562_v13 = vsel %vm986_vm4, %v1512_v35, %v1514_v44 }
 0x1dc   : > { %1637 = vmatprep.subr.bf16.mxu0 %v1555_v2  ;;  %v1608_v6 = vsel %vm1606_vm12, %v1562_v13, 0 }
 0x1dd   : > { %1638 = vmatpush1.bf16.msra.mxu0 %v1554_v15 }
 0x1de   : > { %v1518_v54 = vpop.permute.xlu0 %1517  ;;  %v1500_v0 = vpop.permute.xlu1 %1499 }
 0x1df   : > { %v1557_v43 = vsel %vm986_vm4, %v1500_v0, %v7674_v59  ;;  %v1556_v55 = vsel %vm986_vm4, %v1498_v24, %v1500_v0 }
 0x1e0   : > { %1678 = vmatprep.subr.bf16.mxu1 %v1557_v43 }
 0x1e1   : > { %1679 = vmatpush1.bf16.msra.mxu1 %v1556_v55 }
 0x1e2   : > { %v1468_v25 = vpop.permute.xlu0 %1467  ;;  %v1516_v9 = vpop.permute.xlu1 %1515 }
 0x1e3   : > { %v1563_v56 = vsel %vm986_vm4, %v1514_v44, %v1516_v9  ;;  %v1564_v46 = vsel %vm986_vm4, %v1516_v9, %v1518_v54  ;;  %v1542_v23 = vsel %vm986_vm4, %v7663_v47, %v1468_v25 }
 0x1e4   : > { %5450 = vmatprep.subr.msk.bf16.mxu0 %vm1606_vm12, %v1563_v56  ;;  %v1614_v18 = vsel %vm1606_vm12, %v1564_v46, 0 }
 0x1e5   : > { %1640 = vmatpush1.bf16.msra.mxu0 %v1608_v6 }
 0x1e6   : > { %v1472_v4 = vpop.permute.xlu0 %1471  ;;  %1713 = vmatprep.subr.bf16.mxu0 %v1535_v1  ;;  %v1520_v58 = vpop.permute.xlu1 %1519 }
 0x1e7   : > { %v1565_v20 = vsel %vm986_vm4, %v1518_v54, %v1520_v58  ;;  %v1545_v10 = vsel %vm986_vm4, %v1472_v4, %v7665_v11 }
 0x1e8   : > { %5452 = vmatprep.subr.msk.bf16.mxu1 %vm1606_vm12, %v1565_v20  ;;  %5451 = vmatmul.mubr.msk.bf16.vlgmr.msra.gmra.mrb[0].mxu0 %vm1602_vm13, %v7693_v60 }
 0x1e9   : > { %1681 = vmatpush1.bf16.msra.mxu1 %v1614_v18  ;;  %1714 = vmatpush1.bf16.msra.mxu0 %v1534_v3 }
 0x1ea   : > { %v1486_v63 = vpop.permute.xlu0 %1485  ;;  %1754 = vmatprep.subr.bf16.mxu1 %v1537_v53  ;;  %v1470_v29 = vpop.permute.xlu1 %1469  ;;  %1745 = vmatprep.mubr.bf16.mxu0 %v6634_v8 }
 0x1eb   : > { %v1543_v50 = vsel %vm986_vm4, %v1468_v25, %v1470_v29  ;;  %v1550_v62 = vsel %vm986_vm4, %v1484_v31, %v1486_v63  ;;  %v1544_v47 = vsel %vm986_vm4, %v1470_v29, %v1472_v4 }
 0x1ec   : > { %1715 = vmatprep.subr.bf16.mxu0 %v1543_v50  ;;  %5453 = vmatmul.mubr.msk.bf16.vlgmr.msra.gmra.mrb[0].mxu1 %vm1602_vm13, %v7693_v60 }
 0x1ed   : > { %1716 = vmatpush1.bf16.msra.mxu0 %v1542_v23  ;;  %1755 = vmatpush1.bf16.msra.mxu1 %v1536_v12 }
 0x1ee   : > { %v1490_v48 = vpop.permute.xlu0 %1489  ;;  %1756 = vmatprep.subr.bf16.mxu1 %v1545_v10  ;;  %v1488_v35 = vpop.permute.xlu1 %1487  ;;  %1786 = vmatprep.mubr.bf16.mxu1 %v6634_v8  ;;  %v6607_v10 = vld [vmem:[#allocation3] sm:$0xff] }
 0x1ef   : > { %v1551_v45 = vsel %vm986_vm4, %v1486_v63, %v1488_v35  ;;  %v1552_v11 = vsel %vm986_vm4, %v1488_v35, %v1490_v48 }
 0x1f0   : > { %1717 = vmatprep.subr.bf16.mxu0 %v1551_v45 }
 0x1f1   : > { %1718 = vmatpush1.bf16.msra.mxu0 %v1550_v62  ;;  %1757 = vmatpush1.bf16.msra.mxu1 %v1544_v47 }
 0x1f2   : > { %v1504_v28 = vpop.permute.xlu0 %1503  ;;  %v1492_v14 = vpop.permute.xlu1 %1491 }
 0x1f3   : > { %v1553_v37 = vsel %vm986_vm4, %v1490_v48, %v1492_v14  ;;  %v1558_v42 = vsel %vm986_vm4, %v7674_v59, %v1504_v28 }
 0x1f4   : > { %1758 = vmatprep.subr.bf16.mxu1 %v1553_v37 }
 0x1f5   : > { %1759 = vmatpush1.bf16.msra.mxu1 %v1552_v11 }
 0x1f6   : > { %v1508_v21 = vpop.permute.xlu0 %1507  ;;  %v1506_v5 = vpop.permute.xlu1 %1505 }
 0x1f7   : > { %v1559_v41 = vsel %vm986_vm4, %v1504_v28, %v1506_v5  ;;  %v1560_v17 = vsel %vm986_vm4, %v1506_v5, %v1508_v21 }
 0x1f8   : > { %1719 = vmatprep.subr.bf16.mxu0 %v1559_v41 }
 0x1f9   : > { %1720 = vmatpush1.bf16.msra.mxu0 %v1558_v42 }
 0x1fa   : > { %v1522_v16 = vpop.permute.xlu0 %1521  ;;  %v1510_v34 = vpop.permute.xlu1 %1509 }
 0x1fb   : > { %v1561_v32 = vsel %vm986_vm4, %v1508_v21, %v1510_v34  ;;  %v1566_v19 = vsel %vm986_vm4, %v1520_v58, %v1522_v16 }
 0x1fc   : > { %1760 = vmatprep.subr.bf16.mxu1 %v1561_v32  ;;  %v1620_v44 = vsel %vm1606_vm12, %v1566_v19, 0 }
 0x1fd   : > { %1761 = vmatpush1.bf16.msra.mxu1 %v1560_v17 }
 0x1fe   : > { %v1526_v31 = vpop.permute.xlu0 %1525  ;;  %v1524_v49 = vpop.permute.xlu1 %1523 }
 0x1ff   : > { %v1567_v61 = vsel %vm986_vm4, %v1522_v16, %v1524_v49  ;;  %v1568_v59 = vsel %vm986_vm4, %v1524_v49, %v1526_v31 }
 0x200   : > { %5454 = vmatprep.subr.msk.bf16.mxu0 %vm1606_vm12, %v1567_v61  ;;  %v1626_v15 = vsel %vm1606_vm12, %v1568_v59, 0 }
 0x201   : > { %1722 = vmatpush1.bf16.msra.mxu0 %v1620_v44 }
 0x202   : > { %v1528_v24 = vpop.permute.xlu1 %1527 }
 0x203   : > { %v1569_v2 = vsel %vm986_vm4, %v1526_v31, %v1528_v24 }
 0x204   : > { %5455 = vmatmul.mubr.msk.bf16.vlgmr.msra.gmra.mrb[4].mxu0 %vm1602_vm13, %v7693_v60  ;;  %5456 = vmatprep.subr.msk.bf16.mxu1 %vm1606_vm12, %v1569_v2 }
 0x205   : > { %1763 = vmatpush1.bf16.msra.mxu1 %v1626_v15  ;;  %2566 = vmatprep.mubr.bf16.mxu0 %v6634_v8 }
 0x206   : > { %v7748_v24 = vpop.permute.xlu1 %2156 }
 0x208   : > { %5457 = vmatmul.mubr.msk.bf16.vlgmr.msra.gmra.mrb[4].mxu1 %vm1602_vm13, %v7693_v60 }
 0x209   : > { %2607 = vmatprep.mubr.bf16.mxu1 %v6634_v8 }
 0x2bb   : > { %v1665_v54 = vpop.f32.mrb[0].mxu0 }
 0x2bc   : > { %v1667_v0 = vpop.f32.mrb[1].mxu0 }
 0x2bd   : > { %v1795_v43 = vadd.f32 %v1667_v0, %v1665_v54  ;;  %v1669_v55 = vpop.f32.mrb[2].mxu0 }
 0x2be   : > { %v1670_v13 = vpop.f32.mrb[3].mxu0 }
 0x2bf   : > { %v1706_v25 = vpop.f32.mrb[0].mxu1 }
 0x2c0   : > { %v1796_v9 = vadd.f32 %v1795_v43, %v1706_v25  ;;  %v1708_v56 = vpop.f32.mrb[1].mxu1 }
 0x2c1   : > { %v1710_v6 = vpop.f32.mrb[2].mxu1 }
 0x2c2   : > { %v1797_v1 = vadd.f32 %v1796_v9, %v1708_v56  ;;  %v1711_v46 = vpop.f32.mrb[3].mxu1 }
 0x2d7   : > { %v1747_v4 = vpop.f32.mrb[4].mxu0 }
 0x2d8   : > { %v1798_v58 = vadd.f32 %v1797_v1, %v1747_v4  ;;  %v1749_v20 = vpop.f32.mrb[5].mxu0 }
 0x2d9   : > { %v1751_v18 = vpop.f32.mrb[6].mxu0 }
 0x2da   : > { %v1799_v3 = vadd.f32 %v1798_v58, %v1749_v20  ;;  %v1752_v53 = vpop.f32.mrb[7].mxu0 }
 0x2db   : > { %v1788_v60 = vpop.f32.mrb[4].mxu1 }
 0x2dc   : > { %v1800_v63 = vadd.f32 %v1799_v3, %v1788_v60  ;;  %v1790_v29 = vpop.f32.mrb[5].mxu1 }
 0x2dd   : > { %v1792_v50 = vpop.f32.mrb[6].mxu1 }
 0x2de   : > { %v1801_v23 = vadd.f32 %v1800_v63, %v1790_v29  ;;  %v1793_v12 = vpop.f32.mrb[7].mxu1 }
 0x2e0   : > { %1802 = vadd.xlane.f32.xlu0 %v1801_v23 }
 0x2f6   : > { %2112 = vrot.lane.b32.xlu0 %v6934_v27, %s9275_s20 }
 0x2fa   : > { %2192 = vrot.lane.b32.xlu0 %v6607_v10, %s6628_s30 }
 0x2fe   : > { %2236 = vrot.lane.b32.xlu0 %v6962_v38, %s6633_s26 }
 0x36d   : > { %v1803_v48 = vpop.xlane.xlu0 %1802 }
 0x36e   : > { %v1805_v35 = vmul.f32 0.0009765625, %v1803_v48 }
 0x370   : > { %v1806_v45 = vsub.f32 %v1665_v54, %v1805_v35  ;;  %v1807_v62 = vsub.f32 %v1667_v0, %v1805_v35  ;;  %v1808_v47 = vsub.f32 %v1706_v25, %v1805_v35  ;;  %v1809_v28 = vsub.f32 %v1708_v56, %v1805_v35 }
 0x371   : > { %v1810_v11 = vsub.f32 %v1747_v4, %v1805_v35  ;;  %v1811_v41 = vsub.f32 %v1749_v20, %v1805_v35  ;;  %v1812_v16 = vsub.f32 %v1788_v60, %v1805_v35  ;;  %v1813_v17 = vsub.f32 %v1790_v29, %v1805_v35 }
 0x372   : > { %v1814_v14 = vmul.f32 %v1806_v45, %v1806_v45  ;;  %v1815_v37 = vmul.f32 %v1807_v62, %v1807_v62  ;;  %v1816_v21 = vmul.f32 %v1808_v47, %v1808_v47  ;;  %v1817_v42 = vmul.f32 %v1809_v28, %v1809_v28 }
 0x373   : > { %v1818_v34 = vmul.f32 %v1810_v11, %v1810_v11  ;;  %v1819_v19 = vmul.f32 %v1811_v41, %v1811_v41  ;;  %v1820_v31 = vmul.f32 %v1812_v16, %v1812_v16  ;;  %v1821_v61 = vmul.f32 %v1813_v17, %v1813_v17 }
 0x374   : > { %v1822_v5 = vadd.f32 %v1815_v37, %v1814_v14 }
 0x376   : > { %v1823_v27 = vadd.f32 %v1822_v5, %v1816_v21  ;;  %v9386_v5 = vld [vmem:[#allocation17_spill] sm:$0xff] }
 0x378   : > { %v1824_v32 = vadd.f32 %v1823_v27, %v1817_v42  ;;  %v9388_v27 = vld [vmem:[#allocation20_spill] sm:$0xff] }
 0x37a   : > { %v1825_v38 = vadd.f32 %v1824_v32, %v1818_v34  ;;  %v9389_v32 = vld [vmem:[#allocation13_spill] sm:$0xff] }
 0x37c   : > { %v1826_v49 = vadd.f32 %v1825_v38, %v1819_v19  ;;  %v9390_v38 = vld [vmem:[#allocation14_spill] sm:$0xff] }
 0x37e   : > { %v1827_v44 = vadd.f32 %v1826_v49, %v1820_v31  ;;  %v9391_v49 = vld [vmem:[#allocation21_spill] sm:$0xff] }
 0x380   : > { %v1828_v59 = vadd.f32 %v1827_v44, %v1821_v61  ;;  %v9392_v44 = vld [vmem:[#allocation24_spill] sm:$0xff] }
 0x382   : > { %1829 = vadd.xlane.f32.xlu1 %v1828_v59 }
 0x40f   : > { %v1830_v2 = vpop.xlane.xlu1 %1829 }
 0x410   : > { %v1831_v15 = vmul.f32 0.0009765625, %v1830_v2 }
 0x412   : > { %v1832_v54 = vadd.f32 1e-05, %v1831_v15  ;;  %v9394_v15 = vld [vmem:[#allocation19_spill] sm:$0xff] }
 0x414   : > { %6599 = vrsqrt.f32 %v1832_v54 }
 0x41e   : > { %v6600_v0 = vpop.eup %6599 }
 0x41f   : > { %v1836_v43 = vmul.f32 %v6600_v0, %v1808_v47  ;;  %v1834_v55 = vmul.f32 %v6600_v0, %v1806_v45  ;;  %v1835_v13 = vmul.f32 %v6600_v0, %v1807_v62  ;;  %v1837_v25 = vmul.f32 %v6600_v0, %v1809_v28 }
 0x420   : > { %v1838_v9 = vmul.f32 %v6600_v0, %v1810_v11  ;;  %v1839_v46 = vmul.f32 %v6600_v0, %v1811_v41  ;;  %v1840_v29 = vmul.f32 %v6600_v0, %v1812_v16  ;;  %v1841_v23 = vmul.f32 %v6600_v0, %v1813_v17 }
 0x421   : > { %v7750_v56 = vmax.f32 %v1836_v43, 0.0  ;;  %v7752_v6 = vmax.f32 %v1834_v55, 0.0  ;;  %v7754_v1 = vmax.f32 %v1835_v13, 0.0  ;;  %v7759_v20 = vmax.f32 %v1837_v25, 0.0 }
 0x422   : > { %v7761_v18 = vmax.f32 %v1838_v9, 0.0  ;;  %v7767_v53 = vmax.f32 %v1839_v46, 0.0  ;;  %v7777_v50 = vmax.f32 %v1840_v29, 0.0  ;;  %v9395_v9 = vld [vmem:[#allocation22_spill] sm:$0xff] }
 0x423   : > { %v6023_v4 = vpack.i.bf16 %v6607_v10, %v7750_v56  ;;  %v6018_v58 = vpack.i.bf16 %v7754_v1, %v7752_v6  ;;  %v6038_v63 = vpack.i.bf16 %v7759_v20, %v7750_v56  ;;  %v7783_v10 = vmax.f32 %v1841_v23, 0.0  ;;  %v9398_v29 = vld [vmem:[#allocation30_spill] sm:$0xff] }
 0x424   : > { %v6028_v3 = vpack.i.bf16 %v7761_v18, %v7759_v20  ;;  %v6043_v60 = vpack.i.bf16 %v7767_v53, %v7761_v18  ;;  %v6063_v12 = vpack.i.bf16 %v7777_v50, %v7767_v53  ;;  %v1879_v35 = vmul.f32 %v7752_v6, %v6954_v36 }
 0x425   : > { %6024 = vrot.lane.b32.xlu1 %v6023_v4, %s9301_s21  ;;  %6019 = vrot.lane.b32.xlu0 %v6018_v58, %s9301_s21  ;;  %v6068_v48 = vpack.i.bf16 %v7783_v10, %v7777_v50  ;;  %v1880_v45 = vmul.f32 %v7754_v1, %v6941_v30  ;;  %v1881_v47 = vmul.f32 %v7750_v56, %v6989_v57  ;;  %v9384_v57 = vld [vmem:[#allocation11_spill] sm:$0xff] }
 0x426   : > { %v1888_v28 = vmul.f32 %v7752_v6, %v6983_v52  ;;  %v1889_v14 = vmul.f32 %v7754_v1, %v6967_v40  ;;  %v1890_v30 = vmul.f32 %v7750_v56, %v7014_v51  ;;  %v1882_v11 = vmul.f32 %v7759_v20, %v7001_v26  ;;  %v9385_v40 = vld [vmem:[#allocation16_spill] sm:$0xff]  ;;  %v9387_v51 = vld [vmem:[#allocation15_spill] sm:$0xff] }
 0x427   : > { %v6078_v62 = vpack.i.bf16 %v1880_v45, %v1879_v35  ;;  %v6083_v36 = vpack.i.bf16 %v7044_v39, %v1881_v47  ;;  %v1883_v21 = vmul.f32 %v7761_v18, %v9384_v57  ;;  %v1891_v52 = vmul.f32 %v7759_v20, %v9385_v40  ;;  %v9404_v57 = vld [vmem:[#allocation33_spill] sm:$0xff]  ;;  %v9405_v40 = vld [vmem:[#allocation10_spill] sm:$0xff] }
 0x428   : > { %v6088_v37 = vpack.i.bf16 %v1889_v14, %v1888_v28  ;;  %v1892_v41 = vmul.f32 %v7761_v18, %v9386_v5  ;;  %v6093_v42 = vpack.i.bf16 %v9387_v51, %v1890_v30  ;;  %v1896_v16 = vmul.f32 %v9388_v27, %v7752_v6  ;;  %v9402_v28 = vld [vmem:[#allocation38_spill] sm:$0xff]  ;;  %v9406_v5 = vld [vmem:[#allocation28_spill] sm:$0xff] }
 0x429   : > { %6034 = vrot.lane.b32.xlu1 %v6018_v58, %s9280_s29  ;;  %6029 = vrot.lane.b32.xlu0 %v6028_v3, %s9301_s21  ;;  %v6098_v39 = vpack.i.bf16 %v1883_v21, %v1882_v11  ;;  %v1897_v26 = vmul.f32 %v7754_v1, %v7113_v33  ;;  %v1898_v17 = vmul.f32 %v7750_v56, %v9389_v32  ;;  %v9393_v33 = vld [vmem:[#allocation18_spill] sm:$0xff]  ;;  %v9408_v27 = vld [vmem:[#allocation40_spill] sm:$0xff] }
 0x42a   : > { %v6103_v34 = vpack.i.bf16 %v1892_v41, %v1891_v52  ;;  %v1899_v31 = vmul.f32 %v7759_v20, %v9390_v38  ;;  %v1905_v61 = vmul.f32 %v9391_v49, %v7752_v6  ;;  %v1906_v59 = vmul.f32 %v7754_v1, %v9392_v44 }
 0x42b   : > { %v6108_v19 = vpack.i.bf16 %v1897_v26, %v1896_v16  ;;  %v1900_v2 = vmul.f32 %v7761_v18, %v9393_v33  ;;  %v1901_v54 = vmul.f32 %v7767_v53, %v9394_v15  ;;  %v1909_v55 = vmul.f32 %v7761_v18, %v7150_v7  ;;  %v9409_v26 = vld [vmem:[#allocation41_spill] sm:$0xff]  ;;  %v9413_v33 = vld [vmem:[#allocation44_spill] sm:$0xff] }
 0x42c   : > { %v6113_v0 = vpack.i.bf16 %v1899_v31, %v1898_v17  ;;  %v6123_v43 = vpack.i.bf16 %v1906_v59, %v1905_v61  ;;  %v1910_v13 = vmul.f32 %v7767_v53, %v7159_v22  ;;  %v1907_v46 = vmul.f32 %v7750_v56, %v9395_v9  ;;  %v9399_v22 = vld [vmem:[#allocation25_spill] sm:$0xff]  ;;  %v9411_v31 = vld [vmem:[#allocation43_spill] sm:$0xff] }
 0x42d   : > { %6044 = vrot.lane.b32.xlu1 %v6043_v60, %s9280_s29  ;;  %6039 = vrot.lane.b32.xlu0 %v6038_v63, %s9280_s29  ;;  %v6118_v25 = vpack.i.bf16 %v1901_v54, %v1900_v2  ;;  %v1915_v7 = vmul.f32 %v7754_v1, %v9398_v29  ;;  %v1916_v23 = vmul.f32 %v7750_v56, %v9399_v22  ;;  %v9412_v61 = vld [vmem:[#allocation9_spill] sm:$0xff] }
 0x42e   : > { %v6133_v4 = vpack.i.bf16 %v1910_v13, %v1909_v55  ;;  %v1894_v14 = vmul.f32 %v7777_v50, %v9402_v28  ;;  %v1919_v21 = vmul.f32 %v7767_v53, %v9404_v57  ;;  %v1895_v52 = vmul.f32 %v9405_v40, %v7783_v10  ;;  %v9414_v15 = vld [vmem:[#allocation45_spill] sm:$0xff]  ;;  %v9418_v40 = vld [vmem:[#allocation36_spill] sm:$0xff] }
 0x42f   : > { %v1884_v41 = vmul.f32 %v7767_v53, %v9406_v5  ;;  %v1902_v16 = vmul.f32 %v7777_v50, %v9408_v27  ;;  %v1912_v49 = vmul.f32 %v7783_v10, %v9411_v31  ;;  %v1886_v44 = vmul.f32 %v9412_v61, %v7783_v10  ;;  %v9421_v61 = vld [vmem:[#allocation12_spill] sm:$0xff] }
 0x430   : > { %v1920_v2 = vmul.f32 %v7777_v50, %v9413_v33  ;;  %v1921_v54 = vmul.f32 %v7783_v10, %v9414_v15 }
 0x431   : > { %6049 = vrot.lane.b32.xlu1 %v6018_v58, %s6628_s30  ;;  %6054 = vrot.lane.b32.xlu0 %v6038_v63, %s6628_s30  ;;  %v9396_v58 = vld [vmem:[#allocation23_spill] sm:$0xff] }
 0x432   : > { %v1908_v3 = vmul.f32 %v7759_v20, %v9396_v58  ;;  %v9415_v58 = vld [vmem:[#allocation31_spill] sm:$0xff] }
 0x434   : > { %v6128_v35 = vpack.i.bf16 %v1908_v3, %v1907_v46  ;;  %v1871_v3 = vmul.f32 %v7754_v1, %v9415_v58 }
 0x435   : > { %6064 = vrot.lane.b32.xlu1 %v6063_v12, %s9301_s21  ;;  %6059 = vrot.lane.b32.xlu0 %v6043_v60, %s6628_s30  ;;  %v9397_v60 = vld [vmem:[#allocation27_spill] sm:$0xff]  ;;  %v9400_v12 = vld [vmem:[#allocation26_spill] sm:$0xff] }
 0x436   : > { %v1914_v63 = vmul.f32 %v9397_v60, %v7752_v6 }
 0x438   : > { %v6138_v45 = vpack.i.bf16 %v1915_v7, %v1914_v63 }
 0x439   : > { %1948 = vrot.lane.b32.xlu1 %v7783_v10, %s9301_s21  ;;  %6069 = vrot.lane.b32.xlu0 %v6068_v48, %s9280_s29 }
 0x43d   : > { %6074 = vrot.lane.b32.xlu0 %v6068_v48, %s6628_s30  ;;  %6079 = vrot.lane.b32.xlu1 %v6078_v62, %s9299_s16  ;;  %v1917_v48 = vmul.f32 %v7759_v20, %v9400_v12  ;;  %v9401_v62 = vld [vmem:[#allocation37_spill] sm:$0xff]  ;;  %s9270_s30 = smov 80  }
 0x43e   : > { %v1893_v47 = vmul.f32 %v7767_v53, %v9401_v62 }
 0x43f   : > { %v6143_v30 = vpack.i.bf16 %v1917_v48, %v1916_v23  ;;  %v9416_v23 = vld [vmem:[#allocation34_spill] sm:$0xff] }
 0x440   : > { %v1872_v12 = vmul.f32 %v7750_v56, %v9416_v23  ;;  %v9417_v56 = vld [vmem:[#allocation35_spill] sm:$0xff] }
 0x441   : > { %6084 = vrot.lane.b32.xlu0 %v6083_v36, %s9299_s16  ;;  %6089 = vrot.lane.b32.xlu1 %v6088_v37, %s9287_s17  ;;  %v6158_v36 = vpack.i.bf16 %v1894_v14, %v1893_v47  ;;  %v9403_v37 = vld [vmem:[#allocation32_spill] sm:$0xff] }
 0x442   : > { %v1918_v11 = vmul.f32 %v7761_v18, %v9403_v37 }
 0x444   : > { %v6148_v51 = vpack.i.bf16 %v1919_v21, %v1918_v11  ;;  %v1874_v11 = vmul.f32 %v7761_v18, %v9417_v56  ;;  %v9420_v18 = vld [vmem:[#allocation46_spill] sm:$0xff] }
 0x445   : > { %6094 = vrot.lane.b32.xlu0 %v6093_v42, %s9287_s17  ;;  %6099 = vrot.lane.b32.xlu1 %v6098_v39, %s9299_s16  ;;  %v9407_v42 = vld [vmem:[#allocation29_spill] sm:$0xff] }
 0x446   : > { %v1885_v39 = vmul.f32 %v7777_v50, %v9407_v42 }
 0x448   : > { %v6153_v32 = vpack.i.bf16 %v1885_v39, %v1884_v41 }
 0x449   : > { %6104 = vrot.lane.b32.xlu0 %v6103_v34, %s9287_s17  ;;  %6109 = vrot.lane.b32.xlu1 %v6108_v19, %s9275_s20  ;;  %v1903_v34 = vmul.f32 %v7783_v10, %v9409_v26  ;;  %v9410_v19 = vld [vmem:[#allocation42_spill] sm:$0xff]  ;;  %v9419_v26 = vld [vmem:[#allocation39_spill] sm:$0xff] }
 0x44a   : > { %v1911_v38 = vmul.f32 %v7777_v50, %v9410_v19 }
 0x44b   : > { %v6163_v17 = vpack.i.bf16 %v1903_v34, %v1902_v16  ;;  %v1876_v34 = vmul.f32 %v7777_v50, %v9419_v26 }
 0x44c   : > { %v6168_v59 = vpack.i.bf16 %v1912_v49, %v1911_v38 }
 0x44d   : > { %6114 = vrot.lane.b32.xlu0 %v6113_v0, %s9275_s20  ;;  %6124 = vrot.lane.b32.xlu1 %v6123_v43, %s9283_s23  ;;  %v6173_v0 = vpack.i.bf16 %v1921_v54, %v1920_v2  ;;  %v7897_v43 = vpop.permute.xlu0 %2112 }
 0x451   : > { %6119 = vrot.lane.b32.xlu0 %v6118_v25, %s9275_s20  ;;  %6134 = vrot.lane.b32.xlu1 %v6133_v4, %s9283_s23  ;;  %v7899_v55 = vpop.permute.xlu0 %2192 }
 0x455   : > { %6129 = vrot.lane.b32.xlu0 %v6128_v35, %s9283_s23  ;;  %6139 = vrot.lane.b32.xlu1 %v6138_v45, %s6633_s26  ;;  %v7901_v13 = vpop.permute.xlu0 %2236 }
 0x459   : > { %6144 = vrot.lane.b32.xlu0 %v6143_v30, %s6633_s26  ;;  %6159 = vrot.lane.b32.xlu1 %v6158_v36, %s9287_s17 }
 0x45d   : > { %6149 = vrot.lane.b32.xlu0 %v6148_v51, %s6633_s26  ;;  %2036 = vrot.lane.b32.xlu1 %v1895_v52, %s9287_s17  ;;  %v1877_v52 = vmul.f32 %v9418_v40, %v7783_v10  ;;  %v1870_v10 = vmul.f32 %v7752_v6, %v9420_v18 }
 0x461   : > { %6154 = vrot.lane.b32.xlu0 %v6153_v32, %s9299_s16  ;;  %6164 = vrot.lane.b32.xlu1 %v6163_v17, %s9275_s20 }
 0x465   : > { %1992 = vrot.lane.b32.xlu0 %v1886_v44, %s9299_s16  ;;  %6169 = vrot.lane.b32.xlu1 %v6168_v59, %s9283_s23  ;;  %v9422_v59 = vld [vmem:[#allocation47_spill] sm:$0xff] }
 0x466   : > { %v1873_v33 = vmul.f32 %v7759_v20, %v9422_v59 }
 0x469   : > { %6174 = vrot.lane.b32.xlu1 %v6173_v0, %s6633_s26  ;;  %s9295_s26 = smov 112  }
 0x497   : > { %v6025_v25 = vpop.permute.xlu1 %6024  ;;  %v6020_v9 = vpop.permute.xlu0 %6019 }
 0x498   : > { %v6026_v46 = vunpack.i.l.bf16 %v6025_v25  ;;  %v6022_v4 = vunpack.i.h.bf16 %v6020_v9  ;;  %v6021_v37 = vunpack.i.l.bf16 %v6020_v9  ;;  %v6027_v27 = vunpack.i.h.bf16 %v6025_v25  ;;  %v9423_v25 = vld [vmem:[#allocation48_spill] sm:$0xff] }
 0x499   : > { %v1875_v9 = vmul.f32 %v7767_v53, %v9423_v25 }
 0x49a   : > { %v1952_v60 = vsel %vm860_vm1, %v6022_v4, %v6026_v46  ;;  %v1951_v16 = vsel %vm860_vm1, %v6021_v37, %v6022_v4  ;;  %v1950_v31 = vsel %vm860_vm1, %v6027_v27, %v6021_v37 }
 0x49b   : > { %v7906_v63 = vpop.permute.xlu1 %6034  ;;  %v6030_v29 = vpop.permute.xlu0 %6029  ;;  %v2257_v7 = vpack.c.bf16 %v1952_v60, %v1871_v3  ;;  %v2256_v38 = vpack.c.bf16 %v1951_v16, %v1870_v10  ;;  %v2255_v44 = vpack.c.bf16 %v1950_v31, %v9421_v61 }
 0x49c   : > { %v6031_v22 = vunpack.i.l.bf16 %v6030_v29  ;;  %v6032_v30 = vunpack.i.h.bf16 %v6030_v29  ;;  %v6036_v20 = vunpack.i.l.bf16 %v7906_v63  ;;  %v6037_v59 = vunpack.i.h.bf16 %v7906_v63 }
 0x49d   : > { %2349 = vrot.lane.b32.xlu0 %v2257_v7, %s6626_s24 }
 0x49e   : > { %v1953_v48 = vsel %vm860_vm1, %v6026_v46, %v6031_v22  ;;  %v1954_v6 = vsel %vm860_vm1, %v6031_v22, %v6032_v30 }
 0x49f   : > { %v7912_v35 = vpop.permute.xlu1 %6044  ;;  %v7914_v45 = vpop.permute.xlu0 %6039  ;;  %v2258_v62 = vpack.c.bf16 %v1953_v48, %v1872_v12  ;;  %v2259_v54 = vpack.c.bf16 %v1954_v6, %v1873_v33 }
 0x4a0   : > { %v6041_v31 = vunpack.i.l.bf16 %v7914_v45  ;;  %v6042_v25 = vunpack.i.h.bf16 %v7914_v45 }
 0x4a1   : > { %2351 = vrot.lane.b32.xlu0 %v2258_v62, %s6626_s24 }
 0x4a3   : > { %v7917_v1 = vpop.permute.xlu1 %6049  ;;  %v7919_v47 = vpop.permute.xlu0 %6054 }
 0x4a4   : > { %v6051_v53 = vunpack.i.l.bf16 %v7917_v1 }
 0x4a7   : > { %v6065_v28 = vpop.permute.xlu1 %6064  ;;  %v7921_v14 = vpop.permute.xlu0 %6059 }
 0x4a8   : > { %v6066_v36 = vunpack.i.l.bf16 %v6065_v28  ;;  %v6067_v57 = vunpack.i.h.bf16 %v6065_v28 }
 0x4aa   : > { %v1955_v21 = vsel %vm860_vm1, %v6032_v30, %v6066_v36  ;;  %v1956_v0 = vsel %vm860_vm1, %v6066_v36, %v6067_v57 }
 0x4ab   : > { %v1949_v5 = vpop.permute.xlu1 %1948  ;;  %v7928_v41 = vpop.permute.xlu0 %6069  ;;  %v2260_v51 = vpack.c.bf16 %v1955_v21, %v1874_v11  ;;  %v2261_v3 = vpack.c.bf16 %v1956_v0, %v1875_v9  ;;  %v2072_v9 = vsel %vm9289_vm6, %v6037_v59, %v6041_v31 }
 0x4ac   : > { %v1957_v42 = vsel %vm860_vm1, %v6067_v57, %v1949_v5  ;;  %v2263_v39 = vpack.c.bf16 %v1949_v5, %v1877_v52 }
 0x4ad   : > { %2355 = vrot.lane.b32.xlu0 %v2260_v51, %s6626_s24  ;;  %v2262_v32 = vpack.c.bf16 %v1957_v42, %v1876_v34 }
 0x4ae   : > { %2361 = vrot.lane.b32.xlu1 %v2263_v39, %s6626_s24 }
 0x4af   : > { %v7938_v17 = vpop.permute.xlu0 %6074  ;;  %v7940_v19 = vpop.permute.xlu1 %6079 }
 0x4b0   : > { %v6082_v48 = vunpack.i.h.bf16 %v7940_v19  ;;  %v6081_v62 = vunpack.i.l.bf16 %v7940_v19 }
 0x4b1   : > { %2359 = vrot.lane.b32.xlu0 %v2262_v32, %s6626_s24 }
 0x4b2   : > { %2347 = vrot.lane.b32.xlu1 %v2256_v38, %s6626_s24  ;;  %v1995_v11 = vsel %vm1083_vm8, %v6081_v62, %v6082_v48 }
 0x4b3   : > { %v7945_v50 = vpop.permute.xlu0 %6084  ;;  %v7947_v49 = vpop.permute.xlu1 %6089 }
 0x4b4   : > { %v6092_v60 = vunpack.i.h.bf16 %v7947_v49  ;;  %v6091_v29 = vunpack.i.l.bf16 %v7947_v49  ;;  %v6087_v57 = vunpack.i.h.bf16 %v7945_v50 }
 0x4b6   : > { %2345 = vrot.lane.b32.xlu1 %v2255_v44, %s6626_s24  ;;  %v2039_v30 = vsel %vm9278_vm7, %v6091_v29, %v6092_v60  ;;  %v1994_v27 = vsel %vm1083_vm8, %v6087_v57, %v6081_v62 }
 0x4b7   : > { %v7954_v2 = vpop.permute.xlu0 %6094  ;;  %v7956_v15 = vpop.permute.xlu1 %6099  ;;  %v2265_v21 = vpack.c.bf16 %v2039_v30, %v1995_v11  ;;  %v6052_v30 = vunpack.i.h.bf16 %v7917_v1  ;;  %v6086_v11 = vunpack.i.l.bf16 %v7945_v50 }
 0x4b8   : > { %v6097_v36 = vunpack.i.h.bf16 %v7954_v2  ;;  %v6102_v16 = vunpack.i.h.bf16 %v7956_v15  ;;  %v6101_v26 = vunpack.i.l.bf16 %v7956_v15 }
 0x4ba   : > { %2353 = vrot.lane.b32.xlu1 %v2259_v54, %s6626_s24  ;;  %v2038_v40 = vsel %vm9278_vm7, %v6097_v36, %v6091_v29  ;;  %v1998_v61 = vsel %vm1083_vm8, %v6101_v26, %v6102_v16  ;;  %v6096_v36 = vunpack.i.l.bf16 %v7954_v2 }
 0x4bb   : > { %v7962_v46 = vpop.permute.xlu0 %6104  ;;  %v7964_v4 = vpop.permute.xlu1 %6109  ;;  %v2264_v18 = vpack.c.bf16 %v2038_v40, %v1994_v27 }
 0x4bc   : > { %v6111_v58 = vunpack.i.l.bf16 %v7964_v4  ;;  %v6107_v52 = vunpack.i.h.bf16 %v7962_v46  ;;  %v6106_v5 = vunpack.i.l.bf16 %v7962_v46  ;;  %v6112_v44 = vunpack.i.h.bf16 %v7964_v4 }
 0x4bd   : > { %v2040_v1 = vsel %vm9278_vm7, %v6092_v60, %v6096_v36 }
 0x4be   : > { %2357 = vrot.lane.b32.xlu1 %v2261_v3, %s6626_s24  ;;  %v2273_v23 = vpack.c.bf16 %v6111_v58, %v6036_v20  ;;  %v2042_v10 = vsel %vm9278_vm7, %v6106_v5, %v6107_v52 }
 0x4bf   : > { %v7971_v7 = vpop.permute.xlu0 %6114  ;;  %v7973_v22 = vpop.permute.xlu1 %6124  ;;  %v2268_v6 = vpack.c.bf16 %v2042_v10, %v1998_v61  ;;  %v1996_v10 = vsel %vm1083_vm8, %v6082_v48, %v6086_v11  ;;  %v1997_v48 = vsel %vm1083_vm8, %v6086_v11, %v6101_v26  ;;  %v2071_v26 = vsel %vm9289_vm6, %v6036_v20, %v6037_v59 }
 0x4c0   : > { %v6126_v12 = vunpack.i.l.bf16 %v7973_v22  ;;  %v6116_v32 = vunpack.i.l.bf16 %v7971_v7  ;;  %v6117_v33 = vunpack.i.h.bf16 %v7971_v7  ;;  %v6127_v62 = vunpack.i.h.bf16 %v7973_v22 }
 0x4c1   : > { %v2073_v7 = vsel %vm9289_vm6, %v6041_v31, %v6042_v25  ;;  %v2266_v49 = vpack.c.bf16 %v2040_v1, %v1996_v10  ;;  %v2041_v31 = vsel %vm9278_vm7, %v6096_v36, %v6106_v5  ;;  %v6056_v59 = vunpack.i.l.bf16 %v7919_v47 }
 0x4c2   : > { %v2282_v28 = vpack.c.bf16 %v6051_v53, %v6126_v12  ;;  %2381 = vrot.lane.b32.xlu1 %v2273_v23, %s6626_s24  ;;  %v2115_v54 = vsel %vm9277_vm9, %v6112_v44, %v6116_v32  ;;  %v2116_v23 = vsel %vm9277_vm9, %v6116_v32, %v6117_v33  ;;  %v2158_v57 = vsel %vm506_vm5, %v6126_v12, %v6127_v62 }
 0x4c3   : > { %v7988_v37 = vpop.permute.xlu0 %6119  ;;  %v7990_v56 = vpop.permute.xlu1 %6134  ;;  %v2275_v29 = vpack.c.bf16 %v2115_v54, %v2072_v9  ;;  %v2276_v45 = vpack.c.bf16 %v2116_v23, %v2073_v7  ;;  %v6057_v12 = vunpack.i.h.bf16 %v7919_v47  ;;  %v2267_v54 = vpack.c.bf16 %v2041_v31, %v1997_v48 }
 0x4c4   : > { %2399 = vrot.lane.b32.xlu0 %v2282_v28, %s6626_s24  ;;  %v6136_v2 = vunpack.i.l.bf16 %v7990_v56  ;;  %v2114_v9 = vsel %vm9277_vm9, %v6111_v58, %v6112_v44  ;;  %v6121_v5 = vunpack.i.l.bf16 %v7988_v37  ;;  %v6046_v23 = vunpack.i.l.bf16 %v7912_v35 }
 0x4c5   : > { %v2274_v4 = vpack.c.bf16 %v2114_v9, %v2071_v26  ;;  %v6122_v15 = vunpack.i.h.bf16 %v7988_v37 }
 0x4c6   : > { %v2117_v58 = vsel %vm9277_vm9, %v6117_v33, %v6121_v5  ;;  %v2074_v20 = vsel %vm9289_vm6, %v6042_v25, %v6046_v23  ;;  %v2195_v25 = vsel %vm1286_vm10, %v6052_v30, %v6056_v59 }
 0x4c7   : > { %v8000_v51 = vpop.permute.xlu0 %6129  ;;  %v8002_v42 = vpop.permute.xlu1 %6139  ;;  %v2277_v33 = vpack.c.bf16 %v2117_v58, %v2074_v20  ;;  %v2118_v37 = vsel %vm9277_vm9, %v6121_v5, %v6122_v15 }
 0x4c8   : > { %v6141_v39 = vunpack.i.l.bf16 %v8002_v42  ;;  %2365 = vrot.lane.b32.xlu0 %v2265_v21, %s6626_s24  ;;  %v6132_v21 = vunpack.i.h.bf16 %v8000_v51  ;;  %v6142_v32 = vunpack.i.h.bf16 %v8002_v42  ;;  %v6131_v44 = vunpack.i.l.bf16 %v8000_v51 }
 0x4ca   : > { %v2291_v34 = vpack.c.bf16 %v6141_v39, %v6141_v39  ;;  %v2238_v42 = vsel %vm1331_vm11, %v6141_v39, %v6142_v32  ;;  %v2159_v51 = vsel %vm506_vm5, %v6127_v62, %v6131_v44 }
 0x4cb   : > { %v8013_v38 = vpop.permute.xlu0 %6144  ;;  %v8030_v3 = vpop.permute.xlu1 %6159  ;;  %v2284_v46 = vpack.c.bf16 %v2195_v25, %v2159_v51 }
 0x4cc   : > { %2363 = vrot.lane.b32.xlu0 %v2264_v18, %s6626_s24  ;;  %2417 = vrot.lane.b32.xlu1 %v2291_v34, %s6626_s24  ;;  %v2194_v34 = vsel %vm1286_vm10, %v6051_v53, %v6052_v30  ;;  %v6061_v18 = vunpack.i.l.bf16 %v7921_v14  ;;  %v2161_v53 = vsel %vm506_vm5, %v6132_v21, %v6136_v2  ;;  %v6147_v61 = vunpack.i.h.bf16 %v8013_v38 }
 0x4cd   : > { %v2283_v50 = vpack.c.bf16 %v2194_v34, %v2158_v57  ;;  %v6161_v36 = vunpack.i.l.bf16 %v8030_v3  ;;  %v6047_v34 = vunpack.i.h.bf16 %v7912_v35  ;;  %v2196_v30 = vsel %vm1286_vm10, %v6056_v59, %v6057_v12 }
 0x4ce   : > { %v2197_v60 = vsel %vm1286_vm10, %v6057_v12, %v6061_v18 }
 0x4cf   : > { %v8025_v0 = vpop.permute.xlu0 %6149  ;;  %v2037_v40 = vpop.permute.xlu1 %2036  ;;  %v2286_v19 = vpack.c.bf16 %v2197_v60, %v2161_v53  ;;  %v2043_v11 = vsel %vm9278_vm7, %v6107_v52, %v6161_v36  ;;  %v2160_v52 = vsel %vm506_vm5, %v6131_v44, %v6132_v21  ;;  %v6072_v53 = vunpack.i.h.bf16 %v7928_v41 }
 0x4d0   : > { %2371 = vrot.lane.b32.xlu0 %v2268_v6, %s6626_s24  ;;  %v6146_v6 = vunpack.i.l.bf16 %v8013_v38  ;;  %v2285_v35 = vpack.c.bf16 %v2196_v30, %v2160_v52  ;;  %v6071_v21 = vunpack.i.l.bf16 %v7928_v41  ;;  %v6137_v60 = vunpack.i.h.bf16 %v7990_v56 }
 0x4d1   : > { %v6077_v38 = vunpack.i.h.bf16 %v7938_v17 }
 0x4d2   : > { %v2240_v7 = vsel %vm1331_vm11, %v6146_v6, %v6147_v61 }
 0x4d3   : > { %v8034_v28 = vpop.permute.xlu0 %6154  ;;  %v2294_v63 = vpack.c.bf16 %v2240_v7, %v2240_v7  ;;  %v6165_v62 = vpop.permute.xlu1 %6164  ;;  %v6152_v7 = vunpack.i.h.bf16 %v8025_v0  ;;  %v2201_v25 = vsel %vm1286_vm10, %v6077_v38, %v7899_v55 }
 0x4d4   : > { %2385 = vrot.lane.b32.xlu0 %v2275_v29, %s6626_s24  ;;  %v2292_v29 = vpack.c.bf16 %v2238_v42, %v2238_v42  ;;  %v6156_v39 = vunpack.i.l.bf16 %v8034_v28  ;;  %v6157_v57 = vunpack.i.h.bf16 %v8034_v28  ;;  %v6166_v10 = vunpack.i.l.bf16 %v6165_v62 }
 0x4d5   : > { %v6062_v42 = vunpack.i.h.bf16 %v7921_v14 }
 0x4d7   : > { %v1993_v27 = vpop.permute.xlu0 %1992  ;;  %v2198_v26 = vsel %vm1286_vm10, %v6061_v18, %v6062_v42 }
 0x4d8   : > { %v2272_v22 = vpack.c.bf16 %v2037_v40, %v1993_v27  ;;  %2387 = vrot.lane.b32.xlu0 %v2276_v45, %s6626_s24  ;;  %v1999_v45 = vsel %vm1083_vm8, %v6102_v16, %v6156_v39  ;;  %v6162_v16 = vunpack.i.h.bf16 %v8030_v3  ;;  %v6167_v3 = vunpack.i.h.bf16 %v6165_v62 }
 0x4d9   : > { %v2269_v47 = vpack.c.bf16 %v2043_v11, %v1999_v45 }
 0x4da   : > { %2379 = vrot.lane.b32.xlu1 %v2272_v22, %s6626_s24  ;;  %v2001_v22 = vsel %vm1083_vm8, %v6157_v57, %v1993_v27  ;;  %v2045_v1 = vsel %vm9278_vm7, %v6162_v16, %v2037_v40  ;;  %v2075_v27 = vsel %vm9289_vm6, %v6046_v23, %v6047_v34  ;;  %v6151_v40 = vunpack.i.l.bf16 %v8025_v0 }
 0x4db   : > { %v2278_v12 = vpack.c.bf16 %v2118_v37, %v2075_v27  ;;  %v2120_v31 = vsel %vm9277_vm9, %v6166_v10, %v6167_v3  ;;  %v2000_v23 = vsel %vm1083_vm8, %v6156_v39, %v6157_v57  ;;  %v2076_v39 = vsel %vm9289_vm6, %v6047_v34, %v6071_v21 }
 0x4dc   : > { %2401 = vrot.lane.b32.xlu0 %v2283_v50, %s6626_s24  ;;  %v2271_v50 = vpack.c.bf16 %v2045_v1, %v2001_v22  ;;  %v2241_v41 = vsel %vm1331_vm11, %v6147_v61, %v6151_v40  ;;  %v6076_v61 = vunpack.i.l.bf16 %v7938_v17  ;;  %v2119_v17 = vsel %vm9277_vm9, %v6122_v15, %v6166_v10 }
 0x4dd   : > { %v2279_v0 = vpack.c.bf16 %v2119_v17, %v2076_v39  ;;  %v2121_v20 = vsel %vm9277_vm9, %v6167_v3, %v7897_v43 }
 0x4de   : > { %2367 = vrot.lane.b32.xlu1 %v2266_v49, %s6626_s24  ;;  %v2239_v49 = vsel %vm1331_vm11, %v6142_v32, %v6146_v6  ;;  %v2162_v6 = vsel %vm506_vm5, %v6136_v2, %v6137_v60  ;;  %v2044_v2 = vsel %vm9278_vm7, %v6161_v36, %v6162_v16  ;;  %v2200_v58 = vsel %vm1286_vm10, %v6076_v61, %v6077_v38 }
 0x4df   : > { %v2293_v48 = vpack.c.bf16 %v2239_v49, %v2239_v49  ;;  %v2287_v56 = vpack.c.bf16 %v2198_v26, %v2162_v6  ;;  %v2270_v18 = vpack.c.bf16 %v2044_v2, %v2000_v23  ;;  %v2242_v36 = vsel %vm1331_vm11, %v6151_v40, %v6152_v7 }
 0x4e0   : > { %2407 = vrot.lane.b32.xlu0 %v2286_v19, %s6626_s24  ;;  %v6170_v19 = vpop.permute.xlu1 %6169  ;;  %v2296_v59 = vpack.c.bf16 %v2242_v36, %v2242_v36  ;;  %v2199_v57 = vsel %vm1286_vm10, %v6062_v42, %v6076_v61  ;;  %vm2951_vm10 = vcmask 261248  }
 0x4e1   : > { %v6172_v9 = vunpack.i.h.bf16 %v6170_v19  ;;  %v6171_v5 = vunpack.i.l.bf16 %v6170_v19 }
 0x4e2   : > { %2369 = vrot.lane.b32.xlu1 %v2267_v54, %s6626_s24  ;;  %v2077_v54 = vsel %vm9289_vm6, %v6071_v21, %v6072_v53 }
 0x4e3   : > { %v2280_v32 = vpack.c.bf16 %v2120_v31, %v2077_v54  ;;  %v2163_v51 = vsel %vm506_vm5, %v6137_v60, %v6171_v5  ;;  %v2165_v43 = vsel %vm506_vm5, %v6172_v9, %v7748_v24 }
 0x4e4   : > { %2419 = vrot.lane.b32.xlu0 %v2292_v29, %s6626_s24  ;;  %v2295_v29 = vpack.c.bf16 %v2241_v41, %v2241_v41  ;;  %v6175_v14 = vpop.permute.xlu1 %6174  ;;  %v2290_v15 = vpack.c.bf16 %v2201_v25, %v2165_v43 }
 0x4e5   : > { %v6177_v44 = vunpack.i.h.bf16 %v6175_v14 }
 0x4e6   : > { %2383 = vrot.lane.b32.xlu1 %v2274_v4, %s6626_s24  ;;  %v2164_v4 = vsel %vm506_vm5, %v6171_v5, %v6172_v9 }
 0x4e7   : > { %v2289_v28 = vpack.c.bf16 %v2200_v58, %v2164_v4  ;;  %v2245_v34 = vsel %vm1331_vm11, %v6177_v44, %v7901_v13 }
 0x4e8   : > { %2423 = vrot.lane.b32.xlu0 %v2294_v63, %s6626_s24  ;;  %v6176_v63 = vunpack.i.l.bf16 %v6175_v14  ;;  %v2299_v62 = vpack.c.bf16 %v2245_v34, %v2245_v34 }
 0x4ea   : > { %2389 = vrot.lane.b32.xlu1 %v2277_v33, %s6626_s24  ;;  %v2244_v45 = vsel %vm1331_vm11, %v6176_v63, %v6177_v44  ;;  %v2281_v33 = vpack.c.bf16 %v2121_v20, %v6072_v53  ;;  %v2243_v16 = vsel %vm1331_vm11, %v6152_v7, %v6176_v63  ;;  %vm2957_vm11 = vcmask 392448  }
 0x4eb   : > { %v2298_v11 = vpack.c.bf16 %v2244_v45, %v2244_v45  ;;  %v2297_v22 = vpack.c.bf16 %v2243_v16, %v2243_v16 }
 0x4ec   : > { %2373 = vrot.lane.b32.xlu0 %v2269_v47, %s6626_s24  ;;  %v2288_v47 = vpack.c.bf16 %v2199_v57, %v2163_v51 }
 0x4ee   : > { %2403 = vrot.lane.b32.xlu1 %v2284_v46, %s6626_s24 }
 0x4f0   : > { %2377 = vrot.lane.b32.xlu0 %v2271_v50, %s6626_s24 }
 0x4f2   : > { %2405 = vrot.lane.b32.xlu1 %v2285_v35, %s6626_s24 }
 0x4f4   : > { %2391 = vrot.lane.b32.xlu0 %v2278_v12, %s6626_s24 }
 0x4f6   : > { %2421 = vrot.lane.b32.xlu1 %v2293_v48, %s6626_s24 }
 0x4f8   : > { %2395 = vrot.lane.b32.xlu0 %v2280_v32, %s6626_s24 }
 0x4fa   : > { %2425 = vrot.lane.b32.xlu1 %v2295_v29, %s6626_s24 }
 0x4fc   : > { %2409 = vrot.lane.b32.xlu0 %v2287_v56, %s6626_s24 }
 0x4fe   : > { %2375 = vrot.lane.b32.xlu1 %v2270_v18, %s6626_s24 }
 0x500   : > { %2413 = vrot.lane.b32.xlu0 %v2289_v28, %s6626_s24 }
 0x502   : > { %2393 = vrot.lane.b32.xlu1 %v2279_v0, %s6626_s24 }
 0x504   : > { %2427 = vrot.lane.b32.xlu0 %v2296_v59, %s6626_s24 }
 0x506   : > { %2397 = vrot.lane.b32.xlu1 %v2281_v33, %s6626_s24 }
 0x508   : > { %2431 = vrot.lane.b32.xlu0 %v2298_v11, %s6626_s24  ;;  %v8218_v11 = vld [vmem:[%s9192_s2] sm:$0xf] }
 0x50a   : > { %2411 = vrot.lane.b32.xlu1 %v2288_v47, %s6626_s24 }
 0x50e   : > { %2415 = vrot.lane.b32.xlu1 %v2290_v15, %s6626_s24 }
 0x50f   : > { %v2350_v46 = vpop.permute.xlu0 %2349 }
 0x512   : > { %2429 = vrot.lane.b32.xlu1 %v2297_v22, %s6626_s24 }
 0x513   : > { %v2352_v1 = vpop.permute.xlu0 %2351 }
 0x514   : > { %v2437_v10 = vsel %vm986_vm4, %v2350_v46, %v2352_v1 }
 0x516   : > { %2433 = vrot.lane.b32.xlu1 %v2299_v62, %s6626_s24  ;;  %s9264_s24 = smov 16  }
 0x51f   : > { %v8176_v37 = vpop.permute.xlu0 %2355 }
 0x520   : > { %v8172_v24 = vpop.permute.xlu1 %2361 }
 0x523   : > { %v8183_v27 = vpop.permute.xlu0 %2359 }
 0x524   : > { %v2348_v52 = vpop.permute.xlu1 %2347  ;;  %v2442_v16 = vsel %vm986_vm4, %v8183_v27, %v8172_v24 }
 0x525   : > { %v2436_v55 = vsel %vm986_vm4, %v2348_v52, %v2350_v46 }
 0x526   : > { %2534 = vmatprep.subr.bf16.mxu0 %v2436_v55 }
 0x528   : > { %v2346_v50 = vpop.permute.xlu1 %2345 }
 0x529   : > { %v2435_v30 = vsel %vm986_vm4, %v2346_v50, %v2348_v52 }
 0x52a   : > { %2535 = vmatpush1.bf16.msra.mxu0 %v2435_v30 }
 0x52c   : > { %v8178_v13 = vpop.permute.xlu1 %2353 }
 0x52d   : > { %v2438_v3 = vsel %vm986_vm4, %v2352_v1, %v8178_v13  ;;  %v2439_v15 = vsel %vm986_vm4, %v8178_v13, %v8176_v37 }
 0x52e   : > { %2575 = vmatprep.subr.bf16.mxu1 %v2438_v3 }
 0x52f   : > { %2576 = vmatpush1.bf16.msra.mxu1 %v2437_v10 }
 0x530   : > { %v8185_v21 = vpop.permute.xlu1 %2357 }
 0x531   : > { %v2440_v51 = vsel %vm986_vm4, %v8176_v37, %v8185_v21  ;;  %v2441_v46 = vsel %vm986_vm4, %v8185_v21, %v8183_v27 }
 0x534   : > { %v2382_v12 = vpop.permute.xlu1 %2381 }
 0x536   : > { %v2400_v35 = vpop.permute.xlu0 %2399 }
 0x53a   : > { %v2366_v53 = vpop.permute.xlu0 %2365 }
 0x53e   : > { %v2364_v40 = vpop.permute.xlu0 %2363  ;;  %v2418_v31 = vpop.permute.xlu1 %2417 }
 0x53f   : > { %v2443_v32 = vsel %vm986_vm4, %v2364_v40, %v2366_v53 }
 0x542   : > { %v8187_v49 = vpop.permute.xlu0 %2371 }
 0x546   : > { %v2386_v60 = vpop.permute.xlu0 %2385 }
 0x54a   : > { %v2388_v19 = vpop.permute.xlu0 %2387 }
 0x54b   : > { %v2453_v14 = vsel %vm986_vm4, %v2386_v60, %v2388_v19 }
 0x54c   : > { %v8189_v48 = vpop.permute.xlu1 %2379 }
 0x54e   : > { %v2402_v42 = vpop.permute.xlu0 %2401 }
 0x54f   : > { %v2459_v28 = vsel %vm986_vm4, %v2400_v35, %v2402_v42 }
 0x550   : > { %v2368_v54 = vpop.permute.xlu1 %2367 }
 0x551   : > { %v2444_v41 = vsel %vm986_vm4, %v2366_v53, %v2368_v54 }
 0x552   : > { %v8193_v6 = vpop.permute.xlu0 %2407  ;;  %2536 = vmatprep.subr.bf16.mxu0 %v2444_v41 }
 0x553   : > { %2537 = vmatpush1.bf16.msra.mxu0 %v2443_v32 }
 0x554   : > { %v2370_v9 = vpop.permute.xlu1 %2369 }
 0x555   : > { %v2446_v5 = vsel %vm986_vm4, %v2370_v9, %v8187_v49  ;;  %v2445_v29 = vsel %vm986_vm4, %v2368_v54, %v2370_v9 }
 0x556   : > { %v2420_v26 = vpop.permute.xlu0 %2419  ;;  %2577 = vmatprep.subr.bf16.mxu1 %v2446_v5 }
 0x557   : > { %2578 = vmatpush1.bf16.msra.mxu1 %v2445_v29  ;;  %v2467_v36 = vsel %vm986_vm4, %v2418_v31, %v2420_v26 }
 0x558   : > { %v2384_v38 = vpop.permute.xlu1 %2383  ;;  %v2511_v45 = vsel %vm1606_vm12, %v2467_v36, 0 }
 0x559   : > { %v2452_v61 = vsel %vm986_vm4, %v2384_v38, %v2386_v60  ;;  %v2451_v23 = vsel %vm986_vm4, %v2382_v12, %v2384_v38 }
 0x55a   : > { %v2424_v56 = vpop.permute.xlu0 %2423  ;;  %2538 = vmatprep.subr.bf16.mxu0 %v2452_v61 }
 0x55b   : > { %2539 = vmatpush1.bf16.msra.mxu0 %v2451_v23 }
 0x55c   : > { %v2390_v2 = vpop.permute.xlu1 %2389 }
 0x55d   : > { %v2454_v7 = vsel %vm986_vm4, %v2388_v19, %v2390_v2 }
 0x55e   : > { %v2374_v4 = vpop.permute.xlu0 %2373  ;;  %2579 = vmatprep.subr.bf16.mxu1 %v2454_v7 }
 0x55f   : > { %2580 = vmatpush1.bf16.msra.mxu1 %v2453_v14  ;;  %v2447_v62 = vsel %vm986_vm4, %v8187_v49, %v2374_v4 }
 0x560   : > { %v2404_v18 = vpop.permute.xlu1 %2403 }
 0x561   : > { %v2460_v58 = vsel %vm986_vm4, %v2402_v42, %v2404_v18 }
 0x562   : > { %v2378_v17 = vpop.permute.xlu0 %2377  ;;  %2540 = vmatprep.subr.bf16.mxu0 %v2460_v58 }
 0x563   : > { %2541 = vmatpush1.bf16.msra.mxu0 %v2459_v28  ;;  %v2450_v24 = vsel %vm986_vm4, %v2378_v17, %v8189_v48 }
 0x564   : > { %v2406_v39 = vpop.permute.xlu1 %2405 }
 0x565   : > { %v2462_v44 = vsel %vm986_vm4, %v2406_v39, %v8193_v6  ;;  %v2461_v63 = vsel %vm986_vm4, %v2404_v18, %v2406_v39 }
 0x566   : > { %2581 = vmatprep.subr.bf16.mxu1 %v2462_v44  ;;  %v2392_v0 = vpop.permute.xlu0 %2391 }
 0x567   : > { %2582 = vmatpush1.bf16.msra.mxu1 %v2461_v63  ;;  %v2455_v50 = vsel %vm986_vm4, %v2390_v2, %v2392_v0 }
 0x568   : > { %v2422_v20 = vpop.permute.xlu1 %2421 }
 0x569   : > { %v2468_v59 = vsel %vm986_vm4, %v2420_v26, %v2422_v20  ;;  %v2469_v33 = vsel %vm986_vm4, %v2422_v20, %v2424_v56 }
 0x56a   : > { %5458 = vmatprep.subr.msk.bf16.mxu0 %vm1606_vm12, %v2468_v59  ;;  %v2396_v43 = vpop.permute.xlu0 %2395  ;;  %v2517_v25 = vsel %vm1606_vm12, %v2469_v33, 0 }
 0x56b   : > { %2543 = vmatpush1.bf16.msra.mxu0 %v2511_v45 }
 0x56c   : > { %2616 = vmatprep.subr.bf16.mxu0 %v2440_v51  ;;  %v2426_v57 = vpop.permute.xlu1 %2425 }
 0x56d   : > { %v2470_v47 = vsel %vm986_vm4, %v2424_v56, %v2426_v57 }
 0x56e   : > { %5460 = vmatprep.subr.msk.bf16.mxu1 %vm1606_vm12, %v2470_v47  ;;  %5459 = vmatmul.mubr.msk.bf16.vlgmr.msra.gmra.mrb[8].mxu0 %vm1602_vm13, %v8218_v11  ;;  %v2410_v52 = vpop.permute.xlu0 %2409 }
 0x56f   : > { %2584 = vmatpush1.bf16.msra.mxu1 %v2517_v25  ;;  %2617 = vmatpush1.bf16.msra.mxu0 %v2439_v15  ;;  %v2463_v53 = vsel %vm986_vm4, %v8193_v6, %v2410_v52 }
 0x570   : > { %2657 = vmatprep.subr.bf16.mxu1 %v2442_v16  ;;  %v2376_v22 = vpop.permute.xlu1 %2375  ;;  %2648 = vmatprep.mubr.bf16.mxu0 %v6634_v8 }
 0x571   : > { %v2448_v34 = vsel %vm986_vm4, %v2374_v4, %v2376_v22  ;;  %v2449_v30 = vsel %vm986_vm4, %v2376_v22, %v2378_v17 }
 0x572   : > { %2618 = vmatprep.subr.bf16.mxu0 %v2448_v34  ;;  %5461 = vmatmul.mubr.msk.bf16.vlgmr.msra.gmra.mrb[8].mxu1 %vm1602_vm13, %v8218_v11  ;;  %v2414_v3 = vpop.permute.xlu0 %2413 }
 0x573   : > { %2619 = vmatpush1.bf16.msra.mxu0 %v2447_v62  ;;  %2658 = vmatpush1.bf16.msra.mxu1 %v2441_v46 }
 0x574   : > { %2659 = vmatprep.subr.bf16.mxu1 %v2450_v24  ;;  %v2394_v55 = vpop.permute.xlu1 %2393  ;;  %2689 = vmatprep.mubr.bf16.mxu1 %v6634_v8 }
 0x575   : > { %v2456_v1 = vsel %vm986_vm4, %v2392_v0, %v2394_v55  ;;  %v2457_v10 = vsel %vm986_vm4, %v2394_v55, %v2396_v43 }
 0x576   : > { %2620 = vmatprep.subr.bf16.mxu0 %v2456_v1  ;;  %v2428_v21 = vpop.permute.xlu0 %2427 }
 0x577   : > { %2621 = vmatpush1.bf16.msra.mxu0 %v2455_v50  ;;  %2660 = vmatpush1.bf16.msra.mxu1 %v2449_v30  ;;  %v2471_v60 = vsel %vm986_vm4, %v2426_v57, %v2428_v21 }
 0x578   : > { %v2398_v37 = vpop.permute.xlu1 %2397  ;;  %v2523_v42 = vsel %vm1606_vm12, %v2471_v60, 0  ;;  %v6584_v60 = vld [vmem:[%s9202_s12 + $0x18] sm:$0xff]  }
 0x579   : > { %v2458_v13 = vsel %vm986_vm4, %v2396_v43, %v2398_v37 }
 0x57a   : > { %2661 = vmatprep.subr.bf16.mxu1 %v2458_v13  ;;  %v2432_v48 = vpop.permute.xlu0 %2431 }
 0x57b   : > { %2662 = vmatpush1.bf16.msra.mxu1 %v2457_v10 }
 0x57c   : > { %v2412_v27 = vpop.permute.xlu1 %2411 }
 0x57d   : > { %v2464_v35 = vsel %vm986_vm4, %v2410_v52, %v2412_v27  ;;  %v2465_v12 = vsel %vm986_vm4, %v2412_v27, %v2414_v3 }
 0x57e   : > { %2622 = vmatprep.subr.bf16.mxu0 %v2464_v35  ;;  %v6581_v35 = vld [vmem:[%s9202_s12] sm:$0xff]  }
 0x57f   : > { %2623 = vmatpush1.bf16.msra.mxu0 %v2463_v53  ;;  %v6582_v53 = vld [vmem:[%s9202_s12 + $0x8] sm:$0xff]  }
 0x580   : > { %v2416_v40 = vpop.permute.xlu1 %2415 }
 0x581   : > { %v2466_v49 = vsel %vm986_vm4, %v2414_v3, %v2416_v40 }
 0x582   : > { %2663 = vmatprep.subr.bf16.mxu1 %v2466_v49 }
 0x583   : > { %2664 = vmatpush1.bf16.msra.mxu1 %v2465_v12 }
 0x584   : > { %v2430_v31 = vpop.permute.xlu1 %2429 }
 0x585   : > { %v2472_v19 = vsel %vm986_vm4, %v2428_v21, %v2430_v31  ;;  %v2473_v54 = vsel %vm986_vm4, %v2430_v31, %v2432_v48  ;;  %v6583_v21 = vld [vmem:[%s9202_s12 + $0x10] sm:$0xff]  }
 0x586   : > { %5462 = vmatprep.subr.msk.bf16.mxu0 %vm1606_vm12, %v2472_v19  ;;  %v2529_v6 = vsel %vm1606_vm12, %v2473_v54, 0 }
 0x587   : > { %2625 = vmatpush1.bf16.msra.mxu0 %v2523_v42 }
 0x588   : > { %v2434_v41 = vpop.permute.xlu1 %2433  ;;  %5573 = vmatprep.subr.bf16.mxu0 %v6581_v35 }
 0x589   : > { %v2474_v32 = vsel %vm986_vm4, %v2432_v48, %v2434_v41 }
 0x58a   : > { %5463 = vmatmul.mubr.msk.bf16.vlgmr.msra.gmra.mrb[12].mxu0 %vm1602_vm13, %v8218_v11  ;;  %5464 = vmatprep.subr.msk.bf16.mxu1 %vm1606_vm12, %v2474_v32 }
 0x58b   : > { %2666 = vmatpush1.bf16.msra.mxu1 %v2529_v6  ;;  %5574 = vmatpush3.bf16.msra.mxu0 %v6581_v35 }
 0x58c   : > { %5575 = vmatprep.subr.bf16.mxu0 %v6582_v53 }
 0x58e   : > { %5465 = vmatmul.mubr.msk.bf16.vlgmr.msra.gmra.mrb[12].mxu1 %vm1602_vm13, %v8218_v11 }
 0x58f   : > { %3334 = vmatprep.mubr.bf16.mxu1 %v6634_v8  ;;  %5576 = vmatpush3.bf16.msra.mxu0 %v6582_v53  ;;  %v8302_v53 = vld [vmem:[#allocation3] sm:$0xff] }
 0x590   : > { %5577 = vmatprep.subr.bf16.mxu0 %v6583_v21 }
 0x593   : > { %5578 = vmatpush3.bf16.msra.mxu0 %v6583_v21 }
 0x594   : > { %5579 = vmatprep.subr.bf16.mxu0 %v6584_v60 }
 0x597   : > { %5580 = vmatpush3.bf16.msra.mxu0 %v6584_v60 }
 0x641   : > { %v2568_v9 = vpop.f32.mrb[8].mxu0 }
 0x642   : > { %v2570_v5 = vpop.f32.mrb[9].mxu0 }
 0x643   : > { %v2698_v29 = vadd.f32 %v2570_v5, %v2568_v9  ;;  %v2572_v26 = vpop.f32.mrb[10].mxu0 }
 0x644   : > { %v2573_v38 = vpop.f32.mrb[11].mxu0 }
 0x645   : > { %v2609_v61 = vpop.f32.mrb[8].mxu1 }
 0x646   : > { %v2699_v23 = vadd.f32 %v2698_v29, %v2609_v61  ;;  %v2611_v56 = vpop.f32.mrb[9].mxu1 }
 0x647   : > { %v2613_v2 = vpop.f32.mrb[10].mxu1 }
 0x648   : > { %v2700_v7 = vadd.f32 %v2699_v23, %v2611_v56  ;;  %v2614_v4 = vpop.f32.mrb[11].mxu1 }
 0x65d   : > { %v2650_v14 = vpop.f32.mrb[12].mxu0 }
 0x65e   : > { %v2701_v18 = vadd.f32 %v2700_v7, %v2650_v14  ;;  %v2652_v58 = vpop.f32.mrb[13].mxu0 }
 0x65f   : > { %v2654_v17 = vpop.f32.mrb[14].mxu0 }
 0x660   : > { %v2702_v28 = vadd.f32 %v2701_v18, %v2652_v58  ;;  %v2655_v39 = vpop.f32.mrb[15].mxu0 }
 0x661   : > { %v2691_v44 = vpop.f32.mrb[12].mxu1 }
 0x662   : > { %v2703_v63 = vadd.f32 %v2702_v28, %v2691_v44  ;;  %v2693_v36 = vpop.f32.mrb[13].mxu1 }
 0x663   : > { %v2695_v0 = vpop.f32.mrb[14].mxu1 }
 0x664   : > { %v2704_v20 = vadd.f32 %v2703_v63, %v2693_v36  ;;  %v2696_v59 = vpop.f32.mrb[15].mxu1 }
 0x666   : > { %2705 = vadd.xlane.f32.xlu0 %v2704_v20 }
 0x6f3   : > { %v2706_v45 = vpop.xlane.xlu0 %2705 }
 0x6f4   : > { %v2707_v33 = vmul.f32 0.0009765625, %v2706_v45 }
 0x6f6   : > { %v2708_v51 = vsub.f32 %v2568_v9, %v2707_v33  ;;  %v2709_v11 = vsub.f32 %v2570_v5, %v2707_v33  ;;  %v2710_v57 = vsub.f32 %v2609_v61, %v2707_v33  ;;  %v2711_v47 = vsub.f32 %v2611_v56, %v2707_v33 }
 0x6f7   : > { %v2712_v15 = vsub.f32 %v2650_v14, %v2707_v33  ;;  %v2713_v34 = vsub.f32 %v2652_v58, %v2707_v33  ;;  %v2714_v24 = vsub.f32 %v2691_v44, %v2707_v33  ;;  %v2715_v1 = vsub.f32 %v2693_v36, %v2707_v33 }
 0x6f8   : > { %v2716_v43 = vmul.f32 %v2708_v51, %v2708_v51  ;;  %v2717_v25 = vmul.f32 %v2709_v11, %v2709_v11  ;;  %v2718_v16 = vmul.f32 %v2710_v57, %v2710_v57  ;;  %v2719_v62 = vmul.f32 %v2711_v47, %v2711_v47 }
 0x6f9   : > { %v2720_v52 = vmul.f32 %v2712_v15, %v2712_v15  ;;  %v2721_v50 = vmul.f32 %v2713_v34, %v2713_v34  ;;  %v2722_v37 = vmul.f32 %v2714_v24, %v2714_v24  ;;  %v2723_v3 = vmul.f32 %v2715_v1, %v2715_v1 }
 0x6fa   : > { %v2724_v22 = vadd.f32 %v2717_v25, %v2716_v43 }
 0x6fc   : > { %v2725_v46 = vadd.f32 %v2724_v22, %v2718_v16 }
 0x6fe   : > { %v2726_v55 = vadd.f32 %v2725_v46, %v2719_v62 }
 0x700   : > { %v2727_v30 = vadd.f32 %v2726_v55, %v2720_v52 }
 0x702   : > { %v2728_v13 = vadd.f32 %v2727_v30, %v2721_v50  ;;  %v9424_v50 = vld [vmem:[#allocation8_spill] sm:$0xff] }
 0x703   : > { %v674_v30 = vand.u32 15, %v9424_v50 }
 0x704   : > { %v2729_v10 = vadd.f32 %v2728_v13, %v2722_v37  ;;  %v9425_v37 = vld [vmem:[#allocation7_spill] sm:$0xff] }
 0x705   : > { %v667_v13 = vand.u32 15, %v9425_v37  ;;  %vm694_vm0 = vcmp.lt.s32.totalorder %v674_v30, 15  ;;  %vm688_vm4 = vcmp.gt.s32.totalorder %v674_v30, 0 }
 0x706   : > { %v2730_v27 = vadd.f32 %v2729_v10, %v2723_v3 }
 0x707   : > { %vm693_vm15 = vcmp.lt.s32.totalorder %v667_v13, 15  ;;  %vm687_vm3 = vcmp.gt.s32.totalorder %v667_v13, 0 }
 0x708   : > { %2731 = vadd.xlane.f32.xlu1 %v2730_v27  ;;  %v5446_v21 = vsel %vm693_vm15, 1.0, %v8302_v53  ;;  %vm2963_vm15 = vcmask 523648  }
 0x795   : > { %v2732_v40 = vpop.xlane.xlu1 %2731 }
 0x796   : > { %v2733_v49 = vmul.f32 0.0009765625, %v2732_v40  ;;  %v5447_v40 = vsel %vm694_vm0, 1.0, %v8302_v53  ;;  %vm9292_vm0 = vcmask 654848  }
 0x797   : > { %v6198_v60 = vpack.i.bf16 %v5447_v40, %v5446_v21 }
 0x798   : > { %v2734_v12 = vadd.f32 1e-05, %v2733_v49 }
 0x79a   : > { %6601 = vrsqrt.f32 %v2734_v12 }
 0x7a4   : > { %v6602_v31 = vpop.eup %6601 }
 0x7a5   : > { %v2738_v19 = vmul.f32 %v6602_v31, %v2710_v57  ;;  %v2739_v48 = vmul.f32 %v6602_v31, %v2711_v47  ;;  %v2736_v42 = vmul.f32 %v6602_v31, %v2708_v51  ;;  %v2737_v54 = vmul.f32 %v6602_v31, %v2709_v11 }
 0x7a6   : > { %v2742_v41 = vmul.f32 %v6602_v31, %v2714_v24  ;;  %v2743_v32 = vmul.f32 %v6602_v31, %v2715_v1  ;;  %v2740_v6 = vmul.f32 %v6602_v31, %v2712_v15  ;;  %v2741_v9 = vmul.f32 %v6602_v31, %v2713_v34 }
 0x7a7   : > { %v2746_v5 = vmax.f32 %v2738_v19, 0.0  ;;  %v2747_v29 = vmax.f32 %v2739_v48, 0.0  ;;  %v2744_v26 = vmax.f32 %v2736_v42, 0.0  ;;  %v2745_v38 = vmax.f32 %v2737_v54, 0.0 }
 0x7a8   : > { %v2750_v61 = vmax.f32 %v2742_v41, 0.0  ;;  %v2751_v23 = vmax.f32 %v2743_v32, 0.0  ;;  %v2748_v7 = vmax.f32 %v2740_v6, 0.0  ;;  %v2749_v4 = vmax.f32 %v2741_v9, 0.0 }
 0x7a9   : > { %v6183_v56 = vpack.i.bf16 %v2747_v29, %v2746_v5  ;;  %v6178_v2 = vpack.i.bf16 %v2745_v38, %v2744_v26  ;;  %v5444_v48 = vsel %vm687_vm3, 1.0, %v8302_v53  ;;  %v5445_v42 = vsel %vm688_vm4, 1.0, %v8302_v53 }
 0x7aa   : > { %v6193_v14 = vpack.i.bf16 %v2751_v23, %v2750_v61  ;;  %v6188_v18 = vpack.i.bf16 %v2749_v4, %v2748_v7  ;;  %v6203_v54 = vpack.i.bf16 %v5445_v42, %v5444_v48  ;;  %vm9269_vm3 = vcmask 786048  }
 0x7ab   : > { %6184 = vrot.lane.b32.xlu1 %v6183_v56, %s9283_s23  ;;  %6179 = vrot.lane.b32.xlu0 %v6178_v2, %s9283_s23  ;;  %vm9268_vm4 = vcmask 917248  }
 0x7af   : > { %6194 = vrot.lane.b32.xlu1 %v6193_v14, %s9283_s23  ;;  %6189 = vrot.lane.b32.xlu0 %v6188_v18, %s9283_s23 }
 0x81d   : > { %v6185_v58 = vpop.permute.xlu1 %6184  ;;  %v6180_v17 = vpop.permute.xlu0 %6179 }
 0x81e   : > { %v6186_v28 = vunpack.i.l.bf16 %v6185_v58  ;;  %v6182_v39 = vunpack.i.h.bf16 %v6180_v17  ;;  %v6181_v44 = vunpack.i.l.bf16 %v6180_v17  ;;  %v6187_v59 = vunpack.i.h.bf16 %v6185_v58 }
 0x820   : > { %v2793_v63 = vpack.c.bf16 %v6182_v39, %v2745_v38  ;;  %v2792_v36 = vpack.c.bf16 %v6181_v44, %v2744_v26  ;;  %v2794_v0 = vpack.c.bf16 %v6186_v28, %v2746_v5  ;;  %v2795_v33 = vpack.c.bf16 %v6187_v59, %v2747_v29 }
 0x821   : > { %v6190_v20 = vpop.permute.xlu0 %6189  ;;  %v6195_v11 = vpop.permute.xlu1 %6194 }
 0x822   : > { %5581 = vmatprep.mubr.msk.bf16.mxu0 %vm506_vm5, %v2792_v36  ;;  %v6191_v45 = vunpack.i.l.bf16 %v6190_v20  ;;  %v6192_v57 = vunpack.i.h.bf16 %v6190_v20  ;;  %v6196_v47 = vunpack.i.l.bf16 %v6195_v11  ;;  %v6197_v15 = vunpack.i.h.bf16 %v6195_v11 }
 0x823   : > { %5582 = vmatmul.mubr.msk.bf16.vlgmr.msra.gmra.mrb[16].mxu0 %vm506_vm5, %v2793_v63 }
 0x824   : > { %5585 = vmatprep.mubr.msk.bf16.mxu0 %vm506_vm5, %v2794_v0  ;;  %v2796_v51 = vpack.c.bf16 %v6191_v45, %v2748_v7  ;;  %v2797_v43 = vpack.c.bf16 %v6192_v57, %v2749_v4  ;;  %v2798_v25 = vpack.c.bf16 %v6196_v47, %v2750_v61  ;;  %v2799_v16 = vpack.c.bf16 %v6197_v15, %v2751_v23 }
 0x82b   : > { %5586 = vmatmul.mubr.msk.bf16.gmra.mrb[20].mxu0 %vm506_vm5, %v2795_v33 }
 0x82c   : > { %5589 = vmatprep.mubr.msk.bf16.mxu0 %vm506_vm5, %v2796_v51 }
 0x833   : > { %5590 = vmatmul.mubr.msk.bf16.gmra.mrb[24].mxu0 %vm506_vm5, %v2797_v43 }
 0x834   : > { %5593 = vmatprep.mubr.msk.bf16.mxu0 %vm506_vm5, %v2798_v25 }
 0x83b   : > { %5594 = vmatmul.mubr.msk.bf16.gmra.mrb[28].mxu0 %vm506_vm5, %v2799_v16 }
 0x8f6   : > { %v5583_v22 = vpop.f32.mrb[16].mxu0 }
 0x8f7   : > { %2954 = vrot.lane.b32.xlu0 %v5583_v22, %s9285_s25  ;;  %v2882_v34 = vpop.f32.mrb[17].mxu0 }
 0x8f8   : > { %2946 = vst.msk [vmem:[#allocation5] sm:$0xff] %vm9266_vm14, %v2882_v34  ;;  %v5584_v62 = vpop.f32.mrb[18].mxu0 }
 0x8f9   : > { %v2885_v46 = vpop.f32.mrb[19].mxu0 }
 0x8fb   : > { %2960 = vrot.lane.b32.xlu0 %v5584_v62, %s9262_s28 }
 0x8fe   : > { %v5587_v24 = vpop.f32.mrb[20].mxu0 }
 0x8ff   : > { %2948 = vrot.lane.b32.xlu0 %v2885_v46, %s9264_s24  ;;  %v2898_v52 = vpop.f32.mrb[21].mxu0 }
 0x900   : > { %v5588_v55 = vpop.f32.mrb[22].mxu0 }
 0x901   : > { %v2901_v1 = vpop.f32.mrb[23].mxu0 }
 0x903   : > { %2978 = vrot.lane.b32.xlu0 %v5587_v24, %s9287_s17 }
 0x906   : > { %v5591_v3 = vpop.f32.mrb[24].mxu0 }
 0x907   : > { %2966 = vrot.lane.b32.xlu0 %v2898_v52, %s9283_s23  ;;  %2996 = vrot.lane.b32.xlu1 %v5591_v3, %s9285_s25  ;;  %v2914_v10 = vpop.f32.mrb[25].mxu0 }
 0x908   : > { %2989 = vst.msk [vmem:[#allocation5 + $0x8] sm:$0xff] %vm9266_vm14, %v2914_v10  ;;  %v5592_v27 = vpop.f32.mrb[26].mxu0  ;;  %vm9267_vm14 = vcmask 1048448  }
 0x909   : > { %v2917_v35 = vpop.f32.mrb[27].mxu0 }
 0x90b   : > { %2972 = vrot.lane.b32.xlu0 %v2901_v1, %s9270_s30  ;;  %3001 = vrot.lane.b32.xlu1 %v5592_v27, %s9262_s28  ;;  %s9273_s28 = smov 17  }
 0x90e   : > { %v5595_v49 = vpop.f32.mrb[28].mxu0 }
 0x90f   : > { %2984 = vrot.lane.b32.xlu0 %v5588_v55, %s9295_s26  ;;  %2991 = vrot.lane.b32.xlu1 %v2917_v35, %s9264_s24  ;;  %v2930_v12 = vpop.f32.mrb[29].mxu0  ;;  %s9297_s24 = smov 111  }
 0x910   : > { %v5596_v31 = vpop.f32.mrb[30].mxu0 }
 0x911   : > { %v2933_v19 = vpop.f32.mrb[31].mxu0 }
 0x913   : > { %3016 = vrot.lane.b32.xlu1 %v5595_v49, %s9287_s17  ;;  %6199 = vrot.lane.b32.xlu0 %v6198_v60, %s6640_s27  ;;  %s6642_s27 = smov 15  }
 0x917   : > { %3006 = vrot.lane.b32.xlu1 %v2930_v12, %s9283_s23  ;;  %6209 = vrot.lane.b32.xlu0 %v6198_v60, %s9272_s22  ;;  %s6646_s22 = smov 8  }
 0x91b   : > { %3011 = vrot.lane.b32.xlu1 %v2933_v19, %s9270_s30  ;;  %6219 = vrot.lane.b32.xlu0 %v6198_v60, %s9273_s28  ;;  %s6647_s30 = smov 40  }
 0x91f   : > { %3021 = vrot.lane.b32.xlu1 %v5596_v31, %s9295_s26 }
 0x923   : > { %6204 = vrot.lane.b32.xlu1 %v6203_v54, %s9301_s21 }
 0x927   : > { %6214 = vrot.lane.b32.xlu1 %v6203_v54, %s6642_s27  ;;  %s9293_s27 = smov 110  }
 0x92b   : > { %6224 = vrot.lane.b32.xlu1 %v6203_v54, %s9297_s24 }
 0x92f   : > { %3111 = vrot.lane.b32.xlu1 %v8302_v53, %s9301_s21 }
 0x969   : > { %v2955_v41 = vpop.permute.xlu0 %2954 }
 0x96d   : > { %v2961_v32 = vpop.permute.xlu0 %2960 }
 0x971   : > { %v2949_v6 = vpop.permute.xlu0 %2948 }
 0x972   : > { %2952 = vst.msk [vmem:[#allocation5] sm:$0xff] %vm2951_vm10, %v2949_v6 }
 0x973   : > { %2958 = vst.msk [vmem:[#allocation5] sm:$0xff] %vm2957_vm11, %v2955_v41 }
 0x974   : > { %2964 = vst.msk [vmem:[#allocation5] sm:$0xff] %vm2963_vm15, %v2961_v32 }
 0x975   : > { %v2979_v9 = vpop.permute.xlu0 %2978 }
 0x979   : > { %v2967_v5 = vpop.permute.xlu0 %2966  ;;  %v2997_v29 = vpop.permute.xlu1 %2996 }
 0x97a   : > { %2970 = vst.msk [vmem:[#allocation5] sm:$0xff] %vm9292_vm0, %v2967_v5 }
 0x97d   : > { %v2973_v26 = vpop.permute.xlu0 %2972  ;;  %v3002_v38 = vpop.permute.xlu1 %3001 }
 0x97e   : > { %2976 = vst.msk [vmem:[#allocation5] sm:$0xff] %vm9269_vm3, %v2973_v26 }
 0x97f   : > { %2982 = vst.msk [vmem:[#allocation5] sm:$0xff] %vm9268_vm4, %v2979_v9 }
 0x981   : > { %v2985_v61 = vpop.permute.xlu0 %2984  ;;  %v2992_v23 = vpop.permute.xlu1 %2991 }
 0x982   : > { %2988 = vst.msk [vmem:[#allocation5] sm:$0xff] %vm9267_vm14, %v2985_v61 }
 0x983   : > { %2994 = vst.msk [vmem:[#allocation5 + $0x8] sm:$0xff] %vm2951_vm10, %v2992_v23 }
 0x984   : > { %2999 = vst.msk [vmem:[#allocation5 + $0x8] sm:$0xff] %vm2957_vm11, %v2997_v29 }
 0x985   : > { %3004 = vst.msk [vmem:[#allocation5 + $0x8] sm:$0xff] %vm2963_vm15, %v3002_v38  ;;  %v3017_v56 = vpop.permute.xlu1 %3016  ;;  %v6200_v2 = vpop.permute.xlu0 %6199 }
 0x986   : > { %v8330_v7 = vunpack.i.l.bf16 %v6200_v2  ;;  %v8375_v16 = vunpack.i.h.bf16 %v6200_v2 }
 0x988   : > { %v8334_v4 = vmul.f32 %v8302_v53, %v8330_v7 }
 0x989   : > { %v8336_v14 = vld [vmem:[#allocation5] sm:$0xff]  ;;  %v3007_v18 = vpop.permute.xlu1 %3006  ;;  %v6210_v58 = vpop.permute.xlu0 %6209 }
 0x98a   : > { %4853 = vst [vmem:[#allocation3 + $0x28] sm:$0xff] %v8336_v14  ;;  %3009 = vst.msk [vmem:[#allocation5 + $0x8] sm:$0xff] %vm9292_vm0, %v3007_v18  ;;  %v6212_v17 = vunpack.i.h.bf16 %v6210_v58  ;;  %3125 = vrot.lane.b32.xlu0 %v8334_v4, %s9299_s16  ;;  %v8349_v36 = vunpack.i.l.bf16 %v6210_v58  ;;  %vm3797_vm0 = vcmask 523712  }
 0x98c   : > { %v8343_v28 = vmul.f32 %v8302_v53, %v6212_v17  ;;  %v8402_v30 = vsel %vm902_vm2, %v8349_v36, %v6212_v17  ;;  %v3081_v31 = vmul.f32 %v8349_v36, %v8336_v14  ;;  %vm9290_vm2 = vcmask 908288  }
 0x98d   : > { %v3012_v39 = vpop.permute.xlu1 %3011  ;;  %v6220_v44 = vpop.permute.xlu0 %6219 }
 0x98e   : > { %3014 = vst.msk [vmem:[#allocation5 + $0x8] sm:$0xff] %vm9269_vm3, %v3012_v39  ;;  %v6222_v63 = vunpack.i.h.bf16 %v6220_v44  ;;  %3166 = vrot.lane.b32.xlu0 %v8343_v28, %s9293_s27  ;;  %v8351_v0 = vunpack.i.l.bf16 %v6220_v44  ;;  %vm9282_vm3 = vcmask 138240  }
 0x98f   : > { %3019 = vst.msk [vmem:[#allocation5 + $0x8] sm:$0xff] %vm9268_vm4, %v3017_v56  ;;  %vm3088_vm4 = vcmask 121856  }
 0x990   : > { %v8354_v45 = vmul.f32 %v8302_v53, %v6222_v63  ;;  %v8428_v19 = vsel %vm9282_vm3, %v8351_v0, %v6222_v63  ;;  %v3105_v61 = vmul.f32 %v8351_v0, %v8336_v14 }
 0x991   : > { %v3022_v20 = vpop.permute.xlu1 %3021  ;;  %v4864_v59 = vld [vmem:[#allocation3 + $0x28] sm:$0xff] }
 0x992   : > { %3024 = vst.msk [vmem:[#allocation5 + $0x8] sm:$0xff] %vm9267_vm14, %v3022_v20  ;;  %v8358_v33 = vmul.f32 %v8349_v36, %v4864_v59  ;;  %v8361_v51 = vmul.f32 %v8351_v0, %v4864_v59  ;;  %vm3054_vm14 = vcmask 924672  }
 0x993   : > { %v8398_v50 = vsel %vm3054_vm14, %v8330_v7, %v8375_v16  ;;  %vm9291_vm14 = vcmask 916480  }
 0x994   : > { %v6506_v11 = vpack.i.bf16 %v8358_v33, %v8343_v28  ;;  %v3060_v35 = vmul.f32 %v8398_v50, %v8336_v14 }
 0x995   : > { %v6205_v47 = vpop.permute.xlu1 %6204 }
 0x996   : > { %v8367_v43 = vunpack.i.h.bf16 %v6205_v47  ;;  %v8369_v25 = vunpack.i.l.bf16 %v6205_v47 }
 0x998   : > { %v8373_v15 = vmul.f32 %v8302_v53, %v8369_v25  ;;  %v8382_v62 = vsel %vm860_vm1, %v8369_v25, %v8367_v43 }
 0x999   : > { %v8377_v22 = vld [vmem:[#allocation5 + $0x8] sm:$0xff]  ;;  %v6215_v34 = vpop.permute.xlu1 %6214  ;;  %v3071_v55 = vmul.f32 %v8382_v62, %v8336_v14 }
 0x99a   : > { %4854 = vst [vmem:[#allocation3 + $0x30] sm:$0xff] %v8377_v22  ;;  %v6217_v46 = vunpack.i.h.bf16 %v6215_v34  ;;  %3139 = vrot.lane.b32.xlu1 %v8373_v15, %s9295_s26  ;;  %v6228_v24 = vpack.i.bf16 %v8377_v22, %v8336_v14  ;;  %v8389_v52 = vunpack.i.l.bf16 %v6215_v34  ;;  %v3072_v1 = vmul.f32 %v8367_v43, %v8377_v22 }
 0x99b   : > { %v3061_v13 = vmul.f32 %v8375_v16, %v8377_v22  ;;  %v3082_v21 = vmul.f32 %v8402_v30, %v8377_v22  ;;  %v3106_v38 = vmul.f32 %v8428_v19, %v8377_v22 }
 0x99c   : > { %6229 = vrot.lane.b32.xlu0 %v6228_v24, %s9301_s21  ;;  %v8408_v3 = vmul.f32 %v8302_v53, %v6217_v46  ;;  %v8411_v10 = vmul.f32 %v8389_v52, %v4864_v59  ;;  %v6248_v27 = vpack.i.bf16 %v3072_v1, %v3071_v55  ;;  %v8419_v40 = vsel %vm3088_vm4, %v8389_v52, %v6217_v46 }
 0x99d   : > { %v6238_v60 = vpack.i.bf16 %v3061_v13, %v3060_v35  ;;  %v6253_v41 = vpack.i.bf16 %v3082_v21, %v3081_v31  ;;  %v3093_v32 = vmul.f32 %v8389_v52, %v8336_v14  ;;  %v3094_v6 = vmul.f32 %v8419_v40, %v8377_v22  ;;  %v6225_v56 = vpop.permute.xlu1 %6224 }
 0x99e   : > { %6244 = vrot.lane.b32.xlu1 %v6228_v24, %s9280_s29  ;;  %v6263_v23 = vpack.i.bf16 %v3106_v38, %v3105_v61  ;;  %v8463_v39 = vunpack.i.l.bf16 %v6225_v56  ;;  %vm9279_vm4 = vcmask 900096   ;;  %v9452_v33 = vpack.i.bf16 %v8411_v10, %v8408_v3 }
 0x99f   : > { %v6258_v26 = vpack.i.bf16 %v3094_v6, %v3093_v32 }
 0x9a0   : > { %6234 = vrot.lane.b32.xlu0 %v6228_v24, %s9297_s24  ;;  %v8469_v59 = vmul.f32 %v8302_v53, %v8463_v39 }
 0x9a1   : > { %v4865_v49 = vld [vmem:[#allocation3 + $0x30] sm:$0xff]  ;;  %v3112_v18 = vpop.permute.xlu1 %3111 }
 0x9a2   : > { %6249 = vrot.lane.b32.xlu1 %v6248_v27, %s9295_s26  ;;  %v8431_v48 = vmul.f32 %v4865_v49, %v8402_v30  ;;  %v8434_v42 = vmul.f32 %v4865_v49, %v8419_v40  ;;  %v8437_v54 = vmul.f32 %v4865_v49, %v8428_v19 }
 0x9a4   : > { %6239 = vrot.lane.b32.xlu0 %v6238_v60, %s9299_s16  ;;  %v6521_v9 = vpack.i.bf16 %v8343_v28, %v8431_v48 }
 0x9a6   : > { %6254 = vrot.lane.b32.xlu1 %v6253_v41, %s9293_s27  ;;  %v8475_v41 = vunpack.i.h.bf16 %v6225_v56 }
 0x9a8   : > { %3181 = vrot.lane.b32.xlu0 %v8408_v3, %s9287_s17  ;;  %v8484_v56 = vsel %vm9290_vm2, %v8463_v39, %v8475_v41 }
 0x9aa   : > { %6259 = vrot.lane.b32.xlu1 %v6258_v26, %s9287_s17 }
 0x9ac   : > { %3193 = vrot.lane.b32.xlu0 %v8302_v53, %s9280_s29 }
 0x9ae   : > { %6264 = vrot.lane.b32.xlu1 %v6263_v23, %s9275_s20 }
 0x9b0   : > { %3207 = vrot.lane.b32.xlu0 %v8354_v45, %s9275_s20 }
 0x9fc   : > { %v3126_v2 = vpop.permute.xlu0 %3125 }
 0xa00   : > { %v3167_v58 = vpop.permute.xlu0 %3166 }
 0xa0c   : > { %v3140_v17 = vpop.permute.xlu1 %3139 }
 0xa0e   : > { %v6230_v44 = vpop.permute.xlu0 %6229 }
 0xa0f   : > { %v6231_v63 = vunpack.i.l.bf16 %v6230_v44  ;;  %v6232_v26 = vunpack.i.h.bf16 %v6230_v44  ;;  %v3047_v44 = vmul.f32 %v8475_v41, %v8377_v22 }
 0xa10   : > { %v8465_v20 = vpop.permute.xlu1 %6244 }
 0xa11   : > { %v3117_v47 = vsel %vm860_vm1, %v3112_v18, %v6231_v63  ;;  %v6246_v60 = vunpack.i.l.bf16 %v8465_v20  ;;  %v3216_v29 = vpack.c.bf16 %v6232_v26, %v3047_v44 }
 0xa12   : > { %v3214_v34 = vpack.c.bf16 %v3117_v47, %v8469_v59  ;;  %v6235_v46 = vpop.permute.xlu0 %6234 }
 0xa13   : > { %v6236_v13 = vunpack.i.l.bf16 %v6235_v46  ;;  %v6237_v22 = vunpack.i.h.bf16 %v6235_v46 }
 0xa14   : > { %v6250_v24 = vpop.permute.xlu1 %6249  ;;  %3244 = vrot.lane.b32.xlu1 %v3214_v34, %s9273_s28 }
 0xa15   : > { %v6251_v32 = vunpack.i.l.bf16 %v6250_v24 }
 0xa16   : > { %v6240_v1 = vpop.permute.xlu0 %6239 }
 0xa17   : > { %v6241_v35 = vunpack.i.l.bf16 %v6240_v1  ;;  %v3146_v18 = vsel %vm9291_vm14, %v3140_v17, %v6251_v32  ;;  %v6242_v57 = vunpack.i.h.bf16 %v6240_v1  ;;  %v3046_v17 = vmul.f32 %v8484_v56, %v8336_v14 }
 0xa18   : > { %v6255_v55 = vpop.permute.xlu1 %6254 }
 0xa19   : > { %v6256_v27 = vunpack.i.l.bf16 %v6255_v55  ;;  %v3131_v38 = vsel %vm1083_vm8, %v3126_v2, %v6241_v35  ;;  %v3132_v5 = vsel %vm1083_vm8, %v6241_v35, %v6242_v57 }
 0xa1a   : > { %v3217_v34 = vpack.c.bf16 %v3146_v18, %v3131_v38  ;;  %v3182_v2 = vpop.permute.xlu0 %3181  ;;  %v6257_v38 = vunpack.i.h.bf16 %v6255_v55  ;;  %v6247_v55 = vunpack.i.h.bf16 %v8465_v20 }
 0xa1b   : > { %v3220_v21 = vpack.c.bf16 %v6256_v27, %v6236_v13 }
 0xa1c   : > { %v6260_v49 = vpop.permute.xlu1 %6259  ;;  %v3169_v14 = vsel %vm9279_vm4, %v6256_v27, %v6257_v38  ;;  %v3195_v27 = vsel %vm9289_vm6, %v6246_v60, %v6247_v55 }
 0xa1d   : > { %v6261_v31 = vunpack.i.l.bf16 %v6260_v49  ;;  %3256 = vrot.lane.b32.xlu1 %v3220_v21, %s9273_s28  ;;  %v3118_v21 = vsel %vm860_vm1, %v6231_v63, %v6232_v26 }
 0xa1e   : > { %v3215_v12 = vpack.c.bf16 %v3118_v21, %v3046_v17  ;;  %v3194_v18 = vpop.permute.xlu0 %3193 }
 0xa1f   : > { %v3223_v6 = vpack.c.bf16 %v6246_v60, %v6261_v31 }
 0xa20   : > { %v6265_v61 = vpop.permute.xlu1 %6264 }
 0xa21   : > { %v6266_v23 = vunpack.i.l.bf16 %v6265_v61  ;;  %3262 = vrot.lane.b32.xlu0 %v3223_v6, %s9273_s28  ;;  %v6252_v6 = vunpack.i.h.bf16 %v6250_v24  ;;  %v6262_v24 = vunpack.i.h.bf16 %v6260_v49 }
 0xa23   : > { %v3226_v47 = vpack.c.bf16 %v6266_v23, %v6266_v23  ;;  %v3147_v63 = vsel %vm9291_vm14, %v6251_v32, %v6252_v6  ;;  %v3219_v1 = vpack.c.bf16 %v6252_v6, %v6242_v57  ;;  %v3183_v35 = vsel %vm9278_vm7, %v6261_v31, %v6262_v24  ;;  %v3208_v32 = vpop.permute.xlu0 %3207 }
 0xa24   : > { %v3184_v57 = vsel %vm9278_vm7, %v6262_v24, %v3182_v2  ;;  %v3224_v20 = vpack.c.bf16 %v3195_v27, %v3183_v35 }
 0xa25   : > { %3268 = vrot.lane.b32.xlu1 %v3226_v47, %s9273_s28  ;;  %3250 = vrot.lane.b32.xlu0 %v3217_v34, %s9273_s28  ;;  %v3218_v47 = vpack.c.bf16 %v3147_v63, %v3132_v5  ;;  %v3170_v34 = vsel %vm9279_vm4, %v6257_v38, %v3167_v58  ;;  %v3196_v5 = vsel %vm9289_vm6, %v6247_v55, %v3194_v18  ;;  %v6267_v58 = vunpack.i.h.bf16 %v6265_v61 }
 0xa26   : > { %v3222_v46 = vpack.c.bf16 %v3170_v34, %v6237_v22  ;;  %v3225_v49 = vpack.c.bf16 %v3196_v5, %v3184_v57 }
 0xa27   : > { %v3209_v26 = vsel %vm9277_vm9, %v6266_v23, %v6267_v58 }
 0xa28   : > { %v3227_v21 = vpack.c.bf16 %v3209_v26, %v3209_v26 }
 0xa29   : > { %3246 = vrot.lane.b32.xlu1 %v3215_v12, %s9273_s28  ;;  %3248 = vrot.lane.b32.xlu0 %v3216_v29, %s9273_s28  ;;  %v3155_v12 = vsel %vm9290_vm2, %v6236_v13, %v6237_v22  ;;  %v3210_v13 = vsel %vm9277_vm9, %v6267_v58, %v3208_v32 }
 0xa2a   : > { %v3221_v29 = vpack.c.bf16 %v3169_v14, %v3155_v12  ;;  %v3228_v31 = vpack.c.bf16 %v3210_v13, %v3210_v13 }
 0xa2d   : > { %3254 = vrot.lane.b32.xlu1 %v3219_v1, %s9273_s28  ;;  %3252 = vrot.lane.b32.xlu0 %v3218_v47, %s9273_s28 }
 0xa31   : > { %3258 = vrot.lane.b32.xlu1 %v3221_v29, %s9273_s28  ;;  %3260 = vrot.lane.b32.xlu0 %v3222_v46, %s9273_s28 }
 0xa35   : > { %3266 = vrot.lane.b32.xlu1 %v3225_v49, %s9273_s28  ;;  %3264 = vrot.lane.b32.xlu0 %v3224_v20, %s9273_s28  ;;  %v3027_v49 = vld [vmem:[%s9193_s3] sm:$0xf] }
 0xa39   : > { %3272 = vrot.lane.b32.xlu1 %v3228_v31, %s9273_s28  ;;  %3270 = vrot.lane.b32.xlu0 %v3227_v21, %s9273_s28 }
 0xa86   : > { %v3245_v61 = vpop.permute.xlu1 %3244 }
 0xa8f   : > { %v3257_v44 = vpop.permute.xlu1 %3256 }
 0xa93   : > { %v3263_v2 = vpop.permute.xlu0 %3262 }
 0xa97   : > { %v3269_v60 = vpop.permute.xlu1 %3268  ;;  %v3251_v17 = vpop.permute.xlu0 %3250 }
 0xa9b   : > { %v3247_v6 = vpop.permute.xlu1 %3246  ;;  %v3249_v38 = vpop.permute.xlu0 %3248 }
 0xa9c   : > { %v3276_v22 = vsel %vm9282_vm3, %v3247_v6, %v3249_v38  ;;  %v3275_v23 = vsel %vm9282_vm3, %v3245_v61, %v3247_v6 }
 0xa9d   : > { %3302 = vmatprep.subr.bf16.mxu1 %v3276_v22 }
 0xa9e   : > { %3303 = vmatpush1.bf16.msra.mxu1 %v3275_v23 }
 0xa9f   : > { %v3255_v63 = vpop.permute.xlu1 %3254  ;;  %v3253_v1 = vpop.permute.xlu0 %3252 }
 0xaa0   : > { %v3278_v18 = vsel %vm9282_vm3, %v3253_v1, %v3255_v63  ;;  %v3277_v47 = vsel %vm9282_vm3, %v3251_v17, %v3253_v1 }
 0xaa1   : > { %3304 = vmatprep.subr.bf16.mxu1 %v3278_v18 }
 0xaa2   : > { %3305 = vmatpush1.bf16.msra.mxu1 %v3277_v47 }
 0xaa3   : > { %v3259_v34 = vpop.permute.xlu1 %3258  ;;  %v3261_v14 = vpop.permute.xlu0 %3260 }
 0xaa4   : > { %v3280_v24 = vsel %vm9282_vm3, %v3259_v34, %v3261_v14  ;;  %v3279_v55 = vsel %vm9282_vm3, %v3257_v44, %v3259_v34 }
 0xaa5   : > { %3306 = vmatprep.subr.bf16.mxu1 %v3280_v24 }
 0xaa6   : > { %3307 = vmatpush1.bf16.msra.mxu1 %v3279_v55 }
 0xaa7   : > { %v3267_v12 = vpop.permute.xlu1 %3266  ;;  %v3265_v29 = vpop.permute.xlu0 %3264 }
 0xaa8   : > { %v3282_v46 = vsel %vm9282_vm3, %v3265_v29, %v3267_v12  ;;  %v3281_v35 = vsel %vm9282_vm3, %v3263_v2, %v3265_v29 }
 0xaa9   : > { %3308 = vmatprep.subr.bf16.mxu1 %v3282_v46 }
 0xaaa   : > { %3309 = vmatpush1.bf16.msra.mxu1 %v3281_v35 }
 0xaab   : > { %v3273_v57 = vpop.permute.xlu1 %3272  ;;  %v3271_v5 = vpop.permute.xlu0 %3270 }
 0xaac   : > { %v3283_v58 = vsel %vm9282_vm3, %v3269_v60, %v3271_v5  ;;  %v3284_v32 = vsel %vm9282_vm3, %v3271_v5, %v3273_v57 }
 0xaad   : > { %5478 = vmatprep.subr.msk.bf16.mxu1 %vm1606_vm12, %v3284_v32  ;;  %v3297_v27 = vsel %vm1606_vm12, %v3283_v58, 0 }
 0xaae   : > { %3311 = vmatpush1.bf16.msra.mxu1 %v3297_v27 }
 0xab1   : > { %5479 = vmatmul.mubr.msk.bf16.vlgmr.msra.gmra.mrb[16].mxu1 %vm1602_vm13, %v3027_v49 }
 0xab2   : > { %3610 = vmatprep.mubr.bf16.mxu1 %v6634_v8 }
 0xb84   : > { %v3336_v20 = vpop.f32.mrb[16].mxu1 }
 0xb85   : > { %v3338_v13 = vpop.f32.mrb[17].mxu1 }
 0xb86   : > { %v3343_v26 = vadd.f32 %v3338_v13, %v3336_v20  ;;  %v3340_v31 = vpop.f32.mrb[18].mxu1 }
 0xb87   : > { %v3341_v21 = vpop.f32.mrb[19].mxu1 }
 0xb88   : > { %3344 = vadd.xlane.f32.xlu0 %v3343_v26 }
 0xb9e   : > { %3404 = vrot.lane.b32.xlu0 %v8334_v4, %s9299_s16 }
 0xba2   : > { %3444 = vrot.lane.b32.xlu0 %v8343_v28, %s9293_s27 }
 0xc15   : > { %v3345_v61 = vpop.xlane.xlu0 %3344 }
 0xc16   : > { %v3347_v44 = vmul.f32 0.00390625, %v3345_v61 }
 0xc18   : > { %v3348_v2 = vsub.f32 %v3336_v20, %v3347_v44  ;;  %v3349_v60 = vsub.f32 %v3338_v13, %v3347_v44 }
 0xc19   : > { %v3405_v26 = vpop.permute.xlu0 %3404 }
 0xc1a   : > { %v3350_v17 = vmul.f32 %v3348_v2, %v3348_v2  ;;  %v3351_v6 = vmul.f32 %v3349_v60, %v3349_v60 }
 0xc1c   : > { %v3352_v38 = vadd.f32 %v3351_v6, %v3350_v17 }
 0xc1d   : > { %v3445_v21 = vpop.permute.xlu0 %3444 }
 0xc1e   : > { %3353 = vadd.xlane.f32.xlu1 %v3352_v38 }
 0xc2f   : > { %3390 = vrot.lane.b32.xlu1 %v8302_v53, %s9301_s21 }
 0xc33   : > { %3418 = vrot.lane.b32.xlu1 %v8373_v15, %s9295_s26 }
 0xcab   : > { %v3354_v22 = vpop.xlane.xlu1 %3353 }
 0xcac   : > { %v3355_v23 = vmul.f32 0.00390625, %v3354_v22 }
 0xcae   : > { %v3356_v4 = vadd.f32 1e-05, %v3355_v23 }
 0xcaf   : > { %v3391_v31 = vpop.permute.xlu1 %3390 }
 0xcb0   : > { %6603 = vrsqrt.f32 %v3356_v4 }
 0xcb3   : > { %v3419_v61 = vpop.permute.xlu1 %3418 }
 0xcba   : > { %v6604_v63 = vpop.eup %6603 }
 0xcbb   : > { %v3358_v1 = vmul.f32 %v6604_v63, %v3348_v2  ;;  %v3359_v18 = vmul.f32 %v6604_v63, %v3349_v60 }
 0xcbd   : > { %v3360_v47 = vmax.f32 %v3358_v1, 0.0  ;;  %v3361_v34 = vmax.f32 %v3359_v18, 0.0 }
 0xcbf   : > { %3363 = vst [vmem:[#allocation3 + $0x8] sm:$0xff] %v3360_v47  ;;  %3364 = vst [vmem:[#allocation3 + $0x10] sm:$0xff] %v3361_v34  ;;  %v6283_v14 = vpack.i.bf16 %v3361_v34, %v3360_v47  ;;  %v3376_v24 = vmul.f32 %v3360_v47, %v8382_v62  ;;  %v3377_v55 = vmul.f32 %v8367_v43, %v3361_v34 }
 0xcc0   : > { %v3378_v15 = vmul.f32 %v8349_v36, %v3360_v47  ;;  %v3379_v29 = vmul.f32 %v3361_v34, %v8402_v30  ;;  %v3373_v46 = vmul.f32 %v3360_v47, %v8398_v50  ;;  %v3374_v35 = vmul.f32 %v8375_v16, %v3361_v34 }
 0xcc1   : > { %6284 = vrot.lane.b32.xlu1 %v6283_v14, %s9280_s29  ;;  %6269 = vrot.lane.b32.xlu0 %v6283_v14, %s9301_s21  ;;  %v6288_v12 = vpack.i.bf16 %v3377_v55, %v3376_v24  ;;  %v3381_v58 = vmul.f32 %v8389_v52, %v3360_v47  ;;  %v3382_v32 = vmul.f32 %v3361_v34, %v8419_v40 }
 0xcc2   : > { %v6293_v57 = vpack.i.bf16 %v3379_v29, %v3378_v15  ;;  %v6278_v5 = vpack.i.bf16 %v3374_v35, %v3373_v46  ;;  %v3384_v49 = vmul.f32 %v8351_v0, %v3360_v47  ;;  %v3385_v20 = vmul.f32 %v3361_v34, %v8428_v19 }
 0xcc3   : > { %v6298_v27 = vpack.i.bf16 %v3382_v32, %v3381_v58  ;;  %v3371_v60 = vmul.f32 %v8475_v41, %v3361_v34  ;;  %v3370_v38 = vmul.f32 %v3360_v47, %v8484_v56 }
 0xcc4   : > { %v6303_v13 = vpack.i.bf16 %v3385_v20, %v3384_v49 }
 0xcc5   : > { %6274 = vrot.lane.b32.xlu0 %v6283_v14, %s9297_s24  ;;  %6289 = vrot.lane.b32.xlu1 %v6288_v12, %s9295_s26 }
 0xcc9   : > { %6294 = vrot.lane.b32.xlu1 %v6293_v57, %s9293_s27  ;;  %6279 = vrot.lane.b32.xlu0 %v6278_v5, %s9299_s16 }
 0xccd   : > { %6299 = vrot.lane.b32.xlu1 %v6298_v27, %s9287_s17  ;;  %3458 = vrot.lane.b32.xlu0 %v8408_v3, %s9287_s17 }
 0xcd1   : > { %6304 = vrot.lane.b32.xlu1 %v6303_v13, %s9275_s20  ;;  %3470 = vrot.lane.b32.xlu0 %v8302_v53, %s9280_s29  ;;  %s9427_s29 = smov 48  }
 0xcd5   : > { %3484 = vrot.lane.b32.xlu0 %v8354_v45, %s9275_s20  ;;  %s9426_s20 = smov 16  }
 0xd33   : > { %v8564_v44 = vpop.permute.xlu1 %6284  ;;  %v6270_v2 = vpop.permute.xlu0 %6269 }
 0xd34   : > { %v6272_v17 = vunpack.i.h.bf16 %v6270_v2  ;;  %v6271_v6 = vunpack.i.l.bf16 %v6270_v2  ;;  %v6286_v35 = vunpack.i.l.bf16 %v8564_v44 }
 0xd36   : > { %v3493_v22 = vpack.c.bf16 %v6272_v17, %v3371_v60  ;;  %v3397_v23 = vsel %vm860_vm1, %v6271_v6, %v6272_v17  ;;  %v3396_v18 = vsel %vm860_vm1, %v3391_v31, %v6271_v6 }
 0xd37   : > { %v6290_v4 = vpop.permute.xlu1 %6289  ;;  %v6275_v63 = vpop.permute.xlu0 %6274  ;;  %v3492_v1 = vpack.c.bf16 %v3397_v23, %v3370_v38  ;;  %v3491_v34 = vpack.c.bf16 %v3396_v18, %v8469_v59 }
 0xd38   : > { %3525 = vrot.lane.b32.xlu0 %v3493_v22, %s9273_s28  ;;  %v6292_v55 = vunpack.i.h.bf16 %v6290_v4  ;;  %v6291_v5 = vunpack.i.l.bf16 %v6290_v4  ;;  %v6276_v58 = vunpack.i.l.bf16 %v6275_v63  ;;  %v6277_v60 = vunpack.i.h.bf16 %v6275_v63 }
 0xd39   : > { %3523 = vrot.lane.b32.xlu1 %v3492_v1, %s9273_s28  ;;  %v6287_v1 = vunpack.i.h.bf16 %v8564_v44 }
 0xd3a   : > { %v3425_v2 = vsel %vm9291_vm14, %v6291_v5, %v6292_v55  ;;  %v3424_v4 = vsel %vm9291_vm14, %v3419_v61, %v6291_v5  ;;  %v3433_v18 = vsel %vm9290_vm2, %v6276_v58, %v6277_v60  ;;  %vm3785_vm2 = vcmask 392512  }
 0xd3b   : > { %v6295_v14 = vpop.permute.xlu1 %6294  ;;  %v6280_v24 = vpop.permute.xlu0 %6279  ;;  %vm3791_vm14 = vcmask 458112  }
 0xd3c   : > { %v6282_v15 = vunpack.i.h.bf16 %v6280_v24  ;;  %v6296_v12 = vunpack.i.l.bf16 %v6295_v14  ;;  %v6281_v29 = vunpack.i.l.bf16 %v6280_v24  ;;  %v6297_v13 = vunpack.i.h.bf16 %v6295_v14 }
 0xd3d   : > { %3521 = vrot.lane.b32.xlu1 %v3491_v34, %s9273_s28 }
 0xd3e   : > { %v3496_v47 = vpack.c.bf16 %v6292_v55, %v6282_v15  ;;  %v3497_v49 = vpack.c.bf16 %v6296_v12, %v6276_v58  ;;  %v3411_v59 = vsel %vm1083_vm8, %v6281_v29, %v6282_v15  ;;  %v3410_v38 = vsel %vm1083_vm8, %v3405_v26, %v6281_v29 }
 0xd3f   : > { %v6300_v46 = vpop.permute.xlu1 %6299  ;;  %v3459_v32 = vpop.permute.xlu0 %3458  ;;  %v3495_v6 = vpack.c.bf16 %v3425_v2, %v3411_v59  ;;  %v3446_v23 = vsel %vm9279_vm4, %v6296_v12, %v6297_v13  ;;  %v3494_v24 = vpack.c.bf16 %v3424_v4, %v3410_v38  ;;  %v3447_v63 = vsel %vm9279_vm4, %v6297_v13, %v3445_v21 }
 0xd40   : > { %v6301_v57 = vunpack.i.l.bf16 %v6300_v46  ;;  %v6302_v14 = vunpack.i.h.bf16 %v6300_v46  ;;  %v3498_v34 = vpack.c.bf16 %v3446_v23, %v3433_v18  ;;  %v3472_v21 = vsel %vm9289_vm6, %v6286_v35, %v6287_v1 }
 0xd41   : > { %3531 = vrot.lane.b32.xlu1 %v3496_v47, %s9273_s28  ;;  %v3499_v47 = vpack.c.bf16 %v3447_v63, %v6277_v60  ;;  %vm504_vm4 = vcmask 1048064  }
 0xd42   : > { %v3500_v27 = vpack.c.bf16 %v6286_v35, %v6301_v57  ;;  %v3461_v61 = vsel %vm9278_vm7, %v6302_v14, %v3459_v32  ;;  %v3460_v44 = vsel %vm9278_vm7, %v6301_v57, %v6302_v14  ;;  %vm3755_vm7 = vcmask 64512   ;;  %505 = vst.msk [vmem:[#allocation4 + $0x8] sm:$0xff] %vm504_vm4, %v8302_v53  ;;  %508 = vst.msk [vmem:[#allocation4 + $0x20] sm:$0xff] %vm504_vm4, %v8302_v53 }
 0xd43   : > { %v6305_v20 = vpop.permute.xlu1 %6304  ;;  %v3471_v22 = vpop.permute.xlu0 %3470  ;;  %v3501_v46 = vpack.c.bf16 %v3472_v21, %v3460_v44  ;;  %vm3761_vm4 = vcmask 130112  }
 0xd44   : > { %v6306_v31 = vunpack.i.l.bf16 %v6305_v20  ;;  %3539 = vrot.lane.b32.xlu0 %v3500_v27, %s9273_s28  ;;  %v3473_v26 = vsel %vm9289_vm6, %v6287_v1, %v3471_v22  ;;  %v6307_v15 = vunpack.i.h.bf16 %v6305_v20  ;;  %vm3779_vm6 = vcmask 326912  }
 0xd45   : > { %3533 = vrot.lane.b32.xlu1 %v3497_v49, %s9273_s28  ;;  %v3502_v12 = vpack.c.bf16 %v3473_v26, %v3461_v61 }
 0xd46   : > { %v3503_v17 = vpack.c.bf16 %v6306_v31, %v6306_v31  ;;  %v3486_v58 = vsel %vm9277_vm9, %v6306_v31, %v6307_v15 }
 0xd47   : > { %v3485_v55 = vpop.permute.xlu0 %3484  ;;  %v3504_v32 = vpack.c.bf16 %v3486_v58, %v3486_v58 }
 0xd48   : > { %3529 = vrot.lane.b32.xlu0 %v3495_v6, %s9273_s28  ;;  %v3487_v29 = vsel %vm9277_vm9, %v6307_v15, %v3485_v55  ;;  %vm3677_vm9 = vcmask 261120  }
 0xd49   : > { %3545 = vrot.lane.b32.xlu1 %v3503_v17, %s9273_s28  ;;  %v3505_v5 = vpack.c.bf16 %v3487_v29, %v3487_v29 }
 0xd4c   : > { %3527 = vrot.lane.b32.xlu0 %v3494_v24, %s9273_s28 }
 0xd4d   : > { %3535 = vrot.lane.b32.xlu1 %v3498_v34, %s9273_s28 }
 0xd50   : > { %3537 = vrot.lane.b32.xlu0 %v3499_v47, %s9273_s28  ;;  %v3362_v47 = vld [vmem:[%s9194_s4] sm:$0xf] }
 0xd51   : > { %3543 = vrot.lane.b32.xlu1 %v3502_v12, %s9273_s28 }
 0xd54   : > { %3541 = vrot.lane.b32.xlu0 %v3501_v46, %s9273_s28 }
 0xd55   : > { %3549 = vrot.lane.b32.xlu1 %v3505_v5, %s9273_s28 }
 0xd58   : > { %3547 = vrot.lane.b32.xlu0 %v3504_v32, %s9273_s28  ;;  %s6645_s28 = smov 24  }
 0xdaa   : > { %v3526_v57 = vpop.permute.xlu0 %3525 }
 0xdab   : > { %v3524_v27 = vpop.permute.xlu1 %3523 }
 0xdac   : > { %v3552_v49 = vsel %vm9282_vm3, %v3524_v27, %v3526_v57 }
 0xdad   : > { %3578 = vmatprep.subr.bf16.mxu1 %v3552_v49 }
 0xdaf   : > { %v3522_v59 = vpop.permute.xlu1 %3521 }
 0xdb0   : > { %v3551_v35 = vsel %vm9282_vm3, %v3522_v59, %v3524_v27 }
 0xdb1   : > { %3579 = vmatpush1.bf16.msra.mxu1 %v3551_v35  ;;  %v6585_v35 = vld [vmem:[%s9203_s13] sm:$0xff]  }
 0xdb2   : > { %5597 = vmatprep.subr.bf16.mxu0 %v6585_v35 }
 0xdb3   : > { %v3532_v20 = vpop.permute.xlu1 %3531  ;;  %5598 = vmatpush3.bf16.msra.mxu0 %v6585_v35 }
 0xdb6   : > { %v3540_v13 = vpop.permute.xlu0 %3539 }
 0xdb7   : > { %v3534_v2 = vpop.permute.xlu1 %3533 }
 0xdba   : > { %v3530_v31 = vpop.permute.xlu0 %3529 }
 0xdbb   : > { %v3546_v60 = vpop.permute.xlu1 %3545  ;;  %v3554_v17 = vsel %vm9282_vm3, %v3530_v31, %v3532_v20  ;;  %v6586_v20 = vld [vmem:[%s9203_s13 + $0x8] sm:$0xff]  }
 0xdbc   : > { %3580 = vmatprep.subr.bf16.mxu1 %v3554_v17  ;;  %5599 = vmatprep.subr.bf16.mxu0 %v6586_v20 }
 0xdbd   : > { %5600 = vmatpush3.bf16.msra.mxu0 %v6586_v20 }
 0xdbe   : > { %v3528_v6 = vpop.permute.xlu0 %3527  ;;  %5623 = vmatprep.subr.bf16.mxu0 %v8302_v53 }
 0xdbf   : > { %v3553_v38 = vsel %vm9282_vm3, %v3528_v6, %v3530_v31  ;;  %v3536_v22 = vpop.permute.xlu1 %3535 }
 0xdc0   : > { %3581 = vmatpush1.bf16.msra.mxu1 %v3553_v38  ;;  %v3555_v18 = vsel %vm9282_vm3, %v3534_v2, %v3536_v22 }
 0xdc2   : > { %v3538_v23 = vpop.permute.xlu0 %3537 }
 0xdc3   : > { %v3556_v4 = vsel %vm9282_vm3, %v3536_v22, %v3538_v23  ;;  %v3544_v1 = vpop.permute.xlu1 %3543 }
 0xdc4   : > { %3582 = vmatprep.subr.bf16.mxu1 %v3556_v4 }
 0xdc5   : > { %3583 = vmatpush1.bf16.msra.mxu1 %v3555_v18 }
 0xdc6   : > { %v3542_v14 = vpop.permute.xlu0 %3541 }
 0xdc7   : > { %v3558_v24 = vsel %vm9282_vm3, %v3542_v14, %v3544_v1  ;;  %v3557_v63 = vsel %vm9282_vm3, %v3540_v13, %v3542_v14  ;;  %v3550_v34 = vpop.permute.xlu1 %3549 }
 0xdc8   : > { %3584 = vmatprep.subr.bf16.mxu1 %v3558_v24 }
 0xdc9   : > { %3585 = vmatpush1.bf16.msra.mxu1 %v3557_v63 }
 0xdca   : > { %v3548_v26 = vpop.permute.xlu0 %3547 }
 0xdcb   : > { %v3559_v55 = vsel %vm9282_vm3, %v3546_v60, %v3548_v26  ;;  %v3560_v61 = vsel %vm9282_vm3, %v3548_v26, %v3550_v34 }
 0xdcc   : > { %5480 = vmatprep.subr.msk.bf16.mxu1 %vm1606_vm12, %v3560_v61  ;;  %v3573_v15 = vsel %vm1606_vm12, %v3559_v55, 0 }
 0xdcd   : > { %3587 = vmatpush1.bf16.msra.mxu1 %v3573_v15 }
 0xdce   : > { %5609 = vmatprep.subr.bf16.mxu1 %v8302_v53  ;;  %v8638_v53 = vld [vmem:[#allocation3] sm:$0xff] }
 0xdd0   : > { %5481 = vmatmul.mubr.msk.bf16.vlgmr.msra.gmra.mrb[20].mxu1 %vm1602_vm13, %v3362_v47 }
 0xea3   : > { %v3612_v44 = vpop.f32.mrb[20].mxu1 }
 0xea4   : > { %v3614_v12 = vpop.f32.mrb[21].mxu1 }
 0xea5   : > { %v3619_v29 = vadd.f32 %v3614_v12, %v3612_v44  ;;  %v3616_v21 = vpop.f32.mrb[22].mxu1 }
 0xea6   : > { %v3617_v46 = vpop.f32.mrb[23].mxu1 }
 0xea7   : > { %3620 = vadd.xlane.f32.xlu0 %v3619_v29  ;;  %v703_v29 = vand.u32 7, %v9425_v37 }
 0xea9   : > { %vm711_vm3 = vcmp.gt.s32.totalorder %v703_v29, 0 }
 0xf34   : > { %v3621_v5 = vpop.xlane.xlu0 %3620 }
 0xf35   : > { %v3622_v58 = vmul.f32 0.00390625, %v3621_v5 }
 0xf37   : > { %v3623_v32 = vsub.f32 %v3612_v44, %v3622_v58  ;;  %v3624_v57 = vsub.f32 %v3614_v12, %v3622_v58 }
 0xf39   : > { %v3625_v27 = vmul.f32 %v3623_v32, %v3623_v32  ;;  %v3626_v49 = vmul.f32 %v3624_v57, %v3624_v57 }
 0xf3b   : > { %v3627_v59 = vadd.f32 %v3626_v49, %v3625_v27 }
 0xf3d   : > { %3628 = vadd.xlane.f32.xlu1 %v3627_v59 }
 0xfca   : > { %v3629_v13 = vpop.xlane.xlu1 %3628 }
 0xfcb   : > { %v3630_v2 = vmul.f32 0.00390625, %v3629_v13 }
 0xfcd   : > { %v3631_v31 = vadd.f32 1e-05, %v3630_v2 }
 0xfcf   : > { %6605 = vrsqrt.f32 %v3631_v31 }
 0xfd9   : > { %v6606_v60 = vpop.eup %6605 }
 0xfda   : > { %v3633_v17 = vmul.f32 %v6606_v60, %v3623_v32  ;;  %v3634_v38 = vmul.f32 %v6606_v60, %v3624_v57  ;;  %v5448_v32 = vsel %vm711_vm3, 1.0, %v8638_v53  ;;  %vm3773_vm3 = vcmask 261312  }
 0xfdc   : > { %v3635_v6 = vmax.f32 %v3633_v17, 0.0  ;;  %v3636_v22 = vmax.f32 %v3634_v38, 0.0 }
 0xfde   : > { %3645 = vrot.lane.b32.xlu1 %v3635_v6, %s9283_s23  ;;  %3642 = vrot.lane.b32.xlu0 %v3635_v6, %s9287_s17 }
 0xfe2   : > { %3652 = vrot.lane.b32.xlu1 %v3636_v22, %s9287_s17  ;;  %3648 = vrot.lane.b32.xlu0 %v3635_v6, %s9285_s25  ;;  %s6652_s17 = smov 119  }
 0xfe6   : > { %3658 = vrot.lane.b32.xlu1 %v3636_v22, %s9285_s25  ;;  %3655 = vrot.lane.b32.xlu0 %v3636_v22, %s9283_s23  ;;  %s9428_s23 = smov 1  }
0x1050   : > { %v3646_v23 = vpop.permute.xlu1 %3645  ;;  %v3643_v4 = vpop.permute.xlu0 %3642 }
0x1051   : > { %v3661_v1 = vpack.c.bf16 %v3643_v4, %v3635_v6 }
0x1053   : > { %5601 = vmatprep.mubr.msk.bf16.mxu0 %vm3677_vm9, %v3661_v1 }
0x1054   : > { %v3653_v18 = vpop.permute.xlu1 %3652  ;;  %v3649_v14 = vpop.permute.xlu0 %3648 }
0x1055   : > { %v3663_v24 = vpack.c.bf16 %v3653_v18, %v3636_v22  ;;  %v3662_v63 = vpack.c.bf16 %v3649_v14, %v3646_v23 }
0x1057   : > { %5602 = vmatmul.mubr.msk.bf16.vlgmr.msra.gmra.mrb[32].mxu0 %vm3677_vm9, %v3662_v63 }
0x1058   : > { %5605 = vmatprep.mubr.msk.bf16.mxu0 %vm3677_vm9, %v3663_v24  ;;  %v3659_v34 = vpop.permute.xlu1 %3658  ;;  %v3656_v26 = vpop.permute.xlu0 %3655 }
0x1059   : > { %v3664_v55 = vpack.c.bf16 %v3659_v34, %v3656_v26 }
0x105f   : > { %5606 = vmatmul.mubr.msk.bf16.gmra.mrb[36].mxu0 %vm3677_vm9, %v3664_v55  ;;  %vm714_vm9 = vcmp.lt.s32.totalorder %v703_v29, 7 }
0x1060   : > { %v5449_v58 = vsel %vm714_vm9, 1.0, %v8638_v53  ;;  %vm3767_vm9 = vcmask 195712  }
0x112a   : > { %v5603_v61 = vpop.f32.mrb[32].mxu0 }
0x112b   : > { %3764 = vrot.lane.b32.xlu1 %v5603_v61, %s9426_s20  ;;  %v3724_v15 = vpop.f32.mrb[33].mxu0 }
0x112c   : > { %3756 = vst.msk [vmem:[#allocation6] sm:$0xff] %vm3755_vm7, %v3724_v15  ;;  %v5604_v47 = vpop.f32.mrb[34].mxu0 }
0x112d   : > { %3770 = vrot.lane.b32.xlu0 %v5604_v47, %s6645_s28  ;;  %v3727_v44 = vpop.f32.mrb[35].mxu0  ;;  %s6648_s28 = smov 56  }
0x1131   : > { %3758 = vrot.lane.b32.xlu0 %v3727_v44, %s6646_s22  ;;  %s6649_s22 = smov 121  }
0x1132   : > { %v5607_v12 = vpop.f32.mrb[36].mxu0 }
0x1133   : > { %v3740_v21 = vpop.f32.mrb[37].mxu0 }
0x1134   : > { %3776 = vrot.lane.b32.xlu1 %v3740_v21, %s9285_s25  ;;  %v5608_v46 = vpop.f32.mrb[38].mxu0  ;;  %s6650_s25 = smov 7  }
0x1135   : > { %v3743_v5 = vpop.f32.mrb[39].mxu0 }
0x1136   : > { %3782 = vrot.lane.b32.xlu0 %v3743_v5, %s6647_s30  ;;  %s6651_s30 = smov 9  }
0x1138   : > { %3788 = vrot.lane.b32.xlu1 %v5607_v12, %s9427_s29 }
0x113a   : > { %3794 = vrot.lane.b32.xlu0 %v5608_v46, %s6648_s28  ;;  %s9431_s28 = smov 110  }
0x113c   : > { %3812 = vrot.lane.b32.xlu1 %v5449_v58, %s6649_s22  ;;  %s6658_s22 = smov 88  }
0x113e   : > { %3817 = vrot.lane.b32.xlu0 %v5448_v32, %s9301_s21 }
0x1140   : > { %3822 = vrot.lane.b32.xlu1 %v5449_v58, %s9428_s23  ;;  %s6653_s23 = smov 120  }
0x1142   : > { %3826 = vrot.lane.b32.xlu0 %v5448_v32, %s6650_s25  ;;  %s6654_s25 = smov 118  }
0x1144   : > { %3830 = vrot.lane.b32.xlu1 %v5449_v58, %s6651_s30 }
0x1146   : > { %3806 = vrot.lane.b32.xlu0 %v5448_v32, %s6652_s17 }
0x119d   : > { %v3765_v57 = vpop.permute.xlu1 %3764 }
0x119f   : > { %v3771_v37 = vpop.permute.xlu0 %3770 }
0x11a3   : > { %v3759_v27 = vpop.permute.xlu0 %3758 }
0x11a4   : > { %3762 = vst.msk [vmem:[#allocation6] sm:$0xff] %vm3761_vm4, %v3759_v27  ;;  %vm9444_vm4 = vcmask 786048  }
0x11a5   : > { %3768 = vst.msk [vmem:[#allocation6] sm:$0xff] %vm3767_vm9, %v3765_v57  ;;  %vm9445_vm9 = vcmask 917248  }
0x11a6   : > { %v3777_v49 = vpop.permute.xlu1 %3776  ;;  %3774 = vst.msk [vmem:[#allocation6] sm:$0xff] %vm3773_vm3, %v3771_v37  ;;  %vm9446_vm3 = vcmask 1048448  }
0x11a7   : > { %3780 = vst.msk [vmem:[#allocation6] sm:$0xff] %vm3779_vm6, %v3777_v49  ;;  %vm3858_vm6 = vcmask 982016  }
0x11a8   : > { %v3783_v59 = vpop.permute.xlu0 %3782 }
0x11a9   : > { %3786 = vst.msk [vmem:[#allocation6] sm:$0xff] %vm3785_vm2, %v3783_v59  ;;  %vm3908_vm2 = vcmask 72704  }
0x11aa   : > { %v3789_v35 = vpop.permute.xlu1 %3788 }
0x11ab   : > { %3792 = vst.msk [vmem:[#allocation6] sm:$0xff] %vm3791_vm14, %v3789_v35  ;;  %vm9443_vm14 = vcmask 654848  }
0x11ac   : > { %v3795_v20 = vpop.permute.xlu0 %3794 }
0x11ad   : > { %3798 = vst.msk [vmem:[#allocation6] sm:$0xff] %vm3797_vm0, %v3795_v20  ;;  %vm6655_vm0 = vmmov 0  }
0x11ae   : > { %v8652_v31 = vpop.permute.xlu1 %3812  ;;  %5619 = vmatprep.mubr.msk.bf16.mxu1 %vm6655_vm0, %v8638_v53  ;;  %5633 = vmatprep.mubr.msk.bf16.mxu0 %vm6655_vm0, %v8638_v53  ;;  %vm9448_vm0 = vmmov %vm9444_vm4 }
0x11af   : > { %v8656_v60 = vmul.f32 %v8638_v53, %v8652_v31 }
0x11b0   : > { %v8658_v17 = vpop.permute.xlu0 %3817 }
0x11b1   : > { %v8664_v23 = vmul.f32 %v8638_v53, %v8658_v17 }
0x11b2   : > { %v8672_v14 = vpop.permute.xlu1 %3822 }
0x11b4   : > { %v8646_v13 = vld [vmem:[#allocation6] sm:$0xff]  ;;  %v8676_v63 = vpop.permute.xlu0 %3826 }
0x11b5   : > { %v3800_v2 = vmax.f32 %v8646_v13, 0.0  ;;  %4161 = vst.msk [vmem:[#allocation4 + $0x20] sm:$0xff] %vm506_vm5, %v8646_v13 }
0x11b6   : > { %v8681_v26 = vpop.permute.xlu1 %3830 }
0x11b7   : > { %3802 = vst.msk [vmem:[#allocation4 + $0x8] sm:$0xff] %vm506_vm5, %v3800_v2 }
0x11b8   : > { %v8686_v61 = vpop.permute.xlu0 %3806 }
0x11b9   : > { %v8690_v47 = vmul.f32 %v8638_v53, %v8686_v61 }
0x11be   : > { %v3804_v6 = vld [vmem:[#allocation4 + $0x8] sm:$0xff] }
0x11bf   : > { %v6308_v38 = vpack.i.bf16 %v3804_v6, %v8638_v53  ;;  %v3816_v22 = vmul.f32 %v8652_v31, %v3804_v6  ;;  %v3821_v4 = vmul.f32 %v8658_v17, %v3804_v6  ;;  %v3825_v24 = vmul.f32 %v8672_v14, %v3804_v6 }
0x11c0   : > { %v3829_v34 = vmul.f32 %v8676_v63, %v3804_v6  ;;  %v3833_v55 = vmul.f32 %v8681_v26, %v3804_v6  ;;  %v3810_v29 = vmul.f32 %v8686_v61, %v3804_v6 }
0x11c1   : > { %6309 = vrot.lane.b32.xlu1 %v6308_v38, %s9301_s21  ;;  %v6313_v1 = vpack.i.bf16 %v3816_v22, %v8656_v60  ;;  %v6318_v18 = vpack.i.bf16 %v3821_v4, %v8664_v23 }
0x11c3   : > { %6314 = vrot.lane.b32.xlu0 %v6313_v1, %s9299_s16 }
0x11c5   : > { %6319 = vrot.lane.b32.xlu1 %v6318_v18, %s6653_s23 }
0x11c7   : > { %3862 = vrot.lane.b32.xlu0 %v3804_v6, %s6652_s17 }
0x11c9   : > { %3866 = vrot.lane.b32.xlu1 %v3825_v24, %s6654_s25 }
0x11cb   : > { %3870 = vrot.lane.b32.xlu0 %v3829_v34, %s9295_s26 }
0x11cd   : > { %3873 = vrot.lane.b32.xlu1 %v3804_v6, %s9297_s24 }
0x11cf   : > { %3877 = vrot.lane.b32.xlu0 %v3833_v55, %s9293_s27  ;;  %v6656_v55 = vmov 1  }
0x11d0   : > { %6324 = vset.pattern.permute.xlu1 %v6656_v55 }
0x1233   : > { %v6310_v15 = vpop.permute.xlu1 %6309 }
0x1234   : > { %v6312_v44 = vunpack.i.h.bf16 %v6310_v15  ;;  %v6311_v12 = vunpack.i.l.bf16 %v6310_v15  ;;  %v3962_v15 = vld [vmem:[%s9196_s6] sm:$0xff] }
0x1235   : > { %v6315_v21 = vpop.permute.xlu0 %6314 }
0x1236   : > { %v3840_v46 = vsel %vm860_vm1, %v6311_v12, %v6312_v44  ;;  %v3881_v5 = vpack.c.bf16 %v6312_v44, %v3810_v29  ;;  %v6317_v58 = vunpack.i.h.bf16 %v6315_v21  ;;  %v6316_v32 = vunpack.i.l.bf16 %v6315_v21 }
0x1237   : > { %v6320_v37 = vpop.permute.xlu1 %6319  ;;  %v3880_v57 = vpack.c.bf16 %v3840_v46, %v8690_v47 }
0x1238   : > { %v6322_v27 = vunpack.i.h.bf16 %v6320_v37  ;;  %v6321_v49 = vunpack.i.l.bf16 %v6320_v37  ;;  %3896 = vrot.lane.b32.xlu0 %v3881_v5, %s6651_s30  ;;  %v3849_v35 = vsel %vm1083_vm8, %v6316_v32, %v6317_v58 }
0x1239   : > { %3894 = vrot.lane.b32.xlu1 %v3880_v57, %s6651_s30  ;;  %v3863_v59 = vpop.permute.xlu0 %3862 }
0x123a   : > { %v3859_v20 = vsel %vm3858_vm6, %v6321_v49, %v6322_v27  ;;  %v3883_v2 = vpack.c.bf16 %v6322_v27, %v6317_v58  ;;  %v3801_v27 = vld [vmem:[%s9195_s5] sm:$0xf]  ;;  %v9429_v49 = vlaneseq }
0x123b   : > { %v3867_v6 = vpop.permute.xlu1 %3866  ;;  %v3882_v38 = vpack.c.bf16 %v3859_v20, %v3849_v35 }
0x123c   : > { %3900 = vrot.lane.b32.xlu0 %v3883_v2, %s6651_s30  ;;  %v3884_v4 = vpack.c.bf16 %v3867_v6, %v3863_v59  ;;  %v8722_v59 = vshrl.u32 %v9429_v49, 7 }
0x123d   : > { %v3871_v22 = vpop.permute.xlu0 %3870  ;;  %3898 = vrot.lane.b32.xlu1 %v3882_v38, %s6651_s30 }
0x123e   : > { %v3970_v35 = vsub.s32 0, %v8722_v59  ;;  %v3980_v20 = vsub.s32 1, %v8722_v59 }
0x123f   : > { %v3874_v1 = vpop.permute.xlu1 %3873 }
0x1240   : > { %v3885_v18 = vpack.c.bf16 %v3874_v1, %v3871_v22 }
0x1241   : > { %v3878_v24 = vpop.permute.xlu0 %3877  ;;  %3902 = vrot.lane.b32.xlu1 %v3884_v4, %s6651_s30 }
0x1242   : > { %v3886_v34 = vpack.c.bf16 %v3878_v24, %v3878_v24  ;;  %3904 = vrot.lane.b32.xlu0 %v3885_v18, %s6651_s30 }
0x1245   : > { %3906 = vrot.lane.b32.xlu1 %v3886_v34, %s6651_s30 }
0x1246   : > { %3965 = vperm.xlu0 %6323, %v3962_v15  }
0x1249   : > { %3975 = vperm.xlu1 %6324, %v3962_v15  }
0x12aa   : > { %v3897_v44 = vpop.permute.xlu0 %3896 }
0x12ab   : > { %v3895_v12 = vpop.permute.xlu1 %3894 }
0x12ac   : > { %v3909_v29 = vsel %vm3908_vm2, %v3895_v12, %v3897_v44 }
0x12ad   : > { %5610 = vmatpush3.bf16.msra.mxu1 %v3909_v29 }
0x12ae   : > { %v3901_v21 = vpop.permute.xlu0 %3900  ;;  %5611 = vmatprep.subr.bf16.mxu1 %v8638_v53 }
0x12af   : > { %v3899_v46 = vpop.permute.xlu1 %3898 }
0x12b0   : > { %v3910_v5 = vsel %vm3908_vm2, %v3899_v46, %v3901_v21 }
0x12b1   : > { %5612 = vmatpush3.bf16.msra.mxu1 %v3910_v5 }
0x12b2   : > { %5613 = vmatprep.subr.bf16.mxu1 %v8638_v53 }
0x12b3   : > { %v3903_v58 = vpop.permute.xlu1 %3902 }
0x12b4   : > { %v3905_v32 = vpop.permute.xlu0 %3904 }
0x12b5   : > { %5614 = vmatpush3.bf16.msra.mxu1 %v3903_v58 }
0x12b6   : > { %5615 = vmatprep.subr.bf16.mxu1 %v8638_v53 }
0x12b7   : > { %v3907_v37 = vpop.permute.xlu1 %3906 }
0x12b8   : > { %v3919_v57 = vsel %vm1606_vm12, %v3907_v37, 0 }
0x12b9   : > { %5616 = vmatpush3.bf16.msra.mxu1 %v3905_v32 }
0x12ba   : > { %5617 = vmatprep.subr.bf16.mxu1 %v8638_v53 }
0x12bd   : > { %5618 = vmatpush3.bf16.msra.mxu1 %v3919_v57 }
0x12be   : > { %4363 = vmatprep.subr.bf16.mxu1 %v6634_v8 }
0x12c0   : > { %5620 = vmatmul.mubr.msk.bf16.vlgmr.msra.gmra.mrb[24].mxu1 %vm1602_vm13, %v3801_v27 }
0x12c5   : > { %v3966_v4 = vpop.permute.xlu0 %3965 }
0x12c8   : > { %v3976_v34 = vpop.permute.xlu1 %3975 }
0x1393   : > { %v3955_v2 = vpop.f32.mrb[24].mxu1 }
0x1394   : > { %v3961_v6 = vmax.f32 %v3955_v2, 0.0  ;;  %v5621_v38 = vpop.f32.mrb[25].mxu1 }
0x1395   : > { %v3958_v22 = vpop.f32.mrb[26].mxu1 }
0x1396   : > { %v3971_v1 = vrot.slane %v3961_v6, %v3970_v35  ;;  %v3981_v18 = vrot.slane %v3961_v6, %v3980_v20  ;;  %v5622_v24 = vpop.f32.mrb[27].mxu1 }
0x1398   : > { %v3972_v55 = vmul.f32 %v3971_v1, %v3966_v4  ;;  %v3982_v44 = vmul.f32 %v3981_v18, %v3976_v34 }
0x139a   : > { %v3973_v15 = vadd.f32 %v3972_v55, %v8646_v13 }
0x139c   : > { %v8731_v12 = vadd.f32 %v3982_v44, %v3973_v15 }
0x139e   : > { %v3984_v29 = vmax.f32 %v8731_v12, 0.0 }
0x13a0   : > { %3987 = vst.msk [vmem:[#allocation4 + $0x8] sm:$0xff] %vm506_vm5, %v3984_v29 }
0x13a7   : > { %v3989_v21 = vld [vmem:[#allocation4 + $0x8] sm:$0xff] }
0x13a8   : > { %v6325_v46 = vpack.i.bf16 %v3989_v21, %v8638_v53  ;;  %v3993_v5 = vmul.f32 %v3989_v21, %v8652_v31  ;;  %v3995_v58 = vmul.f32 %v3989_v21, %v8658_v17  ;;  %v3996_v37 = vmul.f32 %v3989_v21, %v8672_v14 }
0x13a9   : > { %v3997_v57 = vmul.f32 %v3989_v21, %v8676_v63  ;;  %v3998_v27 = vmul.f32 %v3989_v21, %v8681_v26  ;;  %v3991_v38 = vmul.f32 %v3989_v21, %v8686_v61 }
0x13aa   : > { %6326 = vrot.lane.b32.xlu1 %v6325_v46, %s9301_s21  ;;  %v6330_v32 = vpack.i.bf16 %v3993_v5, %v8656_v60  ;;  %v6335_v13 = vpack.i.bf16 %v3995_v58, %v8664_v23 }
0x13ac   : > { %6331 = vrot.lane.b32.xlu0 %v6330_v32, %s9299_s16 }
0x13ae   : > { %6336 = vrot.lane.b32.xlu1 %v6335_v13, %s6653_s23 }
0x13b0   : > { %4026 = vrot.lane.b32.xlu0 %v3989_v21, %s6652_s17 }
0x13b2   : > { %4030 = vrot.lane.b32.xlu1 %v3996_v37, %s6654_s25 }
0x13b4   : > { %4034 = vrot.lane.b32.xlu0 %v3997_v57, %s9295_s26  ;;  %s6659_s26 = smov 72  }
0x13b6   : > { %4037 = vrot.lane.b32.xlu1 %v3989_v21, %s9297_s24 }
0x13b8   : > { %4041 = vrot.lane.b32.xlu0 %v3998_v27, %s9293_s27  ;;  %s9438_s27 = smov 64  }
0x141c   : > { %v6327_v49 = vpop.permute.xlu1 %6326 }
0x141d   : > { %v6329_v2 = vunpack.i.h.bf16 %v6327_v49  ;;  %v6328_v6 = vunpack.i.l.bf16 %v6327_v49 }
0x141e   : > { %v6332_v22 = vpop.permute.xlu0 %6331 }
0x141f   : > { %v4005_v4 = vsel %vm860_vm1, %v6328_v6, %v6329_v2  ;;  %v4045_v1 = vpack.c.bf16 %v6329_v2, %v3991_v38  ;;  %v6334_v18 = vunpack.i.h.bf16 %v6332_v22  ;;  %v6333_v24 = vunpack.i.l.bf16 %v6332_v22  ;;  %v5491_v6 = vld [vmem:[%s9196_s6 + $0x8] sm:$0xff]  ;;  %v4148_v38 = vld [vmem:[%s9197_s7] sm:$0xff] }
0x1420   : > { %v6337_v34 = vpop.permute.xlu1 %6336  ;;  %v4044_v55 = vpack.c.bf16 %v4005_v4, %v8690_v47  ;;  %v8769_v22 = vld [vmem:[#allocation4 + $0x20] sm:$0xff] }
0x1421   : > { %v6339_v15 = vunpack.i.h.bf16 %v6337_v34  ;;  %v6338_v44 = vunpack.i.l.bf16 %v6337_v34  ;;  %4060 = vrot.lane.b32.xlu0 %v4045_v1, %s6651_s30  ;;  %v4014_v46 = vsel %vm1083_vm8, %v6333_v24, %v6334_v18  ;;  %v6340_v4 = vpack.i.bf16 %v8769_v22, %v8638_v53 }
0x1422   : > { %4058 = vrot.lane.b32.xlu1 %v4044_v55, %s6651_s30  ;;  %v4027_v29 = vpop.permute.xlu0 %4026  ;;  %v4173_v1 = vmul.f32 %v8769_v22, %v8652_v31  ;;  %v4177_v24 = vmul.f32 %v8769_v22, %v8658_v17 }
0x1423   : > { %v4023_v21 = vsel %vm3858_vm6, %v6338_v44, %v6339_v15  ;;  %v4047_v5 = vpack.c.bf16 %v6339_v15, %v6334_v18 }
0x1424   : > { %v4031_v58 = vpop.permute.xlu1 %4030  ;;  %v4046_v32 = vpack.c.bf16 %v4023_v21, %v4014_v46  ;;  %v6345_v18 = vpack.i.bf16 %v4173_v1, %v8656_v60  ;;  %v6365_v34 = vpack.i.bf16 %v4177_v24, %v8664_v23 }
0x1425   : > { %4064 = vrot.lane.b32.xlu0 %v4047_v5, %s6651_s30  ;;  %v4048_v37 = vpack.c.bf16 %v4031_v58, %v4027_v29 }
0x1426   : > { %v4035_v13 = vpop.permute.xlu0 %4034  ;;  %4062 = vrot.lane.b32.xlu1 %v4046_v32, %s6651_s30 }
0x1428   : > { %v4038_v57 = vpop.permute.xlu1 %4037 }
0x1429   : > { %v4049_v27 = vpack.c.bf16 %v4038_v57, %v4035_v13 }
0x142a   : > { %v4042_v49 = vpop.permute.xlu0 %4041  ;;  %4066 = vrot.lane.b32.xlu1 %v4048_v37, %s6651_s30  ;;  %v5489_v37 = vld [vmem:[%s9195_s5 + $0x4] sm:$0xf] }
0x142b   : > { %v4050_v2 = vpack.c.bf16 %v4042_v49, %v4042_v49  ;;  %4068 = vrot.lane.b32.xlu0 %v4049_v27, %s6651_s30 }
0x142e   : > { %4070 = vrot.lane.b32.xlu1 %v4050_v2, %s6651_s30 }
0x142f   : > { %4129 = vperm.xlu0 %6323, %v5491_v6  }
0x1432   : > { %4139 = vperm.xlu1 %6324, %v5491_v6  }
0x1433   : > { %4151 = vperm.xlu0 %6323, %v4148_v38  }
0x1436   : > { %6395 = vset.pattern.permute.xlu1 %v6634_v8 }
0x1437   : > { %6341 = vrot.lane.b32.xlu0 %v6340_v4, %s9301_s21 }
0x143b   : > { %6346 = vrot.lane.b32.xlu0 %v6345_v18, %s9299_s16 }
0x143f   : > { %6366 = vrot.lane.b32.xlu0 %v6365_v34, %s6653_s23 }
0x1493   : > { %v4061_v55 = vpop.permute.xlu0 %4060 }
0x1494   : > { %v4059_v15 = vpop.permute.xlu1 %4058 }
0x1495   : > { %v4072_v44 = vsel %vm3908_vm2, %v4059_v15, %v4061_v55 }
0x1496   : > { %5624 = vmatpush3.bf16.msra.mxu0 %v4072_v44 }
0x1497   : > { %v4065_v29 = vpop.permute.xlu0 %4064  ;;  %5625 = vmatprep.subr.bf16.mxu0 %v8638_v53 }
0x1498   : > { %v4063_v46 = vpop.permute.xlu1 %4062 }
0x1499   : > { %v4073_v21 = vsel %vm3908_vm2, %v4063_v46, %v4065_v29 }
0x149a   : > { %5626 = vmatpush3.bf16.msra.mxu0 %v4073_v21 }
0x149b   : > { %5627 = vmatprep.subr.bf16.mxu0 %v8638_v53 }
0x149c   : > { %v4067_v5 = vpop.permute.xlu1 %4066 }
0x149d   : > { %v4069_v58 = vpop.permute.xlu0 %4068 }
0x149e   : > { %5628 = vmatpush3.bf16.msra.mxu0 %v4067_v5 }
0x149f   : > { %5629 = vmatprep.subr.bf16.mxu0 %v8638_v53 }
0x14a0   : > { %v4071_v32 = vpop.permute.xlu1 %4070 }
0x14a1   : > { %v4082_v13 = vsel %vm1606_vm12, %v4071_v32, 0 }
0x14a2   : > { %5630 = vmatpush3.bf16.msra.mxu0 %v4069_v58 }
0x14a3   : > { %5631 = vmatprep.subr.bf16.mxu0 %v8638_v53 }
0x14a6   : > { %5632 = vmatpush3.bf16.msra.mxu0 %v4082_v13 }
0x14a9   : > { %5634 = vmatmul.mubr.msk.bf16.vlgmr.msra.gmra.mrb[40].mxu0 %vm1602_vm13, %v5489_v37 }
0x14ae   : > { %v4130_v1 = vpop.permute.xlu0 %4129 }
0x14b1   : > { %v4140_v24 = vpop.permute.xlu1 %4139 }
0x14b2   : > { %v4152_v44 = vpop.permute.xlu0 %4151 }
0x157c   : > { %v4118_v57 = vpop.f32.mrb[40].mxu0 }
0x157d   : > { %v4124_v27 = vmax.f32 %v4118_v57, 0.0  ;;  %v5635_v49 = vpop.f32.mrb[41].mxu0 }
0x157e   : > { %v4121_v2 = vpop.f32.mrb[42].mxu0 }
0x157f   : > { %v4135_v6 = vrot.slane %v4124_v27, %v3970_v35  ;;  %v4145_v38 = vrot.slane %v4124_v27, %v3980_v20  ;;  %v5636_v4 = vpop.f32.mrb[43].mxu0  ;;  %v4179_v35 = vmul.f32 %v8769_v22, %v8672_v14  ;;  %v4169_v27 = vmul.f32 %v8769_v22, %v8686_v61 }
0x1581   : > { %v4136_v18 = vmul.f32 %v4135_v6, %v4130_v1  ;;  %v4146_v55 = vmul.f32 %v4145_v38, %v4140_v24 }
0x1583   : > { %v4137_v34 = vadd.f32 %v4136_v18, %v8731_v12 }
0x1585   : > { %v4147_v15 = vadd.f32 %v4146_v55, %v4137_v34 }
0x1587   : > { %v4154_v29 = vmul.f32 %v4152_v44, %v4147_v15 }
0x1589   : > { %v4155_v46 = vmax.f32 %v4154_v29, 0.0 }
0x158b   : > { %4160 = vst.msk [vmem:[#allocation4 + $0x8] sm:$0xff] %vm506_vm5, %v4155_v46  ;;  %vm9432_vm5 = vcmask 130048  }
0x158c   : > { %vm9433_vm13 = vmmov %vm9432_vm5 }
0x1592   : > { %v4163_v21 = vld [vmem:[#allocation4 + $0x8] sm:$0xff] }
0x1593   : > { %v6350_v59 = vpack.i.bf16 %v4163_v21, %v8638_v53  ;;  %v4178_v20 = vmul.f32 %v4163_v21, %v8672_v14  ;;  %v4171_v5 = vmul.f32 %v4163_v21, %v8652_v31  ;;  %v4175_v32 = vmul.f32 %v4163_v21, %v8658_v17 }
0x1594   : > { %v6385_v13 = vpack.i.bf16 %v8769_v22, %v4163_v21  ;;  %v4274_v31 = vpack.c.bf16 %v8690_v47, %v8690_v47  ;;  %v4180_v14 = vmul.f32 %v4163_v21, %v8676_v63  ;;  %v4182_v37 = vmul.f32 %v4163_v21, %v8681_v26 }
0x1595   : > { %6351 = vrot.lane.b32.xlu1 %v6350_v59, %s9301_s21  ;;  %v6375_v12 = vpack.i.bf16 %v4179_v35, %v4178_v20  ;;  %v6355_v58 = vpack.i.bf16 %v4171_v5, %v8656_v60  ;;  %v6360_v53 = vpack.i.bf16 %v4175_v32, %v8664_v23  ;;  %v4181_v60 = vmul.f32 %v8769_v22, %v8676_v63  ;;  %v6342_v63 = vpop.permute.xlu0 %6341  ;;  %s9434_s21 = smov 96  }
0x1596   : > { %v4183_v23 = vmul.f32 %v8769_v22, %v8681_v26  ;;  %v4167_v47 = vmul.f32 %v4163_v21, %v8686_v61  ;;  %v6344_v6 = vunpack.i.h.bf16 %v6342_v63  ;;  %v6343_v38 = vunpack.i.l.bf16 %v6342_v63 }
0x1597   : > { %6376 = vrot.lane.b32.xlu0 %v6375_v12, %s6654_s25  ;;  %v6380_v17 = vpack.i.bf16 %v4181_v60, %v4180_v14  ;;  %s9430_s25 = smov 112  }
0x1598   : > { %v6390_v57 = vpack.i.bf16 %v4183_v23, %v4182_v37  ;;  %v4275_v49 = vpack.c.bf16 %v4169_v27, %v4167_v47  ;;  %v4197_v18 = vsel %vm860_vm1, %v6343_v38, %v6344_v6 }
0x1599   : > { %6356 = vrot.lane.b32.xlu1 %v6355_v58, %s9299_s16  ;;  %v6347_v2 = vpop.permute.xlu0 %6346  ;;  %s6657_s16 = smov 104  }
0x159a   : > { %v6349_v34 = vunpack.i.h.bf16 %v6347_v2  ;;  %v6348_v55 = vunpack.i.l.bf16 %v6347_v2 }
0x159b   : > { %6386 = vrot.lane.b32.xlu0 %v6385_v13, %s9297_s24  ;;  %s9435_s24 = smov 80  }
0x159c   : > { %v4215_v20 = vsel %vm1083_vm8, %v6348_v55, %v6349_v34 }
0x159d   : > { %6361 = vrot.lane.b32.xlu1 %v6360_v53, %s6653_s23  ;;  %v6367_v24 = vpop.permute.xlu0 %6366 }
0x159e   : > { %v6369_v21 = vunpack.i.h.bf16 %v6367_v24  ;;  %v6368_v35 = vunpack.i.l.bf16 %v6367_v24 }
0x159f   : > { %4318 = vrot.lane.b32.xlu0 %v4274_v31, %s6651_s30 }
0x15a0   : > { %v4233_v31 = vsel %vm3858_vm6, %v6368_v35, %v6369_v21 }
0x15a1   : > { %6371 = vrot.lane.b32.xlu1 %v6385_v13, %s6652_s17  ;;  %s9454_s17 = smov 94  }
0x15a5   : > { %6381 = vrot.lane.b32.xlu1 %v6380_v17, %s9430_s25 }
0x15a9   : > { %6391 = vrot.lane.b32.xlu1 %v6390_v57, %s9431_s28 }
0x15ad   : > { %4320 = vrot.lane.b32.xlu1 %v4275_v49, %s6651_s30 }
0x1607   : > { %v6352_v4 = vpop.permute.xlu1 %6351 }
0x1608   : > { %v6354_v1 = vunpack.i.h.bf16 %v6352_v4  ;;  %v6353_v26 = vunpack.i.l.bf16 %v6352_v4 }
0x1609   : > { %v6377_v59 = vpop.permute.xlu0 %6376 }
0x160a   : > { %v4196_v15 = vsel %vm860_vm1, %v6353_v26, %v6354_v1  ;;  %v4277_v44 = vpack.c.bf16 %v6344_v6, %v6354_v1  ;;  %v6379_v14 = vunpack.i.h.bf16 %v6377_v59  ;;  %v6378_v60 = vunpack.i.l.bf16 %v6377_v59 }
0x160b   : > { %v6357_v29 = vpop.permute.xlu1 %6356  ;;  %v4276_v61 = vpack.c.bf16 %v4197_v18, %v4196_v15 }
0x160c   : > { %v6359_v22 = vunpack.i.h.bf16 %v6357_v29  ;;  %v6358_v46 = vunpack.i.l.bf16 %v6357_v29  ;;  %4324 = vrot.lane.b32.xlu1 %v4277_v44, %s6651_s30  ;;  %v4283_v63 = vpack.c.bf16 %v6379_v14, %v6378_v60  ;;  %v6587_v44 = vld [vmem:[%s9198_s8 + $0x4] ss:$8 sps:$4 sm:$0xff]  }
0x160d   : > { %4322 = vrot.lane.b32.xlu0 %v4276_v61, %s6651_s30  ;;  %v6387_v23 = vpop.permute.xlu0 %6386  ;;  %5496 = vmatprep.mubr.msk.bf16.mxu1 %vm9432_vm5, %v6587_v44 }
0x160e   : > { %v4214_v5 = vsel %vm1083_vm8, %v6358_v46, %v6359_v22  ;;  %v4279_v12 = vpack.c.bf16 %v6349_v34, %v6359_v22  ;;  %v6389_v2 = vunpack.i.h.bf16 %v6387_v23  ;;  %v6388_v6 = vunpack.i.l.bf16 %v6387_v23  ;;  %v6589_v23 = vld [vmem:[%s9198_s8] ss:$8 sps:$4 sm:$0xff]  }
0x160f   : > { %v6362_v58 = vpop.permute.xlu1 %6361  ;;  %v4278_v32 = vpack.c.bf16 %v4215_v20, %v4214_v5 }
0x1610   : > { %v6364_v13 = vunpack.i.h.bf16 %v6362_v58  ;;  %v6363_v53 = vunpack.i.l.bf16 %v6362_v58  ;;  %4328 = vrot.lane.b32.xlu1 %v4279_v12, %s6651_s30  ;;  %v4285_v18 = vpack.c.bf16 %v6389_v2, %v6388_v6 }
0x1611   : > { %4326 = vrot.lane.b32.xlu0 %v4278_v32, %s6651_s30  ;;  %v4319_v61 = vpop.permute.xlu0 %4318 }
0x1612   : > { %v4232_v17 = vsel %vm3858_vm6, %v6363_v53, %v6364_v13  ;;  %v4281_v37 = vpack.c.bf16 %v6369_v21, %v6364_v13  ;;  %v4412_v21 = vld [vmem:[%s9199_s9] sm:$0xff]  ;;  %vm9447_vm6 = vmmov %vm9443_vm14 }
0x1613   : > { %v6372_v57 = vpop.permute.xlu1 %6371  ;;  %v4280_v47 = vpack.c.bf16 %v4233_v31, %v4232_v17 }
0x1614   : > { %v6374_v27 = vunpack.i.h.bf16 %v6372_v57  ;;  %v6373_v49 = vunpack.i.l.bf16 %v6372_v57  ;;  %4332 = vrot.lane.b32.xlu1 %v4281_v37, %s6651_s30  ;;  %v6590_v57 = vld [vmem:[%s9198_s8 + $0x14] ss:$8 sps:$4 sm:$0xff]  }
0x1615   : > { %4330 = vrot.lane.b32.xlu0 %v4280_v47, %s6651_s30  ;;  %v6592_v47 = vld [vmem:[%s9198_s8 + $0x10] ss:$8 sps:$4 sm:$0xff]  }
0x1616   : > { %v4282_v38 = vpack.c.bf16 %v6374_v27, %v6373_v49 }
0x1617   : > { %v6382_v4 = vpop.permute.xlu1 %6381 }
0x1618   : > { %v6384_v1 = vunpack.i.h.bf16 %v6382_v4  ;;  %v6383_v26 = vunpack.i.l.bf16 %v6382_v4  ;;  %4336 = vrot.lane.b32.xlu1 %v4283_v63, %s6651_s30  ;;  %v4426_v4 = vld [vmem:[%s9204_s14] sm:$0xf] }
0x1619   : > { %4334 = vrot.lane.b32.xlu0 %v4282_v38, %s6651_s30 }
0x161a   : > { %v4284_v24 = vpack.c.bf16 %v6384_v1, %v6383_v26 }
0x161b   : > { %v6392_v34 = vpop.permute.xlu1 %6391 }
0x161c   : > { %v6394_v55 = vunpack.i.h.bf16 %v6392_v34  ;;  %v6393_v15 = vunpack.i.l.bf16 %v6392_v34  ;;  %4340 = vrot.lane.b32.xlu1 %v4285_v18, %s6651_s30 }
0x161d   : > { %4338 = vrot.lane.b32.xlu0 %v4284_v24, %s6651_s30 }
0x161e   : > { %v4286_v29 = vpack.c.bf16 %v6394_v55, %v6393_v15 }
0x161f   : > { %v4321_v22 = vpop.permute.xlu1 %4320 }
0x1620   : > { %v4344_v46 = vsel %vm3908_vm2, %v4319_v61, %v4321_v22  ;;  %4415 = vperm.xlu1 %6395, %v4412_v21  }
0x1621   : > { %4364 = vmatpush1.bf16.msra.mxu1 %v4344_v46  ;;  %4342 = vrot.lane.b32.xlu0 %v4286_v29, %s6651_s30  ;;  %s9440_s30 = smov 127  }
0x1622   : > { %4365 = vmatprep.subr.bf16.mxu1 %v6634_v8 }
0x167e   : > { %v4325_v35 = vpop.permute.xlu1 %4324 }
0x167f   : > { %v4323_v59 = vpop.permute.xlu0 %4322 }
0x1680   : > { %v4345_v20 = vsel %vm3908_vm2, %v4323_v59, %v4325_v35 }
0x1681   : > { %4366 = vmatpush1.bf16.msra.mxu1 %v4345_v20 }
0x1682   : > { %v4329_v5 = vpop.permute.xlu1 %4328  ;;  %4367 = vmatprep.subr.bf16.mxu1 %v6634_v8 }
0x1683   : > { %v4327_v12 = vpop.permute.xlu0 %4326 }
0x1684   : > { %v4346_v58 = vsel %vm3908_vm2, %v4327_v12, %v4329_v5 }
0x1685   : > { %4368 = vmatpush1.bf16.msra.mxu1 %v4346_v58 }
0x1686   : > { %v4333_v32 = vpop.permute.xlu1 %4332  ;;  %4369 = vmatprep.subr.bf16.mxu1 %v6634_v8 }
0x1687   : > { %v4331_v13 = vpop.permute.xlu0 %4330 }
0x1688   : > { %v4347_v53 = vsel %vm3908_vm2, %v4331_v13, %v4333_v32  ;;  %vm9449_vm2 = vmmov %vm9445_vm9 }
0x1689   : > { %4370 = vmatpush1.bf16.msra.mxu1 %v4347_v53 }
0x168a   : > { %4371 = vmatprep.subr.bf16.mxu1 %v6634_v8  ;;  %v4337_v14 = vpop.permute.xlu1 %4336 }
0x168b   : > { %v4335_v31 = vpop.permute.xlu0 %4334 }
0x168d   : > { %4372 = vmatpush1.bf16.msra.mxu1 %v4335_v31 }
0x168e   : > { %4373 = vmatprep.subr.bf16.mxu1 %v6634_v8  ;;  %v4341_v17 = vpop.permute.xlu1 %4340 }
0x168f   : > { %v4339_v60 = vpop.permute.xlu0 %4338 }
0x1691   : > { %4374 = vmatpush1.bf16.msra.mxu1 %v4337_v14 }
0x1692   : > { %4375 = vmatprep.subr.bf16.mxu1 %v6634_v8 }
0x1693   : > { %v4343_v37 = vpop.permute.xlu0 %4342 }
0x1695   : > { %4376 = vmatpush1.bf16.msra.mxu1 %v4339_v60  ;;  %v4682_v60 = vsel %vm1606_vm12, %v4426_v4, 0 }
0x1696   : > { %4377 = vmatprep.subr.bf16.mxu1 %v6634_v8 }
0x1699   : > { %4378 = vmatpush1.bf16.msra.mxu1 %v4341_v17 }
0x169a   : > { %4379 = vmatprep.subr.bf16.mxu1 %v6634_v8  ;;  %v5498_v8 = vld [vmem:[%s9204_s14 + $0x4] sm:$0xf] }
0x169b   : > { %5689 = vmatprep.subr.msk.bf16.mxu0 %vm1606_vm12, %v5498_v8  ;;  %v4558_v27 = vsel %vm1606_vm12, %v5498_v8, 0 }
0x169c   : > { %5638 = vmatpush3.bf16.msra.mxu0 %v4558_v27 }
0x169d   : > { %4380 = vmatpush1.bf16.msra.mxu1 %v4343_v37  ;;  %5690 = vmatprep.subr.msk.bf16.mxu0 %vm1606_vm12, %v4426_v4  ;;  %vm9437_vm12 = vmmov %vm9432_vm5 }
0x169f   : > { %v4416_v38 = vpop.permute.xlu1 %4415 }
0x16a0   : > { %4396 = vmatmul.mubr.bf16.vlgmr.msra.gmra.mrb[28].mxu1 %v6589_v23 }
0x16a1   : > { %5497 = vmatprep.mubr.msk.bf16.mxu1 %vm9433_vm13, %v6590_v57 }
0x16a8   : > { %4404 = vmatmul.mubr.bf16.gmra.mrb[32].mxu1 %v6592_v47 }
0x1773   : > { %v4397_v49 = vpop.f32.mrb[28].mxu1 }
0x1774   : > { %v4399_v63 = vpop.f32.mrb[29].mxu1  ;;  %v4418_v1 = vadd.f32 %v4416_v38, %v4397_v49 }
0x1775   : > { %v4400_v2 = vpop.f32.mrb[30].mxu1 }
0x1776   : > { %v4402_v6 = vpop.f32.mrb[31].mxu1  ;;  %v4420_v26 = vadd.f32 %v4416_v38, %v4400_v2  ;;  %v4419_v15 = vmax.f32 %v4418_v1, 0.0 }
0x1778   : > { %v4421_v22 = vmax.f32 %v4420_v26, 0.0 }
0x177b   : > { %v4405_v18 = vpop.f32.mrb[32].mxu1 }
0x177c   : > { %v4422_v24 = vadd.f32 %v4416_v38, %v4405_v18  ;;  %v4407_v34 = vpop.f32.mrb[33].mxu1 }
0x177d   : > { %v4408_v55 = vpop.f32.mrb[34].mxu1 }
0x177e   : > { %v4423_v44 = vmax.f32 %v4422_v24, 0.0  ;;  %v4424_v29 = vadd.f32 %v4416_v38, %v4408_v55  ;;  %v4410_v61 = vpop.f32.mrb[35].mxu1 }
0x1780   : > { %v4425_v46 = vmax.f32 %v4424_v29, 0.0  ;;  %v6431_v21 = vpack.i.bf16 %v4423_v44, %v4419_v15  ;;  %v4473_v20 = vpack.c.bf16 %v4423_v44, %v4419_v15 }
0x1782   : > { %v6401_v35 = vpack.i.bf16 %v4425_v46, %v4421_v22  ;;  %v4525_v59 = vpack.c.bf16 %v4425_v46, %v4421_v22 }
0x1784   : > { %6402 = vrot.lane.b32.xlu1 %v6401_v35, %s9430_s25  ;;  %6397 = vrot.lane.b32.xlu0 %v6401_v35, %s6653_s23 }
0x1785   : > { %5639 = vmatprep.mubr.msk.bf16.mxu0 %vm3755_vm7, %v4525_v59 }
0x1788   : > { %6412 = vrot.lane.b32.xlu1 %v6401_v35, %s9434_s21  ;;  %6407 = vrot.lane.b32.xlu0 %v6401_v35, %s6657_s16 }
0x178c   : > { %6422 = vrot.lane.b32.xlu1 %v6401_v35, %s9435_s24  ;;  %6417 = vrot.lane.b32.xlu0 %v6401_v35, %s6658_s22 }
0x1790   : > { %6432 = vrot.lane.b32.xlu1 %v6431_v21, %s6653_s23  ;;  %6427 = vrot.lane.b32.xlu0 %v6401_v35, %s6659_s26  ;;  %s9436_s23 = smov 32  }
0x1794   : > { %6442 = vrot.lane.b32.xlu1 %v6431_v21, %s6657_s16  ;;  %6437 = vrot.lane.b32.xlu0 %v6431_v21, %s9430_s25 }
0x1798   : > { %6452 = vrot.lane.b32.xlu1 %v6431_v21, %s6658_s22  ;;  %6447 = vrot.lane.b32.xlu0 %v6431_v21, %s9434_s21  ;;  %s9500_s22 = sshll.u32 %s9502_s19, 6 }
0x179c   : > { %6462 = vrot.lane.b32.xlu1 %v6431_v21, %s6659_s26  ;;  %6457 = vrot.lane.b32.xlu0 %v6431_v21, %s9435_s24 }
0x17f6   : > { %v6403_v5 = vpop.permute.xlu1 %6402  ;;  %v6398_v12 = vpop.permute.xlu0 %6397 }
0x17f7   : > { %v6405_v58 = vunpack.i.h.bf16 %v6403_v5  ;;  %v6404_v32 = vunpack.i.l.bf16 %v6403_v5  ;;  %v6400_v13 = vunpack.i.h.bf16 %v6398_v12  ;;  %v6399_v53 = vunpack.i.l.bf16 %v6398_v12 }
0x17f9   : > { %v4527_v31 = vpack.c.bf16 %v6405_v58, %v6404_v32  ;;  %v4526_v14 = vpack.c.bf16 %v6400_v13, %v6399_v53 }
0x17fa   : > { %v6408_v17 = vpop.permute.xlu0 %6407  ;;  %v6413_v37 = vpop.permute.xlu1 %6412 }
0x17fb   : > { %5640 = vmatmul.mubr.msk.bf16.vlgmr.msra.gmra.mrb[44].mxu0 %vm3755_vm7, %v4526_v14  ;;  %v6410_v23 = vunpack.i.h.bf16 %v6408_v17  ;;  %v6409_v57 = vunpack.i.l.bf16 %v6408_v17  ;;  %v6415_v47 = vunpack.i.h.bf16 %v6413_v37  ;;  %v6414_v8 = vunpack.i.l.bf16 %v6413_v37 }
0x17fc   : > { %5656 = vmatpush3.bf16.msra.mxu0 %v4682_v60  ;;  %5643 = vmatprep.mubr.msk.bf16.mxu0 %vm3755_vm7, %v4527_v31 }
0x17fd   : > { %v4528_v27 = vpack.c.bf16 %v6410_v23, %v6409_v57  ;;  %v4529_v49 = vpack.c.bf16 %v6415_v47, %v6414_v8 }
0x17fe   : > { %v6418_v63 = vpop.permute.xlu0 %6417  ;;  %v6423_v2 = vpop.permute.xlu1 %6422 }
0x17ff   : > { %v6420_v6 = vunpack.i.h.bf16 %v6418_v63  ;;  %v6419_v38 = vunpack.i.l.bf16 %v6418_v63  ;;  %v6425_v4 = vunpack.i.h.bf16 %v6423_v2  ;;  %v6424_v1 = vunpack.i.l.bf16 %v6423_v2 }
0x1801   : > { %v4530_v26 = vpack.c.bf16 %v6420_v6, %v6419_v38  ;;  %v4531_v18 = vpack.c.bf16 %v6425_v4, %v6424_v1 }
0x1802   : > { %v6428_v24 = vpop.permute.xlu0 %6427  ;;  %v6433_v44 = vpop.permute.xlu1 %6432 }
0x1803   : > { %5644 = vmatmul.mubr.msk.bf16.gmra.mrb[48].mxu0 %vm3755_vm7, %v4528_v27  ;;  %v6430_v34 = vunpack.i.h.bf16 %v6428_v24  ;;  %v6429_v55 = vunpack.i.l.bf16 %v6428_v24  ;;  %v6435_v61 = vunpack.i.h.bf16 %v6433_v44  ;;  %v6434_v22 = vunpack.i.l.bf16 %v6433_v44 }
0x1804   : > { %5647 = vmatprep.mubr.msk.bf16.mxu0 %vm3755_vm7, %v4529_v49 }
0x1805   : > { %v4532_v15 = vpack.c.bf16 %v6430_v34, %v6429_v55  ;;  %v4474_v35 = vpack.c.bf16 %v6435_v61, %v6434_v22 }
0x1806   : > { %v6438_v29 = vpop.permute.xlu0 %6437  ;;  %v6443_v59 = vpop.permute.xlu1 %6442 }
0x1807   : > { %v6440_v46 = vunpack.i.h.bf16 %v6438_v29  ;;  %v6439_v21 = vunpack.i.l.bf16 %v6438_v29  ;;  %v6445_v58 = vunpack.i.h.bf16 %v6443_v59  ;;  %v6444_v32 = vunpack.i.l.bf16 %v6443_v59 }
0x1809   : > { %v4475_v5 = vpack.c.bf16 %v6440_v46, %v6439_v21  ;;  %v4476_v31 = vpack.c.bf16 %v6445_v58, %v6444_v32  ;;  %v8922_v46 = vld [vmem:[#allocation3] sm:$0xff]  ;;  %v8932_v58 = vld [vmem:[#allocation3 + $0x28] sm:$0xff] }
0x180a   : > { %v6448_v12 = vpop.permute.xlu0 %6447  ;;  %v6453_v14 = vpop.permute.xlu1 %6452  ;;  %v6471_v21 = vpack.i.bf16 %v8922_v46, %v8922_v46  ;;  %v4877_v32 = vmul.f32 %v8932_v58, %v8398_v50 }
0x180b   : > { %5648 = vmatmul.mubr.msk.bf16.gmra.mrb[52].mxu0 %vm3755_vm7, %v4530_v26  ;;  %v6450_v13 = vunpack.i.h.bf16 %v6448_v12  ;;  %v6449_v53 = vunpack.i.l.bf16 %v6448_v12  ;;  %v6455_v17 = vunpack.i.h.bf16 %v6453_v14  ;;  %v6454_v37 = vunpack.i.l.bf16 %v6453_v14 }
0x180c   : > { %5651 = vmatprep.mubr.msk.bf16.mxu0 %vm3755_vm7, %v4531_v18 }
0x180d   : > { %v4477_v60 = vpack.c.bf16 %v6450_v13, %v6449_v53  ;;  %v4478_v47 = vpack.c.bf16 %v6455_v17, %v6454_v37  ;;  %v4879_v53 = vmul.f32 %v8922_v46, %v8369_v25  ;;  %v4883_v17 = vmul.f32 %v8932_v58, %v8382_v62 }
0x180e   : > { %v6463_v8 = vpop.permute.xlu1 %6462 }
0x180f   : > { %v6465_v49 = vunpack.i.h.bf16 %v6463_v8  ;;  %v6464_v63 = vunpack.i.l.bf16 %v6463_v8 }
0x1811   : > { %v4480_v2 = vpack.c.bf16 %v6465_v49, %v6464_v63 }
0x1813   : > { %5652 = vmatmul.mubr.msk.bf16.gmra.mrb[56].mxu0 %vm3755_vm7, %v4532_v15 }
0x1814   : > { %5657 = vmatprep.mubr.msk.bf16.mxu0 %vm3755_vm7, %v4473_v20  ;;  %v6458_v20 = vpop.permute.xlu0 %6457 }
0x1815   : > { %v6460_v23 = vunpack.i.h.bf16 %v6458_v20  ;;  %v6459_v57 = vunpack.i.l.bf16 %v6458_v20 }
0x1817   : > { %v4479_v27 = vpack.c.bf16 %v6460_v23, %v6459_v57 }
0x181b   : > { %5658 = vmatmul.mubr.msk.bf16.vlgmr.msra.gmra.mrb[44].mxu0 %vm3755_vm7, %v4474_v35 }
0x181c   : > { %5661 = vmatprep.mubr.msk.bf16.mxu0 %vm3755_vm7, %v4475_v5  ;;  %v8926_v5 = vld [vmem:[#allocation3 + $0x30] sm:$0xff] }
0x181d   : > { %v4878_v12 = vmul.f32 %v8926_v5, %v8375_v16  ;;  %v6496_v14 = vpack.i.bf16 %v8926_v5, %v8932_v58  ;;  %v4884_v20 = vmul.f32 %v8926_v5, %v8367_v43  ;;  %v6556_v10 = vpack.i.bf16 %v8922_v46, %v8926_v5 }
0x181f   : > { %v6476_v13 = vpack.i.bf16 %v4878_v12, %v4877_v32  ;;  %v6486_v37 = vpack.i.bf16 %v4884_v20, %v4883_v17  ;;  %v4867_v12 = vmul.f32 %v8922_v46, %v8463_v39 }
0x1823   : > { %5662 = vmatmul.mubr.msk.bf16.gmra.mrb[48].mxu0 %vm3755_vm7, %v4476_v31  ;;  %v6491_v31 = vpack.i.bf16 %v4879_v53, %v4879_v53 }
0x1824   : > { %5665 = vmatprep.mubr.msk.bf16.mxu0 %vm3755_vm7, %v4477_v60  ;;  %v4873_v60 = vmul.f32 %v8922_v46, %v8330_v7 }
0x1826   : > { %v6481_v25 = vpack.i.bf16 %v4873_v60, %v4873_v60 }
0x182b   : > { %5666 = vmatmul.mubr.msk.bf16.gmra.mrb[52].mxu0 %vm3755_vm7, %v4478_v47 }
0x182c   : > { %5669 = vmatprep.mubr.msk.bf16.mxu0 %vm3755_vm7, %v4479_v27 }
0x1833   : > { %5670 = vmatmul.mubr.msk.bf16.gmra.mrb[56].mxu0 %vm3755_vm7, %v4480_v2  ;;  %vm9439_vm7 = vmmov %vm9432_vm5 }
0x1834   : > { %vm9450_vm5 = vmmov %vm9446_vm3 }
0x18ee   : > { %v5659_v6 = vpop.f32.mrb[44].mxu0 }
0x18ef   : > { %4788 = vrot.lane.b32.xlu0 %v5659_v6, %s9436_s23  ;;  %v4718_v38 = vpop.f32.mrb[45].mxu0 }
0x18f0   : > { %4781 = vst.msk [vmem:[#allocation3 + $0x8] sm:$0xff] %vm9437_vm12, %v4718_v38  ;;  %v5660_v4 = vpop.f32.mrb[46].mxu0  ;;  %vm9464_vm12 = vcmask 777216  }
0x18f1   : > { %v4721_v1 = vpop.f32.mrb[47].mxu0 }
0x18f3   : > { %4793 = vrot.lane.b32.xlu0 %v5660_v4, %s9427_s29 }
0x18f6   : > { %v5663_v26 = vpop.f32.mrb[48].mxu0 }
0x18f7   : > { %4783 = vrot.lane.b32.xlu0 %v4721_v1, %s9426_s20  ;;  %v4734_v18 = vpop.f32.mrb[49].mxu0 }
0x18f8   : > { %v5664_v24 = vpop.f32.mrb[50].mxu0 }
0x18f9   : > { %v4737_v34 = vpop.f32.mrb[51].mxu0 }
0x18fb   : > { %4808 = vrot.lane.b32.xlu0 %v5663_v26, %s9434_s21 }
0x18fe   : > { %v5667_v55 = vpop.f32.mrb[52].mxu0 }
0x18ff   : > { %4798 = vrot.lane.b32.xlu0 %v4734_v18, %s9438_s27  ;;  %4824 = vrot.lane.b32.xlu1 %v5667_v55, %s9436_s23  ;;  %v4750_v15 = vpop.f32.mrb[53].mxu0 }
0x1900   : > { %4817 = vst.msk [vmem:[#allocation3 + $0x10] sm:$0xff] %vm9439_vm7, %v4750_v15  ;;  %v5668_v44 = vpop.f32.mrb[54].mxu0  ;;  %vm9465_vm7 = vcmask 138240  }
0x1901   : > { %v4753_v29 = vpop.f32.mrb[55].mxu0 }
0x1903   : > { %4803 = vrot.lane.b32.xlu0 %v4737_v34, %s9435_s24  ;;  %4829 = vrot.lane.b32.xlu1 %v5668_v44, %s9427_s29  ;;  %s9441_s29 = smov 126  }
0x1906   : > { %v5671_v61 = vpop.f32.mrb[56].mxu0 }
0x1907   : > { %4813 = vrot.lane.b32.xlu0 %v5664_v24, %s9430_s25  ;;  %4819 = vrot.lane.b32.xlu1 %v4753_v29, %s9426_s20  ;;  %v4766_v22 = vpop.f32.mrb[57].mxu0  ;;  %s9442_s20 = smov 111  }
0x1908   : > { %v5672_v35 = vpop.f32.mrb[58].mxu0 }
0x1909   : > { %v4769_v59 = vpop.f32.mrb[59].mxu0 }
0x190b   : > { %6472 = vrot.lane.b32.xlu0 %v6471_v21, %s9440_s30  ;;  %4844 = vrot.lane.b32.xlu1 %v5671_v61, %s9434_s21  ;;  %v4872_v21 = vmul.f32 %v8926_v5, %v8475_v41 }
0x190f   : > { %6477 = vrot.lane.b32.xlu0 %v6476_v13, %s9441_s29  ;;  %4834 = vrot.lane.b32.xlu1 %v4766_v22, %s9438_s27  ;;  %s494_s27 = scalar_lea.vmem %s9205_s15, %s9500_s22 }
0x1913   : > { %6492 = vrot.lane.b32.xlu0 %v6491_v31, %s9430_s25  ;;  %4839 = vrot.lane.b32.xlu1 %v4769_v59, %s9435_s24 }
0x1917   : > { %6497 = vrot.lane.b32.xlu0 %v6496_v14, %s9442_s20  ;;  %4849 = vrot.lane.b32.xlu1 %v5672_v35, %s9430_s25 }
0x191b   : > { %6467 = vrot.lane.b32.xlu1 %v6496_v14, %s9440_s30 }
0x191f   : > { %6482 = vrot.lane.b32.xlu1 %v6481_v25, %s9441_s29 }
0x1923   : > { %6487 = vrot.lane.b32.xlu1 %v6486_v37, %s9430_s25 }
0x1961   : > { %v4789_v23 = vpop.permute.xlu0 %4788 }
0x1965   : > { %v4794_v57 = vpop.permute.xlu0 %4793 }
0x1969   : > { %v4784_v47 = vpop.permute.xlu0 %4783 }
0x196a   : > { %4786 = vst.msk [vmem:[#allocation3 + $0x8] sm:$0xff] %vm2951_vm10, %v4784_v47 }
0x196b   : > { %4791 = vst.msk [vmem:[#allocation3 + $0x8] sm:$0xff] %vm2957_vm11, %v4789_v23 }
0x196c   : > { %4796 = vst.msk [vmem:[#allocation3 + $0x8] sm:$0xff] %vm2963_vm15, %v4794_v57 }
0x196d   : > { %v4809_v7 = vpop.permute.xlu0 %4808 }
0x1971   : > { %v4799_v8 = vpop.permute.xlu0 %4798  ;;  %v4825_v27 = vpop.permute.xlu1 %4824 }
0x1972   : > { %4801 = vst.msk [vmem:[#allocation3 + $0x8] sm:$0xff] %vm9443_vm14, %v4799_v8  ;;  %vm9466_vm14 = vcmask 900096  }
0x1975   : > { %v4804_v49 = vpop.permute.xlu0 %4803  ;;  %v4830_v63 = vpop.permute.xlu1 %4829 }
0x1976   : > { %4806 = vst.msk [vmem:[#allocation3 + $0x8] sm:$0xff] %vm9444_vm4, %v4804_v49  ;;  %vm9467_vm4 = vmmov %vm9464_vm12 }
0x1977   : > { %4811 = vst.msk [vmem:[#allocation3 + $0x8] sm:$0xff] %vm9445_vm9, %v4809_v7  ;;  %vm9468_vm9 = vmmov %vm9466_vm14 }
0x1979   : > { %v4814_v2 = vpop.permute.xlu0 %4813  ;;  %v4820_v6 = vpop.permute.xlu1 %4819 }
0x197a   : > { %4816 = vst.msk [vmem:[#allocation3 + $0x8] sm:$0xff] %vm9446_vm3, %v4814_v2  ;;  %vm9469_vm3 = vmmov %vm9468_vm9 }
0x197b   : > { %4822 = vst.msk [vmem:[#allocation3 + $0x10] sm:$0xff] %vm2951_vm10, %v4820_v6  ;;  %vm9458_vm10 = vcmask 916480  }
0x197c   : > { %4827 = vst.msk [vmem:[#allocation3 + $0x10] sm:$0xff] %vm2957_vm11, %v4825_v27  ;;  %vm9459_vm11 = vmmov %vm9458_vm10 }
0x197d   : > { %4832 = vst.msk [vmem:[#allocation3 + $0x10] sm:$0xff] %vm2963_vm15, %v4830_v63  ;;  %v4845_v38 = vpop.permute.xlu1 %4844  ;;  %vm9460_vm15 = vcmask 908288  }
0x197e   : > { %vm9461_vm13 = vmmov %vm9460_vm15 }
0x1981   : > { %v4835_v4 = vpop.permute.xlu1 %4834  ;;  %v4860_v18 = vld [vmem:[#allocation3 + $0x8] sm:$0xff] }
0x1982   : > { %4837 = vst.msk [vmem:[#allocation3 + $0x10] sm:$0xff] %vm9447_vm6, %v4835_v4  ;;  %v4874_v15 = vmul.f32 %v4860_v18, %v8398_v50  ;;  %v4880_v61 = vmul.f32 %v4860_v18, %v8382_v62  ;;  %v6551_v62 = vpack.i.bf16 %v8932_v58, %v8922_v46  ;;  %vm9470_vm6 = vmmov %vm9465_vm7 }
0x1985   : > { %v4840_v1 = vpop.permute.xlu1 %4839 }
0x1986   : > { %4842 = vst.msk [vmem:[#allocation3 + $0x10] sm:$0xff] %vm9448_vm0, %v4840_v1  ;;  %vm9471_vm0 = vcmask 785408  }
0x1987   : > { %4847 = vst.msk [vmem:[#allocation3 + $0x10] sm:$0xff] %vm9449_vm2, %v4845_v38  ;;  %vm9472_vm2 = vmmov %vm9469_vm3 }
0x1989   : > { %v4850_v26 = vpop.permute.xlu1 %4849 }
0x198a   : > { %4852 = vst.msk [vmem:[#allocation3 + $0x10] sm:$0xff] %vm9450_vm5, %v4850_v26  ;;  %vm9473_vm5 = vmmov %vm9471_vm0 }
0x198d   : > { %v6468_v32 = vpop.permute.xlu1 %6467 }
0x198e   : > { %v6469_v53 = vunpack.i.l.bf16 %v6468_v32 }
0x1991   : > { %v4861_v24 = vld [vmem:[#allocation3 + $0x10] sm:$0xff] }
0x1992   : > { %v6511_v34 = vpack.i.bf16 %v4861_v24, %v4860_v18  ;;  %v4875_v55 = vmul.f32 %v8375_v16, %v4861_v24  ;;  %v4881_v29 = vmul.f32 %v8367_v43, %v4861_v24  ;;  %v4886_v16 = vmul.f32 %v4861_v24, %v8402_v30 }
0x1993   : > { %v9451_v43 = vpack.i.bf16 %v8408_v3, %v8434_v42  ;;  %v4892_v28 = vmul.f32 %v4861_v24, %v8419_v40  ;;  %v4891_v30 = vmul.f32 %v8389_v52, %v4860_v18  ;;  %v4898_v42 = vmul.f32 %v4861_v24, %v8428_v19 }
0x1994   : > { %6512 = vrot.lane.b32.xlu1 %v6511_v34, %s9442_s20  ;;  %6502 = vrot.lane.b32.xlu0 %v6511_v34, %s9440_s30  ;;  %v6516_v44 = vpack.i.bf16 %v4875_v55, %v4874_v15  ;;  %v6531_v22 = vpack.i.bf16 %v4881_v29, %v4880_v61  ;;  %v4868_v40 = vmul.f32 %v4860_v18, %v8484_v56 }
0x1995   : > { %v6566_v48 = vpack.i.bf16 %v4892_v28, %v4891_v30  ;;  %v4869_v52 = vmul.f32 %v8475_v41, %v4861_v24  ;;  %v9455_v19 = vpack.i.bf16 %v8354_v45, %v8437_v54  ;;  %v5111_v54 = vpack.c.bf16 %v4867_v12, %v4867_v12 }
0x1997   : > { %v5113_v59 = vpack.c.bf16 %v4872_v21, %v4869_v52 }
0x1998   : > { %6507 = vrot.lane.b32.xlu0 %v6506_v11, %s9431_s28  ;;  %6517 = vrot.lane.b32.xlu1 %v6516_v44, %s9441_s29  ;;  %v4885_v11 = vmul.f32 %v8349_v36, %v4860_v18  ;;  %v4897_v36 = vmul.f32 %v8351_v0, %v4860_v18  ;;  %v9456_v0 = vpack.i.bf16 %v8361_v51, %v8354_v45  ;;  %v6473_v45 = vpop.permute.xlu0 %6472 }
0x1999   : > { %v6475_v5 = vunpack.i.h.bf16 %v6473_v45  ;;  %v6474_v31 = vunpack.i.l.bf16 %v6473_v45 }
0x199a   : > { %v6541_v50 = vpack.i.bf16 %v4886_v16, %v4885_v11  ;;  %v6571_v3 = vpack.i.bf16 %v4898_v42, %v4897_v36 }
0x199b   : > { %v4923_v60 = vsel %vm860_vm1, %v6475_v5, %v6469_v53 }
0x199c   : > { %6532 = vrot.lane.b32.xlu0 %v6531_v22, %s9430_s25  ;;  %6522 = vrot.lane.b32.xlu1 %v6521_v9, %s9431_s28  ;;  %s9453_s25 = smov 95   ;;  %v4871_v9 = vmul.f32 %v8932_v58, %v8484_v56  ;;  %v9028_v51 = vpop.permute.xlu0 %6477  ;;  %v6483_v58 = vpop.permute.xlu1 %6482 }
0x199d   : > { %v6485_v20 = vunpack.i.h.bf16 %v6483_v58  ;;  %v6479_v57 = vunpack.i.l.bf16 %v9028_v51  ;;  %v6484_v47 = vunpack.i.l.bf16 %v6483_v58 }
0x199e   : > { %v5112_v35 = vpack.c.bf16 %v4871_v9, %v4868_v40  ;;  %v6480_v40 = vunpack.i.h.bf16 %v9028_v51 }
0x199f   : > { %v4951_v49 = vsel %vm1083_vm8, %v6485_v20, %v6479_v57 }
0x19a0   : > { %6537 = vrot.lane.b32.xlu0 %v9451_v43, %s9434_s21  ;;  %6527 = vrot.lane.b32.xlu1 %v9452_v33, %s9434_s21  ;;  %v6493_v56 = vpop.permute.xlu0 %6492  ;;  %v9032_v41 = vpop.permute.xlu1 %6487 }
0x19a1   : > { %v6489_v8 = vunpack.i.l.bf16 %v9032_v41  ;;  %v6495_v27 = vunpack.i.h.bf16 %v6493_v56  ;;  %v6494_v38 = vunpack.i.l.bf16 %v6493_v56 }
0x19a3   : > { %v4979_v55 = vsel %vm9458_vm10, %v6495_v27, %v6489_v8 }
0x19a4   : > { %6552 = vrot.lane.b32.xlu0 %v6551_v62, %s9453_s25  ;;  %6542 = vrot.lane.b32.xlu1 %v6541_v50, %s9431_s28  ;;  %s9457_s28 = smov 17   ;;  %v9030_v13 = vpop.permute.xlu0 %6497 }
0x19a5   : > { %v6500_v44 = vunpack.i.h.bf16 %v9030_v13  ;;  %v6499_v29 = vunpack.i.l.bf16 %v9030_v13 }
0x19a7   : > { %v4996_v11 = vsel %vm9461_vm13, %v6499_v29, %v6500_v44  ;;  %vm9477_vm13 = vmmov %vm9467_vm4 }
0x19a8   : > { %6567 = vrot.lane.b32.xlu0 %v6566_v48, %s9434_s21  ;;  %6547 = vrot.lane.b32.xlu1 %v6511_v34, %s9453_s25  ;;  %v6470_v34 = vunpack.i.h.bf16 %v6468_v32 }
0x19ac   : > { %6572 = vrot.lane.b32.xlu0 %v6571_v3, %s9454_s17  ;;  %6557 = vrot.lane.b32.xlu1 %v6556_v10, %s9453_s25  ;;  %v4924_v3 = vsel %vm860_vm1, %v6469_v53, %v6470_v34  ;;  %v6490_v10 = vunpack.i.h.bf16 %v9032_v41 }
0x19b0   : > { %6577 = vrot.lane.b32.xlu0 %v9455_v19, %s9454_s17  ;;  %6562 = vrot.lane.b32.xlu1 %v9456_v0, %s9454_s17 }
0x19b4   : > { %5209 = vrot.lane.b32.xlu1 %v5112_v35, %s9457_s28  ;;  %5211 = vrot.lane.b32.xlu0 %v5113_v59, %s9457_s28  ;;  %v4952_v35 = vsel %vm1083_vm8, %v6479_v57, %v6480_v40 }
0x19b8   : > { %5207 = vrot.lane.b32.xlu1 %v5111_v54, %s9457_s28 }
0x1a06   : > { %v6503_v39 = vpop.permute.xlu0 %6502  ;;  %v9034_v46 = vpop.permute.xlu1 %6512 }
0x1a07   : > { %v6504_v14 = vunpack.i.l.bf16 %v6503_v39  ;;  %v6505_v4 = vunpack.i.h.bf16 %v6503_v39  ;;  %v6515_v18 = vunpack.i.h.bf16 %v9034_v46  ;;  %v6514_v24 = vunpack.i.l.bf16 %v9034_v46 }
0x1a09   : > { %v4921_v25 = vsel %vm860_vm1, %v6474_v31, %v6504_v14  ;;  %v5116_v43 = vpack.c.bf16 %v6470_v34, %v6505_v4  ;;  %v4995_v33 = vsel %vm9460_vm15, %v6514_v24, %v6515_v18  ;;  %v5125_v62 = vpack.c.bf16 %v6500_v44, %v6515_v18  ;;  %vm9476_vm15 = vmmov %vm9471_vm0 }
0x1a0a   : > { %v5114_v17 = vpack.c.bf16 %v4923_v60, %v4921_v25  ;;  %v9038_v37 = vpop.permute.xlu0 %6507  ;;  %v6518_v23 = vpop.permute.xlu1 %6517  ;;  %v4922_v30 = vsel %vm860_vm1, %v6504_v14, %v6505_v4  ;;  %v5124_v48 = vpack.c.bf16 %v4996_v11, %v4995_v33  ;;  %v5123_v41 = vpack.c.bf16 %v6499_v29, %v6514_v24  ;;  %vm9462_vm1 = vmmov %vm9458_vm10 }
0x1a0b   : > { %v6519_v7 = vunpack.i.l.bf16 %v6518_v23  ;;  %v6520_v36 = vunpack.i.h.bf16 %v6518_v23  ;;  %v5115_v52 = vpack.c.bf16 %v4924_v3, %v4922_v30  ;;  %v6510_v32 = vunpack.i.h.bf16 %v9038_v37  ;;  %vm9474_vm10 = vmmov %vm9471_vm0 }
0x1a0c   : > { %5213 = vrot.lane.b32.xlu0 %v5114_v17, %s9457_s28  ;;  %v6509_v17 = vunpack.i.l.bf16 %v9038_v37 }
0x1a0d   : > { %v4949_v63 = vsel %vm1083_vm8, %v6484_v47, %v6519_v7  ;;  %v4950_v21 = vsel %vm1083_vm8, %v6519_v7, %v6520_v36  ;;  %v5119_v59 = vpack.c.bf16 %v6480_v40, %v6520_v36  ;;  %vm9463_vm8 = vmmov %vm9462_vm1 }
0x1a0e   : > { %v6533_v2 = vpop.permute.xlu0 %6532  ;;  %v9045_v6 = vpop.permute.xlu1 %6522  ;;  %v5117_v1 = vpack.c.bf16 %v4951_v49, %v4949_v63  ;;  %v5118_v51 = vpack.c.bf16 %v4952_v35, %v4950_v21  ;;  %v4980_v46 = vsel %vm9463_vm8, %v6489_v8, %v6490_v10  ;;  %vm9479_vm8 = vcmask 769024  }
0x1a0f   : > { %v6534_v26 = vunpack.i.l.bf16 %v6533_v2  ;;  %v6535_v42 = vunpack.i.h.bf16 %v6533_v2  ;;  %v6525_v57 = vunpack.i.h.bf16 %v9045_v6  ;;  %v6524_v47 = vunpack.i.l.bf16 %v9045_v6 }
0x1a10   : > { %5219 = vrot.lane.b32.xlu1 %v5117_v1, %s9457_s28 }
0x1a11   : > { %v4977_v15 = vsel %vm9459_vm11, %v6494_v38, %v6534_v26  ;;  %v5122_v9 = vpack.c.bf16 %v6490_v10, %v6535_v42  ;;  %v4978_v5 = vsel %vm9462_vm1, %v6534_v26, %v6535_v42  ;;  %v5024_v6 = vsel %vm9468_vm9, %v6524_v47, %v6525_v57  ;;  %vm9475_vm11 = vmmov %vm9467_vm4 }
0x1a12   : > { %v5120_v61 = vpack.c.bf16 %v4979_v55, %v4977_v15  ;;  %v9054_v22 = vpop.permute.xlu0 %6537  ;;  %v9056_v16 = vpop.permute.xlu1 %6527  ;;  %v5121_v23 = vpack.c.bf16 %v4980_v46, %v4978_v5  ;;  %v5023_v44 = vsel %vm9472_vm2, %v6510_v32, %v6524_v47  ;;  %vm9478_vm1 = vcmask 130048  }
0x1a13   : > { %v6530_v14 = vunpack.i.h.bf16 %v9056_v16  ;;  %v6539_v4 = vunpack.i.l.bf16 %v9054_v22  ;;  %v6540_v29 = vunpack.i.h.bf16 %v9054_v22 }
0x1a14   : > { %5225 = vrot.lane.b32.xlu0 %v5120_v61, %s9457_s28  ;;  %5217 = vrot.lane.b32.xlu1 %v5116_v43, %s9457_s28  ;;  %v6529_v61 = vunpack.i.l.bf16 %v9056_v16  ;;  %v6595_v16 = vld [vmem:[%s9200_s10 + $0x4] ss:$8 sps:$4 sm:$0xff]  }
0x1a15   : > { %v5051_v43 = vsel %vm9473_vm5, %v6530_v14, %v6539_v4  ;;  %v5052_v22 = vsel %vm9476_vm15, %v6539_v4, %v6540_v29  ;;  %5519 = vmatprep.mubr.msk.bf16.mxu1 %vm9478_vm1, %v6595_v16 }
0x1a16   : > { %v9062_v50 = vpop.permute.xlu0 %6552  ;;  %v6543_v28 = vpop.permute.xlu1 %6542 }
0x1a17   : > { %v6544_v12 = vunpack.i.l.bf16 %v6543_v28  ;;  %v6545_v31 = vunpack.i.h.bf16 %v6543_v28  ;;  %v6555_v60 = vunpack.i.h.bf16 %v9062_v50  ;;  %v6554_v28 = vunpack.i.l.bf16 %v9062_v50 }
0x1a18   : > { %5235 = vrot.lane.b32.xlu0 %v5125_v62, %s9457_s28  ;;  %5233 = vrot.lane.b32.xlu1 %v5124_v48, %s9457_s28 }
0x1a19   : > { %v5126_v56 = vpack.c.bf16 %v6510_v32, %v6544_v12  ;;  %v5022_v2 = vsel %vm9466_vm14, %v6545_v31, %v6509_v17  ;;  %v5021_v18 = vsel %vm9469_vm3, %v6544_v12, %v6545_v31  ;;  %v5139_v32 = vld [vmem:[%s9201_s11 + $0x8] sm:$0xff] }
0x1a1a   : > { %v9070_v19 = vpop.permute.xlu0 %6567  ;;  %v9072_v0 = vpop.permute.xlu1 %6547  ;;  %v5128_v24 = vpack.c.bf16 %v5024_v6, %v5022_v2  ;;  %v5127_v33 = vpack.c.bf16 %v5023_v44, %v5021_v18 }
0x1a1b   : > { %v6569_v53 = vunpack.i.l.bf16 %v9070_v19  ;;  %v6550_v25 = vunpack.i.h.bf16 %v9072_v0  ;;  %v6549_v20 = vunpack.i.l.bf16 %v9072_v0  ;;  %v6570_v38 = vunpack.i.h.bf16 %v9070_v19 }
0x1a1c   : > { %5215 = vrot.lane.b32.xlu0 %v5115_v52, %s9457_s28  ;;  %5229 = vrot.lane.b32.xlu1 %v5122_v9, %s9457_s28 }
0x1a1d   : > { %v5129_v27 = vpack.c.bf16 %v6530_v14, %v6569_v53  ;;  %v5073_v37 = vsel %vm9467_vm4, %v6549_v20, %v6550_v25  ;;  %v5049_v55 = vsel %vm9471_vm0, %v6569_v53, %v6570_v38  ;;  %v5050_v11 = vsel %vm9474_vm10, %v6570_v38, %v6529_v61  ;;  %vm9483_vm4 = vmmov %vm9470_vm6 }
0x1a1e   : > { %v9078_v54 = vpop.permute.xlu0 %6572  ;;  %v6558_v45 = vpop.permute.xlu1 %6557  ;;  %v5130_v62 = vpack.c.bf16 %v5051_v43, %v5049_v55  ;;  %v5131_v36 = vpack.c.bf16 %v5052_v22, %v5050_v11  ;;  %v5074_v3 = vsel %vm9477_vm13, %v6550_v25, %v6554_v28  ;;  %v5132_v9 = vpack.c.bf16 %v6555_v60, %v6549_v20  ;;  %vm9484_vm9 = vmmov %vm9483_vm4 }
0x1a1f   : > { %v6559_v39 = vunpack.i.l.bf16 %v6558_v45  ;;  %v6560_v15 = vunpack.i.h.bf16 %v6558_v45  ;;  %v6575_v50 = vunpack.i.h.bf16 %v9078_v54  ;;  %v6574_v10 = vunpack.i.l.bf16 %v9078_v54  ;;  %vm9485_vm3 = vmmov %vm9483_vm4 }
0x1a20   : > { %5223 = vrot.lane.b32.xlu0 %v5119_v59, %s9457_s28  ;;  %5221 = vrot.lane.b32.xlu1 %v5118_v51, %s9457_s28  ;;  %v5138_v51 = vld [vmem:[%s9201_s11] sm:$0xff]  ;;  %vm9487_vm0 = vmmov %vm9485_vm3 }
0x1a21   : > { %v5075_v49 = vsel %vm9464_vm12, %v6555_v60, %v6559_v39  ;;  %v5076_v30 = vsel %vm9475_vm11, %v6559_v39, %v6560_v15  ;;  %vm9480_vm12 = vmmov %vm9479_vm8 }
0x1a22   : > { %v9083_v58 = vpop.permute.xlu0 %6577  ;;  %v9085_v13 = vpop.permute.xlu1 %6562  ;;  %v5133_v1 = vpack.c.bf16 %v5075_v49, %v5073_v37  ;;  %v5134_v40 = vpack.c.bf16 %v5076_v30, %v5074_v3  ;;  %v5101_v21 = vsel %vm9480_vm12, %v6574_v10, %v6575_v50  ;;  %vm9488_vm2 = vmmov %vm9487_vm0  ;;  %v6593_v30 = vld [vmem:[%s9200_s10] ss:$8 sps:$4 sm:$0xff]  }
0x1a23   : > { %v6579_v48 = vunpack.i.l.bf16 %v9083_v58  ;;  %v6565_v42 = vunpack.i.h.bf16 %v9085_v13  ;;  %v6580_v52 = vunpack.i.h.bf16 %v9083_v58  ;;  %v6564_v19 = vunpack.i.l.bf16 %v9085_v13  ;;  %v5141_v58 = vld [vmem:[%s9201_s11 + $0x18] sm:$0xff]  ;;  %vm9489_vm5 = vmmov %vm9487_vm0 }
0x1a24   : > { %5237 = vrot.lane.b32.xlu0 %v5126_v56, %s9457_s28  ;;  %5231 = vrot.lane.b32.xlu1 %v5123_v41, %s9457_s28  ;;  %v5140_v56 = vld [vmem:[%s9201_s11 + $0x10] sm:$0xff]  ;;  %vm9490_vm10 = vmmov %vm9487_vm0 }
0x1a25   : > { %v5103_v0 = vsel %vm9479_vm8, %v6565_v42, %v6579_v48  ;;  %v5135_v45 = vpack.c.bf16 %v6565_v42, %v6574_v10  ;;  %vm9491_vm11 = vmmov %vm9487_vm0  ;;  %v6598_v42 = vld [vmem:[%s9200_s10 + $0x10] ss:$8 sps:$4 sm:$0xff]  }
0x1a26   : > { %v5212_v7 = vpop.permute.xlu0 %5211  ;;  %v5210_v8 = vpop.permute.xlu1 %5209  ;;  %v5136_v59 = vpack.c.bf16 %v5103_v0, %v5101_v21  ;;  %vm9492_vm15 = vmmov %vm9487_vm0 }
0x1a27   : > { %v5262_v63 = vsel %vm9465_vm7, %v5210_v8, %v5212_v7  ;;  %vm9481_vm7 = vmmov %vm9479_vm8 }
0x1a28   : > { %5303 = vmatprep.subr.bf16.mxu1 %v5262_v63  ;;  %5227 = vrot.lane.b32.xlu0 %v5121_v23, %s9457_s28  ;;  %v5104_v35 = vsel %vm9481_vm7, %v6579_v48, %v6580_v52  ;;  %vm9482_vm14 = vmmov %vm9481_vm7  ;;  %v6596_v48 = vld [vmem:[%s9200_s10 + $0x14] ss:$8 sps:$4 sm:$0xff]  }
0x1a29   : > { %5243 = vrot.lane.b32.xlu1 %v5129_v27, %s9457_s28  ;;  %v5102_v12 = vsel %vm9482_vm14, %v6575_v50, %v6564_v19  ;;  %vm9493_vm13 = vmmov %vm9487_vm0 }
0x1a2a   : > { %v5208_v26 = vpop.permute.xlu1 %5207  ;;  %v5137_v54 = vpack.c.bf16 %v5104_v35, %v5102_v12  ;;  %vm9494_vm1 = vmmov %vm9487_vm0 }
0x1a2b   : > { %v5261_v34 = vsel %vm9470_vm6, %v5208_v26, %v5210_v8  ;;  %vm9486_vm6 = vmmov %vm9485_vm3 }
0x1a2c   : > { %5304 = vmatpush1.bf16.msra.mxu1 %v5261_v34  ;;  %5251 = vrot.lane.b32.xlu0 %v5133_v1, %s9457_s28  ;;  %vm9495_vm8 = vmmov %vm9487_vm0 }
0x1a2d   : > { %5241 = vrot.lane.b32.xlu1 %v5128_v24, %s9457_s28  ;;  %vm9496_vm12 = vmmov %vm9487_vm0 }
0x1a2e   : > { %vm9497_vm7 = vmmov %vm9487_vm0 }
0x1a2f   : > { %vm9498_vm14 = vmmov %vm9487_vm0 }
0x1a30   : > { %5239 = vrot.lane.b32.xlu0 %v5127_v33, %s9457_s28 }
0x1a31   : > { %5245 = vrot.lane.b32.xlu1 %v5130_v62, %s9457_s28 }
0x1a34   : > { %5247 = vrot.lane.b32.xlu0 %v5131_v36, %s9457_s28 }
0x1a35   : > { %5253 = vrot.lane.b32.xlu1 %v5134_v40, %s9457_s28 }
0x1a38   : > { %5249 = vrot.lane.b32.xlu0 %v5132_v9, %s9457_s28 }
0x1a39   : > { %5257 = vrot.lane.b32.xlu1 %v5136_v59, %s9457_s28 }
0x1a3c   : > { %5259 = vrot.lane.b32.xlu0 %v5137_v54, %s9457_s28 }
0x1a3d   : > { %5255 = vrot.lane.b32.xlu1 %v5135_v45, %s9457_s28 }
0x1a40   : > { %5144 = vperm.xlu0 %6323, %v5138_v51  }
0x1a41   : > { %5149 = vperm.xlu1 %6395, %v5139_v32  }
0x1a44   : > { %5154 = vperm.xlu0 %6323, %v5140_v56  }
0x1a45   : > { %5159 = vperm.xlu1 %6395, %v5141_v58  }
0x1a7e   : > { %v5214_v13 = vpop.permute.xlu0 %5213 }
0x1a82   : > { %v5220_v41 = vpop.permute.xlu1 %5219 }
0x1a86   : > { %v5226_v5 = vpop.permute.xlu0 %5225  ;;  %v5218_v53 = vpop.permute.xlu1 %5217 }
0x1a8a   : > { %v5236_v39 = vpop.permute.xlu0 %5235  ;;  %v5234_v46 = vpop.permute.xlu1 %5233 }
0x1a8b   : > { %v5270_v2 = vsel %vm9489_vm5, %v5234_v46, %v5236_v39 }
0x1a8e   : > { %v5216_v31 = vpop.permute.xlu0 %5215  ;;  %v5230_v14 = vpop.permute.xlu1 %5229 }
0x1a8f   : > { %v5263_v60 = vsel %vm9483_vm4, %v5214_v13, %v5216_v31  ;;  %v5264_v25 = vsel %vm9484_vm9, %v5216_v31, %v5218_v53  ;;  %vm9499_vm4 = vcmask 130048  }
0x1a90   : > { %5305 = vmatprep.subr.bf16.mxu1 %v5264_v25 }
0x1a91   : > { %5306 = vmatpush1.bf16.msra.mxu1 %v5263_v60 }
0x1a92   : > { %v5224_v20 = vpop.permute.xlu0 %5223  ;;  %v5222_v17 = vpop.permute.xlu1 %5221 }
0x1a93   : > { %v5265_v23 = vsel %vm9485_vm3, %v5220_v41, %v5222_v17  ;;  %v5266_v57 = vsel %vm9486_vm6, %v5222_v17, %v5224_v20 }
0x1a94   : > { %5307 = vmatprep.subr.bf16.mxu1 %v5266_v57 }
0x1a95   : > { %5308 = vmatpush1.bf16.msra.mxu1 %v5265_v23 }
0x1a96   : > { %v5238_v47 = vpop.permute.xlu0 %5237  ;;  %v5232_v7 = vpop.permute.xlu1 %5231 }
0x1a97   : > { %v5269_v6 = vsel %vm9490_vm10, %v5232_v7, %v5234_v46 }
0x1a9a   : > { %v5228_v8 = vpop.permute.xlu0 %5227 }
0x1a9b   : > { %v5244_v27 = vpop.permute.xlu1 %5243  ;;  %v5267_v49 = vsel %vm9487_vm0, %v5226_v5, %v5228_v8  ;;  %v5268_v63 = vsel %vm9488_vm2, %v5228_v8, %v5230_v14 }
0x1a9c   : > { %5309 = vmatprep.subr.bf16.mxu1 %v5268_v63 }
0x1a9d   : > { %5310 = vmatpush1.bf16.msra.mxu1 %v5267_v49 }
0x1a9e   : > { %5311 = vmatprep.subr.bf16.mxu1 %v5270_v2  ;;  %v5252_v38 = vpop.permute.xlu0 %5251 }
0x1a9f   : > { %v5242_v37 = vpop.permute.xlu1 %5241 }
0x1aa1   : > { %5312 = vmatpush1.bf16.msra.mxu1 %v5269_v6 }
0x1aa2   : > { %v5240_v4 = vpop.permute.xlu0 %5239 }
0x1aa3   : > { %v5246_v1 = vpop.permute.xlu1 %5245  ;;  %v5271_v26 = vsel %vm9491_vm11, %v5238_v47, %v5240_v4  ;;  %v5272_v18 = vsel %vm9492_vm15, %v5240_v4, %v5242_v37 }
0x1aa4   : > { %5313 = vmatprep.subr.bf16.mxu1 %v5272_v18  ;;  %v5273_v15 = vsel %vm9494_vm1, %v5244_v27, %v5246_v1 }
0x1aa5   : > { %5314 = vmatpush1.bf16.msra.mxu1 %v5271_v26 }
0x1aa6   : > { %v5248_v24 = vpop.permute.xlu0 %5247 }
0x1aa7   : > { %v5254_v34 = vpop.permute.xlu1 %5253  ;;  %v5274_v55 = vsel %vm9493_vm13, %v5246_v1, %v5248_v24 }
0x1aa8   : > { %5315 = vmatprep.subr.bf16.mxu1 %v5274_v55  ;;  %v5276_v44 = vsel %vm9495_vm8, %v5252_v38, %v5254_v34 }
0x1aa9   : > { %5316 = vmatpush1.bf16.msra.mxu1 %v5273_v15 }
0x1aaa   : > { %5317 = vmatprep.subr.bf16.mxu1 %v5276_v44  ;;  %v5250_v29 = vpop.permute.xlu0 %5249 }
0x1aab   : > { %v5258_v61 = vpop.permute.xlu1 %5257  ;;  %v5275_v43 = vsel %vm9496_vm12, %v5250_v29, %v5252_v38 }
0x1aad   : > { %5318 = vmatpush1.bf16.msra.mxu1 %v5275_v43 }
0x1aae   : > { %v5260_v33 = vpop.permute.xlu0 %5259 }
0x1aaf   : > { %v5256_v11 = vpop.permute.xlu1 %5255  ;;  %v5278_v62 = vsel %vm9497_vm7, %v5258_v61, %v5260_v33 }
0x1ab0   : > { %v5277_v28 = vsel %vm9498_vm14, %v5256_v11, %v5258_v61  ;;  %5319 = vmatprep.subr.bf16.mxu1 %v5278_v62 }
0x1ab1   : > { %5320 = vmatpush1.bf16.msra.mxu1 %v5277_v28 }
0x1ab4   : > { %5336 = vmatmul.mubr.bf16.vlgmr.msra.gmra.mrb[36].mxu1 %v6593_v30 }
0x1ab5   : > { %5520 = vmatprep.mubr.msk.bf16.mxu1 %vm9499_vm4, %v6596_v48 }
0x1abc   : > { %5346 = vmatmul.mubr.bf16.gmra.mrb[40].mxu1 %v6598_v42 }
0x1abf   : > { %v5145_v22 = vpop.permute.xlu0 %5144 }
0x1ac0   : > { %v5150_v50 = vpop.permute.xlu1 %5149 }
0x1ac3   : > { %v5155_v9 = vpop.permute.xlu0 %5154 }
0x1ac4   : > { %v5160_v12 = vpop.permute.xlu1 %5159 }
0x1b87   : > { %v5337_v16 = vpop.f32.mrb[36].mxu1 }
0x1b88   : > { %v5338_v36 = vadd.f32 %v5337_v16, %v5145_v22  ;;  %v5339_v3 = vpop.f32.mrb[37].mxu1 }
0x1b89   : > { %v5340_v10 = vadd.f32 %v5339_v3, %v5145_v22  ;;  %v5341_v40 = vpop.f32.mrb[38].mxu1 }
0x1b8a   : > { %5356 = vst [vmem:[%s494_s27] sm:$0xff] %v5338_v36  ;;  %v5342_v52 = vadd.f32 %v5341_v40, %v5150_v50  ;;  %v5343_v19 = vpop.f32.mrb[39].mxu1 }
0x1b8b   : > { %5357 = vst [vmem:[%s494_s27 + $0x8] sm:$0xff] %v5340_v10  ;;  %v5344_v0 = vadd.f32 %v5343_v19, %v5150_v50 }
0x1b8c   : > { %5358 = vst [vmem:[%s494_s27 + $0x10] sm:$0xff] %v5342_v52 }
0x1b8d   : > { %5359 = vst [vmem:[%s494_s27 + $0x18] sm:$0xff] %v5344_v0 }
0x1b8f   : > { %v5347_v21 = vpop.f32.mrb[40].mxu1 }
0x1b90   : > { %v5348_v35 = vadd.f32 %v5347_v21, %v5155_v9  ;;  %v5349_v59 = vpop.f32.mrb[41].mxu1 }
0x1b91   : > { %v5350_v54 = vadd.f32 %v5349_v59, %v5155_v9  ;;  %v5351_v45 = vpop.f32.mrb[42].mxu1 }
0x1b92   : > { %5360 = vst [vmem:[%s494_s27 + $0x20] sm:$0xff] %v5348_v35  ;;  %v5352_v51 = vadd.f32 %v5351_v45, %v5160_v12  ;;  %v5353_v32 = vpop.f32.mrb[43].mxu1 }
0x1b93   : > { %5361 = vst [vmem:[%s494_s27 + $0x28] sm:$0xff] %v5350_v54  ;;  %v5354_v56 = vadd.f32 %v5353_v32, %v5160_v12 }
0x1b94   : > { %5362 = vst [vmem:[%s494_s27 + $0x30] sm:$0xff] %v5352_v51 }
0x1b95   : > { %5363 = vst [vmem:[%s494_s27 + $0x38] sm:$0xff] %v5354_v56 }
0x1b96 PF: > { %s25_s18 = sadd.s32 1, %s6619_s18  }
0x1b97   : > { %p22_p4 = scmp.ge.s32.totalorder %s25_s18, 4  }
0x1b99   :  { %24 = sbr.rel (!%p22_p4) target bundleno = 1 (0x1), region = 113 }

</bundles_post_ra>
